<compile_context>
chip_gen: v7x
topology: tpu7x:2x2x1
jax: 0.10.0
libtpu: 0.0.40
codegen_flags: <defaults>
</compile_context>

<pallas_src>
import functools

import numpy as np
import jax
import jax.numpy as jnp
from jax import lax
from jax.experimental import pallas as pl
from jax.experimental.pallas import tpu as pltpu


def _round_up(v, m):
    return (v + m - 1) // m * m


# ---------------------------------------------------------------------------
# Pallas kernel: dilated VALID Conv2d + BN affine (or bias) + activation,
# with optional fused input normalization and fused mask multiply.
# ---------------------------------------------------------------------------
def _conv_bn_act_kernel(*refs, KH, KW, dh, dw, H_BLK, HB, WOUT, act,
                        has_norm, has_mask):
    x_ref, w_ref, scale_ref, shift_ref = refs[:4]
    idx = 4
    nmean_ref = nscale_ref = mix_ref = None
    if has_norm:
        nmean_ref, nscale_ref = refs[idx], refs[idx + 1]
        idx += 2
    if has_mask:
        mix_ref = refs[idx]
        idx += 1
    o_ref = refs[idx]

    Cout = o_ref.shape[1]
    w = w_ref[...]                                        # (Cout, KH*KW*Cin_pad)
    # hoist per-channel affine broadcasts out of the (unrolled) row loop
    scale = jnp.broadcast_to(scale_ref[...], (Cout, WOUT))
    shift = jnp.broadcast_to(shift_ref[...], (Cout, WOUT))

    h0 = 0 if HB == 1 else pl.program_id(1) * H_BLK
    for h in range(H_BLK):
        # Pack the KH*KW dilated taps into one deep contraction:
        # (KH*KW*Cin_pad, WOUT) built from 8-aligned sublane pieces.
        pieces = []
        for kh in range(KH):
            row = h0 + h + kh * dh
            xrow = x_ref[row]                             # (Cin_pad, Win_pad)
            if has_norm:
                xrow = (xrow + nmean_ref[row]) * nscale_ref[row]
            for kw in range(KW):
                pieces.append(xrow[:, kw * dw: kw * dw + WOUT])
        xk = pieces[0] if len(pieces) == 1 else jnp.concatenate(pieces, axis=0)

        y = jnp.dot(w, xk, preferred_element_type=jnp.float32)   # (Cout, WOUT)
        y = y * scale + shift
        if act == "relu":
            y = jnp.maximum(y, 0.0)
        elif act == "sigmoid":
            y = pl.reciprocal(1.0 + jnp.exp(-y), approx=True)
        if has_mask:
            y = y * mix_ref[h]
        o_ref[h] = y.astype(o_ref.dtype)                  # lane-dense full slab


# ---------------------------------------------------------------------------
# Pallas wrapper
# ---------------------------------------------------------------------------
def pallas_conv_bn_act(x, w, scale, shift, *, dilation, act,
                       norm=None, mix=None, crop_to=None):
    """x: (N, H, Cin, Win), w: (Cout, Cin, KH, KW) -> (N, Hout, Cout, crop)."""
    N, H, Cin, Win = x.shape
    Cout, Cin2, KH, KW = w.shape
    assert Cin2 == Cin
    dh, dw = dilation
    Hout = H - dh * (KH - 1)
    wout_valid = Win - dw * (KW - 1)
    WOUT = _round_up(wout_valid, 128)          # lane-dense output width
    win_pad = dw * (KW - 1) + WOUT             # input width the kernel slices
    Cin_pad = _round_up(Cin, 8)                # 8-aligned sublane concat pieces

    pad_c, pad_w = Cin_pad - Cin, win_pad - Win
    if pad_c or pad_w:
        x = jnp.pad(x, ((0, 0), (0, 0), (0, pad_c), (0, pad_w)))
    if pad_c:
        w = jnp.pad(w, ((0, 0), (0, pad_c), (0, 0), (0, 0)))
    # single lane-dense weight matrix, K ordered (kh, kw, cin)
    w2 = jnp.transpose(w, (0, 2, 3, 1)).reshape(Cout, KH * KW * Cin_pad)

    # second "parallel" grid axis over frequency rows (megacore / pipelining)
    HB = 2 if (Hout >= 8 and Hout % 2 == 0) else 1
    H_BLK = Hout // HB

    has_norm = norm is not None
    has_mask = mix is not None

    in_specs = [
        pl.BlockSpec((None, H, Cin_pad, win_pad), lambda n, hb: (n, 0, 0, 0)),
        pl.BlockSpec((Cout, KH * KW * Cin_pad), lambda n, hb: (0, 0)),
        pl.BlockSpec((Cout, 1), lambda n, hb: (0, 0)),
        pl.BlockSpec((Cout, 1), lambda n, hb: (0, 0)),
    ]
    args = [x, w2, scale.reshape(Cout, 1), shift.reshape(Cout, 1)]

    if has_norm:
        nmean, nscale = norm                   # per-frequency scalars -> SMEM
        in_specs += [pl.BlockSpec(memory_space=pltpu.MemorySpace.SMEM),
                     pl.BlockSpec(memory_space=pltpu.MemorySpace.SMEM)]
        args += [nmean.astype(jnp.float32), nscale.astype(jnp.float32)]

    if has_mask:
        Lm = mix.shape[-1]
        assert mix.shape == (N, Hout, Cout, Lm) and Lm <= WOUT
        mixp = jnp.pad(mix, ((0, 0), (0, 0), (0, 0), (0, WOUT - Lm)))
        in_specs += [pl.BlockSpec((None, H_BLK, Cout, WOUT),
                                  lambda n, hb: (n, hb, 0, 0))]
        args += [mixp]

    kern = functools.partial(_conv_bn_act_kernel, KH=KH, KW=KW, dh=dh, dw=dw,
                             H_BLK=H_BLK, HB=HB, WOUT=WOUT, act=act,
                             has_norm=has_norm, has_mask=has_mask)

    out = pl.pallas_call(
        kern,
        out_shape=jax.ShapeDtypeStruct((N, Hout, Cout, WOUT), jnp.float32),
        grid=(N, HB),
        in_specs=in_specs,
        out_specs=pl.BlockSpec((None, H_BLK, Cout, WOUT),
                               lambda n, hb: (n, hb, 0, 0)),
        compiler_params=pltpu.CompilerParams(
            dimension_semantics=("parallel", "parallel")),
    )(*args)

    end = wout_valid if crop_to is None else crop_to
    return out[:, :, :, :end]


# ---------------------------------------------------------------------------
# JAX glue (matches the PyTorch module's forward semantics)
# ---------------------------------------------------------------------------
def overlap_add_slicq(x5):
    """x5: (N, C, F, S, T) -> (N, C, F, S*T//2 + T//2), 50% overlap-add."""
    N, C, F, S, T = x5.shape
    hop = T // 2
    ncoefs = S * T // 2 + hop
    out = jnp.zeros((N, C, F, ncoefs), x5.dtype)
    ptr = 0
    for i in range(S):
        out = out.at[:, :, :, ptr:ptr + T].add(x5[:, :, :, i, :])
        ptr += hop
    return out


def _prep_conv_transpose_nhcw(x, w_t, dilation, stride):
    """Rewrite ConvTranspose2d as a dilated VALID conv in (N, H, C, W) layout.

    w_t: PyTorch ConvTranspose2d weight (Cin, Cout, KH, KW).
    Returns (zero-inserted/padded x, equivalent conv weight (Cout, Cin, KH, KW)).
    """
    Cin, Cout, KH, KW = w_t.shape
    dh, dw = dilation
    sh, sw = stride
    N, H, C, W = x.shape
    if sh > 1 or sw > 1:
        Hd, Wd = (H - 1) * sh + 1, (W - 1) * sw + 1
        xd = jnp.zeros((N, Hd, C, Wd), x.dtype)
        x = xd.at[:, ::sh, :, ::sw].set(x)
    ph, pw = dh * (KH - 1), dw * (KW - 1)
    x = jnp.pad(x, ((0, 0), (ph, ph), (0, 0), (pw, pw)))
    w_eq = jnp.transpose(jnp.flip(w_t, axis=(2, 3)), (1, 0, 2, 3))
    return x, w_eq


def forward_pallas(x5, params):
    """Replicates OpenUnmixTimeBucket.forward (eval mode) with Pallas kernels."""
    N, C, F, S, T = x5.shape
    L = S * T
    x = overlap_add_slicq(x5)                           # (N, C, F, ncoefs)
    x = jnp.transpose(x, (0, 2, 1, 3))                  # (N, F, C, ncoefs)
    mix = jnp.transpose(x5.reshape(N, C, F, L), (0, 2, 1, 3))   # (N, F, C, L)

    layers = params["layers"]
    last = len(layers) - 1
    for li, layer in enumerate(layers):
        if layer["kind"] == "conv":
            xin, w = x, layer["w"]
        else:
            xin, w = _prep_conv_transpose_nhcw(x, layer["w"], layer["dilation"],
                                               layer["stride"])
        x = pallas_conv_bn_act(
            xin, w, layer["scale"], layer["shift"],
            dilation=layer["dilation"], act=layer["act"],
            norm=((params["input_mean"], params["input_scale"])
                  if li == 0 else None),
            mix=mix if li == last else None,
            crop_to=L if li == last else None)
    # (N, F, C, L) -> (N, C, F, S, T)
    return jnp.transpose(x, (0, 2, 1, 3)).reshape(N, C, F, S, T)


# ---------------------------------------------------------------------------
# Pure-JAX reference (NCHW, lax.conv) for correctness checking
# ---------------------------------------------------------------------------
def _prep_conv_transpose_nchw(x, w_t, dilation, stride):
    Cin, Cout, KH, KW = w_t.shape
    dh, dw = dilation
    sh, sw = stride
    N, C, H, W = x.shape
    if sh > 1 or sw > 1:
        Hd, Wd = (H - 1) * sh + 1, (W - 1) * sw + 1
        xd = jnp.zeros((N, C, Hd, Wd), x.dtype)
        x = xd.at[:, :, ::sh, ::sw].set(x)
    ph, pw = dh * (KH - 1), dw * (KW - 1)
    x = jnp.pad(x, ((0, 0), (0, 0), (ph, ph), (pw, pw)))
    w_eq = jnp.transpose(jnp.flip(w_t, axis=(2, 3)), (1, 0, 2, 3))
    return x, w_eq


def ref_conv_bn_act(x, w, scale, shift, dilation, act):
    y = lax.conv_general_dilated(
        x, w, window_strides=(1, 1), padding="VALID",
        rhs_dilation=dilation,
        dimension_numbers=("NCHW", "OIHW", "NCHW"),
        precision=lax.Precision.HIGHEST)
    y = y * scale[None, :, None, None] + shift[None, :, None, None]
    if act == "relu":
        y = jnp.maximum(y, 0.0)
    elif act == "sigmoid":
        y = 1.0 / (1.0 + jnp.exp(-y))
    return y


def forward_reference(x5, params):
    N, C, F, S, T = x5.shape
    mix = x5
    x = overlap_add_slicq(x5)
    mean, scale = params["input_mean"], params["input_scale"]
    x = (x + mean[None, None, :, None]) * scale[None, None, :, None]
    for layer in params["layers"]:
        if layer["kind"] == "conv":
            xin, w = x, layer["w"]
        else:
            xin, w = _prep_conv_transpose_nchw(x, layer["w"], layer["dilation"],
                                               layer["stride"])
        x = ref_conv_bn_act(xin, w, layer["scale"], layer["shift"],
                            layer["dilation"], layer["act"])
    x = x[:, :, :, :S * T]
    x = x * mix.reshape(N, C, F, S * T)
    return x.reshape(N, C, F, S, T)


# ---------------------------------------------------------------------------
# Deterministic parameter construction (mirrors __init__ shapes)
# ---------------------------------------------------------------------------
def build_params(key, nb_channels, nb_f_bins, nb_t_bins):
    channels = [nb_channels, 25, 55]
    if nb_f_bins < 10:
        freq_filter = 1
    elif nb_f_bins < 20:
        freq_filter = 3
    else:
        freq_filter = 5
    time_filter = 7 if nb_t_bins <= 100 else 13
    kh, kw = freq_filter, time_filter
    eps = 1e-5
    keys = jax.random.split(key, 8)

    def bn_affine(c, idx):
        ar = jnp.arange(c, dtype=jnp.float32)
        gamma = 1.0 + 0.05 * jnp.cos(ar + idx)
        beta = 0.02 * jnp.sin(ar - idx)
        rmean = 0.01 * ar
        rvar = 1.0 + 0.1 * (ar % 3)
        s = gamma / jnp.sqrt(rvar + eps)
        return s, beta - rmean * s

    def wt(k, shape, fan_in):
        return jax.random.normal(k, shape, jnp.float32) / np.sqrt(fan_in)

    layers = []
    # encoder: Conv2d(C, 25) + BN + ReLU ; Conv2d(25, 55) + BN + ReLU
    w1 = wt(keys[0], (channels[1], channels[0], kh, kw), channels[0] * kh * kw)
    s1, b1 = bn_affine(channels[1], 1)
    layers.append(dict(kind="conv", w=w1, dilation=(1, 2), stride=(1, 1),
                       scale=s1, shift=b1, act="relu"))
    w2 = wt(keys[1], (channels[2], channels[1], kh, kw), channels[1] * kh * kw)
    s2, b2 = bn_affine(channels[2], 2)
    layers.append(dict(kind="conv", w=w2, dilation=(1, 2), stride=(1, 1),
                       scale=s2, shift=b2, act="relu"))
    # decoder: ConvT(55, 25) + BN + ReLU ; ConvT(25, C) + BN + ReLU
    w3 = wt(keys[2], (channels[2], channels[1], kh, kw), channels[2] * kh * kw)
    s3, b3 = bn_affine(channels[1], 3)
    layers.append(dict(kind="convT", w=w3, dilation=(1, 2), stride=(1, 1),
                       scale=s3, shift=b3, act="relu"))
    w4 = wt(keys[3], (channels[1], channels[0], kh, kw), channels[1] * kh * kw)
    s4, b4 = bn_affine(channels[0], 4)
    layers.append(dict(kind="convT", w=w4, dilation=(1, 2), stride=(1, 1),
                       scale=s4, shift=b4, act="relu"))
    # final: ConvT(C, C, (1,3), stride=(1,2), bias=True) + Sigmoid
    w5 = wt(keys[4], (nb_channels, nb_channels, 1, 3), nb_channels * 3)
    bias5 = 0.01 * jnp.arange(nb_channels, dtype=jnp.float32)
    layers.append(dict(kind="convT", w=w5, dilation=(1, 1), stride=(1, 2),
                       scale=jnp.ones((nb_channels,), jnp.float32),
                       shift=bias5, act="sigmoid"))

    ar_f = jnp.arange(nb_f_bins, dtype=jnp.float32)
    # stored parameters: module adds `input_mean` (= -provided mean) and
    # multiplies by `input_scale` (= 1/provided scale)
    input_mean = 0.05 * jnp.sin(ar_f)
    input_scale = 1.0 + 0.1 * jnp.cos(ar_f)
    return dict(layers=layers, input_mean=input_mean, input_scale=input_scale)


# ---------------------------------------------------------------------------
if __name__ == "__main__":
    # slicq_sample_input shape: (nb_samples, nb_channels, nb_f_bins, nb_slices, nb_t_bins)
    N, C, F, S, T = 2, 2, 8, 4, 16
    key = jax.random.PRNGKey(0)
    kx, kp = jax.random.split(key)
    x5 = jax.random.normal(kx, (N, C, F, S, T), jnp.float32)

    params = build_params(kp, C, F, T)

    pallas_fwd = jax.jit(lambda a: forward_pallas(a, params))
    out = jax.block_until_ready(pallas_fwd(x5))
    assert out.shape == (N, C, F, S, T), out.shape

    ref = jax.block_until_ready(forward_reference(x5, params))
    if not np.allclose(np.asarray(out), np.asarray(ref), atol=2e-3, rtol=2e-3):
        raise SystemExit("Pallas output mismatches JAX reference")

    print("KERNEL_OK")
</pallas_src>

<mosaic_0001>
module attributes {stable_mosaic.version = 11 : i64} {
  func.func @_conv_bn_act_kernel(%arg0: i32, %arg1: i32, %arg2: memref<1x8x8x140xf32, #tpu.memory_space<vmem>>, %arg3: memref<25x56xf32, #tpu.memory_space<vmem>>, %arg4: memref<25x1xf32, #tpu.memory_space<vmem>>, %arg5: memref<25x1xf32, #tpu.memory_space<vmem>>, %arg6: memref<8xf32, #tpu.memory_space<smem>>, %arg7: memref<8xf32, #tpu.memory_space<smem>>, %arg8: memref<1x4x25x128xf32, #tpu.memory_space<vmem>>) attributes {dimension_semantics = [#tpu.dimension_semantics<parallel>, #tpu.dimension_semantics<parallel>], iteration_bounds = array<i64: 2, 2>, scalar_prefetch = 0 : i64, scratch_operands = 0 : i64, tpu.core_type = #tpu.core_type<tc>, window_params = [{transform_indices = @transform_0, window_bounds = array<i64: 1, 8, 8, 140>}, {pipeline_mode = #tpu.pipeline_mode<synchronous>, transform_indices = @transform_1, window_bounds = array<i64: 25, 56>}, {pipeline_mode = #tpu.pipeline_mode<synchronous>, transform_indices = @transform_2, window_bounds = array<i64: 25, 1>}, {pipeline_mode = #tpu.pipeline_mode<synchronous>, transform_indices = @transform_3, window_bounds = array<i64: 25, 1>}, {transform_indices = @transform_4, window_bounds = array<i64: 8>}, {transform_indices = @transform_5, window_bounds = array<i64: 8>}, {transform_indices = @transform_6, window_bounds = array<i64: 1, 4, 25, 128>}]} {
    %c0 = arith.constant 0 : index
    %c0_0 = arith.constant 0 : index
    %0 = vector.load %arg3[%c0, %c0_0] : memref<25x56xf32, #tpu.memory_space<vmem>>, vector<25x56xf32>
    %c0_1 = arith.constant 0 : index
    %c0_2 = arith.constant 0 : index
    %1 = vector.load %arg4[%c0_1, %c0_2] : memref<25x1xf32, #tpu.memory_space<vmem>>, vector<25x1xf32>
    %2 = vector.shape_cast %1 : vector<25x1xf32> to vector<25x1xf32>
    %3 = vector.broadcast %2 : vector<25x1xf32> to vector<25x128xf32>
    %c0_3 = arith.constant 0 : index
    %c0_4 = arith.constant 0 : index
    %4 = vector.load %arg5[%c0_3, %c0_4] : memref<25x1xf32, #tpu.memory_space<vmem>>, vector<25x1xf32>
    %5 = vector.shape_cast %4 : vector<25x1xf32> to vector<25x1xf32>
    %6 = vector.broadcast %5 : vector<25x1xf32> to vector<25x128xf32>
    %c4_i32 = arith.constant 4 : i32
    %7 = arith.muli %arg1, %c4_i32 : i32
    %c0_i32 = arith.constant 0 : i32
    %8 = arith.addi %7, %c0_i32 : i32
    %c0_i32_5 = arith.constant 0 : i32
    %9 = arith.addi %8, %c0_i32_5 : i32
    %c0_6 = arith.constant 0 : index
    %10 = arith.index_cast %9 : i32 to index
    %c0_7 = arith.constant 0 : index
    %c0_8 = arith.constant 0 : index
    %11 = vector.load %arg2[%c0_6, %10, %c0_7, %c0_8] : memref<1x8x8x140xf32, #tpu.memory_space<vmem>>, vector<1x1x8x140xf32>
    %12 = vector.shape_cast %11 : vector<1x1x8x140xf32> to vector<8x140xf32>
    %13 = arith.index_cast %9 : i32 to index
    %14 = memref.load %arg6[%13] : memref<8xf32, #tpu.memory_space<smem>>
    %15 = vector.broadcast %14 : f32 to vector<8x140xf32>
    %16 = arith.addf %12, %15 : vector<8x140xf32>
    %17 = arith.index_cast %9 : i32 to index
    %18 = memref.load %arg7[%17] : memref<8xf32, #tpu.memory_space<smem>>
    %19 = vector.broadcast %18 : f32 to vector<8x140xf32>
    %20 = arith.mulf %16, %19 : vector<8x140xf32>
    %21 = vector.extract_strided_slice %20 {offsets = [0, 0], sizes = [8, 128], strides = [1, 1]} : vector<8x140xf32> to vector<8x128xf32>
    %22 = vector.extract_strided_slice %20 {offsets = [0, 2], sizes = [8, 128], strides = [1, 1]} : vector<8x140xf32> to vector<8x128xf32>
    %23 = vector.extract_strided_slice %20 {offsets = [0, 4], sizes = [8, 128], strides = [1, 1]} : vector<8x140xf32> to vector<8x128xf32>
    %24 = vector.extract_strided_slice %20 {offsets = [0, 6], sizes = [8, 128], strides = [1, 1]} : vector<8x140xf32> to vector<8x128xf32>
    %25 = vector.extract_strided_slice %20 {offsets = [0, 8], sizes = [8, 128], strides = [1, 1]} : vector<8x140xf32> to vector<8x128xf32>
    %26 = vector.extract_strided_slice %20 {offsets = [0, 10], sizes = [8, 128], strides = [1, 1]} : vector<8x140xf32> to vector<8x128xf32>
    %27 = vector.extract_strided_slice %20 {offsets = [0, 12], sizes = [8, 128], strides = [1, 1]} : vector<8x140xf32> to vector<8x128xf32>
    %28 = tpu.concatenate %21, %22, %23, %24, %25, %26, %27 in 0 : vector<8x128xf32>, vector<8x128xf32>, vector<8x128xf32>, vector<8x128xf32>, vector<8x128xf32>, vector<8x128xf32>, vector<8x128xf32> -> vector<56x128xf32>
    %cst = arith.constant dense<0.000000e+00> : vector<25x128xf32>
    %29 = tpu.matmul %0, %28, %cst {dimension_numbers = #tpu.dot_dimension_numbers<[1], [0], [0], [1], [0, 0, 1, 1], [], []>} : vector<25x56xf32>, vector<56x128xf32>, vector<25x128xf32> -> vector<25x128xf32>
    %30 = arith.mulf %29, %3 : vector<25x128xf32>
    %31 = arith.addf %30, %6 : vector<25x128xf32>
    %cst_9 = arith.constant 0.000000e+00 : f32
    %32 = vector.broadcast %cst_9 : f32 to vector<25x128xf32>
    %33 = arith.maximumf %31, %32 : vector<25x128xf32>
    %c0_10 = arith.constant 0 : index
    %c0_11 = arith.constant 0 : index
    %c0_12 = arith.constant 0 : index
    %c0_13 = arith.constant 0 : index
    %34 = vector.load %arg8[%c0_10, %c0_11, %c0_12, %c0_13] : memref<1x4x25x128xf32, #tpu.memory_space<vmem>>, vector<1x1x25x128xf32>
    %35 = vector.shape_cast %34 : vector<1x1x25x128xf32> to vector<25x128xf32>
    %36 = vector.shape_cast %33 : vector<25x128xf32> to vector<1x1x25x128xf32>
    tpu.vector_store %arg8[%c0_10, %c0_11, %c0_12, %c0_13], %36 {strides = array<i32>} : memref<1x4x25x128xf32, #tpu.memory_space<vmem>>, vector<1x1x25x128xf32>,
    %c1_i32 = arith.constant 1 : i32
    %37 = arith.addi %7, %c1_i32 : i32
    %c0_i32_14 = arith.constant 0 : i32
    %38 = arith.addi %37, %c0_i32_14 : i32
    %c0_15 = arith.constant 0 : index
    %39 = arith.index_cast %38 : i32 to index
    %c0_16 = arith.constant 0 : index
    %c0_17 = arith.constant 0 : index
    %40 = vector.load %arg2[%c0_15, %39, %c0_16, %c0_17] : memref<1x8x8x140xf32, #tpu.memory_space<vmem>>, vector<1x1x8x140xf32>
    %41 = vector.shape_cast %40 : vector<1x1x8x140xf32> to vector<8x140xf32>
    %42 = arith.index_cast %38 : i32 to index
    %43 = memref.load %arg6[%42] : memref<8xf32, #tpu.memory_space<smem>>
    %44 = vector.broadcast %43 : f32 to vector<8x140xf32>
    %45 = arith.addf %41, %44 : vector<8x140xf32>
    %46 = arith.index_cast %38 : i32 to index
    %47 = memref.load %arg7[%46] : memref<8xf32, #tpu.memory_space<smem>>
    %48 = vector.broadcast %47 : f32 to vector<8x140xf32>
    %49 = arith.mulf %45, %48 : vector<8x140xf32>
    %50 = vector.extract_strided_slice %49 {offsets = [0, 0], sizes = [8, 128], strides = [1, 1]} : vector<8x140xf32> to vector<8x128xf32>
    %51 = vector.extract_strided_slice %49 {offsets = [0, 2], sizes = [8, 128], strides = [1, 1]} : vector<8x140xf32> to vector<8x128xf32>
    %52 = vector.extract_strided_slice %49 {offsets = [0, 4], sizes = [8, 128], strides = [1, 1]} : vector<8x140xf32> to vector<8x128xf32>
    %53 = vector.extract_strided_slice %49 {offsets = [0, 6], sizes = [8, 128], strides = [1, 1]} : vector<8x140xf32> to vector<8x128xf32>
    %54 = vector.extract_strided_slice %49 {offsets = [0, 8], sizes = [8, 128], strides = [1, 1]} : vector<8x140xf32> to vector<8x128xf32>
    %55 = vector.extract_strided_slice %49 {offsets = [0, 10], sizes = [8, 128], strides = [1, 1]} : vector<8x140xf32> to vector<8x128xf32>
    %56 = vector.extract_strided_slice %49 {offsets = [0, 12], sizes = [8, 128], strides = [1, 1]} : vector<8x140xf32> to vector<8x128xf32>
    %57 = tpu.concatenate %50, %51, %52, %53, %54, %55, %56 in 0 : vector<8x128xf32>, vector<8x128xf32>, vector<8x128xf32>, vector<8x128xf32>, vector<8x128xf32>, vector<8x128xf32>, vector<8x128xf32> -> vector<56x128xf32>
    %cst_18 = arith.constant dense<0.000000e+00> : vector<25x128xf32>
    %58 = tpu.matmul %0, %57, %cst_18 {dimension_numbers = #tpu.dot_dimension_numbers<[1], [0], [0], [1], [0, 0, 1, 1], [], []>} : vector<25x56xf32>, vector<56x128xf32>, vector<25x128xf32> -> vector<25x128xf32>
    %59 = arith.mulf %58, %3 : vector<25x128xf32>
    %60 = arith.addf %59, %6 : vector<25x128xf32>
    %cst_19 = arith.constant 0.000000e+00 : f32
    %61 = vector.broadcast %cst_19 : f32 to vector<25x128xf32>
    %62 = arith.maximumf %60, %61 : vector<25x128xf32>
    %c0_20 = arith.constant 0 : index
    %c1 = arith.constant 1 : index
    %c0_21 = arith.constant 0 : index
    %c0_22 = arith.constant 0 : index
    %63 = vector.load %arg8[%c0_20, %c1, %c0_21, %c0_22] : memref<1x4x25x128xf32, #tpu.memory_space<vmem>>, vector<1x1x25x128xf32>
    %64 = vector.shape_cast %63 : vector<1x1x25x128xf32> to vector<25x128xf32>
    %65 = vector.shape_cast %62 : vector<25x128xf32> to vector<1x1x25x128xf32>
    tpu.vector_store %arg8[%c0_20, %c1, %c0_21, %c0_22], %65 {strides = array<i32>} : memref<1x4x25x128xf32, #tpu.memory_space<vmem>>, vector<1x1x25x128xf32>,
    %c2_i32 = arith.constant 2 : i32
    %66 = arith.addi %7, %c2_i32 : i32
    %c0_i32_23 = arith.constant 0 : i32
    %67 = arith.addi %66, %c0_i32_23 : i32
    %c0_24 = arith.constant 0 : index
    %68 = arith.index_cast %67 : i32 to index
    %c0_25 = arith.constant 0 : index
    %c0_26 = arith.constant 0 : index
    %69 = vector.load %arg2[%c0_24, %68, %c0_25, %c0_26] : memref<1x8x8x140xf32, #tpu.memory_space<vmem>>, vector<1x1x8x140xf32>
    %70 = vector.shape_cast %69 : vector<1x1x8x140xf32> to vector<8x140xf32>
    %71 = arith.index_cast %67 : i32 to index
    %72 = memref.load %arg6[%71] : memref<8xf32, #tpu.memory_space<smem>>
    %73 = vector.broadcast %72 : f32 to vector<8x140xf32>
    %74 = arith.addf %70, %73 : vector<8x140xf32>
    %75 = arith.index_cast %67 : i32 to index
    %76 = memref.load %arg7[%75] : memref<8xf32, #tpu.memory_space<smem>>
    %77 = vector.broadcast %76 : f32 to vector<8x140xf32>
    %78 = arith.mulf %74, %77 : vector<8x140xf32>
    %79 = vector.extract_strided_slice %78 {offsets = [0, 0], sizes = [8, 128], strides = [1, 1]} : vector<8x140xf32> to vector<8x128xf32>
    %80 = vector.extract_strided_slice %78 {offsets = [0, 2], sizes = [8, 128], strides = [1, 1]} : vector<8x140xf32> to vector<8x128xf32>
    %81 = vector.extract_strided_slice %78 {offsets = [0, 4], sizes = [8, 128], strides = [1, 1]} : vector<8x140xf32> to vector<8x128xf32>
    %82 = vector.extract_strided_slice %78 {offsets = [0, 6], sizes = [8, 128], strides = [1, 1]} : vector<8x140xf32> to vector<8x128xf32>
    %83 = vector.extract_strided_slice %78 {offsets = [0, 8], sizes = [8, 128], strides = [1, 1]} : vector<8x140xf32> to vector<8x128xf32>
    %84 = vector.extract_strided_slice %78 {offsets = [0, 10], sizes = [8, 128], strides = [1, 1]} : vector<8x140xf32> to vector<8x128xf32>
    %85 = vector.extract_strided_slice %78 {offsets = [0, 12], sizes = [8, 128], strides = [1, 1]} : vector<8x140xf32> to vector<8x128xf32>
    %86 = tpu.concatenate %79, %80, %81, %82, %83, %84, %85 in 0 : vector<8x128xf32>, vector<8x128xf32>, vector<8x128xf32>, vector<8x128xf32>, vector<8x128xf32>, vector<8x128xf32>, vector<8x128xf32> -> vector<56x128xf32>
    %cst_27 = arith.constant dense<0.000000e+00> : vector<25x128xf32>
    %87 = tpu.matmul %0, %86, %cst_27 {dimension_numbers = #tpu.dot_dimension_numbers<[1], [0], [0], [1], [0, 0, 1, 1], [], []>} : vector<25x56xf32>, vector<56x128xf32>, vector<25x128xf32> -> vector<25x128xf32>
    %88 = arith.mulf %87, %3 : vector<25x128xf32>
    %89 = arith.addf %88, %6 : vector<25x128xf32>
    %cst_28 = arith.constant 0.000000e+00 : f32
    %90 = vector.broadcast %cst_28 : f32 to vector<25x128xf32>
    %91 = arith.maximumf %89, %90 : vector<25x128xf32>
    %c0_29 = arith.constant 0 : index
    %c2 = arith.constant 2 : index
    %c0_30 = arith.constant 0 : index
    %c0_31 = arith.constant 0 : index
    %92 = vector.load %arg8[%c0_29, %c2, %c0_30, %c0_31] : memref<1x4x25x128xf32, #tpu.memory_space<vmem>>, vector<1x1x25x128xf32>
    %93 = vector.shape_cast %92 : vector<1x1x25x128xf32> to vector<25x128xf32>
    %94 = vector.shape_cast %91 : vector<25x128xf32> to vector<1x1x25x128xf32>
    tpu.vector_store %arg8[%c0_29, %c2, %c0_30, %c0_31], %94 {strides = array<i32>} : memref<1x4x25x128xf32, #tpu.memory_space<vmem>>, vector<1x1x25x128xf32>,
    %c3_i32 = arith.constant 3 : i32
    %95 = arith.addi %7, %c3_i32 : i32
    %c0_i32_32 = arith.constant 0 : i32
    %96 = arith.addi %95, %c0_i32_32 : i32
    %c0_33 = arith.constant 0 : index
    %97 = arith.index_cast %96 : i32 to index
    %c0_34 = arith.constant 0 : index
    %c0_35 = arith.constant 0 : index
    %98 = vector.load %arg2[%c0_33, %97, %c0_34, %c0_35] : memref<1x8x8x140xf32, #tpu.memory_space<vmem>>, vector<1x1x8x140xf32>
    %99 = vector.shape_cast %98 : vector<1x1x8x140xf32> to vector<8x140xf32>
    %100 = arith.index_cast %96 : i32 to index
    %101 = memref.load %arg6[%100] : memref<8xf32, #tpu.memory_space<smem>>
    %102 = vector.broadcast %101 : f32 to vector<8x140xf32>
    %103 = arith.addf %99, %102 : vector<8x140xf32>
    %104 = arith.index_cast %96 : i32 to index
    %105 = memref.load %arg7[%104] : memref<8xf32, #tpu.memory_space<smem>>
    %106 = vector.broadcast %105 : f32 to vector<8x140xf32>
    %107 = arith.mulf %103, %106 : vector<8x140xf32>
    %108 = vector.extract_strided_slice %107 {offsets = [0, 0], sizes = [8, 128], strides = [1, 1]} : vector<8x140xf32> to vector<8x128xf32>
    %109 = vector.extract_strided_slice %107 {offsets = [0, 2], sizes = [8, 128], strides = [1, 1]} : vector<8x140xf32> to vector<8x128xf32>
    %110 = vector.extract_strided_slice %107 {offsets = [0, 4], sizes = [8, 128], strides = [1, 1]} : vector<8x140xf32> to vector<8x128xf32>
    %111 = vector.extract_strided_slice %107 {offsets = [0, 6], sizes = [8, 128], strides = [1, 1]} : vector<8x140xf32> to vector<8x128xf32>
    %112 = vector.extract_strided_slice %107 {offsets = [0, 8], sizes = [8, 128], strides = [1, 1]} : vector<8x140xf32> to vector<8x128xf32>
    %113 = vector.extract_strided_slice %107 {offsets = [0, 10], sizes = [8, 128], strides = [1, 1]} : vector<8x140xf32> to vector<8x128xf32>
    %114 = vector.extract_strided_slice %107 {offsets = [0, 12], sizes = [8, 128], strides = [1, 1]} : vector<8x140xf32> to vector<8x128xf32>
    %115 = tpu.concatenate %108, %109, %110, %111, %112, %113, %114 in 0 : vector<8x128xf32>, vector<8x128xf32>, vector<8x128xf32>, vector<8x128xf32>, vector<8x128xf32>, vector<8x128xf32>, vector<8x128xf32> -> vector<56x128xf32>
    %cst_36 = arith.constant dense<0.000000e+00> : vector<25x128xf32>
    %116 = tpu.matmul %0, %115, %cst_36 {dimension_numbers = #tpu.dot_dimension_numbers<[1], [0], [0], [1], [0, 0, 1, 1], [], []>} : vector<25x56xf32>, vector<56x128xf32>, vector<25x128xf32> -> vector<25x128xf32>
    %117 = arith.mulf %116, %3 : vector<25x128xf32>
    %118 = arith.addf %117, %6 : vector<25x128xf32>
    %cst_37 = arith.constant 0.000000e+00 : f32
    %119 = vector.broadcast %cst_37 : f32 to vector<25x128xf32>
    %120 = arith.maximumf %118, %119 : vector<25x128xf32>
    %c0_38 = arith.constant 0 : index
    %c3 = arith.constant 3 : index
    %c0_39 = arith.constant 0 : index
    %c0_40 = arith.constant 0 : index
    %121 = vector.load %arg8[%c0_38, %c3, %c0_39, %c0_40] : memref<1x4x25x128xf32, #tpu.memory_space<vmem>>, vector<1x1x25x128xf32>
    %122 = vector.shape_cast %121 : vector<1x1x25x128xf32> to vector<25x128xf32>
    %123 = vector.shape_cast %120 : vector<25x128xf32> to vector<1x1x25x128xf32>
    tpu.vector_store %arg8[%c0_38, %c3, %c0_39, %c0_40], %123 {strides = array<i32>} : memref<1x4x25x128xf32, #tpu.memory_space<vmem>>, vector<1x1x25x128xf32>,
    return
  }
  func.func @transform_0(%arg0: i32, %arg1: i32) -> (i32, i32, i32, i32) {
    %c0_i32 = arith.constant 0 : i32
    %c0_i32_0 = arith.constant 0 : i32
    %c0_i32_1 = arith.constant 0 : i32
    %c0_i32_2 = arith.constant 0 : i32
    return %arg0, %c0_i32, %c0_i32_0, %c0_i32_1 : i32, i32, i32, i32
  }
  func.func @transform_1(%arg0: i32, %arg1: i32) -> (i32, i32) {
    %c0_i32 = arith.constant 0 : i32
    %c0_i32_0 = arith.constant 0 : i32
    %c0_i32_1 = arith.constant 0 : i32
    return %c0_i32, %c0_i32_0 : i32, i32
  }
  func.func @transform_2(%arg0: i32, %arg1: i32) -> (i32, i32) {
    %c0_i32 = arith.constant 0 : i32
    %c0_i32_0 = arith.constant 0 : i32
    %c0_i32_1 = arith.constant 0 : i32
    return %c0_i32, %c0_i32_0 : i32, i32
  }
  func.func @transform_3(%arg0: i32, %arg1: i32) -> (i32, i32) {
    %c0_i32 = arith.constant 0 : i32
    %c0_i32_0 = arith.constant 0 : i32
    %c0_i32_1 = arith.constant 0 : i32
    return %c0_i32, %c0_i32_0 : i32, i32
  }
  func.func @transform_4(%arg0: i32, %arg1: i32) -> i32 {
    %c0_i32 = arith.constant 0 : i32
    %c0_i32_0 = arith.constant 0 : i32
    return %c0_i32 : i32
  }
  func.func @transform_5(%arg0: i32, %arg1: i32) -> i32 {
    %c0_i32 = arith.constant 0 : i32
    %c0_i32_0 = arith.constant 0 : i32
    return %c0_i32 : i32
  }
  func.func @transform_6(%arg0: i32, %arg1: i32) -> (i32, i32, i32, i32) {
    %c0_i32 = arith.constant 0 : i32
    %c0_i32_0 = arith.constant 0 : i32
    %c0_i32_1 = arith.constant 0 : i32
    return %arg0, %arg1, %c0_i32, %c0_i32_0 : i32, i32, i32, i32
  }
}

module attributes {stable_mosaic.version = 11 : i64} {
  func.func @_conv_bn_act_kernel(%arg0: i32, %arg1: i32, %arg2: memref<1x8x32x140xf32, #tpu.memory_space<vmem>>, %arg3: memref<55x224xf32, #tpu.memory_space<vmem>>, %arg4: memref<55x1xf32, #tpu.memory_space<vmem>>, %arg5: memref<55x1xf32, #tpu.memory_space<vmem>>, %arg6: memref<1x4x55x128xf32, #tpu.memory_space<vmem>>) attributes {dimension_semantics = [#tpu.dimension_semantics<parallel>, #tpu.dimension_semantics<parallel>], iteration_bounds = array<i64: 2, 2>, scalar_prefetch = 0 : i64, scratch_operands = 0 : i64, tpu.core_type = #tpu.core_type<tc>, window_params = [{transform_indices = @transform_0, window_bounds = array<i64: 1, 8, 32, 140>}, {pipeline_mode = #tpu.pipeline_mode<synchronous>, transform_indices = @transform_1, window_bounds = array<i64: 55, 224>}, {pipeline_mode = #tpu.pipeline_mode<synchronous>, transform_indices = @transform_2, window_bounds = array<i64: 55, 1>}, {pipeline_mode = #tpu.pipeline_mode<synchronous>, transform_indices = @transform_3, window_bounds = array<i64: 55, 1>}, {transform_indices = @transform_4, window_bounds = array<i64: 1, 4, 55, 128>}]} {
    %c0 = arith.constant 0 : index
    %c0_0 = arith.constant 0 : index
    %0 = vector.load %arg3[%c0, %c0_0] : memref<55x224xf32, #tpu.memory_space<vmem>>, vector<55x224xf32>
    %c0_1 = arith.constant 0 : index
    %c0_2 = arith.constant 0 : index
    %1 = vector.load %arg4[%c0_1, %c0_2] : memref<55x1xf32, #tpu.memory_space<vmem>>, vector<55x1xf32>
    %2 = vector.shape_cast %1 : vector<55x1xf32> to vector<55x1xf32>
    %3 = vector.broadcast %2 : vector<55x1xf32> to vector<55x128xf32>
    %c0_3 = arith.constant 0 : index
    %c0_4 = arith.constant 0 : index
    %4 = vector.load %arg5[%c0_3, %c0_4] : memref<55x1xf32, #tpu.memory_space<vmem>>, vector<55x1xf32>
    %5 = vector.shape_cast %4 : vector<55x1xf32> to vector<55x1xf32>
    %6 = vector.broadcast %5 : vector<55x1xf32> to vector<55x128xf32>
    %c4_i32 = arith.constant 4 : i32
    %7 = arith.muli %arg1, %c4_i32 : i32
    %c0_i32 = arith.constant 0 : i32
    %8 = arith.addi %7, %c0_i32 : i32
    %c0_i32_5 = arith.constant 0 : i32
    %9 = arith.addi %8, %c0_i32_5 : i32
    %c0_6 = arith.constant 0 : index
    %10 = arith.index_cast %9 : i32 to index
    %c0_7 = arith.constant 0 : index
    %c0_8 = arith.constant 0 : index
    %11 = vector.load %arg2[%c0_6, %10, %c0_7, %c0_8] : memref<1x8x32x140xf32, #tpu.memory_space<vmem>>, vector<1x1x32x140xf32>
    %12 = vector.shape_cast %11 : vector<1x1x32x140xf32> to vector<32x140xf32>
    %13 = vector.extract_strided_slice %12 {offsets = [0, 0], sizes = [32, 128], strides = [1, 1]} : vector<32x140xf32> to vector<32x128xf32>
    %14 = vector.extract_strided_slice %12 {offsets = [0, 2], sizes = [32, 128], strides = [1, 1]} : vector<32x140xf32> to vector<32x128xf32>
    %15 = vector.extract_strided_slice %12 {offsets = [0, 4], sizes = [32, 128], strides = [1, 1]} : vector<32x140xf32> to vector<32x128xf32>
    %16 = vector.extract_strided_slice %12 {offsets = [0, 6], sizes = [32, 128], strides = [1, 1]} : vector<32x140xf32> to vector<32x128xf32>
    %17 = vector.extract_strided_slice %12 {offsets = [0, 8], sizes = [32, 128], strides = [1, 1]} : vector<32x140xf32> to vector<32x128xf32>
    %18 = vector.extract_strided_slice %12 {offsets = [0, 10], sizes = [32, 128], strides = [1, 1]} : vector<32x140xf32> to vector<32x128xf32>
    %19 = vector.extract_strided_slice %12 {offsets = [0, 12], sizes = [32, 128], strides = [1, 1]} : vector<32x140xf32> to vector<32x128xf32>
    %20 = tpu.concatenate %13, %14, %15, %16, %17, %18, %19 in 0 : vector<32x128xf32>, vector<32x128xf32>, vector<32x128xf32>, vector<32x128xf32>, vector<32x128xf32>, vector<32x128xf32>, vector<32x128xf32> -> vector<224x128xf32>
    %cst = arith.constant dense<0.000000e+00> : vector<55x128xf32>
    %21 = tpu.matmul %0, %20, %cst {dimension_numbers = #tpu.dot_dimension_numbers<[1], [0], [0], [1], [0, 0, 1, 1], [], []>} : vector<55x224xf32>, vector<224x128xf32>, vector<55x128xf32> -> vector<55x128xf32>
    %22 = arith.mulf %21, %3 : vector<55x128xf32>
    %23 = arith.addf %22, %6 : vector<55x128xf32>
    %cst_9 = arith.constant 0.000000e+00 : f32
    %24 = vector.broadcast %cst_9 : f32 to vector<55x128xf32>
    %25 = arith.maximumf %23, %24 : vector<55x128xf32>
    %c0_10 = arith.constant 0 : index
    %c0_11 = arith.constant 0 : index
    %c0_12 = arith.constant 0 : index
    %c0_13 = arith.constant 0 : index
    %26 = vector.load %arg6[%c0_10, %c0_11, %c0_12, %c0_13] : memref<1x4x55x128xf32, #tpu.memory_space<vmem>>, vector<1x1x55x128xf32>
    %27 = vector.shape_cast %26 : vector<1x1x55x128xf32> to vector<55x128xf32>
    %28 = vector.shape_cast %25 : vector<55x128xf32> to vector<1x1x55x128xf32>
    tpu.vector_store %arg6[%c0_10, %c0_11, %c0_12, %c0_13], %28 {strides = array<i32>} : memref<1x4x55x128xf32, #tpu.memory_space<vmem>>, vector<1x1x55x128xf32>,
    %c1_i32 = arith.constant 1 : i32
    %29 = arith.addi %7, %c1_i32 : i32
    %c0_i32_14 = arith.constant 0 : i32
    %30 = arith.addi %29, %c0_i32_14 : i32
    %c0_15 = arith.constant 0 : index
    %31 = arith.index_cast %30 : i32 to index
    %c0_16 = arith.constant 0 : index
    %c0_17 = arith.constant 0 : index
    %32 = vector.load %arg2[%c0_15, %31, %c0_16, %c0_17] : memref<1x8x32x140xf32, #tpu.memory_space<vmem>>, vector<1x1x32x140xf32>
    %33 = vector.shape_cast %32 : vector<1x1x32x140xf32> to vector<32x140xf32>
    %34 = vector.extract_strided_slice %33 {offsets = [0, 0], sizes = [32, 128], strides = [1, 1]} : vector<32x140xf32> to vector<32x128xf32>
    %35 = vector.extract_strided_slice %33 {offsets = [0, 2], sizes = [32, 128], strides = [1, 1]} : vector<32x140xf32> to vector<32x128xf32>
    %36 = vector.extract_strided_slice %33 {offsets = [0, 4], sizes = [32, 128], strides = [1, 1]} : vector<32x140xf32> to vector<32x128xf32>
    %37 = vector.extract_strided_slice %33 {offsets = [0, 6], sizes = [32, 128], strides = [1, 1]} : vector<32x140xf32> to vector<32x128xf32>
    %38 = vector.extract_strided_slice %33 {offsets = [0, 8], sizes = [32, 128], strides = [1, 1]} : vector<32x140xf32> to vector<32x128xf32>
    %39 = vector.extract_strided_slice %33 {offsets = [0, 10], sizes = [32, 128], strides = [1, 1]} : vector<32x140xf32> to vector<32x128xf32>
    %40 = vector.extract_strided_slice %33 {offsets = [0, 12], sizes = [32, 128], strides = [1, 1]} : vector<32x140xf32> to vector<32x128xf32>
    %41 = tpu.concatenate %34, %35, %36, %37, %38, %39, %40 in 0 : vector<32x128xf32>, vector<32x128xf32>, vector<32x128xf32>, vector<32x128xf32>, vector<32x128xf32>, vector<32x128xf32>, vector<32x128xf32> -> vector<224x128xf32>
    %cst_18 = arith.constant dense<0.000000e+00> : vector<55x128xf32>
    %42 = tpu.matmul %0, %41, %cst_18 {dimension_numbers = #tpu.dot_dimension_numbers<[1], [0], [0], [1], [0, 0, 1, 1], [], []>} : vector<55x224xf32>, vector<224x128xf32>, vector<55x128xf32> -> vector<55x128xf32>
    %43 = arith.mulf %42, %3 : vector<55x128xf32>
    %44 = arith.addf %43, %6 : vector<55x128xf32>
    %cst_19 = arith.constant 0.000000e+00 : f32
    %45 = vector.broadcast %cst_19 : f32 to vector<55x128xf32>
    %46 = arith.maximumf %44, %45 : vector<55x128xf32>
    %c0_20 = arith.constant 0 : index
    %c1 = arith.constant 1 : index
    %c0_21 = arith.constant 0 : index
    %c0_22 = arith.constant 0 : index
    %47 = vector.load %arg6[%c0_20, %c1, %c0_21, %c0_22] : memref<1x4x55x128xf32, #tpu.memory_space<vmem>>, vector<1x1x55x128xf32>
    %48 = vector.shape_cast %47 : vector<1x1x55x128xf32> to vector<55x128xf32>
    %49 = vector.shape_cast %46 : vector<55x128xf32> to vector<1x1x55x128xf32>
    tpu.vector_store %arg6[%c0_20, %c1, %c0_21, %c0_22], %49 {strides = array<i32>} : memref<1x4x55x128xf32, #tpu.memory_space<vmem>>, vector<1x1x55x128xf32>,
    %c2_i32 = arith.constant 2 : i32
    %50 = arith.addi %7, %c2_i32 : i32
    %c0_i32_23 = arith.constant 0 : i32
    %51 = arith.addi %50, %c0_i32_23 : i32
    %c0_24 = arith.constant 0 : index
    %52 = arith.index_cast %51 : i32 to index
    %c0_25 = arith.constant 0 : index
    %c0_26 = arith.constant 0 : index
    %53 = vector.load %arg2[%c0_24, %52, %c0_25, %c0_26] : memref<1x8x32x140xf32, #tpu.memory_space<vmem>>, vector<1x1x32x140xf32>
    %54 = vector.shape_cast %53 : vector<1x1x32x140xf32> to vector<32x140xf32>
    %55 = vector.extract_strided_slice %54 {offsets = [0, 0], sizes = [32, 128], strides = [1, 1]} : vector<32x140xf32> to vector<32x128xf32>
    %56 = vector.extract_strided_slice %54 {offsets = [0, 2], sizes = [32, 128], strides = [1, 1]} : vector<32x140xf32> to vector<32x128xf32>
    %57 = vector.extract_strided_slice %54 {offsets = [0, 4], sizes = [32, 128], strides = [1, 1]} : vector<32x140xf32> to vector<32x128xf32>
    %58 = vector.extract_strided_slice %54 {offsets = [0, 6], sizes = [32, 128], strides = [1, 1]} : vector<32x140xf32> to vector<32x128xf32>
    %59 = vector.extract_strided_slice %54 {offsets = [0, 8], sizes = [32, 128], strides = [1, 1]} : vector<32x140xf32> to vector<32x128xf32>
    %60 = vector.extract_strided_slice %54 {offsets = [0, 10], sizes = [32, 128], strides = [1, 1]} : vector<32x140xf32> to vector<32x128xf32>
    %61 = vector.extract_strided_slice %54 {offsets = [0, 12], sizes = [32, 128], strides = [1, 1]} : vector<32x140xf32> to vector<32x128xf32>
    %62 = tpu.concatenate %55, %56, %57, %58, %59, %60, %61 in 0 : vector<32x128xf32>, vector<32x128xf32>, vector<32x128xf32>, vector<32x128xf32>, vector<32x128xf32>, vector<32x128xf32>, vector<32x128xf32> -> vector<224x128xf32>
    %cst_27 = arith.constant dense<0.000000e+00> : vector<55x128xf32>
    %63 = tpu.matmul %0, %62, %cst_27 {dimension_numbers = #tpu.dot_dimension_numbers<[1], [0], [0], [1], [0, 0, 1, 1], [], []>} : vector<55x224xf32>, vector<224x128xf32>, vector<55x128xf32> -> vector<55x128xf32>
    %64 = arith.mulf %63, %3 : vector<55x128xf32>
    %65 = arith.addf %64, %6 : vector<55x128xf32>
    %cst_28 = arith.constant 0.000000e+00 : f32
    %66 = vector.broadcast %cst_28 : f32 to vector<55x128xf32>
    %67 = arith.maximumf %65, %66 : vector<55x128xf32>
    %c0_29 = arith.constant 0 : index
    %c2 = arith.constant 2 : index
    %c0_30 = arith.constant 0 : index
    %c0_31 = arith.constant 0 : index
    %68 = vector.load %arg6[%c0_29, %c2, %c0_30, %c0_31] : memref<1x4x55x128xf32, #tpu.memory_space<vmem>>, vector<1x1x55x128xf32>
    %69 = vector.shape_cast %68 : vector<1x1x55x128xf32> to vector<55x128xf32>
    %70 = vector.shape_cast %67 : vector<55x128xf32> to vector<1x1x55x128xf32>
    tpu.vector_store %arg6[%c0_29, %c2, %c0_30, %c0_31], %70 {strides = array<i32>} : memref<1x4x55x128xf32, #tpu.memory_space<vmem>>, vector<1x1x55x128xf32>,
    %c3_i32 = arith.constant 3 : i32
    %71 = arith.addi %7, %c3_i32 : i32
    %c0_i32_32 = arith.constant 0 : i32
    %72 = arith.addi %71, %c0_i32_32 : i32
    %c0_33 = arith.constant 0 : index
    %73 = arith.index_cast %72 : i32 to index
    %c0_34 = arith.constant 0 : index
    %c0_35 = arith.constant 0 : index
    %74 = vector.load %arg2[%c0_33, %73, %c0_34, %c0_35] : memref<1x8x32x140xf32, #tpu.memory_space<vmem>>, vector<1x1x32x140xf32>
    %75 = vector.shape_cast %74 : vector<1x1x32x140xf32> to vector<32x140xf32>
    %76 = vector.extract_strided_slice %75 {offsets = [0, 0], sizes = [32, 128], strides = [1, 1]} : vector<32x140xf32> to vector<32x128xf32>
    %77 = vector.extract_strided_slice %75 {offsets = [0, 2], sizes = [32, 128], strides = [1, 1]} : vector<32x140xf32> to vector<32x128xf32>
    %78 = vector.extract_strided_slice %75 {offsets = [0, 4], sizes = [32, 128], strides = [1, 1]} : vector<32x140xf32> to vector<32x128xf32>
    %79 = vector.extract_strided_slice %75 {offsets = [0, 6], sizes = [32, 128], strides = [1, 1]} : vector<32x140xf32> to vector<32x128xf32>
    %80 = vector.extract_strided_slice %75 {offsets = [0, 8], sizes = [32, 128], strides = [1, 1]} : vector<32x140xf32> to vector<32x128xf32>
    %81 = vector.extract_strided_slice %75 {offsets = [0, 10], sizes = [32, 128], strides = [1, 1]} : vector<32x140xf32> to vector<32x128xf32>
    %82 = vector.extract_strided_slice %75 {offsets = [0, 12], sizes = [32, 128], strides = [1, 1]} : vector<32x140xf32> to vector<32x128xf32>
    %83 = tpu.concatenate %76, %77, %78, %79, %80, %81, %82 in 0 : vector<32x128xf32>, vector<32x128xf32>, vector<32x128xf32>, vector<32x128xf32>, vector<32x128xf32>, vector<32x128xf32>, vector<32x128xf32> -> vector<224x128xf32>
    %cst_36 = arith.constant dense<0.000000e+00> : vector<55x128xf32>
    %84 = tpu.matmul %0, %83, %cst_36 {dimension_numbers = #tpu.dot_dimension_numbers<[1], [0], [0], [1], [0, 0, 1, 1], [], []>} : vector<55x224xf32>, vector<224x128xf32>, vector<55x128xf32> -> vector<55x128xf32>
    %85 = arith.mulf %84, %3 : vector<55x128xf32>
    %86 = arith.addf %85, %6 : vector<55x128xf32>
    %cst_37 = arith.constant 0.000000e+00 : f32
    %87 = vector.broadcast %cst_37 : f32 to vector<55x128xf32>
    %88 = arith.maximumf %86, %87 : vector<55x128xf32>
    %c0_38 = arith.constant 0 : index
    %c3 = arith.constant 3 : index
    %c0_39 = arith.constant 0 : index
    %c0_40 = arith.constant 0 : index
    %89 = vector.load %arg6[%c0_38, %c3, %c0_39, %c0_40] : memref<1x4x55x128xf32, #tpu.memory_space<vmem>>, vector<1x1x55x128xf32>
    %90 = vector.shape_cast %89 : vector<1x1x55x128xf32> to vector<55x128xf32>
    %91 = vector.shape_cast %88 : vector<55x128xf32> to vector<1x1x55x128xf32>
    tpu.vector_store %arg6[%c0_38, %c3, %c0_39, %c0_40], %91 {strides = array<i32>} : memref<1x4x55x128xf32, #tpu.memory_space<vmem>>, vector<1x1x55x128xf32>,
    return
  }
  func.func @transform_0(%arg0: i32, %arg1: i32) -> (i32, i32, i32, i32) {
    %c0_i32 = arith.constant 0 : i32
    %c0_i32_0 = arith.constant 0 : i32
    %c0_i32_1 = arith.constant 0 : i32
    %c0_i32_2 = arith.constant 0 : i32
    return %arg0, %c0_i32, %c0_i32_0, %c0_i32_1 : i32, i32, i32, i32
  }
  func.func @transform_1(%arg0: i32, %arg1: i32) -> (i32, i32) {
    %c0_i32 = arith.constant 0 : i32
    %c0_i32_0 = arith.constant 0 : i32
    %c0_i32_1 = arith.constant 0 : i32
    return %c0_i32, %c0_i32_0 : i32, i32
  }
  func.func @transform_2(%arg0: i32, %arg1: i32) -> (i32, i32) {
    %c0_i32 = arith.constant 0 : i32
    %c0_i32_0 = arith.constant 0 : i32
    %c0_i32_1 = arith.constant 0 : i32
    return %c0_i32, %c0_i32_0 : i32, i32
  }
  func.func @transform_3(%arg0: i32, %arg1: i32) -> (i32, i32) {
    %c0_i32 = arith.constant 0 : i32
    %c0_i32_0 = arith.constant 0 : i32
    %c0_i32_1 = arith.constant 0 : i32
    return %c0_i32, %c0_i32_0 : i32, i32
  }
  func.func @transform_4(%arg0: i32, %arg1: i32) -> (i32, i32, i32, i32) {
    %c0_i32 = arith.constant 0 : i32
    %c0_i32_0 = arith.constant 0 : i32
    %c0_i32_1 = arith.constant 0 : i32
    return %arg0, %arg1, %c0_i32, %c0_i32_0 : i32, i32, i32, i32
  }
}

module attributes {stable_mosaic.version = 11 : i64} {
  func.func @_conv_bn_act_kernel(%arg0: i32, %arg1: i32, %arg2: memref<1x8x56x140xf32, #tpu.memory_space<vmem>>, %arg3: memref<25x392xf32, #tpu.memory_space<vmem>>, %arg4: memref<25x1xf32, #tpu.memory_space<vmem>>, %arg5: memref<25x1xf32, #tpu.memory_space<vmem>>, %arg6: memref<1x4x25x128xf32, #tpu.memory_space<vmem>>) attributes {dimension_semantics = [#tpu.dimension_semantics<parallel>, #tpu.dimension_semantics<parallel>], iteration_bounds = array<i64: 2, 2>, scalar_prefetch = 0 : i64, scratch_operands = 0 : i64, tpu.core_type = #tpu.core_type<tc>, window_params = [{transform_indices = @transform_0, window_bounds = array<i64: 1, 8, 56, 140>}, {pipeline_mode = #tpu.pipeline_mode<synchronous>, transform_indices = @transform_1, window_bounds = array<i64: 25, 392>}, {pipeline_mode = #tpu.pipeline_mode<synchronous>, transform_indices = @transform_2, window_bounds = array<i64: 25, 1>}, {pipeline_mode = #tpu.pipeline_mode<synchronous>, transform_indices = @transform_3, window_bounds = array<i64: 25, 1>}, {transform_indices = @transform_4, window_bounds = array<i64: 1, 4, 25, 128>}]} {
    %c0 = arith.constant 0 : index
    %c0_0 = arith.constant 0 : index
    %0 = vector.load %arg3[%c0, %c0_0] : memref<25x392xf32, #tpu.memory_space<vmem>>, vector<25x392xf32>
    %c0_1 = arith.constant 0 : index
    %c0_2 = arith.constant 0 : index
    %1 = vector.load %arg4[%c0_1, %c0_2] : memref<25x1xf32, #tpu.memory_space<vmem>>, vector<25x1xf32>
    %2 = vector.shape_cast %1 : vector<25x1xf32> to vector<25x1xf32>
    %3 = vector.broadcast %2 : vector<25x1xf32> to vector<25x128xf32>
    %c0_3 = arith.constant 0 : index
    %c0_4 = arith.constant 0 : index
    %4 = vector.load %arg5[%c0_3, %c0_4] : memref<25x1xf32, #tpu.memory_space<vmem>>, vector<25x1xf32>
    %5 = vector.shape_cast %4 : vector<25x1xf32> to vector<25x1xf32>
    %6 = vector.broadcast %5 : vector<25x1xf32> to vector<25x128xf32>
    %c4_i32 = arith.constant 4 : i32
    %7 = arith.muli %arg1, %c4_i32 : i32
    %c0_i32 = arith.constant 0 : i32
    %8 = arith.addi %7, %c0_i32 : i32
    %c0_i32_5 = arith.constant 0 : i32
    %9 = arith.addi %8, %c0_i32_5 : i32
    %c0_6 = arith.constant 0 : index
    %10 = arith.index_cast %9 : i32 to index
    %c0_7 = arith.constant 0 : index
    %c0_8 = arith.constant 0 : index
    %11 = vector.load %arg2[%c0_6, %10, %c0_7, %c0_8] : memref<1x8x56x140xf32, #tpu.memory_space<vmem>>, vector<1x1x56x140xf32>
    %12 = vector.shape_cast %11 : vector<1x1x56x140xf32> to vector<56x140xf32>
    %13 = vector.extract_strided_slice %12 {offsets = [0, 0], sizes = [56, 128], strides = [1, 1]} : vector<56x140xf32> to vector<56x128xf32>
    %14 = vector.extract_strided_slice %12 {offsets = [0, 2], sizes = [56, 128], strides = [1, 1]} : vector<56x140xf32> to vector<56x128xf32>
    %15 = vector.extract_strided_slice %12 {offsets = [0, 4], sizes = [56, 128], strides = [1, 1]} : vector<56x140xf32> to vector<56x128xf32>
    %16 = vector.extract_strided_slice %12 {offsets = [0, 6], sizes = [56, 128], strides = [1, 1]} : vector<56x140xf32> to vector<56x128xf32>
    %17 = vector.extract_strided_slice %12 {offsets = [0, 8], sizes = [56, 128], strides = [1, 1]} : vector<56x140xf32> to vector<56x128xf32>
    %18 = vector.extract_strided_slice %12 {offsets = [0, 10], sizes = [56, 128], strides = [1, 1]} : vector<56x140xf32> to vector<56x128xf32>
    %19 = vector.extract_strided_slice %12 {offsets = [0, 12], sizes = [56, 128], strides = [1, 1]} : vector<56x140xf32> to vector<56x128xf32>
    %20 = tpu.concatenate %13, %14, %15, %16, %17, %18, %19 in 0 : vector<56x128xf32>, vector<56x128xf32>, vector<56x128xf32>, vector<56x128xf32>, vector<56x128xf32>, vector<56x128xf32>, vector<56x128xf32> -> vector<392x128xf32>
    %cst = arith.constant dense<0.000000e+00> : vector<25x128xf32>
    %21 = tpu.matmul %0, %20, %cst {dimension_numbers = #tpu.dot_dimension_numbers<[1], [0], [0], [1], [0, 0, 1, 1], [], []>} : vector<25x392xf32>, vector<392x128xf32>, vector<25x128xf32> -> vector<25x128xf32>
    %22 = arith.mulf %21, %3 : vector<25x128xf32>
    %23 = arith.addf %22, %6 : vector<25x128xf32>
    %cst_9 = arith.constant 0.000000e+00 : f32
    %24 = vector.broadcast %cst_9 : f32 to vector<25x128xf32>
    %25 = arith.maximumf %23, %24 : vector<25x128xf32>
    %c0_10 = arith.constant 0 : index
    %c0_11 = arith.constant 0 : index
    %c0_12 = arith.constant 0 : index
    %c0_13 = arith.constant 0 : index
    %26 = vector.load %arg6[%c0_10, %c0_11, %c0_12, %c0_13] : memref<1x4x25x128xf32, #tpu.memory_space<vmem>>, vector<1x1x25x128xf32>
    %27 = vector.shape_cast %26 : vector<1x1x25x128xf32> to vector<25x128xf32>
    %28 = vector.shape_cast %25 : vector<25x128xf32> to vector<1x1x25x128xf32>
    tpu.vector_store %arg6[%c0_10, %c0_11, %c0_12, %c0_13], %28 {strides = array<i32>} : memref<1x4x25x128xf32, #tpu.memory_space<vmem>>, vector<1x1x25x128xf32>,
    %c1_i32 = arith.constant 1 : i32
    %29 = arith.addi %7, %c1_i32 : i32
    %c0_i32_14 = arith.constant 0 : i32
    %30 = arith.addi %29, %c0_i32_14 : i32
    %c0_15 = arith.constant 0 : index
    %31 = arith.index_cast %30 : i32 to index
    %c0_16 = arith.constant 0 : index
    %c0_17 = arith.constant 0 : index
    %32 = vector.load %arg2[%c0_15, %31, %c0_16, %c0_17] : memref<1x8x56x140xf32, #tpu.memory_space<vmem>>, vector<1x1x56x140xf32>
    %33 = vector.shape_cast %32 : vector<1x1x56x140xf32> to vector<56x140xf32>
    %34 = vector.extract_strided_slice %33 {offsets = [0, 0], sizes = [56, 128], strides = [1, 1]} : vector<56x140xf32> to vector<56x128xf32>
    %35 = vector.extract_strided_slice %33 {offsets = [0, 2], sizes = [56, 128], strides = [1, 1]} : vector<56x140xf32> to vector<56x128xf32>
    %36 = vector.extract_strided_slice %33 {offsets = [0, 4], sizes = [56, 128], strides = [1, 1]} : vector<56x140xf32> to vector<56x128xf32>
    %37 = vector.extract_strided_slice %33 {offsets = [0, 6], sizes = [56, 128], strides = [1, 1]} : vector<56x140xf32> to vector<56x128xf32>
    %38 = vector.extract_strided_slice %33 {offsets = [0, 8], sizes = [56, 128], strides = [1, 1]} : vector<56x140xf32> to vector<56x128xf32>
    %39 = vector.extract_strided_slice %33 {offsets = [0, 10], sizes = [56, 128], strides = [1, 1]} : vector<56x140xf32> to vector<56x128xf32>
    %40 = vector.extract_strided_slice %33 {offsets = [0, 12], sizes = [56, 128], strides = [1, 1]} : vector<56x140xf32> to vector<56x128xf32>
    %41 = tpu.concatenate %34, %35, %36, %37, %38, %39, %40 in 0 : vector<56x128xf32>, vector<56x128xf32>, vector<56x128xf32>, vector<56x128xf32>, vector<56x128xf32>, vector<56x128xf32>, vector<56x128xf32> -> vector<392x128xf32>
    %cst_18 = arith.constant dense<0.000000e+00> : vector<25x128xf32>
    %42 = tpu.matmul %0, %41, %cst_18 {dimension_numbers = #tpu.dot_dimension_numbers<[1], [0], [0], [1], [0, 0, 1, 1], [], []>} : vector<25x392xf32>, vector<392x128xf32>, vector<25x128xf32> -> vector<25x128xf32>
    %43 = arith.mulf %42, %3 : vector<25x128xf32>
    %44 = arith.addf %43, %6 : vector<25x128xf32>
    %cst_19 = arith.constant 0.000000e+00 : f32
    %45 = vector.broadcast %cst_19 : f32 to vector<25x128xf32>
    %46 = arith.maximumf %44, %45 : vector<25x128xf32>
    %c0_20 = arith.constant 0 : index
    %c1 = arith.constant 1 : index
    %c0_21 = arith.constant 0 : index
    %c0_22 = arith.constant 0 : index
    %47 = vector.load %arg6[%c0_20, %c1, %c0_21, %c0_22] : memref<1x4x25x128xf32, #tpu.memory_space<vmem>>, vector<1x1x25x128xf32>
    %48 = vector.shape_cast %47 : vector<1x1x25x128xf32> to vector<25x128xf32>
    %49 = vector.shape_cast %46 : vector<25x128xf32> to vector<1x1x25x128xf32>
    tpu.vector_store %arg6[%c0_20, %c1, %c0_21, %c0_22], %49 {strides = array<i32>} : memref<1x4x25x128xf32, #tpu.memory_space<vmem>>, vector<1x1x25x128xf32>,
    %c2_i32 = arith.constant 2 : i32
    %50 = arith.addi %7, %c2_i32 : i32
    %c0_i32_23 = arith.constant 0 : i32
    %51 = arith.addi %50, %c0_i32_23 : i32
    %c0_24 = arith.constant 0 : index
    %52 = arith.index_cast %51 : i32 to index
    %c0_25 = arith.constant 0 : index
    %c0_26 = arith.constant 0 : index
    %53 = vector.load %arg2[%c0_24, %52, %c0_25, %c0_26] : memref<1x8x56x140xf32, #tpu.memory_space<vmem>>, vector<1x1x56x140xf32>
    %54 = vector.shape_cast %53 : vector<1x1x56x140xf32> to vector<56x140xf32>
    %55 = vector.extract_strided_slice %54 {offsets = [0, 0], sizes = [56, 128], strides = [1, 1]} : vector<56x140xf32> to vector<56x128xf32>
    %56 = vector.extract_strided_slice %54 {offsets = [0, 2], sizes = [56, 128], strides = [1, 1]} : vector<56x140xf32> to vector<56x128xf32>
    %57 = vector.extract_strided_slice %54 {offsets = [0, 4], sizes = [56, 128], strides = [1, 1]} : vector<56x140xf32> to vector<56x128xf32>
    %58 = vector.extract_strided_slice %54 {offsets = [0, 6], sizes = [56, 128], strides = [1, 1]} : vector<56x140xf32> to vector<56x128xf32>
    %59 = vector.extract_strided_slice %54 {offsets = [0, 8], sizes = [56, 128], strides = [1, 1]} : vector<56x140xf32> to vector<56x128xf32>
    %60 = vector.extract_strided_slice %54 {offsets = [0, 10], sizes = [56, 128], strides = [1, 1]} : vector<56x140xf32> to vector<56x128xf32>
    %61 = vector.extract_strided_slice %54 {offsets = [0, 12], sizes = [56, 128], strides = [1, 1]} : vector<56x140xf32> to vector<56x128xf32>
    %62 = tpu.concatenate %55, %56, %57, %58, %59, %60, %61 in 0 : vector<56x128xf32>, vector<56x128xf32>, vector<56x128xf32>, vector<56x128xf32>, vector<56x128xf32>, vector<56x128xf32>, vector<56x128xf32> -> vector<392x128xf32>
    %cst_27 = arith.constant dense<0.000000e+00> : vector<25x128xf32>
    %63 = tpu.matmul %0, %62, %cst_27 {dimension_numbers = #tpu.dot_dimension_numbers<[1], [0], [0], [1], [0, 0, 1, 1], [], []>} : vector<25x392xf32>, vector<392x128xf32>, vector<25x128xf32> -> vector<25x128xf32>
    %64 = arith.mulf %63, %3 : vector<25x128xf32>
    %65 = arith.addf %64, %6 : vector<25x128xf32>
    %cst_28 = arith.constant 0.000000e+00 : f32
    %66 = vector.broadcast %cst_28 : f32 to vector<25x128xf32>
    %67 = arith.maximumf %65, %66 : vector<25x128xf32>
    %c0_29 = arith.constant 0 : index
    %c2 = arith.constant 2 : index
    %c0_30 = arith.constant 0 : index
    %c0_31 = arith.constant 0 : index
    %68 = vector.load %arg6[%c0_29, %c2, %c0_30, %c0_31] : memref<1x4x25x128xf32, #tpu.memory_space<vmem>>, vector<1x1x25x128xf32>
    %69 = vector.shape_cast %68 : vector<1x1x25x128xf32> to vector<25x128xf32>
    %70 = vector.shape_cast %67 : vector<25x128xf32> to vector<1x1x25x128xf32>
    tpu.vector_store %arg6[%c0_29, %c2, %c0_30, %c0_31], %70 {strides = array<i32>} : memref<1x4x25x128xf32, #tpu.memory_space<vmem>>, vector<1x1x25x128xf32>,
    %c3_i32 = arith.constant 3 : i32
    %71 = arith.addi %7, %c3_i32 : i32
    %c0_i32_32 = arith.constant 0 : i32
    %72 = arith.addi %71, %c0_i32_32 : i32
    %c0_33 = arith.constant 0 : index
    %73 = arith.index_cast %72 : i32 to index
    %c0_34 = arith.constant 0 : index
    %c0_35 = arith.constant 0 : index
    %74 = vector.load %arg2[%c0_33, %73, %c0_34, %c0_35] : memref<1x8x56x140xf32, #tpu.memory_space<vmem>>, vector<1x1x56x140xf32>
    %75 = vector.shape_cast %74 : vector<1x1x56x140xf32> to vector<56x140xf32>
    %76 = vector.extract_strided_slice %75 {offsets = [0, 0], sizes = [56, 128], strides = [1, 1]} : vector<56x140xf32> to vector<56x128xf32>
    %77 = vector.extract_strided_slice %75 {offsets = [0, 2], sizes = [56, 128], strides = [1, 1]} : vector<56x140xf32> to vector<56x128xf32>
    %78 = vector.extract_strided_slice %75 {offsets = [0, 4], sizes = [56, 128], strides = [1, 1]} : vector<56x140xf32> to vector<56x128xf32>
    %79 = vector.extract_strided_slice %75 {offsets = [0, 6], sizes = [56, 128], strides = [1, 1]} : vector<56x140xf32> to vector<56x128xf32>
    %80 = vector.extract_strided_slice %75 {offsets = [0, 8], sizes = [56, 128], strides = [1, 1]} : vector<56x140xf32> to vector<56x128xf32>
    %81 = vector.extract_strided_slice %75 {offsets = [0, 10], sizes = [56, 128], strides = [1, 1]} : vector<56x140xf32> to vector<56x128xf32>
    %82 = vector.extract_strided_slice %75 {offsets = [0, 12], sizes = [56, 128], strides = [1, 1]} : vector<56x140xf32> to vector<56x128xf32>
    %83 = tpu.concatenate %76, %77, %78, %79, %80, %81, %82 in 0 : vector<56x128xf32>, vector<56x128xf32>, vector<56x128xf32>, vector<56x128xf32>, vector<56x128xf32>, vector<56x128xf32>, vector<56x128xf32> -> vector<392x128xf32>
    %cst_36 = arith.constant dense<0.000000e+00> : vector<25x128xf32>
    %84 = tpu.matmul %0, %83, %cst_36 {dimension_numbers = #tpu.dot_dimension_numbers<[1], [0], [0], [1], [0, 0, 1, 1], [], []>} : vector<25x392xf32>, vector<392x128xf32>, vector<25x128xf32> -> vector<25x128xf32>
    %85 = arith.mulf %84, %3 : vector<25x128xf32>
    %86 = arith.addf %85, %6 : vector<25x128xf32>
    %cst_37 = arith.constant 0.000000e+00 : f32
    %87 = vector.broadcast %cst_37 : f32 to vector<25x128xf32>
    %88 = arith.maximumf %86, %87 : vector<25x128xf32>
    %c0_38 = arith.constant 0 : index
    %c3 = arith.constant 3 : index
    %c0_39 = arith.constant 0 : index
    %c0_40 = arith.constant 0 : index
    %89 = vector.load %arg6[%c0_38, %c3, %c0_39, %c0_40] : memref<1x4x25x128xf32, #tpu.memory_space<vmem>>, vector<1x1x25x128xf32>
    %90 = vector.shape_cast %89 : vector<1x1x25x128xf32> to vector<25x128xf32>
    %91 = vector.shape_cast %88 : vector<25x128xf32> to vector<1x1x25x128xf32>
    tpu.vector_store %arg6[%c0_38, %c3, %c0_39, %c0_40], %91 {strides = array<i32>} : memref<1x4x25x128xf32, #tpu.memory_space<vmem>>, vector<1x1x25x128xf32>,
    return
  }
  func.func @transform_0(%arg0: i32, %arg1: i32) -> (i32, i32, i32, i32) {
    %c0_i32 = arith.constant 0 : i32
    %c0_i32_0 = arith.constant 0 : i32
    %c0_i32_1 = arith.constant 0 : i32
    %c0_i32_2 = arith.constant 0 : i32
    return %arg0, %c0_i32, %c0_i32_0, %c0_i32_1 : i32, i32, i32, i32
  }
  func.func @transform_1(%arg0: i32, %arg1: i32) -> (i32, i32) {
    %c0_i32 = arith.constant 0 : i32
    %c0_i32_0 = arith.constant 0 : i32
    %c0_i32_1 = arith.constant 0 : i32
    return %c0_i32, %c0_i32_0 : i32, i32
  }
  func.func @transform_2(%arg0: i32, %arg1: i32) -> (i32, i32) {
    %c0_i32 = arith.constant 0 : i32
    %c0_i32_0 = arith.constant 0 : i32
    %c0_i32_1 = arith.constant 0 : i32
    return %c0_i32, %c0_i32_0 : i32, i32
  }
  func.func @transform_3(%arg0: i32, %arg1: i32) -> (i32, i32) {
    %c0_i32 = arith.constant 0 : i32
    %c0_i32_0 = arith.constant 0 : i32
    %c0_i32_1 = arith.constant 0 : i32
    return %c0_i32, %c0_i32_0 : i32, i32
  }
  func.func @transform_4(%arg0: i32, %arg1: i32) -> (i32, i32, i32, i32) {
    %c0_i32 = arith.constant 0 : i32
    %c0_i32_0 = arith.constant 0 : i32
    %c0_i32_1 = arith.constant 0 : i32
    return %arg0, %arg1, %c0_i32, %c0_i32_0 : i32, i32, i32, i32
  }
}

module attributes {stable_mosaic.version = 11 : i64} {
  func.func @_conv_bn_act_kernel(%arg0: i32, %arg1: i32, %arg2: memref<1x8x32x140xf32, #tpu.memory_space<vmem>>, %arg3: memref<2x224xf32, #tpu.memory_space<vmem>>, %arg4: memref<2x1xf32, #tpu.memory_space<vmem>>, %arg5: memref<2x1xf32, #tpu.memory_space<vmem>>, %arg6: memref<1x4x2x128xf32, #tpu.memory_space<vmem>>) attributes {dimension_semantics = [#tpu.dimension_semantics<parallel>, #tpu.dimension_semantics<parallel>], iteration_bounds = array<i64: 2, 2>, scalar_prefetch = 0 : i64, scratch_operands = 0 : i64, tpu.core_type = #tpu.core_type<tc>, window_params = [{transform_indices = @transform_0, window_bounds = array<i64: 1, 8, 32, 140>}, {pipeline_mode = #tpu.pipeline_mode<synchronous>, transform_indices = @transform_1, window_bounds = array<i64: 2, 224>}, {pipeline_mode = #tpu.pipeline_mode<synchronous>, transform_indices = @transform_2, window_bounds = array<i64: 2, 1>}, {pipeline_mode = #tpu.pipeline_mode<synchronous>, transform_indices = @transform_3, window_bounds = array<i64: 2, 1>}, {transform_indices = @transform_4, window_bounds = array<i64: 1, 4, 2, 128>}]} {
    %c0 = arith.constant 0 : index
    %c0_0 = arith.constant 0 : index
    %0 = vector.load %arg3[%c0, %c0_0] : memref<2x224xf32, #tpu.memory_space<vmem>>, vector<2x224xf32>
    %c0_1 = arith.constant 0 : index
    %c0_2 = arith.constant 0 : index
    %1 = vector.load %arg4[%c0_1, %c0_2] : memref<2x1xf32, #tpu.memory_space<vmem>>, vector<2x1xf32>
    %2 = vector.shape_cast %1 : vector<2x1xf32> to vector<2x1xf32>
    %3 = vector.broadcast %2 : vector<2x1xf32> to vector<2x128xf32>
    %c0_3 = arith.constant 0 : index
    %c0_4 = arith.constant 0 : index
    %4 = vector.load %arg5[%c0_3, %c0_4] : memref<2x1xf32, #tpu.memory_space<vmem>>, vector<2x1xf32>
    %5 = vector.shape_cast %4 : vector<2x1xf32> to vector<2x1xf32>
    %6 = vector.broadcast %5 : vector<2x1xf32> to vector<2x128xf32>
    %c4_i32 = arith.constant 4 : i32
    %7 = arith.muli %arg1, %c4_i32 : i32
    %c0_i32 = arith.constant 0 : i32
    %8 = arith.addi %7, %c0_i32 : i32
    %c0_i32_5 = arith.constant 0 : i32
    %9 = arith.addi %8, %c0_i32_5 : i32
    %c0_6 = arith.constant 0 : index
    %10 = arith.index_cast %9 : i32 to index
    %c0_7 = arith.constant 0 : index
    %c0_8 = arith.constant 0 : index
    %11 = vector.load %arg2[%c0_6, %10, %c0_7, %c0_8] : memref<1x8x32x140xf32, #tpu.memory_space<vmem>>, vector<1x1x32x140xf32>
    %12 = vector.shape_cast %11 : vector<1x1x32x140xf32> to vector<32x140xf32>
    %13 = vector.extract_strided_slice %12 {offsets = [0, 0], sizes = [32, 128], strides = [1, 1]} : vector<32x140xf32> to vector<32x128xf32>
    %14 = vector.extract_strided_slice %12 {offsets = [0, 2], sizes = [32, 128], strides = [1, 1]} : vector<32x140xf32> to vector<32x128xf32>
    %15 = vector.extract_strided_slice %12 {offsets = [0, 4], sizes = [32, 128], strides = [1, 1]} : vector<32x140xf32> to vector<32x128xf32>
    %16 = vector.extract_strided_slice %12 {offsets = [0, 6], sizes = [32, 128], strides = [1, 1]} : vector<32x140xf32> to vector<32x128xf32>
    %17 = vector.extract_strided_slice %12 {offsets = [0, 8], sizes = [32, 128], strides = [1, 1]} : vector<32x140xf32> to vector<32x128xf32>
    %18 = vector.extract_strided_slice %12 {offsets = [0, 10], sizes = [32, 128], strides = [1, 1]} : vector<32x140xf32> to vector<32x128xf32>
    %19 = vector.extract_strided_slice %12 {offsets = [0, 12], sizes = [32, 128], strides = [1, 1]} : vector<32x140xf32> to vector<32x128xf32>
    %20 = tpu.concatenate %13, %14, %15, %16, %17, %18, %19 in 0 : vector<32x128xf32>, vector<32x128xf32>, vector<32x128xf32>, vector<32x128xf32>, vector<32x128xf32>, vector<32x128xf32>, vector<32x128xf32> -> vector<224x128xf32>
    %cst = arith.constant dense<0.000000e+00> : vector<2x128xf32>
    %21 = tpu.matmul %0, %20, %cst {dimension_numbers = #tpu.dot_dimension_numbers<[1], [0], [0], [1], [0, 0, 1, 1], [], []>} : vector<2x224xf32>, vector<224x128xf32>, vector<2x128xf32> -> vector<2x128xf32>
    %22 = arith.mulf %21, %3 : vector<2x128xf32>
    %23 = arith.addf %22, %6 : vector<2x128xf32>
    %cst_9 = arith.constant 0.000000e+00 : f32
    %24 = vector.broadcast %cst_9 : f32 to vector<2x128xf32>
    %25 = arith.maximumf %23, %24 : vector<2x128xf32>
    %c0_10 = arith.constant 0 : index
    %c0_11 = arith.constant 0 : index
    %c0_12 = arith.constant 0 : index
    %c0_13 = arith.constant 0 : index
    %26 = vector.load %arg6[%c0_10, %c0_11, %c0_12, %c0_13] : memref<1x4x2x128xf32, #tpu.memory_space<vmem>>, vector<1x1x2x128xf32>
    %27 = vector.shape_cast %26 : vector<1x1x2x128xf32> to vector<2x128xf32>
    %28 = vector.shape_cast %25 : vector<2x128xf32> to vector<1x1x2x128xf32>
    tpu.vector_store %arg6[%c0_10, %c0_11, %c0_12, %c0_13], %28 {strides = array<i32>} : memref<1x4x2x128xf32, #tpu.memory_space<vmem>>, vector<1x1x2x128xf32>,
    %c1_i32 = arith.constant 1 : i32
    %29 = arith.addi %7, %c1_i32 : i32
    %c0_i32_14 = arith.constant 0 : i32
    %30 = arith.addi %29, %c0_i32_14 : i32
    %c0_15 = arith.constant 0 : index
    %31 = arith.index_cast %30 : i32 to index
    %c0_16 = arith.constant 0 : index
    %c0_17 = arith.constant 0 : index
    %32 = vector.load %arg2[%c0_15, %31, %c0_16, %c0_17] : memref<1x8x32x140xf32, #tpu.memory_space<vmem>>, vector<1x1x32x140xf32>
    %33 = vector.shape_cast %32 : vector<1x1x32x140xf32> to vector<32x140xf32>
    %34 = vector.extract_strided_slice %33 {offsets = [0, 0], sizes = [32, 128], strides = [1, 1]} : vector<32x140xf32> to vector<32x128xf32>
    %35 = vector.extract_strided_slice %33 {offsets = [0, 2], sizes = [32, 128], strides = [1, 1]} : vector<32x140xf32> to vector<32x128xf32>
    %36 = vector.extract_strided_slice %33 {offsets = [0, 4], sizes = [32, 128], strides = [1, 1]} : vector<32x140xf32> to vector<32x128xf32>
    %37 = vector.extract_strided_slice %33 {offsets = [0, 6], sizes = [32, 128], strides = [1, 1]} : vector<32x140xf32> to vector<32x128xf32>
    %38 = vector.extract_strided_slice %33 {offsets = [0, 8], sizes = [32, 128], strides = [1, 1]} : vector<32x140xf32> to vector<32x128xf32>
    %39 = vector.extract_strided_slice %33 {offsets = [0, 10], sizes = [32, 128], strides = [1, 1]} : vector<32x140xf32> to vector<32x128xf32>
    %40 = vector.extract_strided_slice %33 {offsets = [0, 12], sizes = [32, 128], strides = [1, 1]} : vector<32x140xf32> to vector<32x128xf32>
    %41 = tpu.concatenate %34, %35, %36, %37, %38, %39, %40 in 0 : vector<32x128xf32>, vector<32x128xf32>, vector<32x128xf32>, vector<32x128xf32>, vector<32x128xf32>, vector<32x128xf32>, vector<32x128xf32> -> vector<224x128xf32>
    %cst_18 = arith.constant dense<0.000000e+00> : vector<2x128xf32>
    %42 = tpu.matmul %0, %41, %cst_18 {dimension_numbers = #tpu.dot_dimension_numbers<[1], [0], [0], [1], [0, 0, 1, 1], [], []>} : vector<2x224xf32>, vector<224x128xf32>, vector<2x128xf32> -> vector<2x128xf32>
    %43 = arith.mulf %42, %3 : vector<2x128xf32>
    %44 = arith.addf %43, %6 : vector<2x128xf32>
    %cst_19 = arith.constant 0.000000e+00 : f32
    %45 = vector.broadcast %cst_19 : f32 to vector<2x128xf32>
    %46 = arith.maximumf %44, %45 : vector<2x128xf32>
    %c0_20 = arith.constant 0 : index
    %c1 = arith.constant 1 : index
    %c0_21 = arith.constant 0 : index
    %c0_22 = arith.constant 0 : index
    %47 = vector.load %arg6[%c0_20, %c1, %c0_21, %c0_22] : memref<1x4x2x128xf32, #tpu.memory_space<vmem>>, vector<1x1x2x128xf32>
    %48 = vector.shape_cast %47 : vector<1x1x2x128xf32> to vector<2x128xf32>
    %49 = vector.shape_cast %46 : vector<2x128xf32> to vector<1x1x2x128xf32>
    tpu.vector_store %arg6[%c0_20, %c1, %c0_21, %c0_22], %49 {strides = array<i32>} : memref<1x4x2x128xf32, #tpu.memory_space<vmem>>, vector<1x1x2x128xf32>,
    %c2_i32 = arith.constant 2 : i32
    %50 = arith.addi %7, %c2_i32 : i32
    %c0_i32_23 = arith.constant 0 : i32
    %51 = arith.addi %50, %c0_i32_23 : i32
    %c0_24 = arith.constant 0 : index
    %52 = arith.index_cast %51 : i32 to index
    %c0_25 = arith.constant 0 : index
    %c0_26 = arith.constant 0 : index
    %53 = vector.load %arg2[%c0_24, %52, %c0_25, %c0_26] : memref<1x8x32x140xf32, #tpu.memory_space<vmem>>, vector<1x1x32x140xf32>
    %54 = vector.shape_cast %53 : vector<1x1x32x140xf32> to vector<32x140xf32>
    %55 = vector.extract_strided_slice %54 {offsets = [0, 0], sizes = [32, 128], strides = [1, 1]} : vector<32x140xf32> to vector<32x128xf32>
    %56 = vector.extract_strided_slice %54 {offsets = [0, 2], sizes = [32, 128], strides = [1, 1]} : vector<32x140xf32> to vector<32x128xf32>
    %57 = vector.extract_strided_slice %54 {offsets = [0, 4], sizes = [32, 128], strides = [1, 1]} : vector<32x140xf32> to vector<32x128xf32>
    %58 = vector.extract_strided_slice %54 {offsets = [0, 6], sizes = [32, 128], strides = [1, 1]} : vector<32x140xf32> to vector<32x128xf32>
    %59 = vector.extract_strided_slice %54 {offsets = [0, 8], sizes = [32, 128], strides = [1, 1]} : vector<32x140xf32> to vector<32x128xf32>
    %60 = vector.extract_strided_slice %54 {offsets = [0, 10], sizes = [32, 128], strides = [1, 1]} : vector<32x140xf32> to vector<32x128xf32>
    %61 = vector.extract_strided_slice %54 {offsets = [0, 12], sizes = [32, 128], strides = [1, 1]} : vector<32x140xf32> to vector<32x128xf32>
    %62 = tpu.concatenate %55, %56, %57, %58, %59, %60, %61 in 0 : vector<32x128xf32>, vector<32x128xf32>, vector<32x128xf32>, vector<32x128xf32>, vector<32x128xf32>, vector<32x128xf32>, vector<32x128xf32> -> vector<224x128xf32>
    %cst_27 = arith.constant dense<0.000000e+00> : vector<2x128xf32>
    %63 = tpu.matmul %0, %62, %cst_27 {dimension_numbers = #tpu.dot_dimension_numbers<[1], [0], [0], [1], [0, 0, 1, 1], [], []>} : vector<2x224xf32>, vector<224x128xf32>, vector<2x128xf32> -> vector<2x128xf32>
    %64 = arith.mulf %63, %3 : vector<2x128xf32>
    %65 = arith.addf %64, %6 : vector<2x128xf32>
    %cst_28 = arith.constant 0.000000e+00 : f32
    %66 = vector.broadcast %cst_28 : f32 to vector<2x128xf32>
    %67 = arith.maximumf %65, %66 : vector<2x128xf32>
    %c0_29 = arith.constant 0 : index
    %c2 = arith.constant 2 : index
    %c0_30 = arith.constant 0 : index
    %c0_31 = arith.constant 0 : index
    %68 = vector.load %arg6[%c0_29, %c2, %c0_30, %c0_31] : memref<1x4x2x128xf32, #tpu.memory_space<vmem>>, vector<1x1x2x128xf32>
    %69 = vector.shape_cast %68 : vector<1x1x2x128xf32> to vector<2x128xf32>
    %70 = vector.shape_cast %67 : vector<2x128xf32> to vector<1x1x2x128xf32>
    tpu.vector_store %arg6[%c0_29, %c2, %c0_30, %c0_31], %70 {strides = array<i32>} : memref<1x4x2x128xf32, #tpu.memory_space<vmem>>, vector<1x1x2x128xf32>,
    %c3_i32 = arith.constant 3 : i32
    %71 = arith.addi %7, %c3_i32 : i32
    %c0_i32_32 = arith.constant 0 : i32
    %72 = arith.addi %71, %c0_i32_32 : i32
    %c0_33 = arith.constant 0 : index
    %73 = arith.index_cast %72 : i32 to index
    %c0_34 = arith.constant 0 : index
    %c0_35 = arith.constant 0 : index
    %74 = vector.load %arg2[%c0_33, %73, %c0_34, %c0_35] : memref<1x8x32x140xf32, #tpu.memory_space<vmem>>, vector<1x1x32x140xf32>
    %75 = vector.shape_cast %74 : vector<1x1x32x140xf32> to vector<32x140xf32>
    %76 = vector.extract_strided_slice %75 {offsets = [0, 0], sizes = [32, 128], strides = [1, 1]} : vector<32x140xf32> to vector<32x128xf32>
    %77 = vector.extract_strided_slice %75 {offsets = [0, 2], sizes = [32, 128], strides = [1, 1]} : vector<32x140xf32> to vector<32x128xf32>
    %78 = vector.extract_strided_slice %75 {offsets = [0, 4], sizes = [32, 128], strides = [1, 1]} : vector<32x140xf32> to vector<32x128xf32>
    %79 = vector.extract_strided_slice %75 {offsets = [0, 6], sizes = [32, 128], strides = [1, 1]} : vector<32x140xf32> to vector<32x128xf32>
    %80 = vector.extract_strided_slice %75 {offsets = [0, 8], sizes = [32, 128], strides = [1, 1]} : vector<32x140xf32> to vector<32x128xf32>
    %81 = vector.extract_strided_slice %75 {offsets = [0, 10], sizes = [32, 128], strides = [1, 1]} : vector<32x140xf32> to vector<32x128xf32>
    %82 = vector.extract_strided_slice %75 {offsets = [0, 12], sizes = [32, 128], strides = [1, 1]} : vector<32x140xf32> to vector<32x128xf32>
    %83 = tpu.concatenate %76, %77, %78, %79, %80, %81, %82 in 0 : vector<32x128xf32>, vector<32x128xf32>, vector<32x128xf32>, vector<32x128xf32>, vector<32x128xf32>, vector<32x128xf32>, vector<32x128xf32> -> vector<224x128xf32>
    %cst_36 = arith.constant dense<0.000000e+00> : vector<2x128xf32>
    %84 = tpu.matmul %0, %83, %cst_36 {dimension_numbers = #tpu.dot_dimension_numbers<[1], [0], [0], [1], [0, 0, 1, 1], [], []>} : vector<2x224xf32>, vector<224x128xf32>, vector<2x128xf32> -> vector<2x128xf32>
    %85 = arith.mulf %84, %3 : vector<2x128xf32>
    %86 = arith.addf %85, %6 : vector<2x128xf32>
    %cst_37 = arith.constant 0.000000e+00 : f32
    %87 = vector.broadcast %cst_37 : f32 to vector<2x128xf32>
    %88 = arith.maximumf %86, %87 : vector<2x128xf32>
    %c0_38 = arith.constant 0 : index
    %c3 = arith.constant 3 : index
    %c0_39 = arith.constant 0 : index
    %c0_40 = arith.constant 0 : index
    %89 = vector.load %arg6[%c0_38, %c3, %c0_39, %c0_40] : memref<1x4x2x128xf32, #tpu.memory_space<vmem>>, vector<1x1x2x128xf32>
    %90 = vector.shape_cast %89 : vector<1x1x2x128xf32> to vector<2x128xf32>
    %91 = vector.shape_cast %88 : vector<2x128xf32> to vector<1x1x2x128xf32>
    tpu.vector_store %arg6[%c0_38, %c3, %c0_39, %c0_40], %91 {strides = array<i32>} : memref<1x4x2x128xf32, #tpu.memory_space<vmem>>, vector<1x1x2x128xf32>,
    return
  }
  func.func @transform_0(%arg0: i32, %arg1: i32) -> (i32, i32, i32, i32) {
    %c0_i32 = arith.constant 0 : i32
    %c0_i32_0 = arith.constant 0 : i32
    %c0_i32_1 = arith.constant 0 : i32
    %c0_i32_2 = arith.constant 0 : i32
    return %arg0, %c0_i32, %c0_i32_0, %c0_i32_1 : i32, i32, i32, i32
  }
  func.func @transform_1(%arg0: i32, %arg1: i32) -> (i32, i32) {
    %c0_i32 = arith.constant 0 : i32
    %c0_i32_0 = arith.constant 0 : i32
    %c0_i32_1 = arith.constant 0 : i32
    return %c0_i32, %c0_i32_0 : i32, i32
  }
  func.func @transform_2(%arg0: i32, %arg1: i32) -> (i32, i32) {
    %c0_i32 = arith.constant 0 : i32
    %c0_i32_0 = arith.constant 0 : i32
    %c0_i32_1 = arith.constant 0 : i32
    return %c0_i32, %c0_i32_0 : i32, i32
  }
  func.func @transform_3(%arg0: i32, %arg1: i32) -> (i32, i32) {
    %c0_i32 = arith.constant 0 : i32
    %c0_i32_0 = arith.constant 0 : i32
    %c0_i32_1 = arith.constant 0 : i32
    return %c0_i32, %c0_i32_0 : i32, i32
  }
  func.func @transform_4(%arg0: i32, %arg1: i32) -> (i32, i32, i32, i32) {
    %c0_i32 = arith.constant 0 : i32
    %c0_i32_0 = arith.constant 0 : i32
    %c0_i32_1 = arith.constant 0 : i32
    return %arg0, %arg1, %c0_i32, %c0_i32_0 : i32, i32, i32, i32
  }
}

module attributes {stable_mosaic.version = 11 : i64} {
  func.func @_conv_bn_act_kernel(%arg0: i32, %arg1: i32, %arg2: memref<1x8x8x130xf32, #tpu.memory_space<vmem>>, %arg3: memref<2x24xf32, #tpu.memory_space<vmem>>, %arg4: memref<2x1xf32, #tpu.memory_space<vmem>>, %arg5: memref<2x1xf32, #tpu.memory_space<vmem>>, %arg6: memref<1x4x2x128xf32, #tpu.memory_space<vmem>>, %arg7: memref<1x4x2x128xf32, #tpu.memory_space<vmem>>) attributes {dimension_semantics = [#tpu.dimension_semantics<parallel>, #tpu.dimension_semantics<parallel>], iteration_bounds = array<i64: 2, 2>, scalar_prefetch = 0 : i64, scratch_operands = 0 : i64, tpu.core_type = #tpu.core_type<tc>, window_params = [{transform_indices = @transform_0, window_bounds = array<i64: 1, 8, 8, 130>}, {pipeline_mode = #tpu.pipeline_mode<synchronous>, transform_indices = @transform_1, window_bounds = array<i64: 2, 24>}, {pipeline_mode = #tpu.pipeline_mode<synchronous>, transform_indices = @transform_2, window_bounds = array<i64: 2, 1>}, {pipeline_mode = #tpu.pipeline_mode<synchronous>, transform_indices = @transform_3, window_bounds = array<i64: 2, 1>}, {transform_indices = @transform_4, window_bounds = array<i64: 1, 4, 2, 128>}, {transform_indices = @transform_5, window_bounds = array<i64: 1, 4, 2, 128>}]} {
    %c0 = arith.constant 0 : index
    %c0_0 = arith.constant 0 : index
    %0 = vector.load %arg3[%c0, %c0_0] : memref<2x24xf32, #tpu.memory_space<vmem>>, vector<2x24xf32>
    %c0_1 = arith.constant 0 : index
    %c0_2 = arith.constant 0 : index
    %1 = vector.load %arg4[%c0_1, %c0_2] : memref<2x1xf32, #tpu.memory_space<vmem>>, vector<2x1xf32>
    %2 = vector.shape_cast %1 : vector<2x1xf32> to vector<2x1xf32>
    %3 = vector.broadcast %2 : vector<2x1xf32> to vector<2x128xf32>
    %c0_3 = arith.constant 0 : index
    %c0_4 = arith.constant 0 : index
    %4 = vector.load %arg5[%c0_3, %c0_4] : memref<2x1xf32, #tpu.memory_space<vmem>>, vector<2x1xf32>
    %5 = vector.shape_cast %4 : vector<2x1xf32> to vector<2x1xf32>
    %6 = vector.broadcast %5 : vector<2x1xf32> to vector<2x128xf32>
    %c4_i32 = arith.constant 4 : i32
    %7 = arith.muli %arg1, %c4_i32 : i32
    %c0_i32 = arith.constant 0 : i32
    %8 = arith.addi %7, %c0_i32 : i32
    %c0_i32_5 = arith.constant 0 : i32
    %9 = arith.addi %8, %c0_i32_5 : i32
    %c0_6 = arith.constant 0 : index
    %10 = arith.index_cast %9 : i32 to index
    %c0_7 = arith.constant 0 : index
    %c0_8 = arith.constant 0 : index
    %11 = vector.load %arg2[%c0_6, %10, %c0_7, %c0_8] : memref<1x8x8x130xf32, #tpu.memory_space<vmem>>, vector<1x1x8x130xf32>
    %12 = vector.shape_cast %11 : vector<1x1x8x130xf32> to vector<8x130xf32>
    %13 = vector.extract_strided_slice %12 {offsets = [0, 0], sizes = [8, 128], strides = [1, 1]} : vector<8x130xf32> to vector<8x128xf32>
    %14 = vector.extract_strided_slice %12 {offsets = [0, 1], sizes = [8, 128], strides = [1, 1]} : vector<8x130xf32> to vector<8x128xf32>
    %15 = vector.extract_strided_slice %12 {offsets = [0, 2], sizes = [8, 128], strides = [1, 1]} : vector<8x130xf32> to vector<8x128xf32>
    %16 = tpu.concatenate %13, %14, %15 in 0 : vector<8x128xf32>, vector<8x128xf32>, vector<8x128xf32> -> vector<24x128xf32>
    %cst = arith.constant dense<0.000000e+00> : vector<2x128xf32>
    %17 = tpu.matmul %0, %16, %cst {dimension_numbers = #tpu.dot_dimension_numbers<[1], [0], [0], [1], [0, 0, 1, 1], [], []>} : vector<2x24xf32>, vector<24x128xf32>, vector<2x128xf32> -> vector<2x128xf32>
    %18 = arith.mulf %17, %3 : vector<2x128xf32>
    %19 = arith.addf %18, %6 : vector<2x128xf32>
    %cst_9 = arith.constant 0.000000e+00 : f32
    %20 = vector.broadcast %cst_9 : f32 to vector<2x128xf32>
    %21 = arith.subf %20, %19 : vector<2x128xf32>
    %22 = math.exp %21 : vector<2x128xf32>
    %cst_10 = arith.constant 1.000000e+00 : f32
    %23 = vector.broadcast %cst_10 : f32 to vector<2x128xf32>
    %24 = arith.addf %23, %22 : vector<2x128xf32>
    %25 = tpu.reciprocal %24 {approx = true} : vector<2x128xf32> -> vector<2x128xf32>
    %c0_11 = arith.constant 0 : index
    %c0_12 = arith.constant 0 : index
    %c0_13 = arith.constant 0 : index
    %c0_14 = arith.constant 0 : index
    %26 = vector.load %arg6[%c0_11, %c0_12, %c0_13, %c0_14] : memref<1x4x2x128xf32, #tpu.memory_space<vmem>>, vector<1x1x2x128xf32>
    %27 = vector.shape_cast %26 : vector<1x1x2x128xf32> to vector<2x128xf32>
    %28 = arith.mulf %25, %27 : vector<2x128xf32>
    %c0_15 = arith.constant 0 : index
    %c0_16 = arith.constant 0 : index
    %c0_17 = arith.constant 0 : index
    %c0_18 = arith.constant 0 : index
    %29 = vector.load %arg7[%c0_15, %c0_16, %c0_17, %c0_18] : memref<1x4x2x128xf32, #tpu.memory_space<vmem>>, vector<1x1x2x128xf32>
    %30 = vector.shape_cast %29 : vector<1x1x2x128xf32> to vector<2x128xf32>
    %31 = vector.shape_cast %28 : vector<2x128xf32> to vector<1x1x2x128xf32>
    tpu.vector_store %arg7[%c0_15, %c0_16, %c0_17, %c0_18], %31 {strides = array<i32>} : memref<1x4x2x128xf32, #tpu.memory_space<vmem>>, vector<1x1x2x128xf32>,
    %c1_i32 = arith.constant 1 : i32
    %32 = arith.addi %7, %c1_i32 : i32
    %c0_i32_19 = arith.constant 0 : i32
    %33 = arith.addi %32, %c0_i32_19 : i32
    %c0_20 = arith.constant 0 : index
    %34 = arith.index_cast %33 : i32 to index
    %c0_21 = arith.constant 0 : index
    %c0_22 = arith.constant 0 : index
    %35 = vector.load %arg2[%c0_20, %34, %c0_21, %c0_22] : memref<1x8x8x130xf32, #tpu.memory_space<vmem>>, vector<1x1x8x130xf32>
    %36 = vector.shape_cast %35 : vector<1x1x8x130xf32> to vector<8x130xf32>
    %37 = vector.extract_strided_slice %36 {offsets = [0, 0], sizes = [8, 128], strides = [1, 1]} : vector<8x130xf32> to vector<8x128xf32>
    %38 = vector.extract_strided_slice %36 {offsets = [0, 1], sizes = [8, 128], strides = [1, 1]} : vector<8x130xf32> to vector<8x128xf32>
    %39 = vector.extract_strided_slice %36 {offsets = [0, 2], sizes = [8, 128], strides = [1, 1]} : vector<8x130xf32> to vector<8x128xf32>
    %40 = tpu.concatenate %37, %38, %39 in 0 : vector<8x128xf32>, vector<8x128xf32>, vector<8x128xf32> -> vector<24x128xf32>
    %cst_23 = arith.constant dense<0.000000e+00> : vector<2x128xf32>
    %41 = tpu.matmul %0, %40, %cst_23 {dimension_numbers = #tpu.dot_dimension_numbers<[1], [0], [0], [1], [0, 0, 1, 1], [], []>} : vector<2x24xf32>, vector<24x128xf32>, vector<2x128xf32> -> vector<2x128xf32>
    %42 = arith.mulf %41, %3 : vector<2x128xf32>
    %43 = arith.addf %42, %6 : vector<2x128xf32>
    %cst_24 = arith.constant 0.000000e+00 : f32
    %44 = vector.broadcast %cst_24 : f32 to vector<2x128xf32>
    %45 = arith.subf %44, %43 : vector<2x128xf32>
    %46 = math.exp %45 : vector<2x128xf32>
    %cst_25 = arith.constant 1.000000e+00 : f32
    %47 = vector.broadcast %cst_25 : f32 to vector<2x128xf32>
    %48 = arith.addf %47, %46 : vector<2x128xf32>
    %49 = tpu.reciprocal %48 {approx = true} : vector<2x128xf32> -> vector<2x128xf32>
    %c0_26 = arith.constant 0 : index
    %c1 = arith.constant 1 : index
    %c0_27 = arith.constant 0 : index
    %c0_28 = arith.constant 0 : index
    %50 = vector.load %arg6[%c0_26, %c1, %c0_27, %c0_28] : memref<1x4x2x128xf32, #tpu.memory_space<vmem>>, vector<1x1x2x128xf32>
    %51 = vector.shape_cast %50 : vector<1x1x2x128xf32> to vector<2x128xf32>
    %52 = arith.mulf %49, %51 : vector<2x128xf32>
    %c0_29 = arith.constant 0 : index
    %c1_30 = arith.constant 1 : index
    %c0_31 = arith.constant 0 : index
    %c0_32 = arith.constant 0 : index
    %53 = vector.load %arg7[%c0_29, %c1_30, %c0_31, %c0_32] : memref<1x4x2x128xf32, #tpu.memory_space<vmem>>, vector<1x1x2x128xf32>
    %54 = vector.shape_cast %53 : vector<1x1x2x128xf32> to vector<2x128xf32>
    %55 = vector.shape_cast %52 : vector<2x128xf32> to vector<1x1x2x128xf32>
    tpu.vector_store %arg7[%c0_29, %c1_30, %c0_31, %c0_32], %55 {strides = array<i32>} : memref<1x4x2x128xf32, #tpu.memory_space<vmem>>, vector<1x1x2x128xf32>,
    %c2_i32 = arith.constant 2 : i32
    %56 = arith.addi %7, %c2_i32 : i32
    %c0_i32_33 = arith.constant 0 : i32
    %57 = arith.addi %56, %c0_i32_33 : i32
    %c0_34 = arith.constant 0 : index
    %58 = arith.index_cast %57 : i32 to index
    %c0_35 = arith.constant 0 : index
    %c0_36 = arith.constant 0 : index
    %59 = vector.load %arg2[%c0_34, %58, %c0_35, %c0_36] : memref<1x8x8x130xf32, #tpu.memory_space<vmem>>, vector<1x1x8x130xf32>
    %60 = vector.shape_cast %59 : vector<1x1x8x130xf32> to vector<8x130xf32>
    %61 = vector.extract_strided_slice %60 {offsets = [0, 0], sizes = [8, 128], strides = [1, 1]} : vector<8x130xf32> to vector<8x128xf32>
    %62 = vector.extract_strided_slice %60 {offsets = [0, 1], sizes = [8, 128], strides = [1, 1]} : vector<8x130xf32> to vector<8x128xf32>
    %63 = vector.extract_strided_slice %60 {offsets = [0, 2], sizes = [8, 128], strides = [1, 1]} : vector<8x130xf32> to vector<8x128xf32>
    %64 = tpu.concatenate %61, %62, %63 in 0 : vector<8x128xf32>, vector<8x128xf32>, vector<8x128xf32> -> vector<24x128xf32>
    %cst_37 = arith.constant dense<0.000000e+00> : vector<2x128xf32>
    %65 = tpu.matmul %0, %64, %cst_37 {dimension_numbers = #tpu.dot_dimension_numbers<[1], [0], [0], [1], [0, 0, 1, 1], [], []>} : vector<2x24xf32>, vector<24x128xf32>, vector<2x128xf32> -> vector<2x128xf32>
    %66 = arith.mulf %65, %3 : vector<2x128xf32>
    %67 = arith.addf %66, %6 : vector<2x128xf32>
    %cst_38 = arith.constant 0.000000e+00 : f32
    %68 = vector.broadcast %cst_38 : f32 to vector<2x128xf32>
    %69 = arith.subf %68, %67 : vector<2x128xf32>
    %70 = math.exp %69 : vector<2x128xf32>
    %cst_39 = arith.constant 1.000000e+00 : f32
    %71 = vector.broadcast %cst_39 : f32 to vector<2x128xf32>
    %72 = arith.addf %71, %70 : vector<2x128xf32>
    %73 = tpu.reciprocal %72 {approx = true} : vector<2x128xf32> -> vector<2x128xf32>
    %c0_40 = arith.constant 0 : index
    %c2 = arith.constant 2 : index
    %c0_41 = arith.constant 0 : index
    %c0_42 = arith.constant 0 : index
    %74 = vector.load %arg6[%c0_40, %c2, %c0_41, %c0_42] : memref<1x4x2x128xf32, #tpu.memory_space<vmem>>, vector<1x1x2x128xf32>
    %75 = vector.shape_cast %74 : vector<1x1x2x128xf32> to vector<2x128xf32>
    %76 = arith.mulf %73, %75 : vector<2x128xf32>
    %c0_43 = arith.constant 0 : index
    %c2_44 = arith.constant 2 : index
    %c0_45 = arith.constant 0 : index
    %c0_46 = arith.constant 0 : index
    %77 = vector.load %arg7[%c0_43, %c2_44, %c0_45, %c0_46] : memref<1x4x2x128xf32, #tpu.memory_space<vmem>>, vector<1x1x2x128xf32>
    %78 = vector.shape_cast %77 : vector<1x1x2x128xf32> to vector<2x128xf32>
    %79 = vector.shape_cast %76 : vector<2x128xf32> to vector<1x1x2x128xf32>
    tpu.vector_store %arg7[%c0_43, %c2_44, %c0_45, %c0_46], %79 {strides = array<i32>} : memref<1x4x2x128xf32, #tpu.memory_space<vmem>>, vector<1x1x2x128xf32>,
    %c3_i32 = arith.constant 3 : i32
    %80 = arith.addi %7, %c3_i32 : i32
    %c0_i32_47 = arith.constant 0 : i32
    %81 = arith.addi %80, %c0_i32_47 : i32
    %c0_48 = arith.constant 0 : index
    %82 = arith.index_cast %81 : i32 to index
    %c0_49 = arith.constant 0 : index
    %c0_50 = arith.constant 0 : index
    %83 = vector.load %arg2[%c0_48, %82, %c0_49, %c0_50] : memref<1x8x8x130xf32, #tpu.memory_space<vmem>>, vector<1x1x8x130xf32>
    %84 = vector.shape_cast %83 : vector<1x1x8x130xf32> to vector<8x130xf32>
    %85 = vector.extract_strided_slice %84 {offsets = [0, 0], sizes = [8, 128], strides = [1, 1]} : vector<8x130xf32> to vector<8x128xf32>
    %86 = vector.extract_strided_slice %84 {offsets = [0, 1], sizes = [8, 128], strides = [1, 1]} : vector<8x130xf32> to vector<8x128xf32>
    %87 = vector.extract_strided_slice %84 {offsets = [0, 2], sizes = [8, 128], strides = [1, 1]} : vector<8x130xf32> to vector<8x128xf32>
    %88 = tpu.concatenate %85, %86, %87 in 0 : vector<8x128xf32>, vector<8x128xf32>, vector<8x128xf32> -> vector<24x128xf32>
    %cst_51 = arith.constant dense<0.000000e+00> : vector<2x128xf32>
    %89 = tpu.matmul %0, %88, %cst_51 {dimension_numbers = #tpu.dot_dimension_numbers<[1], [0], [0], [1], [0, 0, 1, 1], [], []>} : vector<2x24xf32>, vector<24x128xf32>, vector<2x128xf32> -> vector<2x128xf32>
    %90 = arith.mulf %89, %3 : vector<2x128xf32>
    %91 = arith.addf %90, %6 : vector<2x128xf32>
    %cst_52 = arith.constant 0.000000e+00 : f32
    %92 = vector.broadcast %cst_52 : f32 to vector<2x128xf32>
    %93 = arith.subf %92, %91 : vector<2x128xf32>
    %94 = math.exp %93 : vector<2x128xf32>
    %cst_53 = arith.constant 1.000000e+00 : f32
    %95 = vector.broadcast %cst_53 : f32 to vector<2x128xf32>
    %96 = arith.addf %95, %94 : vector<2x128xf32>
    %97 = tpu.reciprocal %96 {approx = true} : vector<2x128xf32> -> vector<2x128xf32>
    %c0_54 = arith.constant 0 : index
    %c3 = arith.constant 3 : index
    %c0_55 = arith.constant 0 : index
    %c0_56 = arith.constant 0 : index
    %98 = vector.load %arg6[%c0_54, %c3, %c0_55, %c0_56] : memref<1x4x2x128xf32, #tpu.memory_space<vmem>>, vector<1x1x2x128xf32>
    %99 = vector.shape_cast %98 : vector<1x1x2x128xf32> to vector<2x128xf32>
    %100 = arith.mulf %97, %99 : vector<2x128xf32>
    %c0_57 = arith.constant 0 : index
    %c3_58 = arith.constant 3 : index
    %c0_59 = arith.constant 0 : index
    %c0_60 = arith.constant 0 : index
    %101 = vector.load %arg7[%c0_57, %c3_58, %c0_59, %c0_60] : memref<1x4x2x128xf32, #tpu.memory_space<vmem>>, vector<1x1x2x128xf32>
    %102 = vector.shape_cast %101 : vector<1x1x2x128xf32> to vector<2x128xf32>
    %103 = vector.shape_cast %100 : vector<2x128xf32> to vector<1x1x2x128xf32>
    tpu.vector_store %arg7[%c0_57, %c3_58, %c0_59, %c0_60], %103 {strides = array<i32>} : memref<1x4x2x128xf32, #tpu.memory_space<vmem>>, vector<1x1x2x128xf32>,
    return
  }
  func.func @transform_0(%arg0: i32, %arg1: i32) -> (i32, i32, i32, i32) {
    %c0_i32 = arith.constant 0 : i32
    %c0_i32_0 = arith.constant 0 : i32
    %c0_i32_1 = arith.constant 0 : i32
    %c0_i32_2 = arith.constant 0 : i32
    return %arg0, %c0_i32, %c0_i32_0, %c0_i32_1 : i32, i32, i32, i32
  }
  func.func @transform_1(%arg0: i32, %arg1: i32) -> (i32, i32) {
    %c0_i32 = arith.constant 0 : i32
    %c0_i32_0 = arith.constant 0 : i32
    %c0_i32_1 = arith.constant 0 : i32
    return %c0_i32, %c0_i32_0 : i32, i32
  }
  func.func @transform_2(%arg0: i32, %arg1: i32) -> (i32, i32) {
    %c0_i32 = arith.constant 0 : i32
    %c0_i32_0 = arith.constant 0 : i32
    %c0_i32_1 = arith.constant 0 : i32
    return %c0_i32, %c0_i32_0 : i32, i32
  }
  func.func @transform_3(%arg0: i32, %arg1: i32) -> (i32, i32) {
    %c0_i32 = arith.constant 0 : i32
    %c0_i32_0 = arith.constant 0 : i32
    %c0_i32_1 = arith.constant 0 : i32
    return %c0_i32, %c0_i32_0 : i32, i32
  }
  func.func @transform_4(%arg0: i32, %arg1: i32) -> (i32, i32, i32, i32) {
    %c0_i32 = arith.constant 0 : i32
    %c0_i32_0 = arith.constant 0 : i32
    %c0_i32_1 = arith.constant 0 : i32
    return %arg0, %arg1, %c0_i32, %c0_i32_0 : i32, i32, i32, i32
  }
  func.func @transform_5(%arg0: i32, %arg1: i32) -> (i32, i32, i32, i32) {
    %c0_i32 = arith.constant 0 : i32
    %c0_i32_0 = arith.constant 0 : i32
    %c0_i32_1 = arith.constant 0 : i32
    return %arg0, %arg1, %c0_i32, %c0_i32_0 : i32, i32, i32, i32
  }
}

</mosaic_0001>

<bundles_post_ra>
// kernel: _lambda_.5
= control target key start
LH: loop header
LB: loop body
LE: loop exit
PB: predicated region body
PF: predicated region fallthrough
CT: control target
= control target key end

     0   :  { %11 = vsyncpa [#allocation3], 0  ;;  %s1966_s0 = inlined_call_operand.vmem [shape: f32[2,8,8,140], index: 0, kind: input, shape index: {}]   ;;  %s1967_s1 = inlined_call_operand.vmem [shape: f32[25,56], index: 1, kind: input, shape index: {}]   ;;  %s1968_s2 = inlined_call_operand.vmem [shape: f32[25,1], index: 2, kind: input, shape index: {}]   ;;  %s1969_s3 = inlined_call_operand.vmem [shape: f32[25,1], index: 3, kind: input, shape index: {}]   ;;  %s1970_s4 = inlined_call_operand.vmem [shape: f32[8], index: 4, kind: input, shape index: {}]   ;;  %s1971_s5 = inlined_call_operand.vmem [shape: f32[8], index: 5, kind: input, shape index: {}]   ;;  %s1972_s6 = inlined_call_operand.vmem [shape: f32[2,8,25,128], index: 6, kind: output, shape index: {}]  }
   0x1   :  { %12 = vsyncpa [#allocation5], 0  ;;  %s1646_s21 = smov 0   ;;  %s1648_s22 = smov 0  }
   0x2   :  { %s1650_s23 = smov 0   ;;  %s1652_s24 = smov 0  }
   0x3   :  { %s1654_s25 = smov 0  }
   0x4 LB: > { %s1116_s26 = sadd.s32 4294967295, %s1600_s25   ;;  %s27_s27 = sadd.s32 1, %s1592_s23  ;;  %s1600_s25 = sphi %s1654_s25, %s18_s25   ;;  %s1596_s24 = sphi %s1652_s24, %s1984_s24   ;;  %s1592_s23 = sphi %s1650_s23, %s1983_s23   ;;  %s1588_s22 = sphi %s1648_s22, %s1982_s22   ;;  %s1584_s21 = sphi %s1646_s21, %s1981_s21  }
   0x5   : > { %p28_p0 = scmp.ge.s32.totalorder %s27_s27, 2  ;;  %s30_s28 = sadd.s32 1, %s1596_s24 }
   0x6   : > { %p1118_p1 = scmp.ge.s32.totalorder %s1600_s25, 1  ;;  %p194_p2 = scmp.lt.s32.totalorder %s1600_s25, 5 }
   0x7   : > { %s1986_s27 = smov (%p28_p0, %s27_s27), 0  ;;  %s1988_s28 = smov (!%p28_p0, %s30_s28), %s1596_s24 }
   0x8   : > { %p1679_p3 = pnand %p1118_p1, %p194_p2  ;;  %p32_p4 = scmp.ge.s32.totalorder %s1988_s28, 2 }
   0x9   : > { %p1683_p5 = scmp.eq.s32.totalorder %s1116_s26, 0  ;;  %s216_s9 = sshll.u32 %s1970_s4, 4  ;;  %s217_s9 = int_to_ptr.vmem [resolvable:$true] %s216_s9 }
   0xa   : > { %s1976_s29 = scalar_select %p1679_p3, 1, 0 }
   0xb   : > { %s1977_s30 = scalar_select %p1683_p5, 1, 0 }
   0xc   : > { %p1362_p6 = pneg %p1679_p3  ;;  %s1990_s28 = smov (%p32_p4, %s1988_s28), 0 }
   0xd   : > { %s227_s13 = sshll.u32 %s1971_s5, 4  ;;  %s1524_s14 = scalar_lea.vmem %s217_s9, 16  ;;  %s228_s13 = int_to_ptr.vmem [resolvable:$true] %s227_s13 }
   0xe   : > { %p1696_p7 = pnand %p1683_p5, %p1362_p6  ;;  %p1525_p8 = scmp.ne.s32.totalorder %s217_s9, %s1524_s14 }
   0xf   : > { %p1532_p12 = scmp.lt.s32.totalorder %s217_s9, %s217_s9  ;;  %p1533_p13 = scmp.lt.s32.totalorder %s1524_s14, %s1524_s14 }
  0x10   : > { %p1526_p9 = pneg %p1696_p7 }
  0x11   : > { %p1534_p0 = por %p1533_p13, %p1532_p12 }
  0x12   : > { %p1527_p10 = pnand %p1526_p9, %p1525_p8 }
  0x14   : > { %p1528_p11 = pneg %p1527_p10 }
  0x16   : > { %p1535_p1 = pnand %p1534_p0, %p1528_p11 }
  0x18   : > { %1538 = shalt.err (!%p1535_p1)
}
  0x19   : > { %s1602_s15 = smov [#allocation2]   ;;  %s1539_s16 = scalar_lea.vmem %s228_s13, 16 }
  0x1a   : > { %1365 = dma.vmem_to_smem (!%p1696_p7), %s217_s9, 16, %s1602_s15, [#allocation3]  }
  0x1b   : > { %p1540_p2 = scmp.ne.s32.totalorder %s228_s13, %s1539_s16  ;;  %p1547_p5 = scmp.lt.s32.totalorder %s228_s13, %s228_s13 }
  0x1c   : > { %p1548_p3 = scmp.lt.s32.totalorder %s1539_s16, %s1539_s16 }
  0x1d   : > { %p1542_p4 = pnand %p1540_p2, %p1526_p9 }
  0x1e   : > { %p1549_p8 = por %p1548_p3, %p1547_p5 }
  0x1f   : > { %p1543_p6 = pneg %p1542_p4 }
  0x21   : > { %p1550_p10 = pnand %p1549_p8, %p1543_p6 }
  0x23   : > { %1553 = shalt.err (!%p1550_p10)
}
  0x24   : > { %s1603_s17 = smov [#allocation4]   ;;  %p1979_p11 = scmp.ne.s32.totalorder %s1976_s29, 0 }
  0x25   : > { %1368 = dma.vmem_to_smem (!%p1696_p7), %s228_s13, 16, %s1603_s17, [#allocation5]  }
  0x26   : > { %248 = sbr.rel (%p1979_p11) target bundleno = 462 (0x1ce), region = 44  ;;  %p1980_p12 = scmp.ne.s32.totalorder (!%p1979_p11), %s1977_s30, 0 }
  0x2d   : > { %1575 = dma.done.wait (%p1980_p12), [#allocation3], 16  }
  0x2e   : > { %1577 = vsyncadd (%p1980_p12), [#allocation3], 4294967280 }
  0x2f   : > { %1579 = dma.done.wait (%p1980_p12), [#allocation5], 16  }
  0x30   : > { %1581 = vsyncadd (%p1980_p12), [#allocation5], 4294967280 }
  0x31   : > { %258 = sfence }
  0x32   : > { %p288_p3 = scmp.lt.s32.totalorder %s1588_s22, 1  ;;  %s1721_s18 = sshll.u32 %s1584_s21, 2  ;;  %v1768_v31 = vld [vmem:[%s1967_s1] sm:$0xff]  ;;  %vm414_vm0 = vcmask 457728   ;;  %v1610_v37 = vmov 0   ;;  %v309_v38 = vld [vmem:[%s1968_s2 + $0x8] sm:$0xff] }
  0x33   : > { %p296_p5 = scmp.lt.s32.totalorder %s1721_s18, 7  ;;  %s1178_s19 = sshll.u32 %s1584_s21, 6  ;;  %1240 = vmatprep.mubr.msk.f32.mxu0 %vm414_vm0, %v1768_v31  ;;  %1260 = vmatprep.mubr.msk.f32.mxu1 %vm414_vm0, %v1768_v31  ;;  %v308_v39 = vld [vmem:[%s1968_s2] sm:$0xff]  ;;  %v310_v40 = vld [vmem:[%s1968_s2 + $0x10] sm:$0xff]  ;;  %v311_v41 = vld [vmem:[%s1968_s2 + $0x18] sm:$0x1] }
  0x34   : > { %s1992_s22 = smov (!%p288_p3, %s1588_s22), 1  ;;  %s362_s11 = sld [smem:[#allocation2 + %s1721_s18]]  ;;  %1523 = vset.pattern.permute.xlu1 %v1610_v37  ;;  %1522 = vset.pattern.permute.xlu0 %v1610_v37  ;;  %v332_v42 = vld [vmem:[%s1969_s3] sm:$0xff]  ;;  %v333_v43 = vld [vmem:[%s1969_s3 + $0x8] sm:$0xff]  ;;  %v334_v44 = vld [vmem:[%s1969_s3 + $0x10] sm:$0xff]  ;;  %vm376_vm1 = vcmask 1031168  }
  0x35   : > { %s297_s20 = scalar_select %p296_p5, %s1721_s18, 7  ;;  %v335_v45 = vld [vmem:[%s1969_s3 + $0x18] sm:$0x1]  ;;  %vm383_vm2 = vcmask 1014784   ;;  %vm390_vm3 = vcmask 998400   ;;  %vm397_vm4 = vcmask 982016  }
  0x36   : > { %s1176_s26 = sshll.u32 %s1992_s22, 7  ;;  %s1129_s29 = sshll.u32 %s1992_s22, 5  ;;  %vm404_vm5 = vcmask 965632   ;;  %vm411_vm6 = vcmask 949248  }
  0x37   : > { %s292_s8 = scalar_lea.vmem %s1966_s0, %s1176_s26  ;;  %s1128_s9 = sshll.u32 %s297_s20, 2 }
  0x38   : > { %s1730_s10 = sadd.s32 %s1129_s29, %s1128_s9  ;;  %s1733_s12 = scalar_lea.vmem %s292_s8, %s1178_s19 }
  0x39   : > { %s366_s13 = sld [smem:[#allocation4 + %s1721_s18]]  ;;  %v360_v0 = vld [vmem:[%s1733_s12] sm:$0xff]  ;;  %v361_v1 = vld [vmem:[%s1733_s12 + $0x8] sm:$0xff]  ;;  %s528_s21 = sadd.s32 1, %s1721_s18  ;;  %v1140_v8 = vld [vmem:[%s1733_s12 + $0x10] sm:$0xff] }
  0x3a   : > { %s534_s14 = sld [smem:[#allocation2 + %s528_s21]]  ;;  %v363_v2 = vstv %s362_s11  ;;  %v1141_v9 = vld [vmem:[%s1733_s12 + $0x18] sm:$0xff]  ;;  %s1604_s15 = smov 124   ;;  %v1164_v18 = vld [vmem:[%s1733_s12 + $0x30] sm:$0xff]  ;;  %v1152_v21 = vld [vmem:[%s1733_s12 + $0x20] sm:$0xff] }
  0x3b   : > { %s538_s22 = sld [smem:[#allocation4 + %s528_s21]]  ;;  %v364_v3 = vadd.f32 %v363_v2, %v360_v0  ;;  %v365_v4 = vadd.f32 %v363_v2, %v361_v1  ;;  %s1605_s16 = smov 126   ;;  %v1165_v20 = vld [vmem:[%s1733_s12 + $0x38] sm:$0xff]  ;;  %v1153_v22 = vld [vmem:[%s1733_s12 + $0x28] sm:$0xff] }
  0x3c   : > { %s836_s17 = sadd.s32 3, %s1721_s18  ;;  %s682_s19 = sadd.s32 2, %s1721_s18 }
  0x3d   : > { %s1606_s20 = smov 122   ;;  %s1607_s26 = smov 120  }
  0x3e   : > { %s842_s29 = sld [smem:[#allocation2 + %s836_s17]]  ;;  %s1608_s7 = smov 118  }
  0x3f   : > { %v367_v5 = vstv %s366_s13  ;;  %s688_s30 = sld [smem:[#allocation2 + %s682_s19]]  ;;  %s1609_s12 = smov 116  }
  0x40   : > { %v1739_v6 = vmul.f32 %v367_v5, %v364_v3  ;;  %v369_v7 = vmul.f32 %v367_v5, %v365_v4  ;;  %v535_v11 = vstv %s534_s14  ;;  %s846_s8 = sld [smem:[#allocation4 + %s836_s17]] }
  0x41   : > { %v539_v12 = vstv %s538_s22  ;;  %v536_v13 = vadd.f32 %v1140_v8, %v535_v11  ;;  %v537_v14 = vadd.f32 %v1141_v9, %v535_v11  ;;  %s692_s18 = sld [smem:[#allocation4 + %s682_s19]] }
  0x42   : > { %v1427_v10 = vpack.i.bf16 %v369_v7, %v1739_v6 }
  0x43   : > { %v1747_v15 = vmul.f32 %v539_v12, %v536_v13  ;;  %v541_v16 = vmul.f32 %v539_v12, %v537_v14 }
  0x44   : > { %1428 = vrot.lane.b32.xlu1 %v1427_v10, %s1604_s15  ;;  %1423 = vrot.lane.b32.xlu0 %v1427_v10, %s1605_s16  ;;  %v843_v19 = vstv %s842_s29 }
  0x45   : > { %v1447_v17 = vpack.i.bf16 %v541_v16, %v1747_v15  ;;  %v689_v23 = vstv %s688_s30  ;;  %v844_v24 = vadd.f32 %v1164_v18, %v843_v19  ;;  %v845_v25 = vadd.f32 %v1165_v20, %v843_v19 }
  0x46   : > { %v847_v26 = vstv %s846_s8  ;;  %v690_v27 = vadd.f32 %v1152_v21, %v689_v23  ;;  %v691_v28 = vadd.f32 %v1153_v22, %v689_v23 }
  0x47   : > { %v693_v29 = vstv %s692_s18  ;;  %v1763_v30 = vmul.f32 %v847_v26, %v844_v24  ;;  %v849_v32 = vmul.f32 %v847_v26, %v845_v25 }
  0x48   : > { %1433 = vrot.lane.b32.xlu1 %v1427_v10, %s1606_s20  ;;  %1438 = vrot.lane.b32.xlu0 %v1427_v10, %s1607_s26  ;;  %v1771_v33 = vmul.f32 %v693_v29, %v690_v27  ;;  %v695_v34 = vmul.f32 %v693_v29, %v691_v28 }
  0x49   : > { %v1477_v35 = vpack.i.bf16 %v849_v32, %v1763_v30 }
  0x4a   : > { %v1472_v36 = vpack.i.bf16 %v695_v34, %v1771_v33 }
  0x4c   : > { %1443 = vrot.lane.b32.xlu1 %v1427_v10, %s1608_s7  ;;  %1448 = vrot.lane.b32.xlu0 %v1447_v17, %s1605_s16 }
  0x50   : > { %1458 = vrot.lane.b32.xlu1 %v1447_v17, %s1606_s20  ;;  %1453 = vrot.lane.b32.xlu0 %v1447_v17, %s1604_s15 }
  0x54   : > { %1468 = vrot.lane.b32.xlu1 %v1447_v17, %s1608_s7  ;;  %1463 = vrot.lane.b32.xlu0 %v1447_v17, %s1607_s26 }
  0x58   : > { %409 = vrot.lane.b32.xlu1 %v369_v7, %s1609_s12  ;;  %407 = vrot.lane.b32.xlu0 %v1739_v6, %s1609_s12 }
  0x5c   : > { %576 = vrot.lane.b32.xlu1 %v541_v16, %s1609_s12  ;;  %574 = vrot.lane.b32.xlu0 %v1747_v15, %s1609_s12 }
  0x60   : > { %1478 = vrot.lane.b32.xlu1 %v1477_v35, %s1605_s16  ;;  %1473 = vrot.lane.b32.xlu0 %v1472_v36, %s1605_s16 }
  0x64   : > { %1488 = vrot.lane.b32.xlu1 %v1472_v36, %s1606_s20  ;;  %1483 = vrot.lane.b32.xlu0 %v1472_v36, %s1604_s15 }
  0x68   : > { %1498 = vrot.lane.b32.xlu1 %v1477_v35, %s1606_s20  ;;  %1493 = vrot.lane.b32.xlu0 %v1477_v35, %s1604_s15  ;;  %s1130_s15 = sshll.u32 %s1730_s10, 3 }
  0x69   : > { %s1907_s19 = scalar_lea.vmem %s1972_s6, %s1130_s15 }
  0x6c   : > { %1508 = vrot.lane.b32.xlu1 %v1472_v36, %s1608_s7  ;;  %1503 = vrot.lane.b32.xlu0 %v1472_v36, %s1607_s26 }
  0x70   : > { %1518 = vrot.lane.b32.xlu1 %v1477_v35, %s1608_s7  ;;  %1513 = vrot.lane.b32.xlu0 %v1477_v35, %s1607_s26  ;;  %v1837_v35 = vld [vmem:[%s1967_s1 + $0x10] sm:$0xff] }
  0x74   : > { %730 = vrot.lane.b32.xlu1 %v695_v34, %s1609_s12  ;;  %728 = vrot.lane.b32.xlu0 %v1771_v33, %s1609_s12  ;;  %v1832_v34 = vld [vmem:[%s1967_s1 + $0x8] sm:$0xff] }
  0x78   : > { %884 = vrot.lane.b32.xlu1 %v849_v32, %s1609_s12  ;;  %882 = vrot.lane.b32.xlu0 %v1763_v30, %s1609_s12 }
  0x7c   : > { %319 = vperm.xlu1 %1523, %v309_v38   ;;  %314 = vperm.xlu0 %1522, %v308_v39   ;;  %v1847_v39 = vld [vmem:[%s1967_s1 + $0x18] sm:$0x1] }
  0x80   : > { %324 = vperm.xlu1 %1523, %v310_v40   ;;  %329 = vperm.xlu0 %1522, %v311_v41  }
  0x84   : > { %338 = vperm.xlu1 %1523, %v332_v42   ;;  %343 = vperm.xlu0 %1522, %v333_v43  }
  0x88   : > { %348 = vperm.xlu1 %1523, %v334_v44   ;;  %353 = vperm.xlu0 %1522, %v335_v45  }
  0xb6   : > { %v1429_v46 = vpop.permute.xlu1 %1428  ;;  %v1424_v47 = vpop.permute.xlu0 %1423 }
  0xb7   : > { %v1426_v48 = vunpack.i.h.bf16 %v1424_v47  ;;  %v1425_v49 = vunpack.i.l.bf16 %v1424_v47  ;;  %v1431_v50 = vunpack.i.h.bf16 %v1429_v46  ;;  %v1430_v51 = vunpack.i.l.bf16 %v1429_v46 }
  0xb9   : > { %v377_v52 = vsel %vm376_vm1, %v1425_v49, %v1426_v48  ;;  %v384_v60 = vsel %vm383_vm2, %v1430_v51, %v1431_v50 }
  0xba   : > { %v1434_v53 = vpop.permute.xlu1 %1433  ;;  %v1439_v54 = vpop.permute.xlu0 %1438  ;;  %v1306_v55 = vpack.c.bf16 %v377_v52, %v1739_v6 }
  0xbb   : > { %v1436_v56 = vunpack.i.h.bf16 %v1434_v53  ;;  %v1435_v57 = vunpack.i.l.bf16 %v1434_v53  ;;  %v1441_v58 = vunpack.i.h.bf16 %v1439_v54  ;;  %v1440_v59 = vunpack.i.l.bf16 %v1439_v54 }
  0xbc   : > { %1307 = vmatprep.subr.bf16.mxu0 %v1306_v55 }
  0xbd   : > { %1309 = vmatpush3.bf16.msra.mxu0 %v1306_v55  ;;  %v391_v61 = vsel %vm390_vm3, %v1435_v57, %v1436_v56  ;;  %v398_v5 = vsel %vm397_vm4, %v1440_v59, %v1441_v58 }
  0xbe   : > { %v1444_v62 = vpop.permute.xlu1 %1443  ;;  %v1449_v63 = vpop.permute.xlu0 %1448  ;;  %v1310_v0 = vpack.c.bf16 %v391_v61, %v384_v60 }
  0xbf   : > { %v1446_v1 = vunpack.i.h.bf16 %v1444_v62  ;;  %v1445_v2 = vunpack.i.l.bf16 %v1444_v62  ;;  %v1451_v3 = vunpack.i.h.bf16 %v1449_v63  ;;  %v1450_v4 = vunpack.i.l.bf16 %v1449_v63 }
  0xc0   : > { %1311 = vmatprep.subr.bf16.mxu0 %v1310_v0 }
  0xc1   : > { %1313 = vmatpush3.bf16.msra.mxu0 %v1310_v0  ;;  %v405_v6 = vsel %vm404_vm5, %v1445_v2, %v1446_v1  ;;  %v548_v7 = vsel %vm376_vm1, %v1450_v4, %v1451_v3 }
  0xc2   : > { %v1459_v8 = vpop.permute.xlu1 %1458  ;;  %v1454_v9 = vpop.permute.xlu0 %1453  ;;  %v1314_v10 = vpack.c.bf16 %v405_v6, %v398_v5  ;;  %v1318_v11 = vpack.c.bf16 %v548_v7, %v1747_v15 }
  0xc3   : > { %v1461_v12 = vunpack.i.h.bf16 %v1459_v8  ;;  %v1460_v13 = vunpack.i.l.bf16 %v1459_v8  ;;  %v1456_v14 = vunpack.i.h.bf16 %v1454_v9  ;;  %v1455_v16 = vunpack.i.l.bf16 %v1454_v9 }
  0xc4   : > { %1315 = vmatprep.subr.bf16.mxu0 %v1314_v10  ;;  %1319 = vmatprep.subr.bf16.mxu1 %v1318_v11 }
  0xc5   : > { %1317 = vmatpush3.bf16.msra.mxu0 %v1314_v10  ;;  %1321 = vmatpush3.bf16.msra.mxu1 %v1318_v11  ;;  %v554_v17 = vsel %vm383_vm2, %v1455_v16, %v1456_v14  ;;  %v560_v18 = vsel %vm390_vm3, %v1460_v13, %v1461_v12 }
  0xc6   : > { %v1469_v19 = vpop.permute.xlu1 %1468  ;;  %v1464_v20 = vpop.permute.xlu0 %1463  ;;  %v1322_v21 = vpack.c.bf16 %v560_v18, %v554_v17 }
  0xc7   : > { %v1471_v22 = vunpack.i.h.bf16 %v1469_v19  ;;  %v1470_v23 = vunpack.i.l.bf16 %v1469_v19  ;;  %v1466_v24 = vunpack.i.h.bf16 %v1464_v20  ;;  %v1465_v25 = vunpack.i.l.bf16 %v1464_v20 }
  0xc8   : > { %1323 = vmatprep.subr.bf16.mxu1 %v1322_v21 }
  0xc9   : > { %1325 = vmatpush3.bf16.msra.mxu1 %v1322_v21  ;;  %v566_v15 = vsel %vm397_vm4, %v1465_v25, %v1466_v24  ;;  %v572_v26 = vsel %vm404_vm5, %v1470_v23, %v1471_v22 }
  0xca   : > { %v410_v27 = vpop.permute.xlu1 %409  ;;  %v408_v28 = vpop.permute.xlu0 %407  ;;  %v1326_v29 = vpack.c.bf16 %v572_v26, %v566_v15 }
  0xcb   : > { %v412_v32 = vsel %vm411_vm6, %v408_v28, %v410_v27 }
  0xcc   : > { %1238 = vmatprep.subr.mxu0 %v412_v32  ;;  %1327 = vmatprep.subr.bf16.mxu1 %v1326_v29 }
  0xcd   : > { %1239 = vmatpush3.msra.mxu0 %v412_v32  ;;  %1329 = vmatpush3.bf16.msra.mxu1 %v1326_v29 }
  0xce   : > { %v577_v36 = vpop.permute.xlu1 %576  ;;  %v575_v37 = vpop.permute.xlu0 %574  ;;  %1241 = vmatmul.mubr.msk.f32.vlgmr.msra.gmra.mrb[0].mxu0 %vm414_vm0, %v1832_v34 }
  0xcf   : > { %v578_v38 = vsel %vm411_vm6, %v575_v37, %v577_v36  ;;  %1243 = vmatprep.mubr.msk.f32.mxu0 %vm414_vm0, %v1837_v35 }
  0xd0   : > { %1258 = vmatprep.subr.mxu1 %v578_v38 }
  0xd1   : > { %1259 = vmatpush3.msra.mxu1 %v578_v38 }
  0xd2   : > { %v1479_v40 = vpop.permute.xlu1 %1478  ;;  %v1474_v41 = vpop.permute.xlu0 %1473  ;;  %1261 = vmatmul.mubr.msk.f32.vlgmr.msra.gmra.mrb[0].mxu1 %vm414_vm0, %v1832_v34  ;;  %1244 = vmatmul.mubr.msk.f32.gmra.mrb[2].mxu0 %vm414_vm0, %v1847_v39 }
  0xd3   : > { %v1481_v42 = vunpack.i.h.bf16 %v1479_v40  ;;  %v1480_v43 = vunpack.i.l.bf16 %v1479_v40  ;;  %v1476_v44 = vunpack.i.h.bf16 %v1474_v41  ;;  %v1475_v45 = vunpack.i.l.bf16 %v1474_v41  ;;  %1263 = vmatprep.mubr.msk.f32.mxu1 %vm414_vm0, %v1837_v35  ;;  %1280 = vmatprep.mubr.msk.f32.mxu0 %vm414_vm0, %v1768_v31 }
  0xd5   : > { %v702_v46 = vsel %vm376_vm1, %v1475_v45, %v1476_v44  ;;  %v856_v47 = vsel %vm376_vm1, %v1480_v43, %v1481_v42 }
  0xd6   : > { %v1489_v48 = vpop.permute.xlu1 %1488  ;;  %v1484_v49 = vpop.permute.xlu0 %1483  ;;  %v1330_v50 = vpack.c.bf16 %v702_v46, %v1771_v33  ;;  %v1342_v51 = vpack.c.bf16 %v856_v47, %v1763_v30  ;;  %1264 = vmatmul.mubr.msk.f32.gmra.mrb[2].mxu1 %vm414_vm0, %v1847_v39 }
  0xd7   : > { %v1491_v52 = vunpack.i.h.bf16 %v1489_v48  ;;  %v1490_v53 = vunpack.i.l.bf16 %v1489_v48  ;;  %v1486_v54 = vunpack.i.h.bf16 %v1484_v49  ;;  %v1485_v55 = vunpack.i.l.bf16 %v1484_v49  ;;  %1300 = vmatprep.mubr.msk.f32.mxu1 %vm414_vm0, %v1768_v31 }
  0xd8   : > { %1331 = vmatprep.subr.bf16.mxu0 %v1330_v50  ;;  %1343 = vmatprep.subr.bf16.mxu1 %v1342_v51 }
  0xd9   : > { %1333 = vmatpush3.bf16.msra.mxu0 %v1330_v50  ;;  %1345 = vmatpush3.bf16.msra.mxu1 %v1342_v51  ;;  %v708_v56 = vsel %vm383_vm2, %v1485_v55, %v1486_v54  ;;  %v714_v33 = vsel %vm390_vm3, %v1490_v53, %v1491_v52 }
  0xda   : > { %v1499_v57 = vpop.permute.xlu1 %1498  ;;  %v1494_v30 = vpop.permute.xlu0 %1493  ;;  %v1334_v58 = vpack.c.bf16 %v714_v33, %v708_v56 }
  0xdb   : > { %v1501_v59 = vunpack.i.h.bf16 %v1499_v57  ;;  %v1500_v60 = vunpack.i.l.bf16 %v1499_v57  ;;  %v1496_v61 = vunpack.i.h.bf16 %v1494_v30  ;;  %v1495_v62 = vunpack.i.l.bf16 %v1494_v30 }
  0xdc   : > { %1335 = vmatprep.subr.bf16.mxu0 %v1334_v58 }
  0xdd   : > { %1337 = vmatpush3.bf16.msra.mxu0 %v1334_v58  ;;  %v862_v63 = vsel %vm383_vm2, %v1495_v62, %v1496_v61  ;;  %v868_v31 = vsel %vm390_vm3, %v1500_v60, %v1501_v59 }
  0xde   : > { %v1509_v0 = vpop.permute.xlu1 %1508  ;;  %v1504_v1 = vpop.permute.xlu0 %1503  ;;  %v1346_v2 = vpack.c.bf16 %v868_v31, %v862_v63 }
  0xdf   : > { %v1511_v3 = vunpack.i.h.bf16 %v1509_v0  ;;  %v1510_v4 = vunpack.i.l.bf16 %v1509_v0  ;;  %v1506_v5 = vunpack.i.h.bf16 %v1504_v1  ;;  %v1505_v6 = vunpack.i.l.bf16 %v1504_v1 }
  0xe0   : > { %1347 = vmatprep.subr.bf16.mxu1 %v1346_v2 }
  0xe1   : > { %1349 = vmatpush3.bf16.msra.mxu1 %v1346_v2  ;;  %v720_v7 = vsel %vm397_vm4, %v1505_v6, %v1506_v5  ;;  %v726_v8 = vsel %vm404_vm5, %v1510_v4, %v1511_v3 }
  0xe2   : > { %v1519_v9 = vpop.permute.xlu1 %1518  ;;  %v1514_v10 = vpop.permute.xlu0 %1513  ;;  %v1338_v11 = vpack.c.bf16 %v726_v8, %v720_v7 }
  0xe3   : > { %v1521_v12 = vunpack.i.h.bf16 %v1519_v9  ;;  %v1520_v13 = vunpack.i.l.bf16 %v1519_v9  ;;  %v1516_v14 = vunpack.i.h.bf16 %v1514_v10  ;;  %v1515_v16 = vunpack.i.l.bf16 %v1514_v10 }
  0xe4   : > { %1339 = vmatprep.subr.bf16.mxu0 %v1338_v11 }
  0xe5   : > { %1341 = vmatpush3.bf16.msra.mxu0 %v1338_v11  ;;  %v874_v17 = vsel %vm397_vm4, %v1515_v16, %v1516_v14  ;;  %v880_v18 = vsel %vm404_vm5, %v1520_v13, %v1521_v12 }
  0xe6   : > { %v731_v19 = vpop.permute.xlu1 %730  ;;  %v729_v20 = vpop.permute.xlu0 %728  ;;  %v1350_v21 = vpack.c.bf16 %v880_v18, %v874_v17 }
  0xe7   : > { %v732_v22 = vsel %vm411_vm6, %v729_v20, %v731_v19 }
  0xe8   : > { %1278 = vmatprep.subr.mxu0 %v732_v22  ;;  %1351 = vmatprep.subr.bf16.mxu1 %v1350_v21 }
  0xe9   : > { %1279 = vmatpush3.msra.mxu0 %v732_v22  ;;  %1353 = vmatpush3.bf16.msra.mxu1 %v1350_v21 }
  0xea   : > { %v885_v23 = vpop.permute.xlu1 %884  ;;  %v883_v24 = vpop.permute.xlu0 %882  ;;  %1281 = vmatmul.mubr.msk.f32.vlgmr.msra.gmra.mrb[4].mxu0 %vm414_vm0, %v1832_v34 }
  0xeb   : > { %v886_v25 = vsel %vm411_vm6, %v883_v24, %v885_v23  ;;  %1283 = vmatprep.mubr.msk.f32.mxu0 %vm414_vm0, %v1837_v35 }
  0xec   : > { %1298 = vmatprep.subr.mxu1 %v886_v25 }
  0xed   : > { %1299 = vmatpush3.msra.mxu1 %v886_v25 }
  0xee   : > { %1284 = vmatmul.mubr.msk.f32.gmra.mrb[6].mxu0 %vm414_vm0, %v1847_v39  ;;  %1301 = vmatmul.mubr.msk.f32.vlgmr.msra.gmra.mrb[4].mxu1 %vm414_vm0, %v1832_v34 }
  0xef   : > { %1303 = vmatprep.mubr.msk.f32.mxu1 %vm414_vm0, %v1837_v35 }
  0xf2   : > { %1304 = vmatmul.mubr.msk.f32.gmra.mrb[6].mxu1 %vm414_vm0, %v1847_v39 }
  0xfb   : > { %v320_v15 = vpop.permute.xlu1 %319  ;;  %v1887_v26 = vpop.permute.xlu0 %314 }
  0xff   : > { %v1889_v27 = vpop.permute.xlu1 %324  ;;  %v1891_v28 = vpop.permute.xlu0 %329 }
 0x103   : > { %v1893_v29 = vpop.permute.xlu1 %338  ;;  %v1895_v32 = vpop.permute.xlu0 %343 }
 0x107   : > { %v1900_v39 = vpop.permute.xlu1 %348  ;;  %v1902_v40 = vpop.permute.xlu0 %353 }
 0x1a1   : > { %v1242_v36 = vpop.f32.mrb[0].mxu0 }
 0x1a2   : > { %v513_v34 = vmul.f32 %v1242_v36, %v320_v15  ;;  %v493_v37 = vpop.f32.mrb[1].mxu0 }
 0x1a3   : > { %v512_v35 = vmul.f32 %v493_v37, %v1887_v26 }
 0x1a4   : > { %v517_v38 = vadd.f32 %v513_v34, %v1895_v32 }
 0x1a5   : > { %v1262_v41 = vpop.f32.mrb[0].mxu1  ;;  %v516_v42 = vadd.f32 %v512_v35, %v1893_v29  ;;  %v1245_v43 = vpop.f32.mrb[2].mxu0 }
 0x1a6   : > { %v666_v44 = vmul.f32 %v1262_v41, %v320_v15  ;;  %v646_v45 = vpop.f32.mrb[1].mxu1  ;;  %v521_v46 = vmax.f32 %v517_v38, 0.0  ;;  %v515_v47 = vmul.f32 %v1245_v43, %v1891_v28  ;;  %v503_v48 = vpop.f32.mrb[3].mxu0 }
 0x1a7   : > { %v665_v49 = vmul.f32 %v646_v45, %v1887_v26  ;;  %v520_v50 = vmax.f32 %v516_v42, 0.0  ;;  %v514_v51 = vmul.f32 %v503_v48, %v1889_v27 }
 0x1a8   : > { %525 = vst [vmem:[%s1907_s19 + $0x8] sm:$0xff] %v521_v46  ;;  %v670_v52 = vadd.f32 %v666_v44, %v1895_v32  ;;  %v519_v53 = vadd.f32 %v515_v47, %v1902_v40 }
 0x1a9   : > { %524 = vst [vmem:[%s1907_s19] sm:$0xff] %v520_v50  ;;  %v669_v54 = vadd.f32 %v665_v49, %v1893_v29  ;;  %v1265_v55 = vpop.f32.mrb[2].mxu1  ;;  %v518_v56 = vadd.f32 %v514_v51, %v1900_v39 }
 0x1aa   : > { %v674_v33 = vmax.f32 %v670_v52, 0.0  ;;  %v668_v57 = vmul.f32 %v1265_v55, %v1891_v28  ;;  %v656_v30 = vpop.f32.mrb[3].mxu1  ;;  %v523_v58 = vmax.f32 %v519_v53, 0.0 }
 0x1ab   : > { %v673_v59 = vmax.f32 %v669_v54, 0.0  ;;  %v667_v60 = vmul.f32 %v656_v30, %v1889_v27  ;;  %v522_v61 = vmax.f32 %v518_v56, 0.0 }
 0x1ac   : > { %1147 = vst [vmem:[%s1907_s19 + $0x28] sm:$0xff] %v674_v33  ;;  %527 = vst [vmem:[%s1907_s19 + $0x18] sm:$0x1] %v523_v58  ;;  %v672_v62 = vadd.f32 %v668_v57, %v1902_v40 }
 0x1ad   : > { %1146 = vst [vmem:[%s1907_s19 + $0x20] sm:$0xff] %v673_v59  ;;  %526 = vst [vmem:[%s1907_s19 + $0x10] sm:$0xff] %v522_v61  ;;  %v671_v63 = vadd.f32 %v667_v60, %v1900_v39 }
 0x1ae   : > { %v676_v31 = vmax.f32 %v672_v62, 0.0 }
 0x1af   : > { %v675_v0 = vmax.f32 %v671_v63, 0.0 }
 0x1b0   : > { %1149 = vst [vmem:[%s1907_s19 + $0x38] sm:$0x1] %v676_v31 }
 0x1b1   : > { %1148 = vst [vmem:[%s1907_s19 + $0x30] sm:$0xff] %v675_v0 }
 0x1bd   : > { %v1282_v1 = vpop.f32.mrb[4].mxu0 }
 0x1be   : > { %v820_v2 = vmul.f32 %v1282_v1, %v320_v15  ;;  %v800_v3 = vpop.f32.mrb[5].mxu0 }
 0x1bf   : > { %v819_v4 = vmul.f32 %v800_v3, %v1887_v26 }
 0x1c0   : > { %v824_v5 = vadd.f32 %v820_v2, %v1895_v32 }
 0x1c1   : > { %v823_v6 = vadd.f32 %v819_v4, %v1893_v29  ;;  %v1285_v7 = vpop.f32.mrb[6].mxu0  ;;  %v1302_v8 = vpop.f32.mrb[4].mxu1 }
 0x1c2   : > { %v828_v9 = vmax.f32 %v824_v5, 0.0  ;;  %v822_v10 = vmul.f32 %v1285_v7, %v1891_v28  ;;  %v974_v11 = vmul.f32 %v1302_v8, %v320_v15  ;;  %v810_v12 = vpop.f32.mrb[7].mxu0  ;;  %v954_v13 = vpop.f32.mrb[5].mxu1 }
 0x1c3   : > { %v827_v14 = vmax.f32 %v823_v6, 0.0  ;;  %v821_v16 = vmul.f32 %v810_v12, %v1889_v27  ;;  %v973_v17 = vmul.f32 %v954_v13, %v1887_v26 }
 0x1c4   : > { %1159 = vst [vmem:[%s1907_s19 + $0x48] sm:$0xff] %v828_v9  ;;  %v826_v18 = vadd.f32 %v822_v10, %v1902_v40  ;;  %v978_v19 = vadd.f32 %v974_v11, %v1895_v32 }
 0x1c5   : > { %1158 = vst [vmem:[%s1907_s19 + $0x40] sm:$0xff] %v827_v14  ;;  %v825_v20 = vadd.f32 %v821_v16, %v1900_v39  ;;  %v977_v21 = vadd.f32 %v973_v17, %v1893_v29  ;;  %v1305_v22 = vpop.f32.mrb[6].mxu1 }
 0x1c6   : > { %v830_v23 = vmax.f32 %v826_v18, 0.0  ;;  %v982_v24 = vmax.f32 %v978_v19, 0.0  ;;  %v976_v25 = vmul.f32 %v1305_v22, %v1891_v28  ;;  %v964_v15 = vpop.f32.mrb[7].mxu1 }
 0x1c7   : > { %v829_v26 = vmax.f32 %v825_v20, 0.0  ;;  %v981_v36 = vmax.f32 %v977_v21, 0.0  ;;  %v975_v34 = vmul.f32 %v964_v15, %v1889_v27 }
 0x1c8   : > { %1161 = vst [vmem:[%s1907_s19 + $0x58] sm:$0x1] %v830_v23  ;;  %1171 = vst [vmem:[%s1907_s19 + $0x68] sm:$0xff] %v982_v24  ;;  %v980_v32 = vadd.f32 %v976_v25, %v1902_v40 }
 0x1c9   : > { %1160 = vst [vmem:[%s1907_s19 + $0x50] sm:$0xff] %v829_v26  ;;  %1170 = vst [vmem:[%s1907_s19 + $0x60] sm:$0xff] %v981_v36  ;;  %v979_v29 = vadd.f32 %v975_v34, %v1900_v39 }
 0x1ca   : > { %v984_v37 = vmax.f32 %v980_v32, 0.0 }
 0x1cb   : > { %v983_v35 = vmax.f32 %v979_v29, 0.0 }
 0x1cc   : > { %1173 = vst [vmem:[%s1907_s19 + $0x78] sm:$0x1] %v984_v37 }
 0x1cd   : > { %1172 = vst [vmem:[%s1907_s19 + $0x70] sm:$0xff] %v983_v35 }
 0x1ce PF: > { %s18_s25 = sadd.s32 1, %s1600_s25   ;;  %s1981_s21 = smov %s1592_s23 }
 0x1cf   : > { %p15_p7 = scmp.ge.s32.totalorder %s18_s25, 6   ;;  %s1982_s22 = smov %s1596_s24 }
 0x1d0   : > { %s1983_s23 = smov %s1986_s27  ;;  %s1984_s24 = smov %s1990_s28 }
 0x1d1   :  { %17 = sbr.rel (!%p15_p7) target bundleno = 4 (0x4), region = 90 }
 0x1d8   :  { %1022 = vsyncpa [#allocation3], 1 }
 0x1d9   :  { %1024 = vsyncpa [#allocation3 + $0x1], 1 }
 0x1da   :  { %1025 = vsyncpa [#allocation5], 1 }

// kernel: _lambda_.6
= control target key start
LH: loop header
LB: loop body
LE: loop exit
PB: predicated region body
PF: predicated region fallthrough
CT: control target
= control target key end

     0   :  { %s2497_s15 = smov 0   ;;  %s2499_s16 = smov 0   ;;  %s3305_s0 = inlined_call_operand.vmem [shape: f32[2,8,32,140], index: 0, kind: input, shape index: {}]   ;;  %s3306_s1 = inlined_call_operand.vmem [shape: f32[55,224], index: 1, kind: input, shape index: {}]   ;;  %s3307_s2 = inlined_call_operand.vmem [shape: f32[55,1], index: 2, kind: input, shape index: {}]   ;;  %s3308_s3 = inlined_call_operand.vmem [shape: f32[55,1], index: 3, kind: input, shape index: {}]   ;;  %s3309_s4 = inlined_call_operand.vmem [shape: f32[2,8,55,128], index: 4, kind: output, shape index: {}]  }
   0x1   :  { %s2501_s17 = smov 0   ;;  %s2503_s18 = smov 0  }
   0x2   :  { %s2505_s19 = smov 0  }
   0x3 LB: > { %s23_s20 = sadd.s32 1, %s2454_s17  ;;  %s26_s21 = sadd.s32 1, %s2458_s18  ;;  %s2462_s19 = sphi %s2505_s19, %s14_s19   ;;  %s2458_s18 = sphi %s2503_s18, %s3313_s18   ;;  %s2454_s17 = sphi %s2501_s17, %s3312_s17   ;;  %s2450_s16 = sphi %s2499_s16, %s3311_s16   ;;  %s2446_s15 = sphi %s2497_s15, %s3310_s15  }
   0x4   : > { %p24_p0 = scmp.ge.s32.totalorder %s23_s20, 2  ;;  %p1628_p1 = scmp.ge.s32.totalorder %s2462_s19, 1 }
   0x5   : > { %p176_p2 = scmp.lt.s32.totalorder %s2462_s19, 5 }
   0x6   : > { %s3315_s20 = smov (%p24_p0, %s23_s20), 0  ;;  %s3317_s21 = smov (!%p24_p0, %s26_s21), %s2458_s18 }
   0x7   : > { %p177_p3 = pnand %p1628_p1, %p176_p2  ;;  %p28_p4 = scmp.ge.s32.totalorder %s3317_s21, 2 }
   0x8   : > { %v239_v0 = vld [vmem:[%s3307_s2 + $0x10] sm:$0xff] (!%p177_p3)  ;;  %v237_v1 = vld [vmem:[%s3307_s2] sm:$0xff] (!%p177_p3)  ;;  %p207_p5 = scmp.lt.s32.totalorder (!%p177_p3), %s2450_s16, 1  ;;  %v2464_v2 = vmov (!%p177_p3), 0   ;;  %v240_v3 = vld [vmem:[%s3307_s2 + $0x18] sm:$0xff] (!%p177_p3)  ;;  %s1719_s8 = sshll.u32 (!%p177_p3), %s2446_s15, 8 }
   0x9   : > { %s3319_s21 = smov (%p28_p4, %s3317_s21), 0  ;;  %180 = sbr.rel (%p177_p3) target bundleno = 598 (0x256), region = 36 }
   0xa   : > { %1942 = vset.pattern.permute.xlu1 (!%p177_p3), %v2464_v2  ;;  %1941 = vset.pattern.permute.xlu0 (!%p177_p3), %v2464_v2  ;;  %v238_v4 = vld [vmem:[%s3307_s2 + $0x8] sm:$0xff] (!%p177_p3)  ;;  %v241_v6 = vld [vmem:[%s3307_s2 + $0x20] sm:$0xff] (!%p177_p3)  ;;  %v243_v8 = vld [vmem:[%s3307_s2 + $0x30] sm:$0x7f] (!%p177_p3)  ;;  %s2465_s27 = smov (!%p177_p3), 126   ;;  %v2466_v34 = vmov (!%p177_p3), 0.0|0.0  }
   0xb   : > { %256 = vperm.xlu1 (!%p177_p3), %1942, %v239_v0   ;;  %246 = vperm.xlu0 (!%p177_p3), %1941, %v237_v1   ;;  %v242_v5 = vld [vmem:[%s3307_s2 + $0x28] sm:$0xff] (!%p177_p3)  ;;  %v279_v7 = vld [vmem:[%s3308_s3] sm:$0xff] (!%p177_p3)  ;;  %s2467_s28 = smov (!%p177_p3), 124   ;;  %s2468_s29 = smov (!%p177_p3), 122   ;;  %vm491_vm0 = vcmask (!%p177_p3), 785408   ;;  %vm357_vm1 = vcmask (!%p177_p3), 1031168  }
   0xc   : > { %v280_v15 = vld [vmem:[%s3308_s3 + $0x8] sm:$0xff] (!%p177_p3)  ;;  %1723 = vmatprep.subr.bf16.mxu0 (!%p177_p3), %v2466_v34  ;;  %1765 = vmatprep.subr.bf16.mxu1 (!%p177_p3), %v2466_v34  ;;  %s2470_s5 = smov (!%p177_p3), 118   ;;  %s2471_s6 = smov (!%p177_p3), 116   ;;  %vm382_vm2 = vcmask (!%p177_p3), 1014784   ;;  %vm407_vm3 = vcmask (!%p177_p3), 998400   ;;  %vm432_vm4 = vcmask (!%p177_p3), 982016  }
   0xd   : > { %v224_v52 = vld [vmem:[%s3306_s1 + $0x8] sm:$0xff] (!%p177_p3)  ;;  %vm457_vm5 = vcmask (!%p177_p3), 965632   ;;  %vm482_vm6 = vcmask (!%p177_p3), 949248   ;;  %s1631_s9 = sshll.u32 (!%p177_p3), %s2446_s15, 2 }
   0xe   : > { %1636 = vmatprep.mubr.msk.f32.mxu0 (!%p177_p3), %vm491_vm0, %v224_v52  ;;  %1653 = vmatprep.mubr.msk.f32.mxu1 (!%p177_p3), %vm491_vm0, %v224_v52  ;;  %p215_p6 = scmp.lt.s32.totalorder (!%p177_p3), %s1631_s9, 7 }
   0xf   : > { %261 = vperm.xlu1 (!%p177_p3), %1942, %v240_v3   ;;  %251 = vperm.xlu0 (!%p177_p3), %1941, %v238_v4  }
  0x10   : > { %s3321_s16 = smov (!%p207_p5, %s2450_s16), 1  ;;  %s3323_s9 = smov (!%p215_p6, %s1631_s9), 7 }
  0x11   : > { %s1717_s30 = sshll.u32 %s3321_s16, 9  ;;  %s1892_s10 = smul.u32 56, %s3321_s16 }
  0x12   : > { %s211_s7 = scalar_lea.vmem %s3305_s0, %s1717_s30  ;;  %s2469_s30 = smov 120  }
  0x13   : > { %s2554_s13 = scalar_lea.vmem %s211_s7, %s1719_s8  ;;  %271 = vperm.xlu1 %1942, %v242_v5   ;;  %266 = vperm.xlu0 %1941, %v241_v6   ;;  %s1891_s11 = smul.u32 7, %s3323_s9 }
  0x14   : > { %v325_v9 = vld [vmem:[%s2554_s13] sm:$0xff]  ;;  %v326_v10 = vld [vmem:[%s2554_s13 + $0x8] sm:$0xff]  ;;  %v327_v11 = vld [vmem:[%s2554_s13 + $0x10] sm:$0xff] }
  0x15   : > { %v328_v12 = vld [vmem:[%s2554_s13 + $0x18] sm:$0xff]  ;;  %v1645_v13 = vld [vmem:[%s2554_s13 + $0x40] sm:$0xff]  ;;  %v1646_v14 = vld [vmem:[%s2554_s13 + $0x48] sm:$0xff]  ;;  %v2571_v16 = vpack.i.bf16 %v326_v10, %v325_v9  ;;  %v1724_v35 = vpack.c.bf16 %v327_v11, %v325_v9  ;;  %s219_s12 = sadd.s32 %s1892_s10, %s1891_s11 }
  0x16   : > { %v1647_v17 = vld [vmem:[%s2554_s13 + $0x50] sm:$0xff]  ;;  %v1648_v18 = vld [vmem:[%s2554_s13 + $0x58] sm:$0xff]  ;;  %v329_v19 = vld [vmem:[%s2554_s13 + $0x20] sm:$0xff]  ;;  %v2577_v21 = vpack.i.bf16 %v328_v12, %v327_v11  ;;  %v2579_v22 = vpack.i.bf16 %v1646_v14, %v1645_v13 }
  0x17   : > { %288 = vperm.xlu1 %1942, %v279_v7   ;;  %276 = vperm.xlu0 %1941, %v243_v8   ;;  %v330_v20 = vld [vmem:[%s2554_s13 + $0x28] sm:$0xff]  ;;  %v331_v23 = vld [vmem:[%s2554_s13 + $0x30] sm:$0xff]  ;;  %v332_v24 = vld [vmem:[%s2554_s13 + $0x38] sm:$0xff]  ;;  %v2587_v29 = vpack.i.bf16 %v1648_v18, %v1647_v17  ;;  %v1766_v36 = vpack.c.bf16 %v1647_v17, %v1645_v13 }
  0x18   : > { %v1649_v25 = vld [vmem:[%s2554_s13 + $0x60] sm:$0xff]  ;;  %v1650_v26 = vld [vmem:[%s2554_s13 + $0x68] sm:$0xff]  ;;  %v1651_v27 = vld [vmem:[%s2554_s13 + $0x70] sm:$0xff]  ;;  %v2589_v30 = vpack.i.bf16 %v330_v20, %v329_v19  ;;  %v2591_v31 = vpack.i.bf16 %v332_v24, %v331_v23  ;;  %1725 = vmatpush1.bf16.msra.mxu0 %v1724_v35  ;;  %v1727_v37 = vpack.c.bf16 %v331_v23, %v329_v19 }
  0x19   : > { %v1652_v28 = vld [vmem:[%s2554_s13 + $0x78] sm:$0xff]  ;;  %v2595_v32 = vpack.i.bf16 %v1650_v26, %v1649_v25  ;;  %1726 = vmatprep.subr.bf16.mxu0 %v2466_v34  ;;  %1767 = vmatpush1.bf16.msra.mxu1 %v1766_v36  ;;  %v1769_v38 = vpack.c.bf16 %v1651_v27, %v1649_v25  ;;  %v2694_v39 = vld [vmem:[%s2554_s13 + $0x80] sm:$0xff]  ;;  %v1670_v40 = vld [vmem:[%s2554_s13 + $0x88] sm:$0xff] }
  0x1a   : > { %v2597_v33 = vpack.i.bf16 %v1652_v28, %v1651_v27  ;;  %1768 = vmatprep.subr.bf16.mxu1 %v2466_v34  ;;  %v2702_v41 = vpack.i.bf16 %v1670_v40, %v2694_v39  ;;  %v2705_v42 = vld [vmem:[%s2554_s13 + $0x90] sm:$0xff]  ;;  %v1672_v43 = vld [vmem:[%s2554_s13 + $0x98] sm:$0xff]  ;;  %v2709_v44 = vld [vmem:[%s2554_s13 + $0xc0] sm:$0xff] }
  0x1b   : > { %293 = vperm.xlu0 %1941, %v280_v15   ;;  %1944 = vrot.lane.b32.xlu1 %v2571_v16, %s2465_s27  ;;  %v1694_v45 = vld [vmem:[%s2554_s13 + $0xc8] sm:$0xff]  ;;  %v2717_v46 = vpack.i.bf16 %v1672_v43, %v2705_v42  ;;  %v2723_v48 = vld [vmem:[%s2554_s13 + $0xd0] sm:$0xff]  ;;  %v1696_v49 = vld [vmem:[%s2554_s13 + $0xd8] sm:$0xff] }
  0x1c   : > { %1728 = vmatpush1.bf16.msra.mxu0 %v1727_v37  ;;  %v2720_v47 = vpack.i.bf16 %v1694_v45, %v2709_v44  ;;  %v2727_v50 = vld [vmem:[%s2554_s13 + $0xa0] sm:$0xff]  ;;  %v1674_v51 = vld [vmem:[%s2554_s13 + $0xa8] sm:$0xff]  ;;  %v2740_v53 = vpack.i.bf16 %v1696_v49, %v2723_v48  ;;  %v2746_v55 = vld [vmem:[%s2554_s13 + $0xb0] sm:$0xff] }
  0x1d   : > { %1729 = vmatprep.subr.bf16.mxu0 %v2466_v34  ;;  %1770 = vmatpush1.bf16.msra.mxu1 %v1769_v38  ;;  %v2743_v54 = vpack.i.bf16 %v1674_v51, %v2727_v50  ;;  %v1676_v56 = vld [vmem:[%s2554_s13 + $0xb8] sm:$0xff]  ;;  %v2750_v57 = vld [vmem:[%s2554_s13 + $0xe0] sm:$0xff]  ;;  %v1698_v58 = vld [vmem:[%s2554_s13 + $0xe8] sm:$0xff] }
  0x1e   : > { %1771 = vmatprep.subr.bf16.mxu1 %v2466_v34  ;;  %v2758_v59 = vpack.i.bf16 %v1676_v56, %v2746_v55  ;;  %v2761_v60 = vpack.i.bf16 %v1698_v58, %v2750_v57  ;;  %v2764_v61 = vld [vmem:[%s2554_s13 + $0xf0] sm:$0xff]  ;;  %v1700_v62 = vld [vmem:[%s2554_s13 + $0xf8] sm:$0xff]  ;;  %s1632_s13 = sshll.u32 %s219_s12, 3 }
  0x1f   : > { %1949 = vrot.lane.b32.xlu0 %v2577_v21, %s2465_s27  ;;  %1954 = vrot.lane.b32.xlu1 %v2579_v22, %s2465_s27  ;;  %v2772_v63 = vpack.i.bf16 %v1700_v62, %v2764_v61  ;;  %s3196_s23 = scalar_lea.vmem %s3309_s4, %s1632_s13 }
  0x23   : > { %1959 = vrot.lane.b32.xlu0 %v2587_v29, %s2465_s27  ;;  %1964 = vrot.lane.b32.xlu1 %v2589_v30, %s2465_s27 }
  0x27   : > { %1969 = vrot.lane.b32.xlu0 %v2591_v31, %s2465_s27  ;;  %1974 = vrot.lane.b32.xlu1 %v2595_v32, %s2465_s27 }
  0x2b   : > { %1979 = vrot.lane.b32.xlu0 %v2597_v33, %s2465_s27  ;;  %1984 = vrot.lane.b32.xlu1 %v2571_v16, %s2467_s28 }
  0x2f   : > { %1989 = vrot.lane.b32.xlu0 %v2577_v21, %s2467_s28  ;;  %1994 = vrot.lane.b32.xlu1 %v2579_v22, %s2467_s28 }
  0x33   : > { %1999 = vrot.lane.b32.xlu0 %v2587_v29, %s2467_s28  ;;  %2004 = vrot.lane.b32.xlu1 %v2589_v30, %s2467_s28 }
  0x37   : > { %2009 = vrot.lane.b32.xlu0 %v2591_v31, %s2467_s28  ;;  %2014 = vrot.lane.b32.xlu1 %v2595_v32, %s2467_s28 }
  0x3b   : > { %2019 = vrot.lane.b32.xlu0 %v2597_v33, %s2467_s28  ;;  %2024 = vrot.lane.b32.xlu1 %v2571_v16, %s2468_s29 }
  0x3f   : > { %2029 = vrot.lane.b32.xlu0 %v2577_v21, %s2468_s29  ;;  %2034 = vrot.lane.b32.xlu1 %v2579_v22, %s2468_s29 }
  0x43   : > { %2039 = vrot.lane.b32.xlu0 %v2587_v29, %s2468_s29  ;;  %2044 = vrot.lane.b32.xlu1 %v2589_v30, %s2468_s29 }
  0x47   : > { %2049 = vrot.lane.b32.xlu0 %v2591_v31, %s2468_s29  ;;  %2054 = vrot.lane.b32.xlu1 %v2595_v32, %s2468_s29 }
  0x4b   : > { %2059 = vrot.lane.b32.xlu0 %v2597_v33, %s2468_s29  ;;  %2064 = vrot.lane.b32.xlu1 %v2571_v16, %s2469_s30 }
  0x4f   : > { %2069 = vrot.lane.b32.xlu0 %v2577_v21, %s2469_s30  ;;  %2074 = vrot.lane.b32.xlu1 %v2579_v22, %s2469_s30 }
  0x53   : > { %2079 = vrot.lane.b32.xlu0 %v2587_v29, %s2469_s30  ;;  %2084 = vrot.lane.b32.xlu1 %v2589_v30, %s2469_s30 }
  0x57   : > { %2089 = vrot.lane.b32.xlu0 %v2591_v31, %s2469_s30  ;;  %2094 = vrot.lane.b32.xlu1 %v2595_v32, %s2469_s30 }
  0x5b   : > { %2099 = vrot.lane.b32.xlu0 %v2597_v33, %s2469_s30  ;;  %2104 = vrot.lane.b32.xlu1 %v2571_v16, %s2470_s5 }
  0x5f   : > { %2109 = vrot.lane.b32.xlu0 %v2577_v21, %s2470_s5  ;;  %2114 = vrot.lane.b32.xlu1 %v2579_v22, %s2470_s5 }
  0x63   : > { %2119 = vrot.lane.b32.xlu0 %v2587_v29, %s2470_s5  ;;  %2124 = vrot.lane.b32.xlu1 %v2589_v30, %s2470_s5 }
  0x67   : > { %2129 = vrot.lane.b32.xlu0 %v2591_v31, %s2470_s5  ;;  %2134 = vrot.lane.b32.xlu1 %v2595_v32, %s2470_s5 }
  0x6b   : > { %2139 = vrot.lane.b32.xlu0 %v2597_v33, %s2470_s5  ;;  %2144 = vrot.lane.b32.xlu1 %v2571_v16, %s2471_s6 }
  0x6f   : > { %2149 = vrot.lane.b32.xlu0 %v2577_v21, %s2471_s6  ;;  %2154 = vrot.lane.b32.xlu1 %v2579_v22, %s2471_s6 }
  0x73   : > { %2159 = vrot.lane.b32.xlu0 %v2587_v29, %s2471_s6  ;;  %2164 = vrot.lane.b32.xlu1 %v2589_v30, %s2471_s6 }
  0x77   : > { %2169 = vrot.lane.b32.xlu0 %v2591_v31, %s2471_s6  ;;  %2174 = vrot.lane.b32.xlu1 %v2595_v32, %s2471_s6 }
  0x7b   : > { %2179 = vrot.lane.b32.xlu0 %v2597_v33, %s2471_s6  ;;  %2184 = vrot.lane.b32.xlu1 %v2702_v41, %s2465_s27 }
  0x7f   : > { %2189 = vrot.lane.b32.xlu0 %v2717_v46, %s2465_s27  ;;  %2194 = vrot.lane.b32.xlu1 %v2720_v47, %s2465_s27 }
  0x83   : > { %2199 = vrot.lane.b32.xlu0 %v2740_v53, %s2465_s27  ;;  %2204 = vrot.lane.b32.xlu1 %v2743_v54, %s2465_s27 }
  0x87   : > { %2209 = vrot.lane.b32.xlu0 %v2758_v59, %s2465_s27  ;;  %2214 = vrot.lane.b32.xlu1 %v2761_v60, %s2465_s27 }
  0x8a   : > { %v2774_v0 = vpop.permute.xlu1 %256  ;;  %v2776_v1 = vpop.permute.xlu0 %246 }
  0x8b   : > { %2219 = vrot.lane.b32.xlu0 %v2772_v63, %s2465_s27  ;;  %2224 = vrot.lane.b32.xlu1 %v2702_v41, %s2467_s28 }
  0x8e   : > { %v2782_v2 = vpop.permute.xlu1 %261  ;;  %v2784_v3 = vpop.permute.xlu0 %251 }
  0x8f   : > { %2229 = vrot.lane.b32.xlu0 %v2717_v46, %s2467_s28  ;;  %2234 = vrot.lane.b32.xlu1 %v2720_v47, %s2467_s28 }
  0x92   : > { %v2790_v4 = vpop.permute.xlu1 %271  ;;  %v2792_v5 = vpop.permute.xlu0 %266 }
  0x93   : > { %2239 = vrot.lane.b32.xlu0 %v2740_v53, %s2467_s28  ;;  %2244 = vrot.lane.b32.xlu1 %v2743_v54, %s2467_s28 }
  0x96   : > { %v2798_v6 = vpop.permute.xlu1 %288  ;;  %v2800_v7 = vpop.permute.xlu0 %276 }
  0x97   : > { %2249 = vrot.lane.b32.xlu0 %v2758_v59, %s2467_s28  ;;  %2254 = vrot.lane.b32.xlu1 %v2761_v60, %s2467_s28 }
  0x9a   : > { %v2806_v8 = vpop.permute.xlu0 %293  ;;  %v1945_v9 = vpop.permute.xlu1 %1944 }
  0x9b   : > { %v1947_v10 = vunpack.i.h.bf16 %v1945_v9  ;;  %v1946_v11 = vunpack.i.l.bf16 %v1945_v9  ;;  %2259 = vrot.lane.b32.xlu0 %v2772_v63, %s2467_s28  ;;  %2264 = vrot.lane.b32.xlu1 %v2702_v41, %s2468_s29 }
  0x9d   : > { %v358_v14 = vsel %vm357_vm1, %v1946_v11, %v1947_v10 }
  0x9e   : > { %v1950_v12 = vpop.permute.xlu0 %1949  ;;  %v1955_v13 = vpop.permute.xlu1 %1954 }
  0x9f   : > { %v1952_v15 = vunpack.i.h.bf16 %v1950_v12  ;;  %v1951_v16 = vunpack.i.l.bf16 %v1950_v12  ;;  %v1957_v17 = vunpack.i.h.bf16 %v1955_v13  ;;  %v1956_v18 = vunpack.i.l.bf16 %v1955_v13  ;;  %2269 = vrot.lane.b32.xlu0 %v2717_v46, %s2468_s29  ;;  %2274 = vrot.lane.b32.xlu1 %v2720_v47, %s2468_s29 }
  0xa1   : > { %v359_v19 = vsel %vm357_vm1, %v1951_v16, %v1952_v15  ;;  %v677_v23 = vsel %vm357_vm1, %v1956_v18, %v1957_v17 }
  0xa2   : > { %v1960_v20 = vpop.permute.xlu0 %1959  ;;  %v1965_v21 = vpop.permute.xlu1 %1964  ;;  %v1730_v22 = vpack.c.bf16 %v359_v19, %v358_v14 }
  0xa3   : > { %v1962_v24 = vunpack.i.h.bf16 %v1960_v20  ;;  %v1961_v25 = vunpack.i.l.bf16 %v1960_v20  ;;  %v1967_v26 = vunpack.i.h.bf16 %v1965_v21  ;;  %v1966_v27 = vunpack.i.l.bf16 %v1965_v21  ;;  %2279 = vrot.lane.b32.xlu0 %v2740_v53, %s2468_s29  ;;  %2284 = vrot.lane.b32.xlu1 %v2743_v54, %s2468_s29 }
  0xa4   : > { %1731 = vmatpush1.bf16.msra.mxu0 %v1730_v22 }
  0xa5   : > { %v678_v28 = vsel %vm357_vm1, %v1961_v25, %v1962_v24  ;;  %1732 = vmatprep.subr.bf16.mxu0 %v2466_v34  ;;  %v360_v32 = vsel %vm357_vm1, %v1966_v27, %v1967_v26 }
  0xa6   : > { %v1970_v29 = vpop.permute.xlu0 %1969  ;;  %v1975_v30 = vpop.permute.xlu1 %1974  ;;  %v1772_v31 = vpack.c.bf16 %v678_v28, %v677_v23 }
  0xa7   : > { %v1972_v33 = vunpack.i.h.bf16 %v1970_v29  ;;  %v1971_v35 = vunpack.i.l.bf16 %v1970_v29  ;;  %v1977_v36 = vunpack.i.h.bf16 %v1975_v30  ;;  %v1976_v37 = vunpack.i.l.bf16 %v1975_v30  ;;  %2289 = vrot.lane.b32.xlu0 %v2758_v59, %s2468_s29  ;;  %2294 = vrot.lane.b32.xlu1 %v2761_v60, %s2468_s29 }
  0xa8   : > { %1773 = vmatpush1.bf16.msra.mxu1 %v1772_v31 }
  0xa9   : > { %v361_v38 = vsel %vm357_vm1, %v1971_v35, %v1972_v33  ;;  %1774 = vmatprep.subr.bf16.mxu1 %v2466_v34  ;;  %v679_v49 = vsel %vm357_vm1, %v1976_v37, %v1977_v36 }
  0xaa   : > { %v1980_v40 = vpop.permute.xlu0 %1979  ;;  %v1985_v43 = vpop.permute.xlu1 %1984  ;;  %v1733_v45 = vpack.c.bf16 %v361_v38, %v360_v32 }
  0xab   : > { %v1982_v51 = vunpack.i.h.bf16 %v1980_v40  ;;  %v1981_v52 = vunpack.i.l.bf16 %v1980_v40  ;;  %v1987_v56 = vunpack.i.h.bf16 %v1985_v43  ;;  %v1986_v58 = vunpack.i.l.bf16 %v1985_v43  ;;  %2299 = vrot.lane.b32.xlu0 %v2772_v63, %s2468_s29  ;;  %2304 = vrot.lane.b32.xlu1 %v2702_v41, %s2469_s30 }
  0xac   : > { %1734 = vmatpush1.bf16.msra.mxu0 %v1733_v45 }
  0xad   : > { %v680_v62 = vsel %vm357_vm1, %v1981_v52, %v1982_v51  ;;  %1735 = vmatprep.subr.bf16.mxu0 %v2466_v34  ;;  %v383_v12 = vsel %vm382_vm2, %v1986_v58, %v1987_v56 }
  0xae   : > { %v1990_v9 = vpop.permute.xlu0 %1989  ;;  %v1995_v10 = vpop.permute.xlu1 %1994  ;;  %v1775_v11 = vpack.c.bf16 %v680_v62, %v679_v49 }
  0xaf   : > { %v1992_v13 = vunpack.i.h.bf16 %v1990_v9  ;;  %v1991_v14 = vunpack.i.l.bf16 %v1990_v9  ;;  %v1997_v15 = vunpack.i.h.bf16 %v1995_v10  ;;  %v1996_v16 = vunpack.i.l.bf16 %v1995_v10  ;;  %2309 = vrot.lane.b32.xlu0 %v2717_v46, %s2469_s30  ;;  %2314 = vrot.lane.b32.xlu1 %v2720_v47, %s2469_s30 }
  0xb0   : > { %1776 = vmatpush1.bf16.msra.mxu1 %v1775_v11 }
  0xb1   : > { %v384_v17 = vsel %vm382_vm2, %v1991_v14, %v1992_v13  ;;  %1777 = vmatprep.subr.bf16.mxu1 %v2466_v34  ;;  %v701_v21 = vsel %vm382_vm2, %v1996_v16, %v1997_v15 }
  0xb2   : > { %v2000_v18 = vpop.permute.xlu0 %1999  ;;  %v2005_v19 = vpop.permute.xlu1 %2004  ;;  %v1736_v20 = vpack.c.bf16 %v384_v17, %v383_v12 }
  0xb3   : > { %v2002_v22 = vunpack.i.h.bf16 %v2000_v18  ;;  %v2001_v23 = vunpack.i.l.bf16 %v2000_v18  ;;  %v2007_v24 = vunpack.i.h.bf16 %v2005_v19  ;;  %v2006_v25 = vunpack.i.l.bf16 %v2005_v19  ;;  %2319 = vrot.lane.b32.xlu0 %v2740_v53, %s2469_s30  ;;  %2324 = vrot.lane.b32.xlu1 %v2743_v54, %s2469_s30 }
  0xb4   : > { %1737 = vmatpush1.bf16.msra.mxu0 %v1736_v20 }
  0xb5   : > { %v702_v26 = vsel %vm382_vm2, %v2001_v23, %v2002_v22  ;;  %1738 = vmatprep.subr.bf16.mxu0 %v2466_v34  ;;  %v385_v30 = vsel %vm382_vm2, %v2006_v25, %v2007_v24 }
  0xb6   : > { %v2010_v27 = vpop.permute.xlu0 %2009  ;;  %v2015_v28 = vpop.permute.xlu1 %2014  ;;  %v1778_v29 = vpack.c.bf16 %v702_v26, %v701_v21 }
  0xb7   : > { %v2012_v31 = vunpack.i.h.bf16 %v2010_v27  ;;  %v2011_v32 = vunpack.i.l.bf16 %v2010_v27  ;;  %v2017_v33 = vunpack.i.h.bf16 %v2015_v28  ;;  %v2016_v35 = vunpack.i.l.bf16 %v2015_v28  ;;  %2329 = vrot.lane.b32.xlu0 %v2758_v59, %s2469_s30  ;;  %2334 = vrot.lane.b32.xlu1 %v2761_v60, %s2469_s30 }
  0xb8   : > { %1779 = vmatpush1.bf16.msra.mxu1 %v1778_v29 }
  0xb9   : > { %v386_v36 = vsel %vm382_vm2, %v2011_v32, %v2012_v31  ;;  %1780 = vmatprep.subr.bf16.mxu1 %v2466_v34  ;;  %v703_v43 = vsel %vm382_vm2, %v2016_v35, %v2017_v33 }
  0xba   : > { %v2020_v37 = vpop.permute.xlu0 %2019  ;;  %v2025_v38 = vpop.permute.xlu1 %2024  ;;  %v1739_v40 = vpack.c.bf16 %v386_v36, %v385_v30 }
  0xbb   : > { %v2022_v45 = vunpack.i.h.bf16 %v2020_v37  ;;  %v2021_v49 = vunpack.i.l.bf16 %v2020_v37  ;;  %v2027_v51 = vunpack.i.h.bf16 %v2025_v38  ;;  %v2026_v52 = vunpack.i.l.bf16 %v2025_v38  ;;  %2339 = vrot.lane.b32.xlu0 %v2772_v63, %s2469_s30  ;;  %2344 = vrot.lane.b32.xlu1 %v2702_v41, %s2470_s5 }
  0xbc   : > { %1740 = vmatpush1.bf16.msra.mxu0 %v1739_v40 }
  0xbd   : > { %v704_v56 = vsel %vm382_vm2, %v2021_v49, %v2022_v45  ;;  %1741 = vmatprep.subr.bf16.mxu0 %v2466_v34  ;;  %v408_v10 = vsel %vm407_vm3, %v2026_v52, %v2027_v51 }
  0xbe   : > { %v2030_v58 = vpop.permute.xlu0 %2029  ;;  %v2035_v62 = vpop.permute.xlu1 %2034  ;;  %v1781_v9 = vpack.c.bf16 %v704_v56, %v703_v43 }
  0xbf   : > { %v2032_v11 = vunpack.i.h.bf16 %v2030_v58  ;;  %v2031_v12 = vunpack.i.l.bf16 %v2030_v58  ;;  %v2037_v13 = vunpack.i.h.bf16 %v2035_v62  ;;  %v2036_v14 = vunpack.i.l.bf16 %v2035_v62  ;;  %2349 = vrot.lane.b32.xlu0 %v2717_v46, %s2470_s5  ;;  %2354 = vrot.lane.b32.xlu1 %v2720_v47, %s2470_s5 }
  0xc0   : > { %1782 = vmatpush1.bf16.msra.mxu1 %v1781_v9 }
  0xc1   : > { %v409_v15 = vsel %vm407_vm3, %v2031_v12, %v2032_v11  ;;  %1783 = vmatprep.subr.bf16.mxu1 %v2466_v34  ;;  %v725_v19 = vsel %vm407_vm3, %v2036_v14, %v2037_v13 }
  0xc2   : > { %v2040_v16 = vpop.permute.xlu0 %2039  ;;  %v2045_v17 = vpop.permute.xlu1 %2044  ;;  %v1742_v18 = vpack.c.bf16 %v409_v15, %v408_v10 }
  0xc3   : > { %v2042_v20 = vunpack.i.h.bf16 %v2040_v16  ;;  %v2041_v21 = vunpack.i.l.bf16 %v2040_v16  ;;  %v2047_v22 = vunpack.i.h.bf16 %v2045_v17  ;;  %v2046_v23 = vunpack.i.l.bf16 %v2045_v17  ;;  %2359 = vrot.lane.b32.xlu0 %v2740_v53, %s2470_s5  ;;  %2364 = vrot.lane.b32.xlu1 %v2743_v54, %s2470_s5 }
  0xc4   : > { %1743 = vmatpush1.bf16.msra.mxu0 %v1742_v18 }
  0xc5   : > { %v726_v24 = vsel %vm407_vm3, %v2041_v21, %v2042_v20  ;;  %1744 = vmatprep.subr.bf16.mxu0 %v2466_v34  ;;  %v410_v28 = vsel %vm407_vm3, %v2046_v23, %v2047_v22 }
  0xc6   : > { %v2050_v25 = vpop.permute.xlu0 %2049  ;;  %v2055_v26 = vpop.permute.xlu1 %2054  ;;  %v1784_v27 = vpack.c.bf16 %v726_v24, %v725_v19 }
  0xc7   : > { %v2052_v29 = vunpack.i.h.bf16 %v2050_v25  ;;  %v2051_v30 = vunpack.i.l.bf16 %v2050_v25  ;;  %v2057_v31 = vunpack.i.h.bf16 %v2055_v26  ;;  %v2056_v32 = vunpack.i.l.bf16 %v2055_v26  ;;  %2369 = vrot.lane.b32.xlu0 %v2758_v59, %s2470_s5  ;;  %2374 = vrot.lane.b32.xlu1 %v2761_v60, %s2470_s5 }
  0xc8   : > { %1785 = vmatpush1.bf16.msra.mxu1 %v1784_v27 }
  0xc9   : > { %v411_v33 = vsel %vm407_vm3, %v2051_v30, %v2052_v29  ;;  %1786 = vmatprep.subr.bf16.mxu1 %v2466_v34  ;;  %v727_v38 = vsel %vm407_vm3, %v2056_v32, %v2057_v31 }
  0xca   : > { %v2060_v35 = vpop.permute.xlu0 %2059  ;;  %v2065_v36 = vpop.permute.xlu1 %2064  ;;  %v1745_v37 = vpack.c.bf16 %v411_v33, %v410_v28 }
  0xcb   : > { %v2062_v40 = vunpack.i.h.bf16 %v2060_v35  ;;  %v2061_v43 = vunpack.i.l.bf16 %v2060_v35  ;;  %v2067_v45 = vunpack.i.h.bf16 %v2065_v36  ;;  %v2066_v49 = vunpack.i.l.bf16 %v2065_v36  ;;  %2379 = vrot.lane.b32.xlu0 %v2772_v63, %s2470_s5  ;;  %2384 = vrot.lane.b32.xlu1 %v2702_v41, %s2471_s6  ;;  %v283_v36 = vld [vmem:[%s3308_s3 + $0x20] sm:$0xff] }
  0xcc   : > { %1746 = vmatpush1.bf16.msra.mxu0 %v1745_v37 }
  0xcd   : > { %v728_v51 = vsel %vm407_vm3, %v2061_v43, %v2062_v40  ;;  %1747 = vmatprep.subr.bf16.mxu0 %v2466_v34  ;;  %v433_v62 = vsel %vm432_vm4, %v2066_v49, %v2067_v45 }
  0xce   : > { %v2070_v52 = vpop.permute.xlu0 %2069  ;;  %v2075_v56 = vpop.permute.xlu1 %2074  ;;  %v1787_v58 = vpack.c.bf16 %v728_v51, %v727_v38 }
  0xcf   : > { %v2072_v9 = vunpack.i.h.bf16 %v2070_v52  ;;  %v2071_v10 = vunpack.i.l.bf16 %v2070_v52  ;;  %v2077_v11 = vunpack.i.h.bf16 %v2075_v56  ;;  %v2076_v12 = vunpack.i.l.bf16 %v2075_v56  ;;  %2389 = vrot.lane.b32.xlu0 %v2717_v46, %s2471_s6  ;;  %2394 = vrot.lane.b32.xlu1 %v2720_v47, %s2471_s6  ;;  %v284_v56 = vld [vmem:[%s3308_s3 + $0x28] sm:$0xff] }
  0xd0   : > { %1788 = vmatpush1.bf16.msra.mxu1 %v1787_v58  ;;  %v285_v58 = vld [vmem:[%s3308_s3 + $0x30] sm:$0x7f] }
  0xd1   : > { %v434_v41 = vsel %vm432_vm4, %v2071_v10, %v2072_v9  ;;  %1789 = vmatprep.subr.bf16.mxu1 %v2466_v34  ;;  %v749_v16 = vsel %vm432_vm4, %v2076_v12, %v2077_v11 }
  0xd2   : > { %v2080_v13 = vpop.permute.xlu0 %2079  ;;  %v2085_v14 = vpop.permute.xlu1 %2084  ;;  %v1748_v15 = vpack.c.bf16 %v434_v41, %v433_v62 }
  0xd3   : > { %v2082_v17 = vunpack.i.h.bf16 %v2080_v13  ;;  %v2081_v18 = vunpack.i.l.bf16 %v2080_v13  ;;  %v2087_v19 = vunpack.i.h.bf16 %v2085_v14  ;;  %v2086_v20 = vunpack.i.l.bf16 %v2085_v14  ;;  %2399 = vrot.lane.b32.xlu0 %v2740_v53, %s2471_s6  ;;  %2404 = vrot.lane.b32.xlu1 %v2743_v54, %s2471_s6  ;;  %v281_v53 = vld [vmem:[%s3308_s3 + $0x10] sm:$0xff] }
  0xd4   : > { %1749 = vmatpush1.bf16.msra.mxu0 %v1748_v15 }
  0xd5   : > { %v750_v46 = vsel %vm432_vm4, %v2081_v18, %v2082_v17  ;;  %1750 = vmatprep.subr.bf16.mxu0 %v2466_v34  ;;  %v435_v23 = vsel %vm432_vm4, %v2086_v20, %v2087_v19 }
  0xd6   : > { %v2090_v47 = vpop.permute.xlu0 %2089  ;;  %v2095_v21 = vpop.permute.xlu1 %2094  ;;  %v1790_v22 = vpack.c.bf16 %v750_v46, %v749_v16 }
  0xd7   : > { %v2092_v24 = vunpack.i.h.bf16 %v2090_v47  ;;  %v2091_v25 = vunpack.i.l.bf16 %v2090_v47  ;;  %v2097_v26 = vunpack.i.h.bf16 %v2095_v21  ;;  %v2096_v27 = vunpack.i.l.bf16 %v2095_v21  ;;  %2409 = vrot.lane.b32.xlu0 %v2758_v59, %s2471_s6  ;;  %2414 = vrot.lane.b32.xlu1 %v2761_v60, %s2471_s6  ;;  %v282_v60 = vld [vmem:[%s3308_s3 + $0x18] sm:$0xff] }
  0xd8   : > { %1791 = vmatpush1.bf16.msra.mxu1 %v1790_v22 }
  0xd9   : > { %v436_v54 = vsel %vm432_vm4, %v2091_v25, %v2092_v24  ;;  %1792 = vmatprep.subr.bf16.mxu1 %v2466_v34  ;;  %v751_v31 = vsel %vm432_vm4, %v2096_v27, %v2097_v26 }
  0xda   : > { %v2100_v28 = vpop.permute.xlu0 %2099  ;;  %v2105_v29 = vpop.permute.xlu1 %2104  ;;  %v1751_v30 = vpack.c.bf16 %v436_v54, %v435_v23 }
  0xdb   : > { %v2102_v32 = vunpack.i.h.bf16 %v2100_v28  ;;  %v2101_v59 = vunpack.i.l.bf16 %v2100_v28  ;;  %v2107_v33 = vunpack.i.h.bf16 %v2105_v29  ;;  %v2106_v35 = vunpack.i.l.bf16 %v2105_v29  ;;  %2419 = vrot.lane.b32.xlu0 %v2772_v63, %s2471_s6  ;;  %298 = vperm.xlu1 %1942, %v281_v53  }
  0xdc   : > { %1752 = vmatpush1.bf16.msra.mxu0 %v1751_v30 }
  0xdd   : > { %v752_v37 = vsel %vm432_vm4, %v2101_v59, %v2102_v32  ;;  %1753 = vmatprep.subr.bf16.mxu0 %v2466_v34  ;;  %v458_v45 = vsel %vm457_vm5, %v2106_v35, %v2107_v33 }
  0xde   : > { %v2110_v38 = vpop.permute.xlu0 %2109  ;;  %v2115_v40 = vpop.permute.xlu1 %2114  ;;  %v1793_v43 = vpack.c.bf16 %v752_v37, %v751_v31 }
  0xdf   : > { %v2112_v63 = vunpack.i.h.bf16 %v2110_v38  ;;  %v2111_v49 = vunpack.i.l.bf16 %v2110_v38  ;;  %v2117_v51 = vunpack.i.h.bf16 %v2115_v40  ;;  %v2116_v52 = vunpack.i.l.bf16 %v2115_v40  ;;  %303 = vperm.xlu0 %1941, %v282_v60   ;;  %308 = vperm.xlu1 %1942, %v283_v36  }
  0xe0   : > { %1794 = vmatpush1.bf16.msra.mxu1 %v1793_v43 }
  0xe1   : > { %v459_v62 = vsel %vm457_vm5, %v2111_v49, %v2112_v63  ;;  %1795 = vmatprep.subr.bf16.mxu1 %v2466_v34  ;;  %v773_v12 = vsel %vm457_vm5, %v2116_v52, %v2117_v51 }
  0xe2   : > { %v2120_v9 = vpop.permute.xlu0 %2119  ;;  %v2125_v10 = vpop.permute.xlu1 %2124  ;;  %v1754_v11 = vpack.c.bf16 %v459_v62, %v458_v45 }
  0xe3   : > { %v2122_v41 = vunpack.i.h.bf16 %v2120_v9  ;;  %v2121_v13 = vunpack.i.l.bf16 %v2120_v9  ;;  %v2127_v14 = vunpack.i.h.bf16 %v2125_v10  ;;  %v2126_v15 = vunpack.i.l.bf16 %v2125_v10  ;;  %313 = vperm.xlu0 %1941, %v284_v56   ;;  %318 = vperm.xlu1 %1942, %v285_v58  }
  0xe4   : > { %1755 = vmatpush1.bf16.msra.mxu0 %v1754_v11 }
  0xe5   : > { %v774_v16 = vsel %vm457_vm5, %v2121_v13, %v2122_v41  ;;  %1756 = vmatprep.subr.bf16.mxu0 %v2466_v34  ;;  %v460_v20 = vsel %vm457_vm5, %v2126_v15, %v2127_v14 }
  0xe6   : > { %v2130_v17 = vpop.permute.xlu0 %2129  ;;  %v2135_v18 = vpop.permute.xlu1 %2134  ;;  %v1796_v19 = vpack.c.bf16 %v774_v16, %v773_v12 }
  0xe7   : > { %v2132_v46 = vunpack.i.h.bf16 %v2130_v17  ;;  %v2131_v47 = vunpack.i.l.bf16 %v2130_v17  ;;  %v2137_v21 = vunpack.i.h.bf16 %v2135_v18  ;;  %v2136_v22 = vunpack.i.l.bf16 %v2135_v18 }
  0xe8   : > { %1797 = vmatpush1.bf16.msra.mxu1 %v1796_v19 }
  0xe9   : > { %v461_v23 = vsel %vm457_vm5, %v2131_v47, %v2132_v46  ;;  %1798 = vmatprep.subr.bf16.mxu1 %v2466_v34  ;;  %v775_v27 = vsel %vm457_vm5, %v2136_v22, %v2137_v21  ;;  %v2961_v47 = vld [vmem:[%s3306_s1] sm:$0xff]  ;;  %v1808_v21 = vpack.c.bf16 %v2705_v42, %v2694_v39  ;;  %v2976_v39 = vld [vmem:[%s3306_s1 + $0x10] sm:$0xff]  ;;  %v1811_v42 = vpack.c.bf16 %v2746_v55, %v2727_v50  ;;  %v2991_v50 = vld [vmem:[%s3306_s1 + $0x28] sm:$0xff] }
  0xea   : > { %v2140_v24 = vpop.permute.xlu0 %2139  ;;  %v2145_v25 = vpop.permute.xlu1 %2144  ;;  %v1757_v26 = vpack.c.bf16 %v461_v23, %v460_v20 }
  0xeb   : > { %v2142_v53 = vunpack.i.h.bf16 %v2140_v24  ;;  %v2141_v54 = vunpack.i.l.bf16 %v2140_v24  ;;  %v2147_v28 = vunpack.i.h.bf16 %v2145_v25  ;;  %v2146_v29 = vunpack.i.l.bf16 %v2145_v25 }
  0xec   : > { %1758 = vmatpush1.bf16.msra.mxu0 %v1757_v26 }
  0xed   : > { %v776_v30 = vsel %vm457_vm5, %v2141_v54, %v2142_v53  ;;  %1759 = vmatprep.subr.bf16.mxu0 %v2466_v34  ;;  %v483_v33 = vsel %vm482_vm6, %v2146_v29, %v2147_v28  ;;  %v2970_v53 = vld [vmem:[%s3306_s1 + $0x18] sm:$0xff]  ;;  %v1850_v29 = vpack.c.bf16 %v2723_v48, %v2709_v44 }
  0xee   : > { %v2150_v31 = vpop.permute.xlu0 %2149  ;;  %v2155_v32 = vpop.permute.xlu1 %2154  ;;  %v1799_v59 = vpack.c.bf16 %v776_v30, %v775_v27 }
  0xef   : > { %v2152_v35 = vunpack.i.h.bf16 %v2150_v31  ;;  %v2151_v60 = vunpack.i.l.bf16 %v2150_v31  ;;  %v2157_v36 = vunpack.i.h.bf16 %v2155_v32  ;;  %v2156_v37 = vunpack.i.l.bf16 %v2155_v32 }
  0xf0   : > { %1800 = vmatpush1.bf16.msra.mxu1 %v1799_v59 }
  0xf1   : > { %v484_v38 = vsel %vm482_vm6, %v2151_v60, %v2152_v35  ;;  %1801 = vmatprep.subr.bf16.mxu1 %v2466_v34  ;;  %v797_v63 = vsel %vm482_vm6, %v2156_v37, %v2157_v36  ;;  %v2998_v36 = vld [vmem:[%s3306_s1 + $0x20] sm:$0xff]  ;;  %v1853_v37 = vpack.c.bf16 %v2764_v61, %v2750_v57  ;;  %v3014_v57 = vld [vmem:[%s3306_s1 + $0x38] sm:$0xff] }
  0xf2   : > { %v2160_v40 = vpop.permute.xlu0 %2159  ;;  %v2165_v43 = vpop.permute.xlu1 %2164  ;;  %v1760_v45 = vpack.c.bf16 %v484_v38, %v483_v33 }
  0xf3   : > { %v2162_v49 = vunpack.i.h.bf16 %v2160_v40  ;;  %v2161_v51 = vunpack.i.l.bf16 %v2160_v40  ;;  %v2167_v52 = vunpack.i.h.bf16 %v2165_v43  ;;  %v2166_v56 = vunpack.i.l.bf16 %v2165_v43 }
  0xf4   : > { %1761 = vmatpush1.bf16.msra.mxu0 %v1760_v45 }
  0xf5   : > { %v798_v58 = vsel %vm482_vm6, %v2161_v51, %v2162_v49  ;;  %1762 = vmatprep.subr.bf16.mxu0 %v2466_v34  ;;  %v485_v11 = vsel %vm482_vm6, %v2166_v56, %v2167_v52 }
  0xf6   : > { %v2170_v62 = vpop.permute.xlu0 %2169  ;;  %v2175_v9 = vpop.permute.xlu1 %2174  ;;  %v1802_v10 = vpack.c.bf16 %v798_v58, %v797_v63  ;;  %v3021_v58 = vld [vmem:[%s3306_s1 + $0x30] sm:$0xff] }
  0xf7   : > { %v2172_v12 = vunpack.i.h.bf16 %v2170_v62  ;;  %v2171_v41 = vunpack.i.l.bf16 %v2170_v62  ;;  %v2177_v13 = vunpack.i.h.bf16 %v2175_v9  ;;  %v2176_v14 = vunpack.i.l.bf16 %v2175_v9 }
  0xf8   : > { %1803 = vmatpush1.bf16.msra.mxu1 %v1802_v10 }
  0xf9   : > { %v486_v15 = vsel %vm482_vm6, %v2171_v41, %v2172_v12  ;;  %1804 = vmatprep.subr.bf16.mxu1 %v2466_v34  ;;  %v799_v46 = vsel %vm482_vm6, %v2176_v14, %v2177_v13  ;;  %v3034_v13 = vld [vmem:[%s3306_s1 + $0x48] sm:$0xff] }
  0xfa   : > { %v2180_v16 = vpop.permute.xlu0 %2179  ;;  %v2185_v17 = vpop.permute.xlu1 %2184  ;;  %v1763_v18 = vpack.c.bf16 %v486_v15, %v485_v11 }
  0xfb   : > { %v2182_v19 = vunpack.i.h.bf16 %v2180_v16  ;;  %v2181_v20 = vunpack.i.l.bf16 %v2180_v16  ;;  %v2187_v23 = vunpack.i.h.bf16 %v2185_v17  ;;  %v2186_v24 = vunpack.i.l.bf16 %v2185_v17 }
  0xfc   : > { %1764 = vmatpush1.bf16.msra.mxu0 %v1763_v18  ;;  %v3041_v18 = vld [vmem:[%s3306_s1 + $0x40] sm:$0xff] }
  0xfd   : > { %1807 = vmatprep.subr.bf16.mxu0 %v2466_v34  ;;  %v800_v22 = vsel %vm482_vm6, %v2181_v20, %v2182_v19  ;;  %v970_v32 = vsel %vm357_vm1, %v2186_v24, %v2187_v23  ;;  %v3051_v20 = vld [vmem:[%s3306_s1 + $0x58] sm:$0xff] }
  0xfe   : > { %v2190_v25 = vpop.permute.xlu0 %2189  ;;  %v2195_v26 = vpop.permute.xlu1 %2194  ;;  %v1805_v27 = vpack.c.bf16 %v800_v22, %v799_v46 }
  0xff   : > { %v2192_v54 = vunpack.i.h.bf16 %v2190_v25  ;;  %v2191_v28 = vunpack.i.l.bf16 %v2190_v25  ;;  %578 = vmatmul.mubr.f32.vlgmr.msra.gmra.mrb[0].mxu0 %v2961_v47  ;;  %v2197_v30 = vunpack.i.h.bf16 %v2195_v26  ;;  %v2196_v31 = vunpack.i.l.bf16 %v2195_v26 }
 0x100   : > { %1806 = vmatpush1.bf16.msra.mxu1 %v1805_v27  ;;  %1809 = vmatpush1.bf16.msra.mxu0 %v1808_v21 }
 0x101   : > { %1637 = vmatprep.mubr.msk.f32.mxu0 %vm491_vm0, %v2970_v53  ;;  %1810 = vmatprep.subr.bf16.mxu0 %v2466_v34  ;;  %v971_v59 = vsel %vm357_vm1, %v2191_v28, %v2192_v54  ;;  %v1263_v38 = vsel %vm357_vm1, %v2196_v31, %v2197_v30  ;;  %v3063_v54 = vld [vmem:[%s3306_s1 + $0x50] sm:$0xff] }
 0x102   : > { %v2200_v33 = vpop.permute.xlu0 %2199  ;;  %v2205_v35 = vpop.permute.xlu1 %2204  ;;  %1849 = vmatprep.subr.bf16.mxu1 %v2466_v34  ;;  %v1814_v40 = vpack.c.bf16 %v971_v59, %v970_v32 }
 0x103   : > { %v2202_v44 = vunpack.i.h.bf16 %v2200_v33  ;;  %v2201_v48 = vunpack.i.l.bf16 %v2200_v33  ;;  %v2207_v55 = vunpack.i.h.bf16 %v2205_v35  ;;  %v2206_v60 = vunpack.i.l.bf16 %v2205_v35  ;;  %583 = vmatmul.mubr.f32.gmra.mrb[2].mxu0 %v2976_v39  ;;  %870 = vmatmul.mubr.f32.vlgmr.msra.gmra.mrb[0].mxu1 %v2961_v47 }
 0x104   : > { %1812 = vmatpush1.bf16.msra.mxu0 %v1811_v42  ;;  %1851 = vmatpush1.bf16.msra.mxu1 %v1850_v29  ;;  %v3071_v42 = vld [vmem:[%s3306_s1 + $0x68] sm:$0x7f] }
 0x105   : > { %1638 = vmatprep.mubr.msk.f32.mxu0 %vm491_vm0, %v2991_v50  ;;  %1654 = vmatprep.mubr.msk.f32.mxu1 %vm491_vm0, %v2970_v53  ;;  %v1264_v43 = vsel %vm357_vm1, %v2201_v48, %v2202_v44  ;;  %v972_v45 = vsel %vm357_vm1, %v2206_v60, %v2207_v55  ;;  %v3082_v48 = vld [vmem:[%s3306_s1 + $0x60] sm:$0x7f] }
 0x106   : > { %v2210_v63 = vpop.permute.xlu0 %2209  ;;  %v2215_v49 = vpop.permute.xlu1 %2214  ;;  %1813 = vmatprep.subr.bf16.mxu0 %v2466_v34  ;;  %1852 = vmatprep.subr.bf16.mxu1 %v2466_v34  ;;  %v1856_v9 = vpack.c.bf16 %v1264_v43, %v1263_v38 }
 0x107   : > { %v2212_v61 = vunpack.i.h.bf16 %v2210_v63  ;;  %v2211_v51 = vunpack.i.l.bf16 %v2210_v63  ;;  %v2217_v52 = vunpack.i.h.bf16 %v2215_v49  ;;  %v2216_v56 = vunpack.i.l.bf16 %v2215_v49  ;;  %588 = vmatmul.mubr.f32.gmra.mrb[4].mxu0 %v2998_v36  ;;  %875 = vmatmul.mubr.f32.gmra.mrb[2].mxu1 %v2976_v39 }
 0x108   : > { %1815 = vmatpush1.bf16.msra.mxu0 %v1814_v40  ;;  %1854 = vmatpush1.bf16.msra.mxu1 %v1853_v37 }
 0x109   : > { %v973_v62 = vsel %vm357_vm1, %v2211_v51, %v2212_v61  ;;  %1639 = vmatprep.mubr.msk.f32.mxu0 %vm491_vm0, %v3014_v57  ;;  %1655 = vmatprep.mubr.msk.f32.mxu1 %vm491_vm0, %v2991_v50  ;;  %v1265_v11 = vsel %vm357_vm1, %v2216_v56, %v2217_v52  ;;  %v2423_v51 = vld [vmem:[%s3306_s1 + $0x8] sm:$0xff] }
 0x10a   : > { %v1817_v10 = vpack.c.bf16 %v973_v62, %v972_v45  ;;  %v2220_v12 = vpop.permute.xlu0 %2219  ;;  %v2225_v41 = vpop.permute.xlu1 %2224  ;;  %1816 = vmatprep.subr.bf16.mxu0 %v2466_v34  ;;  %1855 = vmatprep.subr.bf16.mxu1 %v2466_v34 }
 0x10b   : > { %v2222_v14 = vunpack.i.h.bf16 %v2220_v12  ;;  %v2221_v15 = vunpack.i.l.bf16 %v2220_v12  ;;  %v2227_v16 = vunpack.i.h.bf16 %v2225_v41  ;;  %v2226_v17 = vunpack.i.l.bf16 %v2225_v41  ;;  %593 = vmatmul.mubr.f32.gmra.mrb[6].mxu0 %v3021_v58  ;;  %880 = vmatmul.mubr.f32.gmra.mrb[4].mxu1 %v2998_v36 }
 0x10c   : > { %1818 = vmatpush1.bf16.msra.mxu0 %v1817_v10  ;;  %1857 = vmatpush1.bf16.msra.mxu1 %v1856_v9 }
 0x10d   : > { %v1266_v19 = vsel %vm357_vm1, %v2221_v15, %v2222_v14  ;;  %1640 = vmatprep.mubr.msk.f32.mxu0 %vm491_vm0, %v3034_v13  ;;  %1656 = vmatprep.mubr.msk.f32.mxu1 %vm491_vm0, %v3014_v57  ;;  %v994_v21 = vsel %vm382_vm2, %v2226_v17, %v2227_v16 }
 0x10e   : > { %v1859_v46 = vpack.c.bf16 %v1266_v19, %v1265_v11  ;;  %v2230_v22 = vpop.permute.xlu0 %2229  ;;  %v2235_v23 = vpop.permute.xlu1 %2234  ;;  %1858 = vmatprep.subr.bf16.mxu1 %v2466_v34  ;;  %1819 = vmatprep.subr.bf16.mxu0 %v2466_v34 }
 0x10f   : > { %v2232_v24 = vunpack.i.h.bf16 %v2230_v22  ;;  %v2231_v25 = vunpack.i.l.bf16 %v2230_v22  ;;  %v2237_v26 = vunpack.i.h.bf16 %v2235_v23  ;;  %v2236_v27 = vunpack.i.l.bf16 %v2235_v23  ;;  %598 = vmatmul.mubr.f32.gmra.mrb[8].mxu0 %v3041_v18  ;;  %885 = vmatmul.mubr.f32.gmra.mrb[6].mxu1 %v3021_v58 }
 0x110   : > { %1860 = vmatpush1.bf16.msra.mxu1 %v1859_v46  ;;  %1641 = vmatprep.mubr.msk.f32.mxu0 %vm491_vm0, %v3051_v20 }
 0x111   : > { %v995_v28 = vsel %vm382_vm2, %v2231_v25, %v2232_v24  ;;  %1657 = vmatprep.mubr.msk.f32.mxu1 %vm491_vm0, %v3034_v13  ;;  %1861 = vmatprep.subr.bf16.mxu1 %v2466_v34  ;;  %v1287_v30 = vsel %vm382_vm2, %v2236_v27, %v2237_v26 }
 0x112   : > { %v1820_v29 = vpack.c.bf16 %v995_v28, %v994_v21  ;;  %v2240_v31 = vpop.permute.xlu0 %2239  ;;  %v2245_v32 = vpop.permute.xlu1 %2244 }
 0x113   : > { %v2242_v59 = vunpack.i.h.bf16 %v2240_v31  ;;  %v2241_v33 = vunpack.i.l.bf16 %v2240_v31  ;;  %v2247_v35 = vunpack.i.h.bf16 %v2245_v32  ;;  %v2246_v44 = vunpack.i.l.bf16 %v2245_v32  ;;  %603 = vmatmul.mubr.f32.gmra.mrb[10].mxu0 %v3063_v54  ;;  %890 = vmatmul.mubr.f32.gmra.mrb[8].mxu1 %v3041_v18 }
 0x114   : > { %1821 = vmatpush1.bf16.msra.mxu0 %v1820_v29  ;;  %1642 = vmatprep.mubr.msk.f32.mxu0 %vm491_vm0, %v3071_v42 }
 0x115   : > { %v1288_v55 = vsel %vm382_vm2, %v2241_v33, %v2242_v59  ;;  %1658 = vmatprep.mubr.msk.f32.mxu1 %vm491_vm0, %v3051_v20  ;;  %1822 = vmatprep.subr.bf16.mxu0 %v2466_v34  ;;  %v996_v37 = vsel %vm382_vm2, %v2246_v44, %v2247_v35 }
 0x116   : > { %v1862_v60 = vpack.c.bf16 %v1288_v55, %v1287_v30  ;;  %v2250_v38 = vpop.permute.xlu0 %2249  ;;  %v2255_v40 = vpop.permute.xlu1 %2254 }
 0x117   : > { %v2252_v43 = vunpack.i.h.bf16 %v2250_v38  ;;  %v2251_v45 = vunpack.i.l.bf16 %v2250_v38  ;;  %v2257_v63 = vunpack.i.h.bf16 %v2255_v40  ;;  %v2256_v49 = vunpack.i.l.bf16 %v2255_v40  ;;  %608 = vmatmul.mubr.f32.gmra.mrb[12].mxu0 %v3082_v48  ;;  %895 = vmatmul.mubr.f32.gmra.mrb[10].mxu1 %v3063_v54 }
 0x118   : > { %1863 = vmatpush1.bf16.msra.mxu1 %v1862_v60  ;;  %1659 = vmatprep.mubr.msk.f32.mxu1 %vm491_vm0, %v3071_v42 }
 0x119   : > { %v997_v61 = vsel %vm382_vm2, %v2251_v45, %v2252_v43  ;;  %1864 = vmatprep.subr.bf16.mxu1 %v2466_v34  ;;  %1677 = vmatprep.mubr.msk.f32.mxu0 %vm491_vm0, %v2423_v51  ;;  %v1289_v56 = vsel %vm382_vm2, %v2256_v49, %v2257_v63 }
 0x11a   : > { %v1823_v52 = vpack.c.bf16 %v997_v61, %v996_v37  ;;  %v2260_v62 = vpop.permute.xlu0 %2259  ;;  %v2265_v9 = vpop.permute.xlu1 %2264 }
 0x11b   : > { %v2262_v10 = vunpack.i.h.bf16 %v2260_v62  ;;  %v2261_v11 = vunpack.i.l.bf16 %v2260_v62  ;;  %v2267_v12 = vunpack.i.h.bf16 %v2265_v9  ;;  %v2266_v41 = vunpack.i.l.bf16 %v2265_v9  ;;  %900 = vmatmul.mubr.f32.gmra.mrb[12].mxu1 %v3082_v48 }
 0x11c   : > { %1824 = vmatpush1.bf16.msra.mxu0 %v1823_v52  ;;  %1701 = vmatprep.mubr.msk.f32.mxu1 %vm491_vm0, %v2423_v51 }
 0x11d   : > { %v1290_v14 = vsel %vm382_vm2, %v2261_v11, %v2262_v10  ;;  %1825 = vmatprep.subr.bf16.mxu0 %v2466_v34  ;;  %v1018_v16 = vsel %vm407_vm3, %v2266_v41, %v2267_v12 }
 0x11e   : > { %v1865_v15 = vpack.c.bf16 %v1290_v14, %v1289_v56  ;;  %v2270_v17 = vpop.permute.xlu0 %2269  ;;  %v2275_v19 = vpop.permute.xlu1 %2274 }
 0x11f   : > { %v2272_v46 = vunpack.i.h.bf16 %v2270_v17  ;;  %v2271_v21 = vunpack.i.l.bf16 %v2270_v17  ;;  %v2277_v22 = vunpack.i.h.bf16 %v2275_v19  ;;  %v2276_v23 = vunpack.i.l.bf16 %v2275_v19 }
 0x120   : > { %1866 = vmatpush1.bf16.msra.mxu1 %v1865_v15 }
 0x121   : > { %v1019_v24 = vsel %vm407_vm3, %v2271_v21, %v2272_v46  ;;  %1867 = vmatprep.subr.bf16.mxu1 %v2466_v34  ;;  %v1311_v26 = vsel %vm407_vm3, %v2276_v23, %v2277_v22 }
 0x122   : > { %v1826_v25 = vpack.c.bf16 %v1019_v24, %v1018_v16  ;;  %v2280_v27 = vpop.permute.xlu0 %2279  ;;  %v2285_v28 = vpop.permute.xlu1 %2284 }
 0x123   : > { %v2282_v29 = vunpack.i.h.bf16 %v2280_v27  ;;  %v2281_v30 = vunpack.i.l.bf16 %v2280_v27  ;;  %v2287_v31 = vunpack.i.h.bf16 %v2285_v28  ;;  %v2286_v32 = vunpack.i.l.bf16 %v2285_v28 }
 0x124   : > { %1827 = vmatpush1.bf16.msra.mxu0 %v1826_v25 }
 0x125   : > { %v1312_v59 = vsel %vm407_vm3, %v2281_v30, %v2282_v29  ;;  %1828 = vmatprep.subr.bf16.mxu0 %v2466_v34  ;;  %v1020_v35 = vsel %vm407_vm3, %v2286_v32, %v2287_v31 }
 0x126   : > { %v1868_v33 = vpack.c.bf16 %v1312_v59, %v1311_v26  ;;  %v2290_v44 = vpop.permute.xlu0 %2289  ;;  %v2295_v55 = vpop.permute.xlu1 %2294 }
 0x127   : > { %v2292_v60 = vunpack.i.h.bf16 %v2290_v44  ;;  %v2291_v37 = vunpack.i.l.bf16 %v2290_v44  ;;  %v2297_v38 = vunpack.i.h.bf16 %v2295_v55  ;;  %v2296_v40 = vunpack.i.l.bf16 %v2295_v55 }
 0x128   : > { %1869 = vmatpush1.bf16.msra.mxu1 %v1868_v33 }
 0x129   : > { %v1021_v43 = vsel %vm407_vm3, %v2291_v37, %v2292_v60  ;;  %1870 = vmatprep.subr.bf16.mxu1 %v2466_v34  ;;  %v1313_v63 = vsel %vm407_vm3, %v2296_v40, %v2297_v38 }
 0x12a   : > { %v1829_v45 = vpack.c.bf16 %v1021_v43, %v1020_v35  ;;  %v2300_v49 = vpop.permute.xlu0 %2299  ;;  %v2305_v61 = vpop.permute.xlu1 %2304 }
 0x12b   : > { %v2302_v51 = vunpack.i.h.bf16 %v2300_v49  ;;  %v2301_v52 = vunpack.i.l.bf16 %v2300_v49  ;;  %v2307_v56 = vunpack.i.h.bf16 %v2305_v61  ;;  %v2306_v62 = vunpack.i.l.bf16 %v2305_v61 }
 0x12c   : > { %1830 = vmatpush1.bf16.msra.mxu0 %v1829_v45 }
 0x12d   : > { %v1314_v9 = vsel %vm407_vm3, %v2301_v52, %v2302_v51  ;;  %1831 = vmatprep.subr.bf16.mxu0 %v2466_v34  ;;  %v1042_v11 = vsel %vm432_vm4, %v2306_v62, %v2307_v56 }
 0x12e   : > { %v1871_v10 = vpack.c.bf16 %v1314_v9, %v1313_v63  ;;  %v2310_v12 = vpop.permute.xlu0 %2309  ;;  %v2315_v41 = vpop.permute.xlu1 %2314 }
 0x12f   : > { %v2312_v14 = vunpack.i.h.bf16 %v2310_v12  ;;  %v2311_v15 = vunpack.i.l.bf16 %v2310_v12  ;;  %v2317_v16 = vunpack.i.h.bf16 %v2315_v41  ;;  %v2316_v17 = vunpack.i.l.bf16 %v2315_v41 }
 0x130   : > { %1872 = vmatpush1.bf16.msra.mxu1 %v1871_v10 }
 0x131   : > { %v1043_v19 = vsel %vm432_vm4, %v2311_v15, %v2312_v14  ;;  %1873 = vmatprep.subr.bf16.mxu1 %v2466_v34  ;;  %v1335_v21 = vsel %vm432_vm4, %v2316_v17, %v2317_v16 }
 0x132   : > { %v1832_v46 = vpack.c.bf16 %v1043_v19, %v1042_v11  ;;  %v2320_v22 = vpop.permute.xlu0 %2319  ;;  %v2325_v23 = vpop.permute.xlu1 %2324 }
 0x133   : > { %v2322_v24 = vunpack.i.h.bf16 %v2320_v22  ;;  %v2321_v25 = vunpack.i.l.bf16 %v2320_v22  ;;  %v2327_v26 = vunpack.i.h.bf16 %v2325_v23  ;;  %v2326_v27 = vunpack.i.l.bf16 %v2325_v23 }
 0x134   : > { %1833 = vmatpush1.bf16.msra.mxu0 %v1832_v46 }
 0x135   : > { %v1336_v28 = vsel %vm432_vm4, %v2321_v25, %v2322_v24  ;;  %1834 = vmatprep.subr.bf16.mxu0 %v2466_v34  ;;  %v1044_v30 = vsel %vm432_vm4, %v2326_v27, %v2327_v26 }
 0x136   : > { %v1874_v29 = vpack.c.bf16 %v1336_v28, %v1335_v21  ;;  %v2330_v31 = vpop.permute.xlu0 %2329  ;;  %v2335_v32 = vpop.permute.xlu1 %2334 }
 0x137   : > { %v2332_v59 = vunpack.i.h.bf16 %v2330_v31  ;;  %v2331_v33 = vunpack.i.l.bf16 %v2330_v31  ;;  %v2337_v35 = vunpack.i.h.bf16 %v2335_v32  ;;  %v2336_v44 = vunpack.i.l.bf16 %v2335_v32 }
 0x138   : > { %1875 = vmatpush1.bf16.msra.mxu1 %v1874_v29 }
 0x139   : > { %v1045_v55 = vsel %vm432_vm4, %v2331_v33, %v2332_v59  ;;  %1876 = vmatprep.subr.bf16.mxu1 %v2466_v34  ;;  %v1337_v37 = vsel %vm432_vm4, %v2336_v44, %v2337_v35 }
 0x13a   : > { %v1835_v60 = vpack.c.bf16 %v1045_v55, %v1044_v30  ;;  %v2340_v38 = vpop.permute.xlu0 %2339  ;;  %v2345_v40 = vpop.permute.xlu1 %2344 }
 0x13b   : > { %v2342_v43 = vunpack.i.h.bf16 %v2340_v38  ;;  %v2341_v45 = vunpack.i.l.bf16 %v2340_v38  ;;  %v2347_v63 = vunpack.i.h.bf16 %v2345_v40  ;;  %v2346_v49 = vunpack.i.l.bf16 %v2345_v40 }
 0x13c   : > { %1836 = vmatpush1.bf16.msra.mxu0 %v1835_v60 }
 0x13d   : > { %v1338_v61 = vsel %vm432_vm4, %v2341_v45, %v2342_v43  ;;  %1837 = vmatprep.subr.bf16.mxu0 %v2466_v34  ;;  %v1066_v52 = vsel %vm457_vm5, %v2346_v49, %v2347_v63 }
 0x13e   : > { %v1877_v51 = vpack.c.bf16 %v1338_v61, %v1337_v37  ;;  %v2350_v56 = vpop.permute.xlu0 %2349  ;;  %v2355_v62 = vpop.permute.xlu1 %2354 }
 0x13f   : > { %v2352_v9 = vunpack.i.h.bf16 %v2350_v56  ;;  %v2351_v10 = vunpack.i.l.bf16 %v2350_v56  ;;  %v2357_v11 = vunpack.i.h.bf16 %v2355_v62  ;;  %v2356_v12 = vunpack.i.l.bf16 %v2355_v62 }
 0x140   : > { %1878 = vmatpush1.bf16.msra.mxu1 %v1877_v51 }
 0x141   : > { %v1067_v41 = vsel %vm457_vm5, %v2351_v10, %v2352_v9  ;;  %1879 = vmatprep.subr.bf16.mxu1 %v2466_v34  ;;  %v1359_v15 = vsel %vm457_vm5, %v2356_v12, %v2357_v11 }
 0x142   : > { %v1838_v14 = vpack.c.bf16 %v1067_v41, %v1066_v52  ;;  %v2360_v16 = vpop.permute.xlu0 %2359  ;;  %v2365_v17 = vpop.permute.xlu1 %2364 }
 0x143   : > { %v2362_v19 = vunpack.i.h.bf16 %v2360_v16  ;;  %v2361_v46 = vunpack.i.l.bf16 %v2360_v16  ;;  %v2367_v21 = vunpack.i.h.bf16 %v2365_v17  ;;  %v2366_v22 = vunpack.i.l.bf16 %v2365_v17 }
 0x144   : > { %1839 = vmatpush1.bf16.msra.mxu0 %v1838_v14 }
 0x145   : > { %v1360_v23 = vsel %vm457_vm5, %v2361_v46, %v2362_v19  ;;  %1840 = vmatprep.subr.bf16.mxu0 %v2466_v34  ;;  %v1068_v25 = vsel %vm457_vm5, %v2366_v22, %v2367_v21 }
 0x146   : > { %v1880_v24 = vpack.c.bf16 %v1360_v23, %v1359_v15  ;;  %v2370_v26 = vpop.permute.xlu0 %2369  ;;  %v2375_v27 = vpop.permute.xlu1 %2374 }
 0x147   : > { %v2372_v28 = vunpack.i.h.bf16 %v2370_v26  ;;  %v2371_v29 = vunpack.i.l.bf16 %v2370_v26  ;;  %v2377_v30 = vunpack.i.h.bf16 %v2375_v27  ;;  %v2376_v31 = vunpack.i.l.bf16 %v2375_v27 }
 0x148   : > { %1881 = vmatpush1.bf16.msra.mxu1 %v1880_v24 }
 0x149   : > { %v1069_v32 = vsel %vm457_vm5, %v2371_v29, %v2372_v28  ;;  %1882 = vmatprep.subr.bf16.mxu1 %v2466_v34  ;;  %v1361_v33 = vsel %vm457_vm5, %v2376_v31, %v2377_v30 }
 0x14a   : > { %v1841_v59 = vpack.c.bf16 %v1069_v32, %v1068_v25  ;;  %v2380_v35 = vpop.permute.xlu0 %2379  ;;  %v2385_v44 = vpop.permute.xlu1 %2384 }
 0x14b   : > { %v2382_v55 = vunpack.i.h.bf16 %v2380_v35  ;;  %v2381_v60 = vunpack.i.l.bf16 %v2380_v35  ;;  %v2387_v37 = vunpack.i.h.bf16 %v2385_v44  ;;  %v2386_v38 = vunpack.i.l.bf16 %v2385_v44 }
 0x14c   : > { %1842 = vmatpush1.bf16.msra.mxu0 %v1841_v59 }
 0x14d   : > { %v1362_v40 = vsel %vm457_vm5, %v2381_v60, %v2382_v55  ;;  %1843 = vmatprep.subr.bf16.mxu0 %v2466_v34  ;;  %v1090_v45 = vsel %vm482_vm6, %v2386_v38, %v2387_v37 }
 0x14e   : > { %v1883_v43 = vpack.c.bf16 %v1362_v40, %v1361_v33  ;;  %v2390_v63 = vpop.permute.xlu0 %2389  ;;  %v2395_v49 = vpop.permute.xlu1 %2394 }
 0x14f   : > { %v2392_v61 = vunpack.i.h.bf16 %v2390_v63  ;;  %v2391_v51 = vunpack.i.l.bf16 %v2390_v63  ;;  %v2397_v52 = vunpack.i.h.bf16 %v2395_v49  ;;  %v2396_v56 = vunpack.i.l.bf16 %v2395_v49 }
 0x150   : > { %1884 = vmatpush1.bf16.msra.mxu1 %v1883_v43 }
 0x151   : > { %v1091_v62 = vsel %vm482_vm6, %v2391_v51, %v2392_v61  ;;  %1885 = vmatprep.subr.bf16.mxu1 %v2466_v34  ;;  %v1383_v10 = vsel %vm482_vm6, %v2396_v56, %v2397_v52 }
 0x152   : > { %v1844_v9 = vpack.c.bf16 %v1091_v62, %v1090_v45  ;;  %v2400_v11 = vpop.permute.xlu0 %2399  ;;  %v2405_v12 = vpop.permute.xlu1 %2404 }
 0x153   : > { %v2402_v41 = vunpack.i.h.bf16 %v2400_v11  ;;  %v2401_v14 = vunpack.i.l.bf16 %v2400_v11  ;;  %v2407_v15 = vunpack.i.h.bf16 %v2405_v12  ;;  %v2406_v16 = vunpack.i.l.bf16 %v2405_v12 }
 0x154   : > { %1845 = vmatpush1.bf16.msra.mxu0 %v1844_v9 }
 0x155   : > { %v1384_v17 = vsel %vm482_vm6, %v2401_v14, %v2402_v41  ;;  %1846 = vmatprep.subr.bf16.mxu0 %v2466_v34  ;;  %v1092_v46 = vsel %vm482_vm6, %v2406_v16, %v2407_v15 }
 0x156   : > { %v1886_v19 = vpack.c.bf16 %v1384_v17, %v1383_v10  ;;  %v2410_v21 = vpop.permute.xlu0 %2409  ;;  %v2415_v22 = vpop.permute.xlu1 %2414 }
 0x157   : > { %v2412_v23 = vunpack.i.h.bf16 %v2410_v21  ;;  %v2411_v24 = vunpack.i.l.bf16 %v2410_v21  ;;  %v2417_v25 = vunpack.i.h.bf16 %v2415_v22  ;;  %v2416_v26 = vunpack.i.l.bf16 %v2415_v22 }
 0x158   : > { %1887 = vmatpush1.bf16.msra.mxu1 %v1886_v19 }
 0x159   : > { %v1093_v27 = vsel %vm482_vm6, %v2411_v24, %v2412_v23  ;;  %1888 = vmatprep.subr.bf16.mxu1 %v2466_v34  ;;  %v1385_v30 = vsel %vm482_vm6, %v2416_v26, %v2417_v25 }
 0x15a   : > { %v1847_v28 = vpack.c.bf16 %v1093_v27, %v1092_v46  ;;  %v2420_v29 = vpop.permute.xlu0 %2419  ;;  %v3205_v43 = vpop.permute.xlu1 %298 }
 0x15b   : > { %v2422_v31 = vunpack.i.h.bf16 %v2420_v29  ;;  %v2421_v32 = vunpack.i.l.bf16 %v2420_v29 }
 0x15c   : > { %1848 = vmatpush1.bf16.msra.mxu0 %v1847_v28 }
 0x15d   : > { %v1386_v59 = vsel %vm482_vm6, %v2421_v32, %v2422_v31 }
 0x15e   : > { %v1889_v33 = vpack.c.bf16 %v1386_v59, %v1385_v30  ;;  %v3213_v11 = vpop.permute.xlu0 %303  ;;  %v3221_v23 = vpop.permute.xlu1 %308 }
 0x15f   : > { %1163 = vmatmul.mubr.f32.vlgmr.msra.gmra.mrb[14].mxu0 %v2961_v47 }
 0x160   : > { %1890 = vmatpush1.bf16.msra.mxu1 %v1889_v33  ;;  %1678 = vmatprep.mubr.msk.f32.mxu0 %vm491_vm0, %v2970_v53 }
 0x162   : > { %v3229_v33 = vpop.permute.xlu0 %313 }
 0x163   : > { %1168 = vmatmul.mubr.f32.gmra.mrb[16].mxu0 %v2976_v39  ;;  %1456 = vmatmul.mubr.f32.vlgmr.msra.gmra.mrb[14].mxu1 %v2961_v47 }
 0x164   : > { %1679 = vmatprep.mubr.msk.f32.mxu0 %vm491_vm0, %v2991_v50  ;;  %1702 = vmatprep.mubr.msk.f32.mxu1 %vm491_vm0, %v2970_v53 }
 0x167   : > { %1173 = vmatmul.mubr.f32.gmra.mrb[18].mxu0 %v2998_v36  ;;  %1461 = vmatmul.mubr.f32.gmra.mrb[16].mxu1 %v2976_v39 }
 0x168   : > { %1680 = vmatprep.mubr.msk.f32.mxu0 %vm491_vm0, %v3014_v57  ;;  %1703 = vmatprep.mubr.msk.f32.mxu1 %vm491_vm0, %v2991_v50 }
 0x16b   : > { %1178 = vmatmul.mubr.f32.gmra.mrb[20].mxu0 %v3021_v58  ;;  %1466 = vmatmul.mubr.f32.gmra.mrb[18].mxu1 %v2998_v36 }
 0x16c   : > { %1681 = vmatprep.mubr.msk.f32.mxu0 %vm491_vm0, %v3034_v13  ;;  %1704 = vmatprep.mubr.msk.f32.mxu1 %vm491_vm0, %v3014_v57 }
 0x16f   : > { %1183 = vmatmul.mubr.f32.gmra.mrb[22].mxu0 %v3041_v18  ;;  %1471 = vmatmul.mubr.f32.gmra.mrb[20].mxu1 %v3021_v58 }
 0x170   : > { %1682 = vmatprep.mubr.msk.f32.mxu0 %vm491_vm0, %v3051_v20  ;;  %1705 = vmatprep.mubr.msk.f32.mxu1 %vm491_vm0, %v3034_v13 }
 0x173   : > { %1188 = vmatmul.mubr.f32.gmra.mrb[24].mxu0 %v3063_v54  ;;  %1476 = vmatmul.mubr.f32.gmra.mrb[22].mxu1 %v3041_v18 }
 0x174   : > { %1683 = vmatprep.mubr.msk.f32.mxu0 %vm491_vm0, %v3071_v42  ;;  %1706 = vmatprep.mubr.msk.f32.mxu1 %vm491_vm0, %v3051_v20 }
 0x177   : > { %1193 = vmatmul.mubr.f32.gmra.mrb[26].mxu0 %v3082_v48  ;;  %1481 = vmatmul.mubr.f32.gmra.mrb[24].mxu1 %v3063_v54 }
 0x178   : > { %1707 = vmatprep.mubr.msk.f32.mxu1 %vm491_vm0, %v3071_v42 }
 0x17b   : > { %1486 = vmatmul.mubr.f32.gmra.mrb[26].mxu1 %v3082_v48 }
 0x1d2   : > { %v579_v34 = vpop.f32.mrb[0].mxu0 }
 0x1d3   : > { %v613_v47 = vmul.f32 %v579_v34, %v2776_v1  ;;  %v581_v53 = vpop.f32.mrb[1].mxu0 }
 0x1d5   : > { %v620_v39 = vadd.f32 %v613_v47, %v2798_v6 }
 0x1d6   : > { %v584_v50 = vpop.f32.mrb[2].mxu0  ;;  %v871_v36 = vpop.f32.mrb[0].mxu1 }
 0x1d7   : > { %v627_v57 = vmax.f32 %v620_v39, 0.0  ;;  %v614_v58 = vmul.f32 %v584_v50, %v2784_v3  ;;  %v905_v13 = vmul.f32 %v871_v36, %v2776_v1  ;;  %v586_v18 = vpop.f32.mrb[3].mxu0  ;;  %v873_v20 = vpop.f32.mrb[1].mxu1 }
 0x1d8   : > { %v3237_v20 = vpop.permute.xlu1 %318 }
 0x1d9   : > { %634 = vst [vmem:[%s3196_s23] sm:$0xff] %v627_v57  ;;  %v621_v54 = vadd.f32 %v614_v58, %v2806_v8  ;;  %v912_v42 = vadd.f32 %v905_v13, %v2798_v6 }
 0x1da   : > { %v589_v48 = vpop.f32.mrb[4].mxu0  ;;  %v876_v35 = vpop.f32.mrb[2].mxu1 }
 0x1db   : > { %v628_v44 = vmax.f32 %v621_v54, 0.0  ;;  %v919_v55 = vmax.f32 %v912_v42, 0.0  ;;  %v615_v60 = vmul.f32 %v589_v48, %v2774_v0  ;;  %v906_v37 = vmul.f32 %v876_v35, %v2784_v3  ;;  %v591_v38 = vpop.f32.mrb[5].mxu0  ;;  %v878_v40 = vpop.f32.mrb[3].mxu1 }
 0x1dd   : > { %635 = vst [vmem:[%s3196_s23 + $0x8] sm:$0xff] %v628_v44  ;;  %1660 = vst [vmem:[%s3196_s23 + $0x38] sm:$0xff] %v919_v55  ;;  %v622_v45 = vadd.f32 %v615_v60, %v3205_v43  ;;  %v913_v63 = vadd.f32 %v906_v37, %v2806_v8 }
 0x1de   : > { %v594_v49 = vpop.f32.mrb[6].mxu0  ;;  %v881_v61 = vpop.f32.mrb[4].mxu1 }
 0x1df   : > { %v629_v51 = vmax.f32 %v622_v45, 0.0  ;;  %v920_v52 = vmax.f32 %v913_v63, 0.0  ;;  %v616_v56 = vmul.f32 %v594_v49, %v2782_v2  ;;  %v907_v62 = vmul.f32 %v881_v61, %v2774_v0  ;;  %v596_v9 = vpop.f32.mrb[7].mxu0  ;;  %v883_v10 = vpop.f32.mrb[5].mxu1 }
 0x1e1   : > { %636 = vst [vmem:[%s3196_s23 + $0x10] sm:$0xff] %v629_v51  ;;  %1661 = vst [vmem:[%s3196_s23 + $0x40] sm:$0xff] %v920_v52  ;;  %v623_v12 = vadd.f32 %v616_v56, %v3213_v11  ;;  %v914_v41 = vadd.f32 %v907_v62, %v3205_v43 }
 0x1e2   : > { %v599_v14 = vpop.f32.mrb[8].mxu0  ;;  %v886_v15 = vpop.f32.mrb[6].mxu1 }
 0x1e3   : > { %v630_v16 = vmax.f32 %v623_v12, 0.0  ;;  %v921_v17 = vmax.f32 %v914_v41, 0.0  ;;  %v617_v19 = vmul.f32 %v599_v14, %v2792_v5  ;;  %v908_v46 = vmul.f32 %v886_v15, %v2782_v2  ;;  %v601_v21 = vpop.f32.mrb[9].mxu0  ;;  %v888_v22 = vpop.f32.mrb[7].mxu1 }
 0x1e5   : > { %637 = vst [vmem:[%s3196_s23 + $0x18] sm:$0xff] %v630_v16  ;;  %1662 = vst [vmem:[%s3196_s23 + $0x48] sm:$0xff] %v921_v17  ;;  %v624_v24 = vadd.f32 %v617_v19, %v3221_v23  ;;  %v915_v25 = vadd.f32 %v908_v46, %v3213_v11 }
 0x1e6   : > { %v604_v26 = vpop.f32.mrb[10].mxu0  ;;  %v891_v27 = vpop.f32.mrb[8].mxu1 }
 0x1e7   : > { %v631_v28 = vmax.f32 %v624_v24, 0.0  ;;  %v922_v29 = vmax.f32 %v915_v25, 0.0  ;;  %v618_v30 = vmul.f32 %v604_v26, %v2790_v4  ;;  %v909_v31 = vmul.f32 %v891_v27, %v2792_v5  ;;  %v606_v32 = vpop.f32.mrb[11].mxu0  ;;  %v893_v59 = vpop.f32.mrb[9].mxu1 }
 0x1e9   : > { %638 = vst [vmem:[%s3196_s23 + $0x20] sm:$0xff] %v631_v28  ;;  %1663 = vst [vmem:[%s3196_s23 + $0x50] sm:$0xff] %v922_v29  ;;  %v625_v34 = vadd.f32 %v618_v30, %v3229_v33  ;;  %v916_v47 = vadd.f32 %v909_v31, %v3221_v23 }
 0x1ea   : > { %v609_v53 = vpop.f32.mrb[12].mxu0  ;;  %v896_v39 = vpop.f32.mrb[10].mxu1 }
 0x1eb   : > { %v632_v50 = vmax.f32 %v625_v34, 0.0  ;;  %v923_v36 = vmax.f32 %v916_v47, 0.0  ;;  %v619_v57 = vmul.f32 %v609_v53, %v2800_v7  ;;  %v910_v58 = vmul.f32 %v896_v39, %v2790_v4  ;;  %v898_v13 = vpop.f32.mrb[11].mxu1  ;;  %v611_v18 = vpop.f32.mrb[13].mxu0 }
 0x1ed   : > { %639 = vst [vmem:[%s3196_s23 + $0x28] sm:$0xff] %v632_v50  ;;  %1664 = vst [vmem:[%s3196_s23 + $0x58] sm:$0xff] %v923_v36  ;;  %v626_v54 = vadd.f32 %v619_v57, %v3237_v20  ;;  %v917_v42 = vadd.f32 %v910_v58, %v3229_v33 }
 0x1ee   : > { %v901_v48 = vpop.f32.mrb[12].mxu1 }
 0x1ef   : > { %v633_v35 = vmax.f32 %v626_v54, 0.0  ;;  %v924_v44 = vmax.f32 %v917_v42, 0.0  ;;  %v911_v55 = vmul.f32 %v901_v48, %v2800_v7  ;;  %v903_v60 = vpop.f32.mrb[13].mxu1 }
 0x1f1   : > { %640 = vst [vmem:[%s3196_s23 + $0x30] sm:$0x7f] %v633_v35  ;;  %1665 = vst [vmem:[%s3196_s23 + $0x60] sm:$0xff] %v924_v44  ;;  %v918_v37 = vadd.f32 %v911_v55, %v3237_v20 }
 0x1f3   : > { %v925_v38 = vmax.f32 %v918_v37, 0.0 }
 0x1f5   : > { %1666 = vst [vmem:[%s3196_s23 + $0x68] sm:$0x7f] %v925_v38 }
 0x232   : > { %v1164_v40 = vpop.f32.mrb[14].mxu0 }
 0x233   : > { %v1198_v45 = vmul.f32 %v1164_v40, %v2776_v1  ;;  %v1166_v63 = vpop.f32.mrb[15].mxu0 }
 0x235   : > { %v1205_v49 = vadd.f32 %v1198_v45, %v2798_v6 }
 0x236   : > { %v1169_v61 = vpop.f32.mrb[16].mxu0  ;;  %v1457_v51 = vpop.f32.mrb[14].mxu1 }
 0x237   : > { %v1212_v52 = vmax.f32 %v1205_v49, 0.0  ;;  %v1199_v56 = vmul.f32 %v1169_v61, %v2784_v3  ;;  %v1491_v62 = vmul.f32 %v1457_v51, %v2776_v1  ;;  %v1459_v9 = vpop.f32.mrb[15].mxu1  ;;  %v1171_v10 = vpop.f32.mrb[17].mxu0 }
 0x239   : > { %1684 = vst [vmem:[%s3196_s23 + $0x70] sm:$0xff] %v1212_v52  ;;  %v1206_v12 = vadd.f32 %v1199_v56, %v2806_v8  ;;  %v1498_v41 = vadd.f32 %v1491_v62, %v2798_v6 }
 0x23a   : > { %v1174_v14 = vpop.f32.mrb[18].mxu0  ;;  %v1462_v15 = vpop.f32.mrb[16].mxu1 }
 0x23b   : > { %v1213_v16 = vmax.f32 %v1206_v12, 0.0  ;;  %v1505_v17 = vmax.f32 %v1498_v41, 0.0  ;;  %v1200_v19 = vmul.f32 %v1174_v14, %v2774_v0  ;;  %v1492_v46 = vmul.f32 %v1462_v15, %v2784_v3  ;;  %v1464_v21 = vpop.f32.mrb[17].mxu1  ;;  %v1176_v22 = vpop.f32.mrb[19].mxu0 }
 0x23d   : > { %1685 = vst [vmem:[%s3196_s23 + $0x78] sm:$0xff] %v1213_v16  ;;  %1708 = vst [vmem:[%s3196_s23 + $0xa8] sm:$0xff] %v1505_v17  ;;  %v1207_v1 = vadd.f32 %v1200_v19, %v3205_v43  ;;  %v1499_v24 = vadd.f32 %v1492_v46, %v2806_v8 }
 0x23e   : > { %v1179_v25 = vpop.f32.mrb[20].mxu0  ;;  %v1467_v6 = vpop.f32.mrb[18].mxu1 }
 0x23f   : > { %v1214_v26 = vmax.f32 %v1207_v1, 0.0  ;;  %v1506_v27 = vmax.f32 %v1499_v24, 0.0  ;;  %v1201_v28 = vmul.f32 %v1179_v25, %v2782_v2  ;;  %v1493_v29 = vmul.f32 %v1467_v6, %v2774_v0  ;;  %v1469_v3 = vpop.f32.mrb[19].mxu1  ;;  %v1181_v30 = vpop.f32.mrb[21].mxu0 }
 0x241   : > { %1686 = vst [vmem:[%s3196_s23 + $0x80] sm:$0xff] %v1214_v26  ;;  %1709 = vst [vmem:[%s3196_s23 + $0xb0] sm:$0xff] %v1506_v27  ;;  %v1208_v31 = vadd.f32 %v1201_v28, %v3213_v11  ;;  %v1500_v32 = vadd.f32 %v1493_v29, %v3205_v43 }
 0x242   : > { %v1184_v59 = vpop.f32.mrb[22].mxu0  ;;  %v1472_v8 = vpop.f32.mrb[20].mxu1 }
 0x243   : > { %v1215_v34 = vmax.f32 %v1208_v31, 0.0  ;;  %v1507_v47 = vmax.f32 %v1500_v32, 0.0  ;;  %v1202_v53 = vmul.f32 %v1184_v59, %v2792_v5  ;;  %v1494_v39 = vmul.f32 %v1472_v8, %v2782_v2  ;;  %v1474_v0 = vpop.f32.mrb[21].mxu1  ;;  %v1186_v50 = vpop.f32.mrb[23].mxu0 }
 0x245   : > { %1687 = vst [vmem:[%s3196_s23 + $0x88] sm:$0xff] %v1215_v34  ;;  %1710 = vst [vmem:[%s3196_s23 + $0xb8] sm:$0xff] %v1507_v47  ;;  %v1209_v36 = vadd.f32 %v1202_v53, %v3221_v23  ;;  %v1501_v57 = vadd.f32 %v1494_v39, %v3213_v11 }
 0x246   : > { %v1189_v58 = vpop.f32.mrb[24].mxu0  ;;  %v1477_v43 = vpop.f32.mrb[22].mxu1 }
 0x247   : > { %v1216_v13 = vmax.f32 %v1209_v36, 0.0  ;;  %v1508_v18 = vmax.f32 %v1501_v57, 0.0  ;;  %v1203_v54 = vmul.f32 %v1189_v58, %v2790_v4  ;;  %v1495_v42 = vmul.f32 %v1477_v43, %v2792_v5  ;;  %v1479_v2 = vpop.f32.mrb[23].mxu1  ;;  %v1191_v48 = vpop.f32.mrb[25].mxu0 }
 0x249   : > { %1688 = vst [vmem:[%s3196_s23 + $0x90] sm:$0xff] %v1216_v13  ;;  %1711 = vst [vmem:[%s3196_s23 + $0xc0] sm:$0xff] %v1508_v18  ;;  %v1210_v35 = vadd.f32 %v1203_v54, %v3229_v33  ;;  %v1502_v44 = vadd.f32 %v1495_v42, %v3221_v23 }
 0x24a   : > { %v1194_v55 = vpop.f32.mrb[26].mxu0  ;;  %v1482_v11 = vpop.f32.mrb[24].mxu1 }
 0x24b   : > { %v1217_v60 = vmax.f32 %v1210_v35, 0.0  ;;  %v1509_v37 = vmax.f32 %v1502_v44, 0.0  ;;  %v1204_v38 = vmul.f32 %v1194_v55, %v2800_v7  ;;  %v1496_v40 = vmul.f32 %v1482_v11, %v2790_v4  ;;  %v1484_v5 = vpop.f32.mrb[25].mxu1  ;;  %v1196_v45 = vpop.f32.mrb[27].mxu0 }
 0x24d   : > { %1689 = vst [vmem:[%s3196_s23 + $0x98] sm:$0xff] %v1217_v60  ;;  %1712 = vst [vmem:[%s3196_s23 + $0xc8] sm:$0xff] %v1509_v37  ;;  %v1211_v63 = vadd.f32 %v1204_v38, %v3237_v20  ;;  %v1503_v49 = vadd.f32 %v1496_v40, %v3229_v33 }
 0x24e   : > { %v1487_v23 = vpop.f32.mrb[26].mxu1 }
 0x24f   : > { %v1218_v61 = vmax.f32 %v1211_v63, 0.0  ;;  %v1510_v51 = vmax.f32 %v1503_v49, 0.0  ;;  %v1497_v52 = vmul.f32 %v1487_v23, %v2800_v7  ;;  %v1489_v56 = vpop.f32.mrb[27].mxu1 }
 0x251   : > { %1690 = vst [vmem:[%s3196_s23 + $0xa0] sm:$0x7f] %v1218_v61  ;;  %1713 = vst [vmem:[%s3196_s23 + $0xd0] sm:$0xff] %v1510_v51  ;;  %v1504_v62 = vadd.f32 %v1497_v52, %v3237_v20 }
 0x253   : > { %v1511_v4 = vmax.f32 %v1504_v62, 0.0 }
 0x255   : > { %1714 = vst [vmem:[%s3196_s23 + $0xd8] sm:$0x7f] %v1511_v4 }
 0x256 PF: > { %s14_s19 = sadd.s32 1, %s2462_s19   ;;  %s3310_s15 = smov %s2454_s17 }
 0x257   : > { %p11_p7 = scmp.ge.s32.totalorder %s14_s19, 6   ;;  %s3311_s16 = smov %s2458_s18 }
 0x258   : > { %s3312_s17 = smov %s3315_s20  ;;  %s3313_s18 = smov %s3319_s21 }
 0x259   :  { %13 = sbr.rel (!%p11_p7) target bundleno = 3 (0x3), region = 73 }

// kernel: _lambda_.8
= control target key start
LH: loop header
LB: loop body
LE: loop exit
PB: predicated region body
PF: predicated region fallthrough
CT: control target
= control target key end

     0   :  { %s2136_s15 = smov 0   ;;  %s2138_s16 = smov 0   ;;  %s2677_s0 = inlined_call_operand.vmem [shape: f32[2,8,32,140], index: 0, kind: input, shape index: {}]   ;;  %s2678_s1 = inlined_call_operand.vmem [shape: f32[2,224], index: 1, kind: input, shape index: {}]   ;;  %s2679_s2 = inlined_call_operand.vmem [shape: f32[2,1], index: 2, kind: input, shape index: {}]   ;;  %s2680_s3 = inlined_call_operand.vmem [shape: f32[2,1], index: 3, kind: input, shape index: {}]   ;;  %s2681_s4 = inlined_call_operand.vmem [shape: f32[2,8,2,128], index: 4, kind: output, shape index: {}]  }
   0x1   :  { %s2140_s17 = smov 0   ;;  %s2142_s18 = smov 0  }
   0x2   :  { %s2144_s19 = smov 0  }
   0x3 LB: > { %s23_s20 = sadd.s32 1, %s2093_s17  ;;  %s26_s21 = sadd.s32 1, %s2097_s18  ;;  %s2101_s19 = sphi %s2144_s19, %s14_s19   ;;  %s2097_s18 = sphi %s2142_s18, %s2685_s18   ;;  %s2093_s17 = sphi %s2140_s17, %s2684_s17   ;;  %s2089_s16 = sphi %s2138_s16, %s2683_s16   ;;  %s2085_s15 = sphi %s2136_s15, %s2682_s15  }
   0x4   : > { %p24_p0 = scmp.ge.s32.totalorder %s23_s20, 2  ;;  %p1310_p1 = scmp.ge.s32.totalorder %s2101_s19, 1 }
   0x5   : > { %p176_p2 = scmp.lt.s32.totalorder %s2101_s19, 5 }
   0x6   : > { %s2687_s20 = smov (%p24_p0, %s23_s20), 0  ;;  %s2689_s21 = smov (!%p24_p0, %s26_s21), %s2097_s18 }
   0x7   : > { %p177_p3 = pnand %p1310_p1, %p176_p2  ;;  %p28_p4 = scmp.ge.s32.totalorder %s2689_s21, 2 }
   0x8   : > { %v222_v0 = vld [vmem:[%s2679_s2] sm:$0x3] (!%p177_p3)  ;;  %p206_p5 = scmp.lt.s32.totalorder (!%p177_p3), %s2089_s16, 1  ;;  %v2103_v1 = vmov (!%p177_p3), 0   ;;  %v2104_v2 = vmov (!%p177_p3), 0.0|0.0   ;;  %s1361_s26 = sshll.u32 (!%p177_p3), %s2085_s15, 8 }
   0x9   : > { %s2691_s21 = smov (%p28_p4, %s2689_s21), 0  ;;  %180 = sbr.rel (%p177_p3) target bundleno = 558 (0x22e), region = 36 }
   0xa   : > { %1581 = vset.pattern.permute.xlu0 (!%p177_p3), %v2103_v1  ;;  %1365 = vmatprep.subr.bf16.mxu0 (!%p177_p3), %v2104_v2  ;;  %v228_v3 = vld [vmem:[%s2680_s3] sm:$0x3] (!%p177_p3)  ;;  %s2105_s6 = smov (!%p177_p3), 126   ;;  %s2106_s7 = smov (!%p177_p3), 124   ;;  %vm414_vm0 = vcmask (!%p177_p3), 785408   ;;  %vm270_vm1 = vcmask (!%p177_p3), 1031168  }
   0xb   : > { %225 = vperm.xlu0 (!%p177_p3), %1581, %v222_v0   ;;  %1407 = vmatprep.subr.bf16.mxu1 (!%p177_p3), %v2104_v2  ;;  %s2107_s8 = smov (!%p177_p3), 122   ;;  %s2108_s9 = smov (!%p177_p3), 120   ;;  %v2318_v34 = vld.sshfl [vmem:[%s2678_s1] sm:$0x33 pattern:$0x76325410] (!%p177_p3) }
   0xc   : > { %s2109_s10 = smov (!%p177_p3), 118   ;;  %s2110_s11 = smov (!%p177_p3), 116   ;;  %v2327_v36 = vcombine.high (!%p177_p3), %v2318_v34, %v2318_v34  ;;  %vm295_vm2 = vcmask (!%p177_p3), 1014784   ;;  %vm320_vm3 = vcmask (!%p177_p3), 998400   ;;  %vm345_vm4 = vcmask (!%p177_p3), 982016  }
   0xd   : > { %vm370_vm5 = vcmask (!%p177_p3), 965632   ;;  %vm395_vm6 = vcmask (!%p177_p3), 949248   ;;  %s1313_s23 = sshll.u32 (!%p177_p3), %s2085_s15, 2 }
   0xe   : > { %1320 = vmatprep.mubr.msk.f32.mxu0 (!%p177_p3), %vm414_vm0, %v2327_v36  ;;  %1331 = vmatprep.mubr.msk.f32.mxu1 (!%p177_p3), %vm414_vm0, %v2327_v36  ;;  %p214_p6 = scmp.lt.s32.totalorder (!%p177_p3), %s1313_s23, 7 }
   0xf   : > { %231 = vperm.xlu0 (!%p177_p3), %1581, %v228_v3  }
  0x10   : > { %s2693_s16 = smov (!%p206_p5, %s2089_s16), 1  ;;  %s2695_s23 = smov (!%p214_p6, %s1313_s23), 7 }
  0x11   : > { %s1359_s27 = sshll.u32 %s2693_s16, 9  ;;  %s1314_s24 = sshll.u32 %s2693_s16, 3 }
  0x12   : > { %s210_s30 = scalar_lea.vmem %s2677_s0, %s1359_s27  ;;  %s217_s25 = sadd.s32 %s1314_s24, %s2695_s23 }
  0x13   : > { %s2183_s5 = scalar_lea.vmem %s210_s30, %s1361_s26  ;;  %s1315_s26 = sshll.u32 %s217_s25, 1 }
  0x14   : > { %v238_v4 = vld [vmem:[%s2183_s5] sm:$0xff]  ;;  %v239_v5 = vld [vmem:[%s2183_s5 + $0x8] sm:$0xff]  ;;  %v240_v6 = vld [vmem:[%s2183_s5 + $0x10] sm:$0xff]  ;;  %s219_s29 = scalar_lea.vmem %s2681_s4, %s1315_s26 }
  0x15   : > { %v2188_v7 = vpack.i.bf16 %v239_v5, %v238_v4  ;;  %v241_v8 = vld [vmem:[%s2183_s5 + $0x18] sm:$0xff]  ;;  %v1323_v9 = vld [vmem:[%s2183_s5 + $0x40] sm:$0xff]  ;;  %v1324_v10 = vld [vmem:[%s2183_s5 + $0x48] sm:$0xff]  ;;  %v1366_v28 = vpack.c.bf16 %v240_v6, %v238_v4 }
  0x16   : > { %v2193_v11 = vpack.i.bf16 %v1324_v10, %v1323_v9  ;;  %v242_v12 = vld [vmem:[%s2183_s5 + $0x20] sm:$0xff]  ;;  %v2198_v13 = vpack.i.bf16 %v241_v8, %v240_v6  ;;  %v243_v14 = vld [vmem:[%s2183_s5 + $0x28] sm:$0xff]  ;;  %v1325_v15 = vld [vmem:[%s2183_s5 + $0x50] sm:$0xff] }
  0x17   : > { %1583 = vrot.lane.b32.xlu1 %v2188_v7, %s2105_s6  ;;  %v1326_v16 = vld [vmem:[%s2183_s5 + $0x58] sm:$0xff]  ;;  %v2205_v17 = vpack.i.bf16 %v243_v14, %v242_v12  ;;  %v1327_v18 = vld [vmem:[%s2183_s5 + $0x60] sm:$0xff]  ;;  %v1328_v19 = vld [vmem:[%s2183_s5 + $0x68] sm:$0xff]  ;;  %v1408_v29 = vpack.c.bf16 %v1325_v15, %v1323_v9  ;;  %1367 = vmatpush1.bf16.msra.mxu0 %v1366_v28 }
  0x18   : > { %1593 = vrot.lane.b32.xlu0 %v2193_v11, %s2105_s6  ;;  %v244_v20 = vld [vmem:[%s2183_s5 + $0x30] sm:$0xff]  ;;  %v245_v21 = vld [vmem:[%s2183_s5 + $0x38] sm:$0xff]  ;;  %v2213_v22 = vpack.i.bf16 %v1326_v16, %v1325_v15  ;;  %v2217_v23 = vpack.i.bf16 %v1328_v19, %v1327_v18  ;;  %1368 = vmatprep.subr.bf16.mxu0 %v2104_v2  ;;  %v2310_v32 = vld [vmem:[%s2183_s5 + $0x80] sm:$0xff] }
  0x19   : > { %v2219_v24 = vpack.i.bf16 %v245_v21, %v244_v20  ;;  %v1329_v25 = vld [vmem:[%s2183_s5 + $0x70] sm:$0xff]  ;;  %v1330_v26 = vld [vmem:[%s2183_s5 + $0x78] sm:$0xff]  ;;  %v1369_v30 = vpack.c.bf16 %v244_v20, %v242_v12  ;;  %1409 = vmatpush1.bf16.msra.mxu1 %v1408_v29  ;;  %v1336_v33 = vld [vmem:[%s2183_s5 + $0x88] sm:$0xff] }
  0x1a   : > { %v2223_v27 = vpack.i.bf16 %v1330_v26, %v1329_v25  ;;  %v1411_v31 = vpack.c.bf16 %v1329_v25, %v1327_v18  ;;  %1410 = vmatprep.subr.bf16.mxu1 %v2104_v2  ;;  %v2323_v35 = vpack.i.bf16 %v1336_v33, %v2310_v32  ;;  %v2330_v37 = vld [vmem:[%s2183_s5 + $0xc0] sm:$0xff]  ;;  %v1348_v38 = vld [vmem:[%s2183_s5 + $0xc8] sm:$0xff]  ;;  %v2342_v39 = vld [vmem:[%s2183_s5 + $0x90] sm:$0xff] }
  0x1b   : > { %1588 = vrot.lane.b32.xlu1 %v2198_v13, %s2105_s6  ;;  %1370 = vmatpush1.bf16.msra.mxu0 %v1369_v30  ;;  %v1338_v40 = vld [vmem:[%s2183_s5 + $0x98] sm:$0xff]  ;;  %v2346_v41 = vpack.i.bf16 %v1348_v38, %v2330_v37  ;;  %v2349_v42 = vld [vmem:[%s2183_s5 + $0xa0] sm:$0xff]  ;;  %v1340_v43 = vld [vmem:[%s2183_s5 + $0xa8] sm:$0xff] }
  0x1c   : > { %1603 = vrot.lane.b32.xlu0 %v2205_v17, %s2105_s6  ;;  %1371 = vmatprep.subr.bf16.mxu0 %v2104_v2  ;;  %v2355_v44 = vpack.i.bf16 %v1338_v40, %v2342_v39  ;;  %v2360_v45 = vld [vmem:[%s2183_s5 + $0xd0] sm:$0xff]  ;;  %v1350_v46 = vld [vmem:[%s2183_s5 + $0xd8] sm:$0xff]  ;;  %v2364_v47 = vpack.i.bf16 %v1340_v43, %v2349_v42  ;;  %v2367_v48 = vld [vmem:[%s2183_s5 + $0xe0] sm:$0xff] }
  0x1d   : > { %1412 = vmatpush1.bf16.msra.mxu1 %v1411_v31  ;;  %v1352_v49 = vld [vmem:[%s2183_s5 + $0xe8] sm:$0xff]  ;;  %v2373_v50 = vpack.i.bf16 %v1350_v46, %v2360_v45  ;;  %v2378_v51 = vld [vmem:[%s2183_s5 + $0xb0] sm:$0xff]  ;;  %v1342_v52 = vld [vmem:[%s2183_s5 + $0xb8] sm:$0xff] }
  0x1e   : > { %1413 = vmatprep.subr.bf16.mxu1 %v2104_v2  ;;  %v2382_v53 = vpack.i.bf16 %v1352_v49, %v2367_v48  ;;  %v2387_v54 = vpack.i.bf16 %v1342_v52, %v2378_v51  ;;  %v2392_v55 = vld [vmem:[%s2183_s5 + $0xf0] sm:$0xff]  ;;  %v1354_v56 = vld [vmem:[%s2183_s5 + $0xf8] sm:$0xff] }
  0x1f   : > { %1598 = vrot.lane.b32.xlu1 %v2213_v22, %s2105_s6  ;;  %v2398_v57 = vpack.i.bf16 %v1354_v56, %v2392_v55 }
  0x20   : > { %1613 = vrot.lane.b32.xlu0 %v2217_v23, %s2105_s6 }
  0x23   : > { %1608 = vrot.lane.b32.xlu1 %v2219_v24, %s2105_s6 }
  0x24   : > { %1623 = vrot.lane.b32.xlu0 %v2188_v7, %s2106_s7 }
  0x27   : > { %1618 = vrot.lane.b32.xlu1 %v2223_v27, %s2105_s6 }
  0x28   : > { %1633 = vrot.lane.b32.xlu0 %v2193_v11, %s2106_s7 }
  0x2b   : > { %1628 = vrot.lane.b32.xlu1 %v2198_v13, %s2106_s7 }
  0x2c   : > { %1643 = vrot.lane.b32.xlu0 %v2205_v17, %s2106_s7 }
  0x2f   : > { %1638 = vrot.lane.b32.xlu1 %v2213_v22, %s2106_s7 }
  0x30   : > { %1653 = vrot.lane.b32.xlu0 %v2217_v23, %s2106_s7 }
  0x33   : > { %1648 = vrot.lane.b32.xlu1 %v2219_v24, %s2106_s7 }
  0x34   : > { %1663 = vrot.lane.b32.xlu0 %v2188_v7, %s2107_s8 }
  0x37   : > { %1658 = vrot.lane.b32.xlu1 %v2223_v27, %s2106_s7 }
  0x38   : > { %1673 = vrot.lane.b32.xlu0 %v2193_v11, %s2107_s8 }
  0x3b   : > { %1668 = vrot.lane.b32.xlu1 %v2198_v13, %s2107_s8 }
  0x3c   : > { %1683 = vrot.lane.b32.xlu0 %v2205_v17, %s2107_s8 }
  0x3f   : > { %1678 = vrot.lane.b32.xlu1 %v2213_v22, %s2107_s8 }
  0x40   : > { %1693 = vrot.lane.b32.xlu0 %v2217_v23, %s2107_s8 }
  0x43   : > { %1688 = vrot.lane.b32.xlu1 %v2219_v24, %s2107_s8 }
  0x44   : > { %1703 = vrot.lane.b32.xlu0 %v2188_v7, %s2108_s9 }
  0x47   : > { %1698 = vrot.lane.b32.xlu1 %v2223_v27, %s2107_s8 }
  0x48   : > { %1713 = vrot.lane.b32.xlu0 %v2193_v11, %s2108_s9 }
  0x4b   : > { %1708 = vrot.lane.b32.xlu1 %v2198_v13, %s2108_s9 }
  0x4c   : > { %1723 = vrot.lane.b32.xlu0 %v2205_v17, %s2108_s9 }
  0x4f   : > { %1718 = vrot.lane.b32.xlu1 %v2213_v22, %s2108_s9 }
  0x50   : > { %1733 = vrot.lane.b32.xlu0 %v2217_v23, %s2108_s9 }
  0x53   : > { %1728 = vrot.lane.b32.xlu1 %v2219_v24, %s2108_s9 }
  0x54   : > { %1743 = vrot.lane.b32.xlu0 %v2188_v7, %s2109_s10 }
  0x57   : > { %1738 = vrot.lane.b32.xlu1 %v2223_v27, %s2108_s9 }
  0x58   : > { %1753 = vrot.lane.b32.xlu0 %v2193_v11, %s2109_s10 }
  0x5b   : > { %1748 = vrot.lane.b32.xlu1 %v2198_v13, %s2109_s10 }
  0x5c   : > { %1763 = vrot.lane.b32.xlu0 %v2205_v17, %s2109_s10 }
  0x5f   : > { %1758 = vrot.lane.b32.xlu1 %v2213_v22, %s2109_s10 }
  0x60   : > { %1773 = vrot.lane.b32.xlu0 %v2217_v23, %s2109_s10 }
  0x63   : > { %1768 = vrot.lane.b32.xlu1 %v2219_v24, %s2109_s10 }
  0x64   : > { %1783 = vrot.lane.b32.xlu0 %v2188_v7, %s2110_s11 }
  0x67   : > { %1778 = vrot.lane.b32.xlu1 %v2223_v27, %s2109_s10 }
  0x68   : > { %1793 = vrot.lane.b32.xlu0 %v2193_v11, %s2110_s11 }
  0x6b   : > { %1788 = vrot.lane.b32.xlu1 %v2198_v13, %s2110_s11 }
  0x6c   : > { %1803 = vrot.lane.b32.xlu0 %v2205_v17, %s2110_s11 }
  0x6f   : > { %1798 = vrot.lane.b32.xlu1 %v2213_v22, %s2110_s11 }
  0x70   : > { %1813 = vrot.lane.b32.xlu0 %v2217_v23, %s2110_s11 }
  0x73   : > { %1808 = vrot.lane.b32.xlu1 %v2219_v24, %s2110_s11 }
  0x74   : > { %1823 = vrot.lane.b32.xlu0 %v2323_v35, %s2105_s6 }
  0x77   : > { %1818 = vrot.lane.b32.xlu1 %v2223_v27, %s2110_s11 }
  0x78   : > { %1833 = vrot.lane.b32.xlu0 %v2346_v41, %s2105_s6 }
  0x7b   : > { %1828 = vrot.lane.b32.xlu1 %v2355_v44, %s2105_s6 }
  0x7c   : > { %1843 = vrot.lane.b32.xlu0 %v2364_v47, %s2105_s6 }
  0x7f   : > { %1838 = vrot.lane.b32.xlu1 %v2373_v50, %s2105_s6 }
  0x80   : > { %1853 = vrot.lane.b32.xlu0 %v2382_v53, %s2105_s6 }
  0x83   : > { %1848 = vrot.lane.b32.xlu1 %v2387_v54, %s2105_s6 }
  0x84   : > { %1863 = vrot.lane.b32.xlu0 %v2323_v35, %s2106_s7 }
  0x87   : > { %1858 = vrot.lane.b32.xlu1 %v2398_v57, %s2105_s6 }
  0x88   : > { %1873 = vrot.lane.b32.xlu0 %v2346_v41, %s2106_s7 }
  0x89   : > { %v1584_v58 = vpop.permute.xlu1 %1583 }
  0x8a   : > { %v1586_v59 = vunpack.i.h.bf16 %v1584_v58  ;;  %v1585_v60 = vunpack.i.l.bf16 %v1584_v58  ;;  %v2410_v62 = vpop.permute.xlu0 %225 }
  0x8b   : > { %1868 = vrot.lane.b32.xlu1 %v2355_v44, %s2106_s7 }
  0x8c   : > { %1883 = vrot.lane.b32.xlu0 %v2364_v47, %s2106_s7  ;;  %v271_v1 = vsel %vm270_vm1, %v1585_v60, %v1586_v59 }
  0x8d   : > { %v1589_v61 = vpop.permute.xlu1 %1588 }
  0x8e   : > { %v1591_v63 = vunpack.i.h.bf16 %v1589_v61  ;;  %v1590_v0 = vunpack.i.l.bf16 %v1589_v61  ;;  %v2418_v6 = vpop.permute.xlu0 %231 }
  0x8f   : > { %1878 = vrot.lane.b32.xlu1 %v2373_v50, %s2106_s7 }
  0x90   : > { %v272_v3 = vsel %vm270_vm1, %v1590_v0, %v1591_v63  ;;  %1893 = vrot.lane.b32.xlu0 %v2382_v53, %s2106_s7 }
  0x91   : > { %v1372_v4 = vpack.c.bf16 %v272_v3, %v271_v1  ;;  %v1599_v5 = vpop.permute.xlu1 %1598 }
  0x92   : > { %v1601_v7 = vunpack.i.h.bf16 %v1599_v5  ;;  %v1600_v8 = vunpack.i.l.bf16 %v1599_v5  ;;  %v1594_v10 = vpop.permute.xlu0 %1593 }
  0x93   : > { %1373 = vmatpush1.bf16.msra.mxu0 %v1372_v4  ;;  %1888 = vrot.lane.b32.xlu1 %v2387_v54, %s2106_s7  ;;  %v1596_v13 = vunpack.i.h.bf16 %v1594_v10  ;;  %v1595_v14 = vunpack.i.l.bf16 %v1594_v10 }
  0x94   : > { %1374 = vmatprep.subr.bf16.mxu0 %v2104_v2  ;;  %1903 = vrot.lane.b32.xlu0 %v2323_v35, %s2107_s8  ;;  %v528_v15 = vsel %vm270_vm1, %v1600_v8, %v1601_v7 }
  0x95   : > { %v1609_v9 = vpop.permute.xlu1 %1608  ;;  %v527_v16 = vsel %vm270_vm1, %v1595_v14, %v1596_v13 }
  0x96   : > { %v1611_v11 = vunpack.i.h.bf16 %v1609_v9  ;;  %v1610_v12 = vunpack.i.l.bf16 %v1609_v9  ;;  %v1604_v18 = vpop.permute.xlu0 %1603  ;;  %v1414_v19 = vpack.c.bf16 %v528_v15, %v527_v16 }
  0x97   : > { %1898 = vrot.lane.b32.xlu1 %v2398_v57, %s2106_s7  ;;  %v1606_v21 = vunpack.i.h.bf16 %v1604_v18  ;;  %v1605_v22 = vunpack.i.l.bf16 %v1604_v18 }
  0x98   : > { %1913 = vrot.lane.b32.xlu0 %v2346_v41, %s2107_s8  ;;  %v274_v20 = vsel %vm270_vm1, %v1610_v12, %v1611_v11  ;;  %1415 = vmatpush1.bf16.msra.mxu1 %v1414_v19 }
  0x99   : > { %v1619_v17 = vpop.permute.xlu1 %1618  ;;  %v273_v25 = vsel %vm270_vm1, %v1605_v22, %v1606_v21  ;;  %1416 = vmatprep.subr.bf16.mxu1 %v2104_v2 }
  0x9a   : > { %v1621_v23 = vunpack.i.h.bf16 %v1619_v17  ;;  %v1620_v24 = vunpack.i.l.bf16 %v1619_v17  ;;  %v1614_v27 = vpop.permute.xlu0 %1613  ;;  %v1375_v28 = vpack.c.bf16 %v274_v20, %v273_v25 }
  0x9b   : > { %1908 = vrot.lane.b32.xlu1 %v2355_v44, %s2107_s8  ;;  %v1616_v31 = vunpack.i.h.bf16 %v1614_v27  ;;  %v1615_v33 = vunpack.i.l.bf16 %v1614_v27 }
  0x9c   : > { %1923 = vrot.lane.b32.xlu0 %v2364_v47, %s2107_s8  ;;  %v530_v38 = vsel %vm270_vm1, %v1620_v24, %v1621_v23  ;;  %1376 = vmatpush1.bf16.msra.mxu0 %v1375_v28 }
  0x9d   : > { %v1629_v26 = vpop.permute.xlu1 %1628  ;;  %v529_v40 = vsel %vm270_vm1, %v1615_v33, %v1616_v31  ;;  %1377 = vmatprep.subr.bf16.mxu0 %v2104_v2 }
  0x9e   : > { %v1631_v29 = vunpack.i.h.bf16 %v1629_v26  ;;  %v1630_v30 = vunpack.i.l.bf16 %v1629_v26  ;;  %v1624_v46 = vpop.permute.xlu0 %1623  ;;  %v1417_v49 = vpack.c.bf16 %v530_v38, %v529_v40 }
  0x9f   : > { %1918 = vrot.lane.b32.xlu1 %v2373_v50, %s2107_s8  ;;  %v1626_v56 = vunpack.i.h.bf16 %v1624_v46  ;;  %v1625_v58 = vunpack.i.l.bf16 %v1624_v46 }
  0xa0   : > { %1933 = vrot.lane.b32.xlu0 %v2382_v53, %s2107_s8  ;;  %v297_v52 = vsel %vm295_vm2, %v1630_v30, %v1631_v29  ;;  %1418 = vmatpush1.bf16.msra.mxu1 %v1417_v49 }
  0xa1   : > { %v1639_v43 = vpop.permute.xlu1 %1638  ;;  %v296_v61 = vsel %vm295_vm2, %v1625_v58, %v1626_v56  ;;  %1419 = vmatprep.subr.bf16.mxu1 %v2104_v2 }
  0xa2   : > { %v1641_v59 = vunpack.i.h.bf16 %v1639_v43  ;;  %v1640_v60 = vunpack.i.l.bf16 %v1639_v43  ;;  %v1634_v0 = vpop.permute.xlu0 %1633  ;;  %v1378_v1 = vpack.c.bf16 %v297_v52, %v296_v61 }
  0xa3   : > { %1928 = vrot.lane.b32.xlu1 %v2387_v54, %s2107_s8  ;;  %v1636_v5 = vunpack.i.h.bf16 %v1634_v0  ;;  %v1635_v7 = vunpack.i.l.bf16 %v1634_v0 }
  0xa4   : > { %1943 = vrot.lane.b32.xlu0 %v2323_v35, %s2108_s9  ;;  %v552_v8 = vsel %vm295_vm2, %v1640_v60, %v1641_v59  ;;  %1379 = vmatpush1.bf16.msra.mxu0 %v1378_v1 }
  0xa5   : > { %v1649_v63 = vpop.permute.xlu1 %1648  ;;  %v551_v9 = vsel %vm295_vm2, %v1635_v7, %v1636_v5  ;;  %1380 = vmatprep.subr.bf16.mxu0 %v2104_v2 }
  0xa6   : > { %v1651_v3 = vunpack.i.h.bf16 %v1649_v63  ;;  %v1650_v4 = vunpack.i.l.bf16 %v1649_v63  ;;  %v1644_v11 = vpop.permute.xlu0 %1643  ;;  %v1420_v12 = vpack.c.bf16 %v552_v8, %v551_v9 }
  0xa7   : > { %1938 = vrot.lane.b32.xlu1 %v2398_v57, %s2107_s8  ;;  %v1646_v14 = vunpack.i.h.bf16 %v1644_v11  ;;  %v1645_v15 = vunpack.i.l.bf16 %v1644_v11 }
  0xa8   : > { %1953 = vrot.lane.b32.xlu0 %v2346_v41, %s2108_s9  ;;  %v299_v13 = vsel %vm295_vm2, %v1650_v4, %v1651_v3  ;;  %1421 = vmatpush1.bf16.msra.mxu1 %v1420_v12 }
  0xa9   : > { %v1659_v10 = vpop.permute.xlu1 %1658  ;;  %v298_v18 = vsel %vm295_vm2, %v1645_v15, %v1646_v14  ;;  %1422 = vmatprep.subr.bf16.mxu1 %v2104_v2 }
  0xaa   : > { %v1661_v16 = vunpack.i.h.bf16 %v1659_v10  ;;  %v1660_v17 = vunpack.i.l.bf16 %v1659_v10  ;;  %v1654_v20 = vpop.permute.xlu0 %1653  ;;  %v1381_v21 = vpack.c.bf16 %v299_v13, %v298_v18 }
  0xab   : > { %1948 = vrot.lane.b32.xlu1 %v2355_v44, %s2108_s9  ;;  %v1656_v24 = vunpack.i.h.bf16 %v1654_v20  ;;  %v1655_v25 = vunpack.i.l.bf16 %v1654_v20 }
  0xac   : > { %1963 = vrot.lane.b32.xlu0 %v2364_v47, %s2108_s9  ;;  %v554_v26 = vsel %vm295_vm2, %v1660_v17, %v1661_v16  ;;  %1382 = vmatpush1.bf16.msra.mxu0 %v1381_v21 }
  0xad   : > { %v1669_v19 = vpop.permute.xlu1 %1668  ;;  %v553_v27 = vsel %vm295_vm2, %v1655_v25, %v1656_v24  ;;  %1383 = vmatprep.subr.bf16.mxu0 %v2104_v2 }
  0xae   : > { %v1671_v22 = vunpack.i.h.bf16 %v1669_v19  ;;  %v1670_v23 = vunpack.i.l.bf16 %v1669_v19  ;;  %v1664_v29 = vpop.permute.xlu0 %1663  ;;  %v1423_v30 = vpack.c.bf16 %v554_v26, %v553_v27 }
  0xaf   : > { %1958 = vrot.lane.b32.xlu1 %v2373_v50, %s2108_s9  ;;  %v1666_v33 = vunpack.i.h.bf16 %v1664_v29  ;;  %v1665_v38 = vunpack.i.l.bf16 %v1664_v29 }
  0xb0   : > { %1973 = vrot.lane.b32.xlu0 %v2382_v53, %s2108_s9  ;;  %v322_v31 = vsel %vm320_vm3, %v1670_v23, %v1671_v22  ;;  %1424 = vmatpush1.bf16.msra.mxu1 %v1423_v30 }
  0xb1   : > { %v1679_v28 = vpop.permute.xlu1 %1678  ;;  %v321_v46 = vsel %vm320_vm3, %v1665_v38, %v1666_v33  ;;  %1425 = vmatprep.subr.bf16.mxu1 %v2104_v2 }
  0xb2   : > { %v1681_v40 = vunpack.i.h.bf16 %v1679_v28  ;;  %v1680_v43 = vunpack.i.l.bf16 %v1679_v28  ;;  %v1674_v52 = vpop.permute.xlu0 %1673  ;;  %v1384_v56 = vpack.c.bf16 %v322_v31, %v321_v46 }
  0xb3   : > { %1968 = vrot.lane.b32.xlu1 %v2387_v54, %s2108_s9  ;;  %v1676_v60 = vunpack.i.h.bf16 %v1674_v52  ;;  %v1675_v61 = vunpack.i.l.bf16 %v1674_v52 }
  0xb4   : > { %1983 = vrot.lane.b32.xlu0 %v2323_v35, %s2109_s10  ;;  %v576_v63 = vsel %vm320_vm3, %v1680_v43, %v1681_v40  ;;  %1385 = vmatpush1.bf16.msra.mxu0 %v1384_v56 }
  0xb5   : > { %v1689_v49 = vpop.permute.xlu1 %1688  ;;  %v575_v0 = vsel %vm320_vm3, %v1675_v61, %v1676_v60  ;;  %1386 = vmatprep.subr.bf16.mxu0 %v2104_v2 }
  0xb6   : > { %v1691_v58 = vunpack.i.h.bf16 %v1689_v49  ;;  %v1690_v59 = vunpack.i.l.bf16 %v1689_v49  ;;  %v1684_v3 = vpop.permute.xlu0 %1683  ;;  %v1426_v4 = vpack.c.bf16 %v576_v63, %v575_v0 }
  0xb7   : > { %1978 = vrot.lane.b32.xlu1 %v2398_v57, %s2108_s9  ;;  %v1686_v7 = vunpack.i.h.bf16 %v1684_v3  ;;  %v1685_v8 = vunpack.i.l.bf16 %v1684_v3 }
  0xb8   : > { %1993 = vrot.lane.b32.xlu0 %v2346_v41, %s2109_s10  ;;  %v324_v5 = vsel %vm320_vm3, %v1690_v59, %v1691_v58  ;;  %1427 = vmatpush1.bf16.msra.mxu1 %v1426_v4 }
  0xb9   : > { %v1699_v1 = vpop.permute.xlu1 %1698  ;;  %v323_v11 = vsel %vm320_vm3, %v1685_v8, %v1686_v7  ;;  %1428 = vmatprep.subr.bf16.mxu1 %v2104_v2 }
  0xba   : > { %v1701_v9 = vunpack.i.h.bf16 %v1699_v1  ;;  %v1700_v10 = vunpack.i.l.bf16 %v1699_v1  ;;  %v1694_v13 = vpop.permute.xlu0 %1693  ;;  %v1387_v14 = vpack.c.bf16 %v324_v5, %v323_v11 }
  0xbb   : > { %1988 = vrot.lane.b32.xlu1 %v2355_v44, %s2109_s10  ;;  %v1696_v17 = vunpack.i.h.bf16 %v1694_v13  ;;  %v1695_v18 = vunpack.i.l.bf16 %v1694_v13 }
  0xbc   : > { %2003 = vrot.lane.b32.xlu0 %v2364_v47, %s2109_s10  ;;  %v578_v19 = vsel %vm320_vm3, %v1700_v10, %v1701_v9  ;;  %1388 = vmatpush1.bf16.msra.mxu0 %v1387_v14 }
  0xbd   : > { %v1709_v12 = vpop.permute.xlu1 %1708  ;;  %v577_v20 = vsel %vm320_vm3, %v1695_v18, %v1696_v17  ;;  %1389 = vmatprep.subr.bf16.mxu0 %v2104_v2 }
  0xbe   : > { %v1711_v15 = vunpack.i.h.bf16 %v1709_v12  ;;  %v1710_v16 = vunpack.i.l.bf16 %v1709_v12  ;;  %v1704_v22 = vpop.permute.xlu0 %1703  ;;  %v1429_v23 = vpack.c.bf16 %v578_v19, %v577_v20 }
  0xbf   : > { %1998 = vrot.lane.b32.xlu1 %v2373_v50, %s2109_s10  ;;  %v1706_v25 = vunpack.i.h.bf16 %v1704_v22  ;;  %v1705_v26 = vunpack.i.l.bf16 %v1704_v22 }
  0xc0   : > { %2013 = vrot.lane.b32.xlu0 %v2382_v53, %s2109_s10  ;;  %v347_v24 = vsel %vm345_vm4, %v1710_v16, %v1711_v15  ;;  %1430 = vmatpush1.bf16.msra.mxu1 %v1429_v23 }
  0xc1   : > { %v1719_v21 = vpop.permute.xlu1 %1718  ;;  %v346_v29 = vsel %vm345_vm4, %v1705_v26, %v1706_v25  ;;  %1431 = vmatprep.subr.bf16.mxu1 %v2104_v2 }
  0xc2   : > { %v1721_v27 = vunpack.i.h.bf16 %v1719_v21  ;;  %v1720_v28 = vunpack.i.l.bf16 %v1719_v21  ;;  %v1714_v31 = vpop.permute.xlu0 %1713  ;;  %v1390_v33 = vpack.c.bf16 %v347_v24, %v346_v29 }
  0xc3   : > { %2008 = vrot.lane.b32.xlu1 %v2387_v54, %s2109_s10  ;;  %v1716_v43 = vunpack.i.h.bf16 %v1714_v31  ;;  %v1715_v46 = vunpack.i.l.bf16 %v1714_v31 }
  0xc4   : > { %2023 = vrot.lane.b32.xlu0 %v2323_v35, %s2110_s11  ;;  %v600_v49 = vsel %vm345_vm4, %v1720_v28, %v1721_v27  ;;  %1391 = vmatpush1.bf16.msra.mxu0 %v1390_v33 }
  0xc5   : > { %v1729_v30 = vpop.permute.xlu1 %1728  ;;  %v599_v35 = vsel %vm345_vm4, %v1715_v46, %v1716_v43  ;;  %1392 = vmatprep.subr.bf16.mxu0 %v2104_v2 }
  0xc6   : > { %v1731_v38 = vunpack.i.h.bf16 %v1729_v30  ;;  %v1730_v40 = vunpack.i.l.bf16 %v1729_v30  ;;  %v1724_v56 = vpop.permute.xlu0 %1723  ;;  %v1432_v58 = vpack.c.bf16 %v600_v49, %v599_v35 }
  0xc7   : > { %2018 = vrot.lane.b32.xlu1 %v2398_v57, %s2109_s10  ;;  %v1726_v60 = vunpack.i.h.bf16 %v1724_v56  ;;  %v1725_v61 = vunpack.i.l.bf16 %v1724_v56 }
  0xc8   : > { %2033 = vrot.lane.b32.xlu0 %v2346_v41, %s2110_s11  ;;  %v349_v59 = vsel %vm345_vm4, %v1730_v40, %v1731_v38  ;;  %1433 = vmatpush1.bf16.msra.mxu1 %v1432_v58 }
  0xc9   : > { %v1739_v52 = vpop.permute.xlu1 %1738  ;;  %v348_v41 = vsel %vm345_vm4, %v1725_v61, %v1726_v60  ;;  %1434 = vmatprep.subr.bf16.mxu1 %v2104_v2 }
  0xca   : > { %v1741_v63 = vunpack.i.h.bf16 %v1739_v52  ;;  %v1740_v0 = vunpack.i.l.bf16 %v1739_v52  ;;  %v1734_v3 = vpop.permute.xlu0 %1733  ;;  %v1393_v4 = vpack.c.bf16 %v349_v59, %v348_v41 }
  0xcb   : > { %2028 = vrot.lane.b32.xlu1 %v2355_v44, %s2110_s11  ;;  %v1736_v8 = vunpack.i.h.bf16 %v1734_v3  ;;  %v1735_v9 = vunpack.i.l.bf16 %v1734_v3 }
  0xcc   : > { %2043 = vrot.lane.b32.xlu0 %v2364_v47, %s2110_s11  ;;  %v602_v44 = vsel %vm345_vm4, %v1740_v0, %v1741_v63  ;;  %1394 = vmatpush1.bf16.msra.mxu0 %v1393_v4 }
  0xcd   : > { %v1749_v1 = vpop.permute.xlu1 %1748  ;;  %v601_v47 = vsel %vm345_vm4, %v1735_v9, %v1736_v8  ;;  %1395 = vmatprep.subr.bf16.mxu0 %v2104_v2 }
  0xce   : > { %v1751_v5 = vunpack.i.h.bf16 %v1749_v1  ;;  %v1750_v7 = vunpack.i.l.bf16 %v1749_v1  ;;  %v1744_v11 = vpop.permute.xlu0 %1743  ;;  %v1435_v12 = vpack.c.bf16 %v602_v44, %v601_v47 }
  0xcf   : > { %2038 = vrot.lane.b32.xlu1 %v2373_v50, %s2110_s11  ;;  %v1746_v14 = vunpack.i.h.bf16 %v1744_v11  ;;  %v1745_v15 = vunpack.i.l.bf16 %v1744_v11 }
  0xd0   : > { %2053 = vrot.lane.b32.xlu0 %v2382_v53, %s2110_s11  ;;  %v372_v13 = vsel %vm370_vm5, %v1750_v7, %v1751_v5  ;;  %1436 = vmatpush1.bf16.msra.mxu1 %v1435_v12 }
  0xd1   : > { %v1759_v10 = vpop.permute.xlu1 %1758  ;;  %v371_v50 = vsel %vm370_vm5, %v1745_v15, %v1746_v14  ;;  %1437 = vmatprep.subr.bf16.mxu1 %v2104_v2 }
  0xd2   : > { %v1761_v16 = vunpack.i.h.bf16 %v1759_v10  ;;  %v1760_v17 = vunpack.i.l.bf16 %v1759_v10  ;;  %v1754_v18 = vpop.permute.xlu0 %1753  ;;  %v1396_v19 = vpack.c.bf16 %v372_v13, %v371_v50 }
  0xd3   : > { %2048 = vrot.lane.b32.xlu1 %v2387_v54, %s2110_s11  ;;  %v1756_v22 = vunpack.i.h.bf16 %v1754_v18  ;;  %v1755_v23 = vunpack.i.l.bf16 %v1754_v18 }
  0xd4   : > { %v624_v24 = vsel %vm370_vm5, %v1760_v17, %v1761_v16  ;;  %1397 = vmatpush1.bf16.msra.mxu0 %v1396_v19 }
  0xd5   : > { %v1769_v53 = vpop.permute.xlu1 %1768  ;;  %v623_v54 = vsel %vm370_vm5, %v1755_v23, %v1756_v22  ;;  %1398 = vmatprep.subr.bf16.mxu0 %v2104_v2 }
  0xd6   : > { %v1771_v20 = vunpack.i.h.bf16 %v1769_v53  ;;  %v1770_v21 = vunpack.i.l.bf16 %v1769_v53  ;;  %v1764_v26 = vpop.permute.xlu0 %1763  ;;  %v1438_v27 = vpack.c.bf16 %v624_v24, %v623_v54 }
  0xd7   : > { %2058 = vrot.lane.b32.xlu1 %v2398_v57, %s2110_s11  ;;  %v1766_v29 = vunpack.i.h.bf16 %v1764_v26  ;;  %v1765_v30 = vunpack.i.l.bf16 %v1764_v26 }
  0xd8   : > { %v374_v28 = vsel %vm370_vm5, %v1770_v21, %v1771_v20  ;;  %1439 = vmatpush1.bf16.msra.mxu1 %v1438_v27 }
  0xd9   : > { %v1779_v25 = vpop.permute.xlu1 %1778  ;;  %v373_v38 = vsel %vm370_vm5, %v1765_v30, %v1766_v29  ;;  %1440 = vmatprep.subr.bf16.mxu1 %v2104_v2 }
  0xda   : > { %v1781_v31 = vunpack.i.h.bf16 %v1779_v25  ;;  %v1780_v33 = vunpack.i.l.bf16 %v1779_v25  ;;  %v1774_v40 = vpop.permute.xlu0 %1773  ;;  %v1399_v43 = vpack.c.bf16 %v374_v28, %v373_v38  ;;  %v1450_v25 = vpack.c.bf16 %v2342_v39, %v2310_v32 }
  0xdb   : > { %v1776_v35 = vunpack.i.h.bf16 %v1774_v40  ;;  %v1775_v52 = vunpack.i.l.bf16 %v1774_v40  ;;  %v1492_v32 = vpack.c.bf16 %v2360_v45, %v2330_v37  ;;  %v1495_v37 = vpack.c.bf16 %v2392_v55, %v2367_v48 }
  0xdc   : > { %v626_v56 = vsel %vm370_vm5, %v1780_v33, %v1781_v31  ;;  %1400 = vmatpush1.bf16.msra.mxu0 %v1399_v43 }
  0xdd   : > { %v1789_v57 = vpop.permute.xlu1 %1788  ;;  %v625_v58 = vsel %vm370_vm5, %v1775_v52, %v1776_v35  ;;  %1401 = vmatprep.subr.bf16.mxu0 %v2104_v2 }
  0xde   : > { %v1791_v46 = vunpack.i.h.bf16 %v1789_v57  ;;  %v1790_v49 = vunpack.i.l.bf16 %v1789_v57  ;;  %v1784_v60 = vpop.permute.xlu0 %1783  ;;  %v1441_v61 = vpack.c.bf16 %v626_v56, %v625_v58  ;;  %v1453_v57 = vpack.c.bf16 %v2378_v51, %v2349_v42 }
  0xdf   : > { %v1786_v0 = vunpack.i.h.bf16 %v1784_v60  ;;  %v1785_v41 = vunpack.i.l.bf16 %v1784_v60 }
  0xe0   : > { %v397_v63 = vsel %vm395_vm6, %v1790_v49, %v1791_v46  ;;  %1442 = vmatpush1.bf16.msra.mxu1 %v1441_v61 }
  0xe1   : > { %v1799_v59 = vpop.permute.xlu1 %1798  ;;  %v396_v4 = vsel %vm395_vm6, %v1785_v41, %v1786_v0  ;;  %1443 = vmatprep.subr.bf16.mxu1 %v2104_v2 }
  0xe2   : > { %v1801_v1 = vunpack.i.h.bf16 %v1799_v59  ;;  %v1800_v3 = vunpack.i.l.bf16 %v1799_v59  ;;  %v1794_v7 = vpop.permute.xlu0 %1793  ;;  %v1402_v8 = vpack.c.bf16 %v397_v63, %v396_v4 }
  0xe3   : > { %v1796_v47 = vunpack.i.h.bf16 %v1794_v7  ;;  %v1795_v10 = vunpack.i.l.bf16 %v1794_v7 }
  0xe4   : > { %v648_v11 = vsel %vm395_vm6, %v1800_v3, %v1801_v1  ;;  %1403 = vmatpush1.bf16.msra.mxu0 %v1402_v8 }
  0xe5   : > { %v1809_v5 = vpop.permute.xlu1 %1808  ;;  %v647_v12 = vsel %vm395_vm6, %v1795_v10, %v1796_v47  ;;  %1404 = vmatprep.subr.bf16.mxu0 %v2104_v2 }
  0xe6   : > { %v1811_v9 = vunpack.i.h.bf16 %v1809_v5  ;;  %v1810_v44 = vunpack.i.l.bf16 %v1809_v5  ;;  %v1804_v14 = vpop.permute.xlu0 %1803  ;;  %v1444_v15 = vpack.c.bf16 %v648_v11, %v647_v12 }
  0xe7   : > { %v1806_v17 = vunpack.i.h.bf16 %v1804_v14  ;;  %v1805_v50 = vunpack.i.l.bf16 %v1804_v14 }
  0xe8   : > { %v399_v16 = vsel %vm395_vm6, %v1810_v44, %v1811_v9  ;;  %1445 = vmatpush1.bf16.msra.mxu1 %v1444_v15 }
  0xe9   : > { %v1819_v13 = vpop.permute.xlu1 %1818  ;;  %v398_v19 = vsel %vm395_vm6, %v1805_v50, %v1806_v17  ;;  %1446 = vmatprep.subr.bf16.mxu1 %v2104_v2 }
  0xea   : > { %v1821_v53 = vunpack.i.h.bf16 %v1819_v13  ;;  %v1820_v18 = vunpack.i.l.bf16 %v1819_v13  ;;  %v1814_v21 = vpop.permute.xlu0 %1813  ;;  %v1405_v22 = vpack.c.bf16 %v399_v16, %v398_v19 }
  0xeb   : > { %v1816_v23 = vunpack.i.h.bf16 %v1814_v21  ;;  %v1815_v24 = vunpack.i.l.bf16 %v1814_v21 }
  0xec   : > { %v650_v54 = vsel %vm395_vm6, %v1820_v18, %v1821_v53  ;;  %1406 = vmatpush1.bf16.msra.mxu0 %v1405_v22 }
  0xed   : > { %v1829_v20 = vpop.permute.xlu1 %1828  ;;  %1449 = vmatprep.subr.bf16.mxu0 %v2104_v2  ;;  %v649_v26 = vsel %vm395_vm6, %v1815_v24, %v1816_v23 }
  0xee   : > { %v1824_v28 = vpop.permute.xlu0 %1823  ;;  %v1447_v29 = vpack.c.bf16 %v650_v54, %v649_v26  ;;  %v1831_v33 = vunpack.i.h.bf16 %v1829_v20  ;;  %v1830_v38 = vunpack.i.l.bf16 %v1829_v20 }
  0xef   : > { %v1826_v30 = vunpack.i.h.bf16 %v1824_v28  ;;  %v1825_v31 = vunpack.i.l.bf16 %v1824_v28  ;;  %482 = vmatmul.mubr.f32.vlgmr.msra.gmra.mrb[0].mxu0 %v2318_v34 }
  0xf0   : > { %1448 = vmatpush1.bf16.msra.mxu1 %v1447_v29  ;;  %1451 = vmatpush1.bf16.msra.mxu0 %v1450_v25  ;;  %v767_v42 = vsel %vm270_vm1, %v1830_v38, %v1831_v33 }
  0xf1   : > { %v1839_v27 = vpop.permute.xlu1 %1838  ;;  %1452 = vmatprep.subr.bf16.mxu0 %v2104_v2  ;;  %1491 = vmatprep.subr.bf16.mxu1 %v2104_v2  ;;  %v766_v52 = vsel %vm270_vm1, %v1825_v31, %v1826_v30 }
  0xf2   : > { %v1834_v40 = vpop.permute.xlu0 %1833  ;;  %v1841_v43 = vunpack.i.h.bf16 %v1839_v27  ;;  %v1840_v46 = vunpack.i.l.bf16 %v1839_v27  ;;  %1343 = vmatprep.mubr.msk.f32.mxu0 %vm414_vm0, %v2327_v36  ;;  %v1456_v58 = vpack.c.bf16 %v767_v42, %v766_v52 }
  0xf3   : > { %v1836_v51 = vunpack.i.h.bf16 %v1834_v40  ;;  %v1835_v56 = vunpack.i.l.bf16 %v1834_v40  ;;  %720 = vmatmul.mubr.f32.vlgmr.msra.gmra.mrb[0].mxu1 %v2318_v34 }
  0xf4   : > { %1454 = vmatpush1.bf16.msra.mxu0 %v1453_v57  ;;  %1493 = vmatpush1.bf16.msra.mxu1 %v1492_v32  ;;  %v1006_v60 = vsel %vm270_vm1, %v1840_v46, %v1841_v43 }
  0xf5   : > { %v1849_v39 = vpop.permute.xlu1 %1848  ;;  %1455 = vmatprep.subr.bf16.mxu0 %v2104_v2  ;;  %1494 = vmatprep.subr.bf16.mxu1 %v2104_v2  ;;  %v1005_v59 = vsel %vm270_vm1, %v1835_v56, %v1836_v51 }
  0xf6   : > { %v1851_v49 = vunpack.i.h.bf16 %v1849_v39  ;;  %v1850_v35 = vunpack.i.l.bf16 %v1849_v39  ;;  %v1844_v61 = vpop.permute.xlu0 %1843  ;;  %1355 = vmatprep.mubr.msk.f32.mxu1 %vm414_vm0, %v2327_v36  ;;  %v1498_v3 = vpack.c.bf16 %v1006_v60, %v1005_v59 }
  0xf7   : > { %v1846_v34 = vunpack.i.h.bf16 %v1844_v61  ;;  %v1845_v0 = vunpack.i.l.bf16 %v1844_v61 }
  0xf8   : > { %v769_v63 = vsel %vm270_vm1, %v1850_v35, %v1851_v49  ;;  %1457 = vmatpush1.bf16.msra.mxu0 %v1456_v58  ;;  %1496 = vmatpush1.bf16.msra.mxu1 %v1495_v37 }
  0xf9   : > { %v1859_v45 = vpop.permute.xlu1 %1858  ;;  %v768_v55 = vsel %vm270_vm1, %v1845_v0, %v1846_v34  ;;  %1458 = vmatprep.subr.bf16.mxu0 %v2104_v2  ;;  %1497 = vmatprep.subr.bf16.mxu1 %v2104_v2 }
  0xfa   : > { %v1861_v41 = vunpack.i.h.bf16 %v1859_v45  ;;  %v1860_v48 = vunpack.i.l.bf16 %v1859_v45  ;;  %v1459_v4 = vpack.c.bf16 %v769_v63, %v768_v55  ;;  %v1854_v5 = vpop.permute.xlu0 %1853 }
  0xfb   : > { %v1856_v9 = vunpack.i.h.bf16 %v1854_v5  ;;  %v1855_v36 = vunpack.i.l.bf16 %v1854_v5 }
  0xfc   : > { %v1008_v44 = vsel %vm270_vm1, %v1860_v48, %v1861_v41  ;;  %1460 = vmatpush1.bf16.msra.mxu0 %v1459_v4  ;;  %1499 = vmatpush1.bf16.msra.mxu1 %v1498_v3 }
  0xfd   : > { %v1869_v1 = vpop.permute.xlu1 %1868  ;;  %v1007_v47 = vsel %vm270_vm1, %v1855_v36, %v1856_v9  ;;  %1500 = vmatprep.subr.bf16.mxu1 %v2104_v2  ;;  %1461 = vmatprep.subr.bf16.mxu0 %v2104_v2 }
  0xfe   : > { %v1871_v7 = vunpack.i.h.bf16 %v1869_v1  ;;  %v1870_v8 = vunpack.i.l.bf16 %v1869_v1  ;;  %v1501_v11 = vpack.c.bf16 %v1008_v44, %v1007_v47  ;;  %v1864_v12 = vpop.permute.xlu0 %1863 }
  0xff   : > { %v1866_v14 = vunpack.i.h.bf16 %v1864_v12  ;;  %v1865_v15 = vunpack.i.l.bf16 %v1864_v12 }
 0x100   : > { %v791_v13 = vsel %vm295_vm2, %v1870_v8, %v1871_v7  ;;  %1502 = vmatpush1.bf16.msra.mxu1 %v1501_v11 }
 0x101   : > { %v1879_v10 = vpop.permute.xlu1 %1878  ;;  %v790_v50 = vsel %vm295_vm2, %v1865_v15, %v1866_v14  ;;  %1503 = vmatprep.subr.bf16.mxu1 %v2104_v2 }
 0x102   : > { %v1881_v16 = vunpack.i.h.bf16 %v1879_v10  ;;  %v1880_v17 = vunpack.i.l.bf16 %v1879_v10  ;;  %v1462_v18 = vpack.c.bf16 %v791_v13, %v790_v50  ;;  %v1874_v19 = vpop.permute.xlu0 %1873 }
 0x103   : > { %v1876_v22 = vunpack.i.h.bf16 %v1874_v19  ;;  %v1875_v23 = vunpack.i.l.bf16 %v1874_v19 }
 0x104   : > { %v1030_v24 = vsel %vm295_vm2, %v1880_v17, %v1881_v16  ;;  %1463 = vmatpush1.bf16.msra.mxu0 %v1462_v18 }
 0x105   : > { %v1889_v53 = vpop.permute.xlu1 %1888  ;;  %v1029_v54 = vsel %vm295_vm2, %v1875_v23, %v1876_v22  ;;  %1464 = vmatprep.subr.bf16.mxu0 %v2104_v2 }
 0x106   : > { %v1891_v20 = vunpack.i.h.bf16 %v1889_v53  ;;  %v1890_v21 = vunpack.i.l.bf16 %v1889_v53  ;;  %v1504_v26 = vpack.c.bf16 %v1030_v24, %v1029_v54  ;;  %v1884_v27 = vpop.permute.xlu0 %1883 }
 0x107   : > { %v1886_v29 = vunpack.i.h.bf16 %v1884_v27  ;;  %v1885_v30 = vunpack.i.l.bf16 %v1884_v27 }
 0x108   : > { %v793_v28 = vsel %vm295_vm2, %v1890_v21, %v1891_v20  ;;  %1505 = vmatpush1.bf16.msra.mxu1 %v1504_v26 }
 0x109   : > { %v1899_v25 = vpop.permute.xlu1 %1898  ;;  %v792_v38 = vsel %vm295_vm2, %v1885_v30, %v1886_v29  ;;  %1506 = vmatprep.subr.bf16.mxu1 %v2104_v2 }
 0x10a   : > { %v1901_v31 = vunpack.i.h.bf16 %v1899_v25  ;;  %v1900_v33 = vunpack.i.l.bf16 %v1899_v25  ;;  %v1465_v32 = vpack.c.bf16 %v793_v28, %v792_v38  ;;  %v1894_v39 = vpop.permute.xlu0 %1893 }
 0x10b   : > { %v1896_v46 = vunpack.i.h.bf16 %v1894_v39  ;;  %v1895_v49 = vunpack.i.l.bf16 %v1894_v39 }
 0x10c   : > { %v1032_v35 = vsel %vm295_vm2, %v1900_v33, %v1901_v31  ;;  %1466 = vmatpush1.bf16.msra.mxu0 %v1465_v32 }
 0x10d   : > { %v1909_v57 = vpop.permute.xlu1 %1908  ;;  %v1031_v52 = vsel %vm295_vm2, %v1895_v49, %v1896_v46  ;;  %1467 = vmatprep.subr.bf16.mxu0 %v2104_v2 }
 0x10e   : > { %v1911_v40 = vunpack.i.h.bf16 %v1909_v57  ;;  %v1910_v43 = vunpack.i.l.bf16 %v1909_v57  ;;  %v1507_v51 = vpack.c.bf16 %v1032_v35, %v1031_v52  ;;  %v1904_v56 = vpop.permute.xlu0 %1903 }
 0x10f   : > { %v1906_v45 = vunpack.i.h.bf16 %v1904_v56  ;;  %v1905_v58 = vunpack.i.l.bf16 %v1904_v56 }
 0x110   : > { %v815_v37 = vsel %vm320_vm3, %v1910_v43, %v1911_v40  ;;  %1508 = vmatpush1.bf16.msra.mxu1 %v1507_v51 }
 0x111   : > { %v1919_v42 = vpop.permute.xlu1 %1918  ;;  %v814_v61 = vsel %vm320_vm3, %v1905_v58, %v1906_v45  ;;  %1509 = vmatprep.subr.bf16.mxu1 %v2104_v2 }
 0x112   : > { %v1921_v59 = vunpack.i.h.bf16 %v1919_v42  ;;  %v1920_v60 = vunpack.i.l.bf16 %v1919_v42  ;;  %v1468_v34 = vpack.c.bf16 %v815_v37, %v814_v61  ;;  %v1914_v0 = vpop.permute.xlu0 %1913 }
 0x113   : > { %v1916_v55 = vunpack.i.h.bf16 %v1914_v0  ;;  %v1915_v1 = vunpack.i.l.bf16 %v1914_v0 }
 0x114   : > { %v1054_v3 = vsel %vm320_vm3, %v1920_v60, %v1921_v59  ;;  %1469 = vmatpush1.bf16.msra.mxu0 %v1468_v34 }
 0x115   : > { %v1929_v63 = vpop.permute.xlu1 %1928  ;;  %v1053_v4 = vsel %vm320_vm3, %v1915_v1, %v1916_v55  ;;  %1470 = vmatprep.subr.bf16.mxu0 %v2104_v2 }
 0x116   : > { %v1931_v41 = vunpack.i.h.bf16 %v1929_v63  ;;  %v1930_v48 = vunpack.i.l.bf16 %v1929_v63  ;;  %v1510_v7 = vpack.c.bf16 %v1054_v3, %v1053_v4  ;;  %v1924_v8 = vpop.permute.xlu0 %1923 }
 0x117   : > { %v1926_v36 = vunpack.i.h.bf16 %v1924_v8  ;;  %v1925_v44 = vunpack.i.l.bf16 %v1924_v8 }
 0x118   : > { %v817_v9 = vsel %vm320_vm3, %v1930_v48, %v1931_v41  ;;  %1511 = vmatpush1.bf16.msra.mxu1 %v1510_v7 }
 0x119   : > { %v1939_v5 = vpop.permute.xlu1 %1938  ;;  %v816_v11 = vsel %vm320_vm3, %v1925_v44, %v1926_v36  ;;  %1512 = vmatprep.subr.bf16.mxu1 %v2104_v2 }
 0x11a   : > { %v1941_v47 = vunpack.i.h.bf16 %v1939_v5  ;;  %v1940_v10 = vunpack.i.l.bf16 %v1939_v5  ;;  %v1471_v13 = vpack.c.bf16 %v817_v9, %v816_v11  ;;  %v1934_v14 = vpop.permute.xlu0 %1933 }
 0x11b   : > { %v1936_v17 = vunpack.i.h.bf16 %v1934_v14  ;;  %v1935_v50 = vunpack.i.l.bf16 %v1934_v14 }
 0x11c   : > { %v1056_v53 = vsel %vm320_vm3, %v1940_v10, %v1941_v47  ;;  %1472 = vmatpush1.bf16.msra.mxu0 %v1471_v13 }
 0x11d   : > { %v1949_v12 = vpop.permute.xlu1 %1948  ;;  %v1055_v18 = vsel %vm320_vm3, %v1935_v50, %v1936_v17  ;;  %1473 = vmatprep.subr.bf16.mxu0 %v2104_v2 }
 0x11e   : > { %v1951_v15 = vunpack.i.h.bf16 %v1949_v12  ;;  %v1950_v16 = vunpack.i.l.bf16 %v1949_v12  ;;  %v1513_v20 = vpack.c.bf16 %v1056_v53, %v1055_v18  ;;  %v1944_v21 = vpop.permute.xlu0 %1943 }
 0x11f   : > { %v1946_v23 = vunpack.i.h.bf16 %v1944_v21  ;;  %v1945_v24 = vunpack.i.l.bf16 %v1944_v21 }
 0x120   : > { %v839_v22 = vsel %vm345_vm4, %v1950_v16, %v1951_v15  ;;  %1514 = vmatpush1.bf16.msra.mxu1 %v1513_v20 }
 0x121   : > { %v1959_v19 = vpop.permute.xlu1 %1958  ;;  %v838_v26 = vsel %vm345_vm4, %v1945_v24, %v1946_v23  ;;  %1515 = vmatprep.subr.bf16.mxu1 %v2104_v2 }
 0x122   : > { %v1961_v54 = vunpack.i.h.bf16 %v1959_v19  ;;  %v1960_v25 = vunpack.i.l.bf16 %v1959_v19  ;;  %v1474_v28 = vpack.c.bf16 %v839_v22, %v838_v26  ;;  %v1954_v29 = vpop.permute.xlu0 %1953 }
 0x123   : > { %v1956_v33 = vunpack.i.h.bf16 %v1954_v29  ;;  %v1955_v38 = vunpack.i.l.bf16 %v1954_v29 }
 0x124   : > { %v1078_v57 = vsel %vm345_vm4, %v1960_v25, %v1961_v54  ;;  %1475 = vmatpush1.bf16.msra.mxu0 %v1474_v28 }
 0x125   : > { %v1969_v27 = vpop.permute.xlu1 %1968  ;;  %v1077_v32 = vsel %vm345_vm4, %v1955_v38, %v1956_v33  ;;  %1476 = vmatprep.subr.bf16.mxu0 %v2104_v2 }
 0x126   : > { %v1971_v30 = vunpack.i.h.bf16 %v1969_v27  ;;  %v1970_v31 = vunpack.i.l.bf16 %v1969_v27  ;;  %v1516_v40 = vpack.c.bf16 %v1078_v57, %v1077_v32  ;;  %v1964_v43 = vpop.permute.xlu0 %1963 }
 0x127   : > { %v1966_v49 = vunpack.i.h.bf16 %v1964_v43  ;;  %v1965_v35 = vunpack.i.l.bf16 %v1964_v43 }
 0x128   : > { %v841_v46 = vsel %vm345_vm4, %v1970_v31, %v1971_v30  ;;  %1517 = vmatpush1.bf16.msra.mxu1 %v1516_v40 }
 0x129   : > { %v1979_v39 = vpop.permute.xlu1 %1978  ;;  %v840_v51 = vsel %vm345_vm4, %v1965_v35, %v1966_v49  ;;  %1518 = vmatprep.subr.bf16.mxu1 %v2104_v2 }
 0x12a   : > { %v1981_v52 = vunpack.i.h.bf16 %v1979_v39  ;;  %v1980_v42 = vunpack.i.l.bf16 %v1979_v39  ;;  %v1477_v37 = vpack.c.bf16 %v841_v46, %v840_v51  ;;  %v1974_v45 = vpop.permute.xlu0 %1973 }
 0x12b   : > { %v1976_v60 = vunpack.i.h.bf16 %v1974_v45  ;;  %v1975_v61 = vunpack.i.l.bf16 %v1974_v45 }
 0x12c   : > { %v1080_v63 = vsel %vm345_vm4, %v1980_v42, %v1981_v52  ;;  %1478 = vmatpush1.bf16.msra.mxu0 %v1477_v37 }
 0x12d   : > { %v1989_v56 = vpop.permute.xlu1 %1988  ;;  %v1079_v34 = vsel %vm345_vm4, %v1975_v61, %v1976_v60  ;;  %1479 = vmatprep.subr.bf16.mxu0 %v2104_v2 }
 0x12e   : > { %v1991_v58 = vunpack.i.h.bf16 %v1989_v56  ;;  %v1990_v59 = vunpack.i.l.bf16 %v1989_v56  ;;  %v1519_v41 = vpack.c.bf16 %v1080_v63, %v1079_v34  ;;  %v1984_v48 = vpop.permute.xlu0 %1983 }
 0x12f   : > { %v1986_v1 = vunpack.i.h.bf16 %v1984_v48  ;;  %v1985_v3 = vunpack.i.l.bf16 %v1984_v48 }
 0x130   : > { %v863_v55 = vsel %vm370_vm5, %v1990_v59, %v1991_v58  ;;  %1520 = vmatpush1.bf16.msra.mxu1 %v1519_v41 }
 0x131   : > { %v1999_v0 = vpop.permute.xlu1 %1998  ;;  %v862_v7 = vsel %vm370_vm5, %v1985_v3, %v1986_v1  ;;  %1521 = vmatprep.subr.bf16.mxu1 %v2104_v2 }
 0x132   : > { %v2001_v4 = vunpack.i.h.bf16 %v1999_v0  ;;  %v2000_v5 = vunpack.i.l.bf16 %v1999_v0  ;;  %v1480_v9 = vpack.c.bf16 %v863_v55, %v862_v7  ;;  %v1994_v36 = vpop.permute.xlu0 %1993 }
 0x133   : > { %v1996_v10 = vunpack.i.h.bf16 %v1994_v36  ;;  %v1995_v11 = vunpack.i.l.bf16 %v1994_v36 }
 0x134   : > { %v1102_v12 = vsel %vm370_vm5, %v2000_v5, %v2001_v4  ;;  %1481 = vmatpush1.bf16.msra.mxu0 %v1480_v9 }
 0x135   : > { %v2009_v8 = vpop.permute.xlu1 %2008  ;;  %v1101_v13 = vsel %vm370_vm5, %v1995_v11, %v1996_v10  ;;  %1482 = vmatprep.subr.bf16.mxu0 %v2104_v2 }
 0x136   : > { %v2011_v44 = vunpack.i.h.bf16 %v2009_v8  ;;  %v2010_v47 = vunpack.i.l.bf16 %v2009_v8  ;;  %v1522_v15 = vpack.c.bf16 %v1102_v12, %v1101_v13  ;;  %v2004_v16 = vpop.permute.xlu0 %2003  ;;  %v2062_v8 = vld.sshfl [vmem:[%s2678_s1] sm:$0x33 pattern:$0x76325410] }
 0x137   : > { %v2006_v50 = vunpack.i.h.bf16 %v2004_v16  ;;  %v2005_v53 = vunpack.i.l.bf16 %v2004_v16 }
 0x138   : > { %v865_v17 = vsel %vm370_vm5, %v2010_v47, %v2011_v44  ;;  %1523 = vmatpush1.bf16.msra.mxu1 %v1522_v15 }
 0x139   : > { %v2019_v14 = vpop.permute.xlu1 %2018  ;;  %v864_v20 = vsel %vm370_vm5, %v2005_v53, %v2006_v50  ;;  %1524 = vmatprep.subr.bf16.mxu1 %v2104_v2 }
 0x13a   : > { %v2021_v18 = vunpack.i.h.bf16 %v2019_v14  ;;  %v2020_v19 = vunpack.i.l.bf16 %v2019_v14  ;;  %v1483_v22 = vpack.c.bf16 %v865_v17, %v864_v20  ;;  %v2014_v23 = vpop.permute.xlu0 %2013 }
 0x13b   : > { %v2016_v25 = vunpack.i.h.bf16 %v2014_v23  ;;  %v2015_v26 = vunpack.i.l.bf16 %v2014_v23 }
 0x13c   : > { %v1104_v27 = vsel %vm370_vm5, %v2020_v19, %v2021_v18  ;;  %1484 = vmatpush1.bf16.msra.mxu0 %v1483_v22 }
 0x13d   : > { %v2029_v21 = vpop.permute.xlu1 %2028  ;;  %v1103_v28 = vsel %vm370_vm5, %v2015_v26, %v2016_v25  ;;  %1485 = vmatprep.subr.bf16.mxu0 %v2104_v2 }
 0x13e   : > { %v2031_v24 = vunpack.i.h.bf16 %v2029_v21  ;;  %v2030_v54 = vunpack.i.l.bf16 %v2029_v21  ;;  %v1525_v30 = vpack.c.bf16 %v1104_v27, %v1103_v28  ;;  %v2024_v31 = vpop.permute.xlu0 %2023 }
 0x13f   : > { %v2026_v38 = vunpack.i.h.bf16 %v2024_v31  ;;  %v2025_v57 = vunpack.i.l.bf16 %v2024_v31 }
 0x140   : > { %v887_v33 = vsel %vm395_vm6, %v2030_v54, %v2031_v24  ;;  %1526 = vmatpush1.bf16.msra.mxu1 %v1525_v30 }
 0x141   : > { %v2039_v29 = vpop.permute.xlu1 %2038  ;;  %v886_v40 = vsel %vm395_vm6, %v2025_v57, %v2026_v38  ;;  %1527 = vmatprep.subr.bf16.mxu1 %v2104_v2 }
 0x142   : > { %v2041_v32 = vunpack.i.h.bf16 %v2039_v29  ;;  %v2040_v39 = vunpack.i.l.bf16 %v2039_v29  ;;  %v1486_v46 = vpack.c.bf16 %v887_v33, %v886_v40  ;;  %v2034_v49 = vpop.permute.xlu0 %2033 }
 0x143   : > { %v2036_v42 = vunpack.i.h.bf16 %v2034_v49  ;;  %v2035_v51 = vunpack.i.l.bf16 %v2034_v49 }
 0x144   : > { %v1126_v56 = vsel %vm395_vm6, %v2040_v39, %v2041_v32  ;;  %1487 = vmatpush1.bf16.msra.mxu0 %v1486_v46 }
 0x145   : > { %v2049_v43 = vpop.permute.xlu1 %2048  ;;  %v1125_v37 = vsel %vm395_vm6, %v2035_v51, %v2036_v42  ;;  %1488 = vmatprep.subr.bf16.mxu0 %v2104_v2 }
 0x146   : > { %v2051_v35 = vunpack.i.h.bf16 %v2049_v43  ;;  %v2050_v52 = vunpack.i.l.bf16 %v2049_v43  ;;  %v1528_v58 = vpack.c.bf16 %v1126_v56, %v1125_v37  ;;  %v2044_v59 = vpop.permute.xlu0 %2043 }
 0x147   : > { %v2046_v61 = vunpack.i.h.bf16 %v2044_v59  ;;  %v2045_v63 = vunpack.i.l.bf16 %v2044_v59 }
 0x148   : > { %v889_v60 = vsel %vm395_vm6, %v2050_v52, %v2051_v35  ;;  %1529 = vmatpush1.bf16.msra.mxu1 %v1528_v58 }
 0x149   : > { %v2059_v45 = vpop.permute.xlu1 %2058  ;;  %v888_v41 = vsel %vm395_vm6, %v2045_v63, %v2046_v61  ;;  %1530 = vmatprep.subr.bf16.mxu1 %v2104_v2 }
 0x14a   : > { %v2061_v34 = vunpack.i.h.bf16 %v2059_v45  ;;  %v2060_v0 = vunpack.i.l.bf16 %v2059_v45  ;;  %v1489_v48 = vpack.c.bf16 %v889_v60, %v888_v41  ;;  %v2054_v55 = vpop.permute.xlu0 %2053 }
 0x14b   : > { %v2056_v1 = vunpack.i.h.bf16 %v2054_v55  ;;  %v2055_v3 = vunpack.i.l.bf16 %v2054_v55 }
 0x14c   : > { %v1128_v4 = vsel %vm395_vm6, %v2060_v0, %v2061_v34  ;;  %1490 = vmatpush1.bf16.msra.mxu0 %v1489_v48 }
 0x14d   : > { %v1127_v5 = vsel %vm395_vm6, %v2055_v3, %v2056_v1 }
 0x14e   : > { %v1531_v7 = vpack.c.bf16 %v1128_v4, %v1127_v5 }
 0x14f   : > { %959 = vmatmul.mubr.f32.vlgmr.msra.gmra.mrb[2].mxu0 %v2062_v8 }
 0x150   : > { %1532 = vmatpush1.bf16.msra.mxu1 %v1531_v7 }
 0x153   : > { %1198 = vmatmul.mubr.f32.vlgmr.msra.gmra.mrb[2].mxu1 %v2062_v8 }
 0x1c2   : > { %v483_v2 = vpop.f32.mrb[0].mxu0 }
 0x1c3   : > { %v487_v9 = vmul.f32 %v483_v2, %v2410_v62  ;;  %v485_v36 = vpop.f32.mrb[1].mxu0 }
 0x1c5   : > { %v488_v44 = vadd.f32 %v487_v9, %v2418_v6 }
 0x1c6   : > { %v721_v47 = vpop.f32.mrb[0].mxu1 }
 0x1c7   : > { %v489_v10 = vmax.f32 %v488_v44, 0.0  ;;  %v725_v11 = vmul.f32 %v721_v47, %v2410_v62  ;;  %v723_v12 = vpop.f32.mrb[1].mxu1 }
 0x1c9   : > { %490 = vst [vmem:[%s219_s29] sm:$0x3] %v489_v10  ;;  %v726_v13 = vadd.f32 %v725_v11, %v2418_v6 }
 0x1cb   : > { %v727_v14 = vmax.f32 %v726_v13, 0.0 }
 0x1cd   : > { %1332 = vst [vmem:[%s219_s29 + $0x2] sm:$0x3] %v727_v14 }
 0x222   : > { %v960_v15 = vpop.f32.mrb[2].mxu0 }
 0x223   : > { %v964_v16 = vmul.f32 %v960_v15, %v2410_v62  ;;  %v962_v17 = vpop.f32.mrb[3].mxu0 }
 0x225   : > { %v965_v50 = vadd.f32 %v964_v16, %v2418_v6 }
 0x226   : > { %v1199_v53 = vpop.f32.mrb[2].mxu1 }
 0x227   : > { %v966_v18 = vmax.f32 %v965_v50, 0.0  ;;  %v1203_v19 = vmul.f32 %v1199_v53, %v2410_v62  ;;  %v1201_v20 = vpop.f32.mrb[3].mxu1 }
 0x229   : > { %1344 = vst [vmem:[%s219_s29 + $0x4] sm:$0x3] %v966_v18  ;;  %v1204_v21 = vadd.f32 %v1203_v19, %v2418_v6 }
 0x22b   : > { %v1205_v22 = vmax.f32 %v1204_v21, 0.0 }
 0x22d   : > { %1356 = vst [vmem:[%s219_s29 + $0x6] sm:$0x3] %v1205_v22 }
 0x22e PF: > { %s14_s19 = sadd.s32 1, %s2101_s19   ;;  %s2682_s15 = smov %s2093_s17 }
 0x22f   : > { %p11_p7 = scmp.ge.s32.totalorder %s14_s19, 6   ;;  %s2683_s16 = smov %s2097_s18 }
 0x230   : > { %s2684_s17 = smov %s2687_s20  ;;  %s2685_s18 = smov %s2691_s21 }
 0x231   :  { %13 = sbr.rel (!%p11_p7) target bundleno = 3 (0x3), region = 73 }

// kernel: _lambda_.7
= control target key start
LH: loop header
LB: loop body
LE: loop exit
PB: predicated region body
PF: predicated region fallthrough
CT: control target
= control target key end

     0   :  { %s3759_s15 = smov 0   ;;  %s3761_s16 = smov 0   ;;  %s4949_s0 = inlined_call_operand.vmem [shape: f32[2,8,56,140], index: 0, kind: input, shape index: {}]   ;;  %s4950_s1 = inlined_call_operand.vmem [shape: f32[25,392], index: 1, kind: input, shape index: {}]   ;;  %s4951_s2 = inlined_call_operand.vmem [shape: f32[25,1], index: 2, kind: input, shape index: {}]   ;;  %s4952_s3 = inlined_call_operand.vmem [shape: f32[25,1], index: 3, kind: input, shape index: {}]   ;;  %s4953_s4 = inlined_call_operand.vmem [shape: f32[2,8,25,128], index: 4, kind: output, shape index: {}]  }
   0x1   :  { %s3763_s17 = smov 0   ;;  %s3765_s18 = smov 0  }
   0x2   :  { %s3767_s19 = smov 0  }
   0x3 LB: > { %s23_s20 = sadd.s32 1, %s3715_s17  ;;  %s26_s21 = sadd.s32 1, %s3719_s18  ;;  %s3723_s19 = sphi %s3767_s19, %s14_s19   ;;  %s3719_s18 = sphi %s3765_s18, %s4960_s18   ;;  %s3715_s17 = sphi %s3763_s17, %s4959_s17   ;;  %s3711_s16 = sphi %s3761_s16, %s4958_s16   ;;  %s3707_s15 = sphi %s3759_s15, %s4957_s15  }
   0x4   : > { %p24_p0 = scmp.ge.s32.totalorder %s23_s20, 2  ;;  %p2297_p1 = scmp.ge.s32.totalorder %s3723_s19, 1 }
   0x5   : > { %p176_p2 = scmp.lt.s32.totalorder %s3723_s19, 5 }
   0x6   : > { %s4962_s20 = smov (%p24_p0, %s23_s20), 0  ;;  %s4964_s21 = smov (!%p24_p0, %s26_s21), %s3719_s18 }
   0x7   : > { %p177_p3 = pnand %p2297_p1, %p176_p2  ;;  %p28_p4 = scmp.ge.s32.totalorder %s4964_s21, 2 }
   0x8   : > { %v241_v0 = vld [vmem:[%s4951_s2 + $0x10] sm:$0xff] (!%p177_p3)  ;;  %v239_v1 = vld [vmem:[%s4951_s2] sm:$0xff] (!%p177_p3)  ;;  %p207_p5 = scmp.lt.s32.totalorder (!%p177_p3), %s3711_s16, 1  ;;  %v3725_v2 = vmov (!%p177_p3), 0   ;;  %v242_v3 = vld [vmem:[%s4951_s2 + $0x18] sm:$0x1] (!%p177_p3) }
   0x9   : > { %s4966_s21 = smov (%p28_p4, %s4964_s21), 0  ;;  %180 = sbr.rel (%p177_p3) target bundleno = 734 (0x2de), region = 36 }
   0xa   : > { %2836 = vset.pattern.permute.xlu1 (!%p177_p3), %v3725_v2  ;;  %2835 = vset.pattern.permute.xlu0 (!%p177_p3), %v3725_v2  ;;  %v240_v4 = vld [vmem:[%s4951_s2 + $0x8] sm:$0xff] (!%p177_p3)  ;;  %s2384_s30 = smul.u32 (!%p177_p3), 448, %s3707_s15  ;;  %v263_v6 = vld [vmem:[%s4952_s3] sm:$0xff] (!%p177_p3)  ;;  %v266_v7 = vld [vmem:[%s4952_s3 + $0x18] sm:$0x1] (!%p177_p3)  ;;  %s3726_s25 = smov (!%p177_p3), 126  }
   0xb   : > { %255 = vperm.xlu1 (!%p177_p3), %2836, %v241_v0   ;;  %245 = vperm.xlu0 (!%p177_p3), %2835, %v239_v1   ;;  %v264_v5 = vld [vmem:[%s4952_s3 + $0x8] sm:$0xff] (!%p177_p3)  ;;  %v265_v8 = vld [vmem:[%s4952_s3 + $0x10] sm:$0xff] (!%p177_p3)  ;;  %s3727_s26 = smov (!%p177_p3), 124   ;;  %s3728_s27 = smov (!%p177_p3), 122   ;;  %v3731_v33 = vmov (!%p177_p3), 0.0|0.0   ;;  %v3971_v51 = vld [vmem:[%s4950_s1 + $0x18] sm:$0xff] (!%p177_p3) }
   0xc   : > { %s3729_s28 = smov (!%p177_p3), 120   ;;  %s3730_s29 = smov (!%p177_p3), 118   ;;  %2593 = vmatprep.subr.bf16.mxu1 (!%p177_p3), %v3731_v33  ;;  %v3952_v47 = vld [vmem:[%s4950_s1 + $0x8] sm:$0xff] (!%p177_p3)  ;;  %vm577_vm0 = vcmask (!%p177_p3), 64512   ;;  %vm390_vm1 = vcmask (!%p177_p3), 1014784   ;;  %vm433_vm2 = vcmask (!%p177_p3), 998400  }
   0xd   : > { %654 = vmatprep.mubr.f32.mxu0 (!%p177_p3), %v3952_v47  ;;  %2306 = vmatprep.mubr.msk.f32.mxu1 (!%p177_p3), %vm577_vm0, %v3971_v51  ;;  %vm347_vm3 = vcmask (!%p177_p3), 1031168   ;;  %vm476_vm4 = vcmask (!%p177_p3), 982016   ;;  %vm519_vm5 = vcmask (!%p177_p3), 965632   ;;  %vm562_vm6 = vcmask (!%p177_p3), 949248   ;;  %s2299_s9 = sshll.u32 (!%p177_p3), %s3707_s15, 2 }
   0xe   : > { %p215_p6 = scmp.lt.s32.totalorder (!%p177_p3), %s2299_s9, 7 }
   0xf   : > { %260 = vperm.xlu1 (!%p177_p3), %2836, %v242_v3   ;;  %250 = vperm.xlu0 (!%p177_p3), %2835, %v240_v4  }
  0x10   : > { %s4968_s16 = smov (!%p207_p5, %s3711_s16), 1  ;;  %s4970_s9 = smov (!%p215_p6, %s2299_s9), 7 }
  0x11   : > { %s2785_s5 = smul.u32 896, %s4968_s16  ;;  %s2300_s15 = sshll.u32 %s4970_s9, 2 }
  0x13   : > { %s211_s8 = scalar_lea.vmem %s4949_s0, %s2785_s5  ;;  %274 = vperm.xlu1 %2836, %v264_v5   ;;  %269 = vperm.xlu0 %2835, %v263_v6  }
  0x14   : > { %s3816_s13 = scalar_lea.vmem %s211_s8, %s2384_s30  ;;  %s3732_s30 = smov 116  }
  0x15   : > { %v3825_v9 = vld [vmem:[%s3816_s13 + $0x10] sm:$0xff]  ;;  %v294_v10 = vld [vmem:[%s3816_s13 + $0x18] sm:$0xff]  ;;  %v3829_v11 = vld [vmem:[%s3816_s13] sm:$0xff] }
  0x16   : > { %v292_v12 = vld [vmem:[%s3816_s13 + $0x8] sm:$0xff]  ;;  %v3833_v13 = vpack.i.bf16 %v294_v10, %v3825_v9  ;;  %v3837_v15 = vld [vmem:[%s3816_s13 + $0x30] sm:$0xff]  ;;  %v298_v16 = vld [vmem:[%s3816_s13 + $0x38] sm:$0xff]  ;;  %v2563_v30 = vpack.c.bf16 %v3825_v9, %v3829_v11 }
  0x17   : > { %284 = vperm.xlu1 %2836, %v266_v7   ;;  %279 = vperm.xlu0 %2835, %v265_v8   ;;  %v2837_v14 = vpack.i.bf16 %v292_v12, %v3829_v11  ;;  %v3841_v17 = vld [vmem:[%s3816_s13 + $0x20] sm:$0xff]  ;;  %v296_v18 = vld [vmem:[%s3816_s13 + $0x28] sm:$0xff]  ;;  %v2852_v19 = vpack.i.bf16 %v298_v16, %v3837_v15  ;;  %v3846_v20 = vld [vmem:[%s3816_s13 + $0x50] sm:$0xff] }
  0x18   : > { %v302_v21 = vld [vmem:[%s3816_s13 + $0x58] sm:$0xff]  ;;  %v2847_v22 = vpack.i.bf16 %v296_v18, %v3841_v17  ;;  %v3854_v23 = vld [vmem:[%s3816_s13 + $0x40] sm:$0xff]  ;;  %v300_v24 = vld [vmem:[%s3816_s13 + $0x48] sm:$0xff]  ;;  %v2567_v31 = vpack.c.bf16 %v3837_v15, %v3841_v17 }
  0x19   : > { %v3032_v25 = vpack.i.bf16 %v300_v24, %v3854_v23  ;;  %v3037_v26 = vpack.i.bf16 %v302_v21, %v3846_v20  ;;  %v3862_v27 = vld [vmem:[%s3816_s13 + $0x60] sm:$0xff]  ;;  %v304_v28 = vld [vmem:[%s3816_s13 + $0x68] sm:$0xff]  ;;  %v2571_v32 = vpack.c.bf16 %v3846_v20, %v3854_v23  ;;  %v3915_v34 = vld [vmem:[%s3816_s13 + $0x70] sm:$0xff] }
  0x1a   : > { %v2867_v29 = vpack.i.bf16 %v304_v28, %v3862_v27  ;;  %v2313_v35 = vld [vmem:[%s3816_s13 + $0x78] sm:$0xff]  ;;  %v3925_v37 = vld [vmem:[%s3816_s13 + $0x90] sm:$0xff]  ;;  %v3929_v39 = vld [vmem:[%s3816_s13 + $0x80] sm:$0xff] }
  0x1b   : > { %2843 = vrot.lane.b32.xlu1 %v3833_v13, %s3726_s25  ;;  %2838 = vrot.lane.b32.xlu0 %v2837_v14, %s3726_s25  ;;  %v3922_v36 = vpack.i.bf16 %v2313_v35, %v3915_v34  ;;  %v2317_v38 = vld [vmem:[%s3816_s13 + $0x98] sm:$0xff]  ;;  %v2315_v40 = vld [vmem:[%s3816_s13 + $0x88] sm:$0xff] }
  0x1c   : > { %v3936_v41 = vpack.i.bf16 %v2317_v38, %v3925_v37  ;;  %v3939_v42 = vpack.i.bf16 %v2315_v40, %v3929_v39  ;;  %v3942_v43 = vld [vmem:[%s3816_s13 + $0xb0] sm:$0xff]  ;;  %v2321_v44 = vld [vmem:[%s3816_s13 + $0xb8] sm:$0xff]  ;;  %v3946_v45 = vld [vmem:[%s3816_s13 + $0xa0] sm:$0xff] }
  0x1d   : > { %v2319_v46 = vld [vmem:[%s3816_s13 + $0xa8] sm:$0xff]  ;;  %v3960_v48 = vpack.i.bf16 %v2321_v44, %v3942_v43  ;;  %v3966_v50 = vld [vmem:[%s3816_s13 + $0xd0] sm:$0xff]  ;;  %v3974_v52 = vld [vmem:[%s3816_s13 + $0xd8] sm:$0xff] }
  0x1e   : > { %v3963_v49 = vpack.i.bf16 %v2319_v46, %v3946_v45  ;;  %v3977_v53 = vld [vmem:[%s3816_s13 + $0xc0] sm:$0xff]  ;;  %v2323_v54 = vld [vmem:[%s3816_s13 + $0xc8] sm:$0xff]  ;;  %v3988_v55 = vpack.i.bf16 %v3974_v52, %v3966_v50 }
  0x1f   : > { %2853 = vrot.lane.b32.xlu1 %v2852_v19, %s3726_s25  ;;  %2848 = vrot.lane.b32.xlu0 %v2847_v22, %s3726_s25  ;;  %v3991_v56 = vpack.i.bf16 %v2323_v54, %v3977_v53 }
  0x23   : > { %2863 = vrot.lane.b32.xlu1 %v3037_v26, %s3726_s25  ;;  %2858 = vrot.lane.b32.xlu0 %v3032_v25, %s3726_s25 }
  0x27   : > { %2873 = vrot.lane.b32.xlu1 %v2837_v14, %s3727_s26  ;;  %2868 = vrot.lane.b32.xlu0 %v2867_v29, %s3726_s25 }
  0x2b   : > { %2883 = vrot.lane.b32.xlu1 %v2847_v22, %s3727_s26  ;;  %2878 = vrot.lane.b32.xlu0 %v3833_v13, %s3727_s26 }
  0x2f   : > { %2893 = vrot.lane.b32.xlu1 %v3032_v25, %s3727_s26  ;;  %2888 = vrot.lane.b32.xlu0 %v2852_v19, %s3727_s26 }
  0x33   : > { %2903 = vrot.lane.b32.xlu1 %v2867_v29, %s3727_s26  ;;  %2898 = vrot.lane.b32.xlu0 %v3037_v26, %s3727_s26 }
  0x37   : > { %2913 = vrot.lane.b32.xlu1 %v3833_v13, %s3728_s27  ;;  %2908 = vrot.lane.b32.xlu0 %v2837_v14, %s3728_s27 }
  0x3b   : > { %2923 = vrot.lane.b32.xlu1 %v2852_v19, %s3728_s27  ;;  %2918 = vrot.lane.b32.xlu0 %v2847_v22, %s3728_s27 }
  0x3f   : > { %2933 = vrot.lane.b32.xlu1 %v3037_v26, %s3728_s27  ;;  %2928 = vrot.lane.b32.xlu0 %v3032_v25, %s3728_s27 }
  0x43   : > { %2943 = vrot.lane.b32.xlu1 %v2837_v14, %s3729_s28  ;;  %2938 = vrot.lane.b32.xlu0 %v2867_v29, %s3728_s27 }
  0x47   : > { %2953 = vrot.lane.b32.xlu1 %v2847_v22, %s3729_s28  ;;  %2948 = vrot.lane.b32.xlu0 %v3833_v13, %s3729_s28 }
  0x4b   : > { %2963 = vrot.lane.b32.xlu1 %v3032_v25, %s3729_s28  ;;  %2958 = vrot.lane.b32.xlu0 %v2852_v19, %s3729_s28 }
  0x4f   : > { %2973 = vrot.lane.b32.xlu1 %v2867_v29, %s3729_s28  ;;  %2968 = vrot.lane.b32.xlu0 %v3037_v26, %s3729_s28 }
  0x53   : > { %2983 = vrot.lane.b32.xlu1 %v3833_v13, %s3730_s29  ;;  %2978 = vrot.lane.b32.xlu0 %v2837_v14, %s3730_s29 }
  0x57   : > { %2993 = vrot.lane.b32.xlu1 %v2852_v19, %s3730_s29  ;;  %2988 = vrot.lane.b32.xlu0 %v2847_v22, %s3730_s29 }
  0x5b   : > { %3003 = vrot.lane.b32.xlu1 %v3037_v26, %s3730_s29  ;;  %2998 = vrot.lane.b32.xlu0 %v3032_v25, %s3730_s29 }
  0x5f   : > { %3013 = vrot.lane.b32.xlu1 %v2837_v14, %s3732_s30  ;;  %3008 = vrot.lane.b32.xlu0 %v2867_v29, %s3730_s29 }
  0x63   : > { %3023 = vrot.lane.b32.xlu1 %v2847_v22, %s3732_s30  ;;  %3018 = vrot.lane.b32.xlu0 %v3833_v13, %s3732_s30 }
  0x67   : > { %3033 = vrot.lane.b32.xlu1 %v3032_v25, %s3732_s30  ;;  %3028 = vrot.lane.b32.xlu0 %v2852_v19, %s3732_s30 }
  0x6b   : > { %558 = vrot.lane.b32.xlu1 %v3862_v27, %s3732_s30  ;;  %3038 = vrot.lane.b32.xlu0 %v3037_v26, %s3732_s30 }
  0x6f   : > { %3043 = vrot.lane.b32.xlu1 %v3922_v36, %s3726_s25  ;;  %560 = vrot.lane.b32.xlu0 %v304_v28, %s3732_s30 }
  0x73   : > { %3053 = vrot.lane.b32.xlu1 %v3936_v41, %s3726_s25  ;;  %3048 = vrot.lane.b32.xlu0 %v3939_v42, %s3726_s25 }
  0x77   : > { %3063 = vrot.lane.b32.xlu1 %v3960_v48, %s3726_s25  ;;  %3058 = vrot.lane.b32.xlu0 %v3963_v49, %s3726_s25 }
  0x7b   : > { %3073 = vrot.lane.b32.xlu1 %v3988_v55, %s3726_s25  ;;  %3068 = vrot.lane.b32.xlu0 %v3991_v56, %s3726_s25 }
  0x7f   : > { %3083 = vrot.lane.b32.xlu1 %v3939_v42, %s3727_s26  ;;  %3078 = vrot.lane.b32.xlu0 %v3922_v36, %s3727_s26 }
  0x83   : > { %3093 = vrot.lane.b32.xlu1 %v3963_v49, %s3727_s26  ;;  %3088 = vrot.lane.b32.xlu0 %v3936_v41, %s3727_s26 }
  0x87   : > { %3103 = vrot.lane.b32.xlu1 %v3991_v56, %s3727_s26  ;;  %3098 = vrot.lane.b32.xlu0 %v3960_v48, %s3727_s26 }
  0x8a   : > { %v4009_v57 = vpop.permute.xlu1 %255  ;;  %v4011_v58 = vpop.permute.xlu0 %245 }
  0x8b   : > { %3113 = vrot.lane.b32.xlu1 %v3922_v36, %s3728_s27  ;;  %3108 = vrot.lane.b32.xlu0 %v3988_v55, %s3727_s26 }
  0x8e   : > { %v4017_v59 = vpop.permute.xlu1 %260  ;;  %v4019_v60 = vpop.permute.xlu0 %250 }
  0x8f   : > { %3123 = vrot.lane.b32.xlu1 %v3936_v41, %s3728_s27  ;;  %3118 = vrot.lane.b32.xlu0 %v3939_v42, %s3728_s27 }
  0x92   : > { %v4025_v61 = vpop.permute.xlu1 %274  ;;  %v4027_v62 = vpop.permute.xlu0 %269 }
  0x93   : > { %3133 = vrot.lane.b32.xlu1 %v3960_v48, %s3728_s27  ;;  %3128 = vrot.lane.b32.xlu0 %v3963_v49, %s3728_s27 }
  0x96   : > { %v4033_v63 = vpop.permute.xlu1 %284  ;;  %v4035_v0 = vpop.permute.xlu0 %279 }
  0x97   : > { %3143 = vrot.lane.b32.xlu1 %v3988_v55, %s3728_s27  ;;  %3138 = vrot.lane.b32.xlu0 %v3991_v56, %s3728_s27 }
  0x9a   : > { %v4041_v1 = vpop.permute.xlu1 %2843  ;;  %v4043_v2 = vpop.permute.xlu0 %2838 }
  0x9b   : > { %3153 = vrot.lane.b32.xlu1 %v3939_v42, %s3729_s28  ;;  %3148 = vrot.lane.b32.xlu0 %v3922_v36, %s3729_s28  ;;  %v2840_v9 = vunpack.i.l.bf16 %v4043_v2 }
  0x9e   : > { %v4049_v3 = vpop.permute.xlu1 %2853  ;;  %v4051_v4 = vpop.permute.xlu0 %2848 }
  0x9f   : > { %3163 = vrot.lane.b32.xlu1 %v3963_v49, %s3729_s28  ;;  %3158 = vrot.lane.b32.xlu0 %v3936_v41, %s3729_s28  ;;  %v2851_v15 = vunpack.i.h.bf16 %v4051_v4  ;;  %v2850_v17 = vunpack.i.l.bf16 %v4051_v4  ;;  %v2845_v4 = vunpack.i.l.bf16 %v4041_v1 }
  0xa2   : > { %v4057_v5 = vpop.permute.xlu1 %2863  ;;  %v4059_v6 = vpop.permute.xlu0 %2858 }
  0xa3   : > { %3173 = vrot.lane.b32.xlu1 %v3991_v56, %s3729_s28  ;;  %3168 = vrot.lane.b32.xlu0 %v3960_v48, %s3729_s28  ;;  %v2861_v23 = vunpack.i.h.bf16 %v4059_v6 }
  0xa6   : > { %v4065_v7 = vpop.permute.xlu1 %2873  ;;  %v4067_v8 = vpop.permute.xlu0 %2868 }
  0xa7   : > { %3183 = vrot.lane.b32.xlu1 %v3922_v36, %s3730_s29  ;;  %3178 = vrot.lane.b32.xlu0 %v3988_v55, %s3729_s28 }
  0xaa   : > { %v2884_v10 = vpop.permute.xlu1 %2883  ;;  %v4073_v12 = vpop.permute.xlu0 %2878 }
  0xab   : > { %3193 = vrot.lane.b32.xlu1 %v3936_v41, %s3730_s29  ;;  %3188 = vrot.lane.b32.xlu0 %v3939_v42, %s3730_s29  ;;  %v2886_v13 = vunpack.i.h.bf16 %v2884_v10  ;;  %v2885_v14 = vunpack.i.l.bf16 %v2884_v10 }
  0xad   : > { %v393_v25 = vsel %vm390_vm1, %v2885_v14, %v2886_v13 }
  0xae   : > { %v2894_v16 = vpop.permute.xlu1 %2893  ;;  %v2889_v18 = vpop.permute.xlu0 %2888 }
  0xaf   : > { %v2891_v19 = vunpack.i.h.bf16 %v2889_v18  ;;  %v2890_v21 = vunpack.i.l.bf16 %v2889_v18  ;;  %3203 = vrot.lane.b32.xlu1 %v3960_v48, %s3730_s29  ;;  %3198 = vrot.lane.b32.xlu0 %v3963_v49, %s3730_s29  ;;  %v2896_v22 = vunpack.i.h.bf16 %v2894_v16  ;;  %v2895_v24 = vunpack.i.l.bf16 %v2894_v16 }
  0xb1   : > { %v394_v26 = vsel %vm390_vm1, %v2890_v21, %v2891_v19  ;;  %v395_v54 = vsel %vm390_vm1, %v2895_v24, %v2896_v22  ;;  %v2841_v19 = vunpack.i.h.bf16 %v4043_v2 }
  0xb2   : > { %v2904_v28 = vpop.permute.xlu1 %2903  ;;  %v2899_v29 = vpop.permute.xlu0 %2898  ;;  %v2561_v35 = vpack.c.bf16 %v394_v26, %v393_v25 }
  0xb3   : > { %v2901_v38 = vunpack.i.h.bf16 %v2899_v29  ;;  %v2900_v40 = vunpack.i.l.bf16 %v2899_v29  ;;  %3213 = vrot.lane.b32.xlu1 %v3988_v55, %s3730_s29  ;;  %3208 = vrot.lane.b32.xlu0 %v3991_v56, %s3730_s29  ;;  %v2906_v44 = vunpack.i.h.bf16 %v2904_v28  ;;  %v2905_v46 = vunpack.i.l.bf16 %v2904_v28 }
  0xb4   : > { %2562 = vmatprep.subr.bf16.mxu0 %v2561_v35  ;;  %v2342_v35 = vld [vmem:[%s3816_s13 + $0x110] sm:$0xff] }
  0xb5   : > { %2564 = vmatpush3.bf16.msra.mxu0 %v2563_v30  ;;  %v396_v10 = vsel %vm390_vm1, %v2900_v40, %v2901_v38  ;;  %v397_v21 = vsel %vm390_vm1, %v2905_v46, %v2906_v44  ;;  %v2343_v38 = vld [vmem:[%s3816_s13 + $0x118] sm:$0xff] }
  0xb6   : > { %v2914_v13 = vpop.permute.xlu1 %2913  ;;  %v2909_v14 = vpop.permute.xlu0 %2908  ;;  %v2565_v16 = vpack.c.bf16 %v396_v10, %v395_v54 }
  0xb7   : > { %v2911_v18 = vunpack.i.h.bf16 %v2909_v14  ;;  %v2910_v55 = vunpack.i.l.bf16 %v2909_v14  ;;  %3223 = vrot.lane.b32.xlu1 %v3939_v42, %s3732_s30  ;;  %3218 = vrot.lane.b32.xlu0 %v3922_v36, %s3732_s30  ;;  %v2916_v11 = vunpack.i.h.bf16 %v2914_v13  ;;  %v2915_v30 = vunpack.i.l.bf16 %v2914_v13  ;;  %v2340_v14 = vld [vmem:[%s3816_s13 + $0x100] sm:$0xff] }
  0xb8   : > { %2566 = vmatprep.subr.bf16.mxu0 %v2565_v16  ;;  %v4129_v13 = vpack.i.bf16 %v2343_v38, %v2342_v35  ;;  %v2865_v35 = vunpack.i.l.bf16 %v4057_v5 }
  0xb9   : > { %2568 = vmatpush3.bf16.msra.mxu0 %v2567_v31  ;;  %v434_v22 = vsel %vm433_vm2, %v2910_v55, %v2911_v18  ;;  %v348_v31 = vsel %vm347_vm3, %v2840_v9, %v2841_v19  ;;  %v435_v29 = vsel %vm433_vm2, %v2915_v30, %v2916_v11  ;;  %v2347_v19 = vld [vmem:[%s3816_s13 + $0x138] sm:$0xff]  ;;  %v2856_v9 = vunpack.i.h.bf16 %v4049_v3 }
  0xba   : > { %v2924_v42 = vpop.permute.xlu1 %2923  ;;  %v2919_v24 = vpop.permute.xlu0 %2918  ;;  %v2569_v36 = vpack.c.bf16 %v434_v22, %v397_v21  ;;  %v2575_v20 = vpack.c.bf16 %v348_v31, %v3862_v27  ;;  %v2341_v27 = vld [vmem:[%s3816_s13 + $0x108] sm:$0xff]  ;;  %v2344_v31 = vld [vmem:[%s3816_s13 + $0x120] sm:$0xff] }
  0xbb   : > { %v2921_v25 = vunpack.i.h.bf16 %v2919_v24  ;;  %v2920_v26 = vunpack.i.l.bf16 %v2919_v24  ;;  %3233 = vrot.lane.b32.xlu1 %v3963_v49, %s3732_s30  ;;  %3228 = vrot.lane.b32.xlu0 %v3936_v41, %s3732_s30  ;;  %v2926_v2 = vunpack.i.h.bf16 %v2924_v42  ;;  %v2925_v28 = vunpack.i.l.bf16 %v2924_v42 }
  0xbc   : > { %2570 = vmatprep.subr.bf16.mxu0 %v2569_v36  ;;  %v2846_v41 = vunpack.i.h.bf16 %v4041_v1  ;;  %v350_v1 = vsel %vm347_vm3, %v2850_v17, %v2851_v15 }
  0xbd   : > { %2572 = vmatpush3.bf16.msra.mxu0 %v2571_v32  ;;  %v436_v49 = vsel %vm433_vm2, %v2920_v26, %v2921_v25  ;;  %v2860_v32 = vunpack.i.l.bf16 %v4059_v6  ;;  %v2855_v6 = vunpack.i.l.bf16 %v4049_v3  ;;  %v4144_v25 = vpack.i.bf16 %v2341_v27, %v2340_v14 }
  0xbe   : > { %v2934_v40 = vpop.permute.xlu1 %2933  ;;  %v2929_v44 = vpop.permute.xlu0 %2928  ;;  %v2573_v46 = vpack.c.bf16 %v436_v49, %v435_v29  ;;  %v349_v22 = vsel %vm347_vm3, %v2845_v4, %v2846_v41  ;;  %v2871_v3 = vunpack.i.h.bf16 %v4067_v8  ;;  %v2870_v26 = vunpack.i.l.bf16 %v4067_v8 }
  0xbf   : > { %v2931_v54 = vunpack.i.h.bf16 %v2929_v44  ;;  %v2930_v10 = vunpack.i.l.bf16 %v2929_v44  ;;  %3243 = vrot.lane.b32.xlu1 %v3991_v56, %s3732_s30  ;;  %3238 = vrot.lane.b32.xlu0 %v3960_v48, %s3732_s30  ;;  %v2936_v16 = vunpack.i.h.bf16 %v2934_v40  ;;  %v2935_v18 = vunpack.i.l.bf16 %v2934_v40  ;;  %v2346_v48 = vld [vmem:[%s3816_s13 + $0x130] sm:$0xff] }
  0xc0   : > { %2574 = vmatprep.subr.bf16.mxu0 %v2573_v46  ;;  %v437_v56 = vsel %vm433_vm2, %v2925_v28, %v2926_v2  ;;  %v2579_v36 = vpack.c.bf16 %v350_v1, %v349_v22  ;;  %v352_v15 = vsel %vm347_vm3, %v2860_v32, %v2861_v23  ;;  %v4149_v17 = vpack.i.bf16 %v2347_v19, %v2346_v48  ;;  %v2345_v2 = vld [vmem:[%s3816_s13 + $0x128] sm:$0xff] }
  0xc1   : > { %2576 = vmatpush3.bf16.msra.mxu0 %v2575_v20  ;;  %v438_v55 = vsel %vm433_vm2, %v2930_v10, %v2931_v54  ;;  %v2866_v49 = vunpack.i.h.bf16 %v4057_v5  ;;  %v351_v4 = vsel %vm347_vm3, %v2855_v6, %v2856_v9  ;;  %v4162_v54 = vpack.i.bf16 %v2345_v2, %v2344_v31  ;;  %v2336_v6 = vld [vmem:[%s3816_s13 + $0xe0] sm:$0xff] }
  0xc2   : > { %v2944_v11 = vpop.permute.xlu1 %2943  ;;  %v2939_v30 = vpop.permute.xlu0 %2938  ;;  %v2577_v21 = vpack.c.bf16 %v438_v55, %v437_v56  ;;  %v2583_v46 = vpack.c.bf16 %v352_v15, %v351_v4  ;;  %v2881_v10 = vunpack.i.h.bf16 %v4073_v12  ;;  %v2880_v5 = vunpack.i.l.bf16 %v4073_v12 }
  0xc3   : > { %v2941_v42 = vunpack.i.h.bf16 %v2939_v30  ;;  %v2940_v24 = vunpack.i.l.bf16 %v2939_v30  ;;  %1044 = vrot.lane.b32.xlu1 %v3974_v52, %s3732_s30  ;;  %1042 = vrot.lane.b32.xlu0 %v3966_v50, %s3732_s30  ;;  %v2946_v28 = vunpack.i.h.bf16 %v2944_v11  ;;  %v2945_v29 = vunpack.i.l.bf16 %v2944_v11  ;;  %v2337_v11 = vld [vmem:[%s3816_s13 + $0xe8] sm:$0xff] }
  0xc4   : > { %2578 = vmatprep.subr.bf16.mxu0 %v2577_v21  ;;  %v439_v52 = vsel %vm433_vm2, %v2935_v18, %v2936_v16  ;;  %v354_v20 = vsel %vm347_vm3, %v2870_v26, %v2871_v3  ;;  %v2876_v27 = vunpack.i.h.bf16 %v4065_v7  ;;  %v2875_v16 = vunpack.i.l.bf16 %v4065_v7  ;;  %v4180_v7 = vld [vmem:[%s3816_s13 + $0x140] sm:$0xff]  ;;  %v4183_v21 = vld [vmem:[%s3816_s13 + $0x148] sm:$0xff] }
  0xc5   : > { %2580 = vmatpush3.bf16.msra.mxu0 %v2579_v36  ;;  %v440_v50 = vsel %vm433_vm2, %v2940_v24, %v2941_v42  ;;  %v477_v1 = vsel %vm476_vm4, %v2945_v29, %v2946_v28  ;;  %v353_v55 = vsel %vm347_vm3, %v2865_v35, %v2866_v49  ;;  %v392_v30 = vsel %vm390_vm1, %v2880_v5, %v2881_v10 }
  0xc6   : > { %v2954_v38 = vpop.permute.xlu1 %2953  ;;  %v2949_v8 = vpop.permute.xlu0 %2948  ;;  %v2581_v41 = vpack.c.bf16 %v440_v50, %v439_v52  ;;  %v2587_v9 = vpack.c.bf16 %v354_v20, %v353_v55  ;;  %v391_v31 = vsel %vm390_vm1, %v2875_v16, %v2876_v27  ;;  %v4188_v2 = vpack.i.bf16 %v2337_v11, %v2336_v6  ;;  %v4215_v20 = vld [vmem:[%s3816_s13 + $0xf0] sm:$0xff]  ;;  %v4226_v16 = vld [vmem:[%s4950_s1 + $0x20] sm:$0xff]  ;;  %v4231_v55 = vld [vmem:[%s4950_s1 + $0x48] sm:$0xff] }
  0xc7   : > { %v2951_v40 = vunpack.i.h.bf16 %v2949_v8  ;;  %v2950_v44 = vunpack.i.l.bf16 %v2949_v8  ;;  %3253 = vrot.lane.b32.xlu1 %v4129_v13, %s3727_s26  ;;  %3248 = vrot.lane.b32.xlu0 %v4144_v25, %s3727_s26  ;;  %v2956_v23 = vunpack.i.h.bf16 %v2954_v38  ;;  %v2955_v32 = vunpack.i.l.bf16 %v2954_v38 }
  0xc8   : > { %2582 = vmatprep.subr.bf16.mxu0 %v2581_v41  ;;  %v2591_v52 = vpack.c.bf16 %v392_v30, %v391_v31  ;;  %v4196_v50 = vpack.i.bf16 %v4183_v21, %v4180_v7  ;;  %v4203_v41 = vld [vmem:[%s4950_s1] sm:$0xff] }
  0xc9   : > { %2584 = vmatpush3.bf16.msra.mxu0 %v2583_v46  ;;  %v478_v14 = vsel %vm476_vm4, %v2950_v44, %v2951_v40  ;;  %v479_v24 = vsel %vm476_vm4, %v2955_v32, %v2956_v23  ;;  %v4208_v46 = vld [vmem:[%s4950_s1 + $0x28] sm:$0xff]  ;;  %v2339_v23 = vld [vmem:[%s3816_s13 + $0xf8] sm:$0xff] }
  0xca   : > { %v2964_v18 = vpop.permute.xlu1 %2963  ;;  %v2959_v12 = vpop.permute.xlu0 %2958  ;;  %v2585_v56 = vpack.c.bf16 %v478_v14, %v477_v1 }
  0xcb   : > { %v2961_v48 = vunpack.i.h.bf16 %v2959_v12  ;;  %v2960_v19 = vunpack.i.l.bf16 %v2959_v12  ;;  %3263 = vrot.lane.b32.xlu1 %v4149_v17, %s3729_s28  ;;  %3258 = vrot.lane.b32.xlu0 %v4162_v54, %s3729_s28  ;;  %v2966_v22 = vunpack.i.h.bf16 %v2964_v18  ;;  %v2965_v42 = vunpack.i.l.bf16 %v2964_v18 }
  0xcc   : > { %2586 = vmatprep.subr.bf16.mxu0 %v2585_v56 }
  0xcd   : > { %2588 = vmatpush3.bf16.msra.mxu0 %v2587_v9  ;;  %v480_v36 = vsel %vm476_vm4, %v2960_v19, %v2961_v48  ;;  %v481_v38 = vsel %vm476_vm4, %v2965_v42, %v2966_v22  ;;  %v4238_v9 = vpack.i.bf16 %v2339_v23, %v4215_v20  ;;  %v4248_v42 = vld [vmem:[%s4950_s1 + $0x40] sm:$0xff] }
  0xce   : > { %v2974_v3 = vpop.permute.xlu1 %2973  ;;  %v2969_v26 = vpop.permute.xlu0 %2968  ;;  %v2589_v15 = vpack.c.bf16 %v480_v36, %v479_v24 }
  0xcf   : > { %v2971_v28 = vunpack.i.h.bf16 %v2969_v26  ;;  %v2970_v29 = vunpack.i.l.bf16 %v2969_v26  ;;  %3273 = vrot.lane.b32.xlu1 %v4149_v17, %s3727_s26  ;;  %3268 = vrot.lane.b32.xlu0 %v4162_v54, %s3727_s26  ;;  %v2976_v49 = vunpack.i.h.bf16 %v2974_v3  ;;  %v2975_v35 = vunpack.i.l.bf16 %v2974_v3  ;;  %v4253_v26 = vld [vmem:[%s4950_s1 + $0x68] sm:$0x1] }
  0xd0   : > { %2590 = vmatprep.subr.bf16.mxu0 %v2589_v15 }
  0xd1   : > { %2592 = vmatpush3.bf16.msra.mxu0 %v2591_v52  ;;  %v482_v8 = vsel %vm476_vm4, %v2970_v29, %v2971_v28  ;;  %v483_v14 = vsel %vm476_vm4, %v2975_v35, %v2976_v49  ;;  %v4267_v35 = vld [vmem:[%s4950_s1 + $0x60] sm:$0x1] }
  0xd2   : > { %v2984_v4 = vpop.permute.xlu1 %2983  ;;  %v2979_v40 = vpop.permute.xlu0 %2978  ;;  %v2594_v44 = vpack.c.bf16 %v482_v8, %v481_v38 }
  0xd3   : > { %v2981_v10 = vunpack.i.h.bf16 %v2979_v40  ;;  %v2980_v5 = vunpack.i.l.bf16 %v2979_v40  ;;  %3283 = vrot.lane.b32.xlu1 %v4188_v2, %s3730_s29  ;;  %3278 = vrot.lane.b32.xlu0 %v4196_v50, %s3729_s28  ;;  %v2986_v32 = vunpack.i.h.bf16 %v2984_v4  ;;  %v2985_v1 = vunpack.i.l.bf16 %v2984_v4 }
  0xd4   : > { %2595 = vmatpush1.bf16.msra.mxu1 %v2594_v44  ;;  %655 = vmatmul.mubr.f32.vlgmr.msra.gmra.mrb[0].mxu0 %v4203_v41 }
  0xd5   : > { %2596 = vmatprep.subr.bf16.mxu1 %v3731_v33  ;;  %v520_v27 = vsel %vm519_vm5, %v2980_v5, %v2981_v10  ;;  %659 = vmatprep.mubr.f32.mxu0 %v4208_v46  ;;  %v521_v30 = vsel %vm519_vm5, %v2985_v1, %v2986_v32 }
  0xd6   : > { %v2994_v18 = vpop.permute.xlu1 %2993  ;;  %v2989_v12 = vpop.permute.xlu0 %2988  ;;  %v2597_v56 = vpack.c.bf16 %v520_v27, %v483_v14 }
  0xd7   : > { %v2991_v48 = vunpack.i.h.bf16 %v2989_v12  ;;  %v2990_v19 = vunpack.i.l.bf16 %v2989_v12  ;;  %3293 = vrot.lane.b32.xlu1 %v4188_v2, %s3728_s27  ;;  %3288 = vrot.lane.b32.xlu0 %v4196_v50, %s3727_s26  ;;  %v2996_v6 = vunpack.i.h.bf16 %v2994_v18  ;;  %v2995_v11 = vunpack.i.l.bf16 %v2994_v18 }
  0xd8   : > { %2598 = vmatpush1.bf16.msra.mxu1 %v2597_v56  ;;  %660 = vmatmul.mubr.f32.gmra.mrb[2].mxu0 %v4226_v16 }
  0xd9   : > { %2599 = vmatprep.subr.bf16.mxu1 %v3731_v33  ;;  %v522_v22 = vsel %vm519_vm5, %v2990_v19, %v2991_v48  ;;  %664 = vmatprep.mubr.f32.mxu0 %v4231_v55  ;;  %v523_v52 = vsel %vm519_vm5, %v2995_v11, %v2996_v6 }
  0xda   : > { %v3004_v24 = vpop.permute.xlu1 %3003  ;;  %v2999_v36 = vpop.permute.xlu0 %2998  ;;  %v2600_v3 = vpack.c.bf16 %v522_v22, %v521_v30 }
  0xdb   : > { %v3001_v15 = vunpack.i.h.bf16 %v2999_v36  ;;  %v3000_v31 = vunpack.i.l.bf16 %v2999_v36  ;;  %3303 = vrot.lane.b32.xlu1 %v4144_v25, %s3730_s29  ;;  %3298 = vrot.lane.b32.xlu0 %v4238_v9, %s3730_s29  ;;  %v3006_v28 = vunpack.i.h.bf16 %v3004_v24  ;;  %v3005_v29 = vunpack.i.l.bf16 %v3004_v24 }
  0xdc   : > { %2601 = vmatpush1.bf16.msra.mxu1 %v2600_v3  ;;  %665 = vmatmul.mubr.f32.gmra.mrb[4].mxu0 %v4248_v42 }
  0xdd   : > { %2602 = vmatprep.subr.bf16.mxu1 %v3731_v33  ;;  %v524_v49 = vsel %vm519_vm5, %v3000_v31, %v3001_v15  ;;  %669 = vmatprep.mubr.f32.mxu0 %v4253_v26  ;;  %v525_v23 = vsel %vm519_vm5, %v3005_v29, %v3006_v28 }
  0xde   : > { %v3014_v38 = vpop.permute.xlu1 %3013  ;;  %v3009_v8 = vpop.permute.xlu0 %3008  ;;  %v2603_v4 = vpack.c.bf16 %v524_v49, %v523_v52 }
  0xdf   : > { %v3011_v40 = vunpack.i.h.bf16 %v3009_v8  ;;  %v3010_v44 = vunpack.i.l.bf16 %v3009_v8  ;;  %3313 = vrot.lane.b32.xlu1 %v4144_v25, %s3728_s27  ;;  %3308 = vrot.lane.b32.xlu0 %v4238_v9, %s3728_s27  ;;  %v3016_v10 = vunpack.i.h.bf16 %v3014_v38  ;;  %v3015_v5 = vunpack.i.l.bf16 %v3014_v38 }
  0xe0   : > { %2604 = vmatpush1.bf16.msra.mxu1 %v2603_v4  ;;  %670 = vmatmul.mubr.f32.gmra.mrb[6].mxu0 %v4267_v35 }
  0xe1   : > { %2605 = vmatprep.subr.bf16.mxu1 %v3731_v33  ;;  %v526_v32 = vsel %vm519_vm5, %v3010_v44, %v3011_v40  ;;  %1124 = vmatprep.mubr.f32.mxu0 %v3952_v47  ;;  %v563_v19 = vsel %vm562_vm6, %v3015_v5, %v3016_v10  ;;  %v4954_v5 = vmov 0.0  }
  0xe2   : > { %v3024_v1 = vpop.permute.xlu1 %3023  ;;  %v3019_v14 = vpop.permute.xlu0 %3018  ;;  %v2606_v27 = vpack.c.bf16 %v526_v32, %v525_v23 }
  0xe3   : > { %v3021_v18 = vunpack.i.h.bf16 %v3019_v14  ;;  %v3020_v12 = vunpack.i.l.bf16 %v3019_v14  ;;  %3323 = vrot.lane.b32.xlu1 %v4162_v54, %s3730_s29  ;;  %3318 = vrot.lane.b32.xlu0 %v4129_v13, %s3730_s29  ;;  %v3026_v56 = vunpack.i.h.bf16 %v3024_v1  ;;  %v3025_v48 = vunpack.i.l.bf16 %v3024_v1  ;;  %v4313_v1 = vld [vmem:[%s4950_s1 + $0x10] sm:$0xff] }
  0xe4   : > { %2607 = vmatpush1.bf16.msra.mxu1 %v2606_v27  ;;  %v4319_v27 = vld [vmem:[%s4950_s1 + $0x38] sm:$0xff] }
  0xe5   : > { %2608 = vmatprep.subr.bf16.mxu1 %v3731_v33  ;;  %v564_v47 = vsel %vm562_vm6, %v3020_v12, %v3021_v18  ;;  %v565_v15 = vsel %vm562_vm6, %v3025_v48, %v3026_v56  ;;  %v4336_v56 = vld [vmem:[%s4950_s1 + $0x30] sm:$0xff]  ;;  %v4341_v48 = vld [vmem:[%s4950_s1 + $0x58] sm:$0xff] }
  0xe6   : > { %v3034_v6 = vpop.permute.xlu1 %3033  ;;  %v3029_v11 = vpop.permute.xlu0 %3028  ;;  %v2609_v30 = vpack.c.bf16 %v564_v47, %v563_v19 }
  0xe7   : > { %v3031_v22 = vunpack.i.h.bf16 %v3029_v11  ;;  %v3030_v24 = vunpack.i.l.bf16 %v3029_v11  ;;  %3333 = vrot.lane.b32.xlu1 %v4129_v13, %s3728_s27  ;;  %3328 = vrot.lane.b32.xlu0 %v4188_v2, %s3726_s25  ;;  %v3036_v36 = vunpack.i.h.bf16 %v3034_v6  ;;  %v3035_v3 = vunpack.i.l.bf16 %v3034_v6  ;;  %v4357_v6 = vld [vmem:[%s4950_s1 + $0x50] sm:$0xff]  ;;  %v4362_v11 = vld [vmem:[%s4950_s1 + $0x78] sm:$0x1] }
  0xe8   : > { %2610 = vmatpush1.bf16.msra.mxu1 %v2609_v30 }
  0xe9   : > { %2611 = vmatprep.subr.bf16.mxu1 %v3731_v33  ;;  %v566_v31 = vsel %vm562_vm6, %v3030_v24, %v3031_v22  ;;  %v567_v8 = vsel %vm562_vm6, %v3035_v3, %v3036_v36  ;;  %v4378_v24 = vld [vmem:[%s4950_s1 + $0x70] sm:$0x1] }
  0xea   : > { %v559_v28 = vpop.permute.xlu1 %558  ;;  %v3039_v29 = vpop.permute.xlu0 %3038  ;;  %v2612_v52 = vpack.c.bf16 %v566_v31, %v565_v15 }
  0xeb   : > { %v3041_v49 = vunpack.i.h.bf16 %v3039_v29  ;;  %v3040_v38 = vunpack.i.l.bf16 %v3039_v29  ;;  %3343 = vrot.lane.b32.xlu1 %v4149_v17, %s3730_s29  ;;  %3338 = vrot.lane.b32.xlu0 %v4162_v54, %s3728_s27 }
  0xec   : > { %2613 = vmatpush1.bf16.msra.mxu1 %v2612_v52 }
  0xed   : > { %2614 = vmatprep.subr.bf16.mxu1 %v3731_v33  ;;  %v568_v4 = vsel %vm562_vm6, %v3040_v38, %v3041_v49  ;;  %v2619_v38 = vpack.c.bf16 %v3929_v39, %v3915_v34 }
  0xee   : > { %v4299_v40 = vpop.permute.xlu1 %3043  ;;  %v561_v44 = vpop.permute.xlu0 %560  ;;  %v2615_v10 = vpack.c.bf16 %v568_v4, %v567_v8 }
  0xef   : > { %3353 = vrot.lane.b32.xlu1 %v4238_v9, %s3726_s25  ;;  %3348 = vrot.lane.b32.xlu0 %v4196_v50, %s3730_s29  ;;  %v569_v14 = vsel %vm562_vm6, %v559_v28, %v561_v44  ;;  %v3045_v34 = vunpack.i.l.bf16 %v4299_v40 }
  0xf0   : > { %2616 = vmatpush1.bf16.msra.mxu1 %v2615_v10 }
  0xf1   : > { %707 = vmatprep.subr.mxu1 %v4954_v5 }
  0xf2   : > { %v4306_v23 = vpop.permute.xlu1 %3053  ;;  %v4308_v32 = vpop.permute.xlu0 %3048 }
  0xf3   : > { %3363 = vrot.lane.b32.xlu1 %v4149_v17, %s3728_s27  ;;  %3358 = vrot.lane.b32.xlu0 %v4144_v25, %s3726_s25 }
  0xf4   : > { %708 = vmatpush1.msra.mxu1 %v569_v14 }
  0xf5   : > { %740 = vmatmul.mubr.f32.vlgmr.msra.gmra.mrb[0].mxu1 %v4313_v1  ;;  %2649 = vmatprep.subr.bf16.mxu1 %v3731_v33 }
  0xf6   : > { %v4327_v18 = vpop.permute.xlu1 %3063  ;;  %v4329_v12 = vpop.permute.xlu0 %3058  ;;  %2307 = vmatprep.mubr.msk.f32.mxu1 %vm577_vm0, %v4319_v27 }
  0xf7   : > { %3373 = vrot.lane.b32.xlu1 %v4188_v2, %s3732_s30  ;;  %3368 = vrot.lane.b32.xlu0 %v4196_v50, %s3728_s27 }
  0xf9   : > { %745 = vmatmul.mubr.f32.gmra.mrb[2].mxu1 %v4336_v56 }
  0xfa   : > { %v4348_v19 = vpop.permute.xlu1 %3073  ;;  %v4350_v47 = vpop.permute.xlu0 %3068  ;;  %2308 = vmatprep.mubr.msk.f32.mxu1 %vm577_vm0, %v4341_v48 }
  0xfb   : > { %3383 = vrot.lane.b32.xlu1 %v4129_v13, %s3726_s25  ;;  %3378 = vrot.lane.b32.xlu0 %v4238_v9, %s3732_s30 }
  0xfd   : > { %750 = vmatmul.mubr.f32.gmra.mrb[4].mxu1 %v4357_v6 }
  0xfe   : > { %v4369_v30 = vpop.permute.xlu1 %3083  ;;  %v4371_v22 = vpop.permute.xlu0 %3078  ;;  %2309 = vmatprep.mubr.msk.f32.mxu1 %vm577_vm0, %v4362_v11 }
  0xff   : > { %3393 = vrot.lane.b32.xlu1 %v4188_v2, %s3729_s28  ;;  %3388 = vrot.lane.b32.xlu0 %v4162_v54, %s3726_s25 }
 0x101   : > { %755 = vmatmul.mubr.f32.gmra.mrb[6].mxu1 %v4378_v24 }
 0x102   : > { %v3094_v36 = vpop.permute.xlu1 %3093  ;;  %v3089_v3 = vpop.permute.xlu0 %3088  ;;  %2326 = vmatprep.mubr.msk.f32.mxu1 %vm577_vm0, %v3971_v51 }
 0x103   : > { %v3096_v15 = vunpack.i.h.bf16 %v3094_v36  ;;  %v3095_v31 = vunpack.i.l.bf16 %v3094_v36  ;;  %v3091_v28 = vunpack.i.h.bf16 %v3089_v3  ;;  %v3090_v29 = vunpack.i.l.bf16 %v3089_v3  ;;  %3403 = vrot.lane.b32.xlu1 %v4144_v25, %s3732_s30  ;;  %3398 = vrot.lane.b32.xlu0 %v4238_v9, %s3729_s28 }
 0x104   : > { %v2623_v3 = vpack.c.bf16 %v3946_v45, %v3925_v37  ;;  %v2627_v37 = vpack.c.bf16 %v3977_v53, %v3942_v43  ;;  %v2365_v43 = vld [vmem:[%s3816_s13 + $0x178] sm:$0xff] }
 0x105   : > { %v880_v52 = vsel %vm390_vm1, %v3090_v29, %v3091_v28  ;;  %v881_v49 = vsel %vm390_vm1, %v3095_v31, %v3096_v15  ;;  %v3046_v15 = vunpack.i.h.bf16 %v4299_v40  ;;  %v3056_v40 = vunpack.i.h.bf16 %v4306_v23 }
 0x106   : > { %v3104_v8 = vpop.permute.xlu1 %3103  ;;  %v3099_v4 = vpop.permute.xlu0 %3098  ;;  %v2617_v51 = vpack.c.bf16 %v881_v49, %v880_v52 }
 0x107   : > { %v3106_v44 = vunpack.i.h.bf16 %v3104_v8  ;;  %v3105_v10 = vunpack.i.l.bf16 %v3104_v8  ;;  %v3101_v14 = vunpack.i.h.bf16 %v3099_v4  ;;  %v3100_v36 = vunpack.i.l.bf16 %v3099_v4  ;;  %3413 = vrot.lane.b32.xlu1 %v4149_v17, %s3726_s25  ;;  %3408 = vrot.lane.b32.xlu0 %v4129_v13, %s3732_s30 }
 0x108   : > { %2618 = vmatprep.subr.bf16.mxu0 %v2617_v51  ;;  %v836_v45 = vsel %vm347_vm3, %v3045_v34, %v3046_v15 }
 0x109   : > { %2620 = vmatpush3.bf16.msra.mxu0 %v2619_v38  ;;  %v882_v39 = vsel %vm390_vm1, %v3100_v36, %v3101_v14  ;;  %v883_v31 = vsel %vm390_vm1, %v3105_v10, %v3106_v44  ;;  %v3055_v44 = vunpack.i.l.bf16 %v4306_v23  ;;  %v3050_v10 = vunpack.i.l.bf16 %v4308_v32 }
 0x10a   : > { %v3114_v28 = vpop.permute.xlu1 %3113  ;;  %v3109_v29 = vpop.permute.xlu0 %3108  ;;  %v2621_v52 = vpack.c.bf16 %v883_v31, %v882_v39  ;;  %v2364_v39 = vld [vmem:[%s3816_s13 + $0x170] sm:$0xff]  ;;  %v3065_v23 = vunpack.i.l.bf16 %v4327_v18 }
 0x10b   : > { %v3116_v49 = vunpack.i.h.bf16 %v3114_v28  ;;  %v3115_v8 = vunpack.i.l.bf16 %v3114_v28  ;;  %v3111_v4 = vunpack.i.h.bf16 %v3109_v29  ;;  %v3110_v5 = vunpack.i.l.bf16 %v3109_v29  ;;  %3423 = vrot.lane.b32.xlu1 %v4144_v25, %s3729_s28  ;;  %3418 = vrot.lane.b32.xlu0 %v4196_v50, %s3726_s25 }
 0x10c   : > { %2622 = vmatprep.subr.bf16.mxu0 %v2621_v52  ;;  %v3051_v25 = vunpack.i.h.bf16 %v4308_v32  ;;  %v3061_v32 = vunpack.i.h.bf16 %v4329_v12 }
 0x10d   : > { %2624 = vmatpush3.bf16.msra.mxu0 %v2623_v3  ;;  %v884_v38 = vsel %vm390_vm1, %v3110_v5, %v3111_v4  ;;  %v920_v51 = vsel %vm433_vm2, %v3115_v8, %v3116_v49  ;;  %v3066_v5 = vunpack.i.h.bf16 %v4327_v18  ;;  %v3060_v3 = vunpack.i.l.bf16 %v4329_v12  ;;  %v3657_v4 = vld [vmem:[%s3816_s13 + $0xd0] sm:$0xff] }
 0x10e   : > { %v3124_v50 = vpop.permute.xlu1 %3123  ;;  %v3119_v14 = vpop.permute.xlu0 %3118  ;;  %v2625_v36 = vpack.c.bf16 %v920_v51, %v884_v38  ;;  %v837_v52 = vsel %vm347_vm3, %v3050_v10, %v3051_v25  ;;  %v2631_v38 = vpack.c.bf16 %v836_v45, %v3657_v4  ;;  %v3076_v45 = vunpack.i.h.bf16 %v4348_v19 }
 0x10f   : > { %v3126_v53 = vunpack.i.h.bf16 %v3124_v50  ;;  %v3125_v15 = vunpack.i.l.bf16 %v3124_v50  ;;  %v3121_v34 = vunpack.i.h.bf16 %v3119_v14  ;;  %v3120_v31 = vunpack.i.l.bf16 %v3119_v14  ;;  %3433 = vrot.lane.b32.xlu1 %v4162_v54, %s3732_s30  ;;  %3428 = vrot.lane.b32.xlu0 %v4129_v13, %s3729_s28 }
 0x110   : > { %2626 = vmatprep.subr.bf16.mxu0 %v2625_v36  ;;  %v4430_v54 = vpack.i.bf16 %v2365_v43, %v2364_v39  ;;  %v838_v13 = vsel %vm347_vm3, %v3055_v44, %v3056_v40  ;;  %v2366_v40 = vld [vmem:[%s3816_s13 + $0x180] sm:$0xff]  ;;  %v2367_v44 = vld [vmem:[%s3816_s13 + $0x188] sm:$0xff]  ;;  %v840_v25 = vsel %vm347_vm3, %v3065_v23, %v3066_v5  ;;  %v839_v10 = vsel %vm347_vm3, %v3060_v3, %v3061_v32  ;;  %v2368_v43 = vld [vmem:[%s3816_s13 + $0x190] sm:$0xff] }
 0x111   : > { %2628 = vmatpush3.bf16.msra.mxu0 %v2627_v37  ;;  %v921_v28 = vsel %vm433_vm2, %v3120_v31, %v3121_v34  ;;  %v922_v29 = vsel %vm433_vm2, %v3125_v15, %v3126_v53  ;;  %v3075_v14 = vunpack.i.l.bf16 %v4348_v19  ;;  %v3071_v36 = vunpack.i.h.bf16 %v4350_v47  ;;  %v2369_v53 = vld [vmem:[%s3816_s13 + $0x198] sm:$0xff] }
 0x112   : > { %v3134_v49 = vpop.permute.xlu1 %3133  ;;  %v3129_v18 = vpop.permute.xlu0 %3128  ;;  %v2629_v8 = vpack.c.bf16 %v922_v29, %v921_v28  ;;  %v3070_v39 = vunpack.i.l.bf16 %v4350_v47  ;;  %v2635_v5 = vpack.c.bf16 %v838_v13, %v837_v52  ;;  %v4451_v23 = vpack.i.bf16 %v2367_v44, %v2366_v40  ;;  %v2371_v40 = vld [vmem:[%s3816_s13 + $0x1a8] sm:$0xff] }
 0x113   : > { %v3136_v12 = vunpack.i.h.bf16 %v3134_v49  ;;  %v3135_v51 = vunpack.i.l.bf16 %v3134_v49  ;;  %v3131_v37 = vunpack.i.h.bf16 %v3129_v18  ;;  %v3130_v50 = vunpack.i.l.bf16 %v3129_v18  ;;  %3443 = vrot.lane.b32.xlu1 %v4188_v2, %s3727_s26  ;;  %3438 = vrot.lane.b32.xlu0 %v4149_v17, %s3732_s30 }
 0x114   : > { %2630 = vmatprep.subr.bf16.mxu0 %v2629_v8  ;;  %v842_v47 = vsel %vm347_vm3, %v3075_v14, %v3076_v45  ;;  %v2639_v29 = vpack.c.bf16 %v840_v25, %v839_v10  ;;  %v4458_v49 = vpack.i.bf16 %v2369_v53, %v2368_v43  ;;  %v841_v13 = vsel %vm347_vm3, %v3070_v39, %v3071_v36 }
 0x115   : > { %2632 = vmatpush3.bf16.msra.mxu0 %v2631_v38  ;;  %v923_v2 = vsel %vm433_vm2, %v3130_v50, %v3131_v37  ;;  %v924_v17 = vsel %vm433_vm2, %v3135_v51, %v3136_v12  ;;  %v3086_v52 = vunpack.i.h.bf16 %v4369_v30  ;;  %v3085_v4 = vunpack.i.l.bf16 %v4369_v30  ;;  %v2370_v50 = vld [vmem:[%s3816_s13 + $0x1a0] sm:$0xff] }
 0x116   : > { %v3144_v15 = vpop.permute.xlu1 %3143  ;;  %v3139_v34 = vpop.permute.xlu0 %3138  ;;  %v2633_v31 = vpack.c.bf16 %v924_v17, %v923_v2  ;;  %v3080_v38 = vunpack.i.l.bf16 %v4371_v22  ;;  %v4475_v14 = vpack.i.bf16 %v2371_v40, %v2370_v50  ;;  %v2643_v43 = vpack.c.bf16 %v842_v47, %v841_v13 }
 0x117   : > { %v3146_v32 = vunpack.i.h.bf16 %v3144_v15  ;;  %v3145_v19 = vunpack.i.l.bf16 %v3144_v15  ;;  %v3141_v3 = vunpack.i.h.bf16 %v3139_v34  ;;  %v3140_v28 = vunpack.i.l.bf16 %v3139_v34  ;;  %3453 = vrot.lane.b32.xlu1 %v4430_v54, %s3727_s26  ;;  %3448 = vrot.lane.b32.xlu0 %v4238_v9, %s3727_s26 }
 0x118   : > { %2634 = vmatprep.subr.bf16.mxu0 %v2633_v31  ;;  %v3081_v9 = vunpack.i.h.bf16 %v4371_v22  ;;  %v879_v36 = vsel %vm390_vm1, %v3085_v4, %v3086_v52 }
 0x119   : > { %2636 = vmatpush3.bf16.msra.mxu0 %v2635_v5  ;;  %v925_v18 = vsel %vm433_vm2, %v3140_v28, %v3141_v3  ;;  %v926_v8 = vsel %vm433_vm2, %v3145_v19, %v3146_v32  ;;  %v4484_v5 = vld [vmem:[%s3816_s13 + $0x1b0] sm:$0xff]  ;;  %v4487_v32 = vld [vmem:[%s3816_s13 + $0x1b8] sm:$0xff] }
 0x11a   : > { %v3154_v12 = vpop.permute.xlu1 %3153  ;;  %v3149_v51 = vpop.permute.xlu0 %3148  ;;  %v2637_v37 = vpack.c.bf16 %v926_v8, %v925_v18  ;;  %v878_v39 = vsel %vm390_vm1, %v3080_v38, %v3081_v9  ;;  %v4493_v52 = vpack.i.bf16 %v4487_v32, %v4484_v5  ;;  %v4500_v9 = vld [vmem:[%s3816_s13 + $0x150] sm:$0xff]  ;;  %v2361_v38 = vld [vmem:[%s3816_s13 + $0x158] sm:$0xff] }
 0x11b   : > { %v3156_v44 = vunpack.i.h.bf16 %v3154_v12  ;;  %v3155_v25 = vunpack.i.l.bf16 %v3154_v12  ;;  %v3151_v10 = vunpack.i.h.bf16 %v3149_v51  ;;  %v3150_v45 = vunpack.i.l.bf16 %v3149_v51  ;;  %1513 = vrot.lane.b32.xlu1 %v4180_v7, %s3732_s30  ;;  %3458 = vrot.lane.b32.xlu0 %v4451_v23, %s3727_s26 }
 0x11c   : > { %2638 = vmatprep.subr.bf16.mxu0 %v2637_v37  ;;  %v2647_v13 = vpack.c.bf16 %v879_v36, %v878_v39  ;;  %v2363_v36 = vld [vmem:[%s3816_s13 + $0x168] sm:$0xff] }
 0x11d   : > { %2640 = vmatpush3.bf16.msra.mxu0 %v2639_v29  ;;  %v962_v30 = vsel %vm476_vm4, %v3150_v45, %v3151_v10  ;;  %v963_v22 = vsel %vm476_vm4, %v3155_v25, %v3156_v44  ;;  %v4506_v44 = vpack.i.bf16 %v2361_v38, %v4500_v9 }
 0x11e   : > { %v3164_v2 = vpop.permute.xlu1 %3163  ;;  %v3159_v17 = vpop.permute.xlu0 %3158  ;;  %v2641_v7 = vpack.c.bf16 %v963_v22, %v962_v30  ;;  %v4513_v22 = vld [vmem:[%s3816_s13 + $0x160] sm:$0xff] }
 0x11f   : > { %v3166_v53 = vunpack.i.h.bf16 %v3164_v2  ;;  %v3165_v15 = vunpack.i.l.bf16 %v3164_v2  ;;  %v3161_v34 = vunpack.i.h.bf16 %v3159_v17  ;;  %v3160_v31 = vunpack.i.l.bf16 %v3159_v17  ;;  %3463 = vrot.lane.b32.xlu1 %v4458_v49, %s3729_s28  ;;  %1515 = vrot.lane.b32.xlu0 %v4183_v21, %s3732_s30 }
 0x120   : > { %2642 = vmatprep.subr.bf16.mxu0 %v2641_v7 }
 0x121   : > { %2644 = vmatpush3.bf16.msra.mxu0 %v2643_v43  ;;  %v964_v19 = vsel %vm476_vm4, %v3160_v31, %v3161_v34  ;;  %v965_v3 = vsel %vm476_vm4, %v3165_v15, %v3166_v53  ;;  %v4522_v53 = vpack.i.bf16 %v2363_v36, %v4513_v22 }
 0x122   : > { %v3174_v28 = vpop.permute.xlu1 %3173  ;;  %v3169_v47 = vpop.permute.xlu0 %3168  ;;  %v2645_v29 = vpack.c.bf16 %v965_v3, %v964_v19 }
 0x123   : > { %v3176_v21 = vunpack.i.h.bf16 %v3174_v28  ;;  %v3175_v18 = vunpack.i.l.bf16 %v3174_v28  ;;  %v3171_v8 = vunpack.i.h.bf16 %v3169_v47  ;;  %v3170_v4 = vunpack.i.l.bf16 %v3169_v47  ;;  %3473 = vrot.lane.b32.xlu1 %v4458_v49, %s3727_s26  ;;  %3468 = vrot.lane.b32.xlu0 %v4475_v14, %s3729_s28 }
 0x124   : > { %2646 = vmatprep.subr.bf16.mxu0 %v2645_v29 }
 0x125   : > { %v967_v12 = vsel %vm476_vm4, %v3175_v18, %v3176_v21  ;;  %v966_v51 = vsel %vm476_vm4, %v3170_v4, %v3171_v8  ;;  %2648 = vmatpush3.bf16.msra.mxu0 %v2647_v13 }
 0x126   : > { %v3184_v37 = vpop.permute.xlu1 %3183  ;;  %v3179_v50 = vpop.permute.xlu0 %3178  ;;  %v2650_v40 = vpack.c.bf16 %v967_v12, %v966_v51 }
 0x127   : > { %v3186_v25 = vunpack.i.h.bf16 %v3184_v37  ;;  %v3185_v10 = vunpack.i.l.bf16 %v3184_v37  ;;  %v3181_v45 = vunpack.i.h.bf16 %v3179_v50  ;;  %v3180_v30 = vunpack.i.l.bf16 %v3179_v50  ;;  %3483 = vrot.lane.b32.xlu1 %v4493_v52, %s3729_s28  ;;  %3478 = vrot.lane.b32.xlu0 %v4475_v14, %s3727_s26 }
 0x128   : > { %2651 = vmatpush1.bf16.msra.mxu1 %v2650_v40  ;;  %1125 = vmatmul.mubr.f32.vlgmr.msra.gmra.mrb[8].mxu0 %v4203_v41  ;;  %v4553_v40 = vld [vmem:[%s4950_s1 + $0x8] sm:$0xff] }
 0x129   : > { %v1004_v39 = vsel %vm519_vm5, %v3185_v10, %v3186_v25  ;;  %v968_v2 = vsel %vm476_vm4, %v3180_v30, %v3181_v45  ;;  %2652 = vmatprep.subr.bf16.mxu1 %v3731_v33  ;;  %1129 = vmatprep.mubr.f32.mxu0 %v4208_v46 }
 0x12a   : > { %v3194_v17 = vpop.permute.xlu1 %3193  ;;  %v3189_v7 = vpop.permute.xlu0 %3188  ;;  %v2653_v43 = vpack.c.bf16 %v1004_v39, %v968_v2 }
 0x12b   : > { %v3196_v15 = vunpack.i.h.bf16 %v3194_v17  ;;  %v3195_v34 = vunpack.i.l.bf16 %v3194_v17  ;;  %v3191_v31 = vunpack.i.h.bf16 %v3189_v7  ;;  %v3190_v19 = vunpack.i.l.bf16 %v3189_v7  ;;  %3493 = vrot.lane.b32.xlu1 %v4493_v52, %s3727_s26  ;;  %3488 = vrot.lane.b32.xlu0 %v4506_v44, %s3730_s29 }
 0x12c   : > { %2654 = vmatpush1.bf16.msra.mxu1 %v2653_v43  ;;  %1130 = vmatmul.mubr.f32.gmra.mrb[10].mxu0 %v4226_v16 }
 0x12d   : > { %v1006_v41 = vsel %vm519_vm5, %v3195_v34, %v3196_v15  ;;  %v1005_v46 = vsel %vm519_vm5, %v3190_v19, %v3191_v31  ;;  %2655 = vmatprep.subr.bf16.mxu1 %v3731_v33  ;;  %1134 = vmatprep.mubr.f32.mxu0 %v4231_v55 }
 0x12e   : > { %v3204_v3 = vpop.permute.xlu1 %3203  ;;  %v3199_v28 = vpop.permute.xlu0 %3198  ;;  %v2656_v47 = vpack.c.bf16 %v1006_v41, %v1005_v46 }
 0x12f   : > { %v3206_v29 = vunpack.i.h.bf16 %v3204_v3  ;;  %v3205_v13 = vunpack.i.l.bf16 %v3204_v3  ;;  %v3201_v21 = vunpack.i.h.bf16 %v3199_v28  ;;  %v3200_v18 = vunpack.i.l.bf16 %v3199_v28  ;;  %3503 = vrot.lane.b32.xlu1 %v4522_v53, %s3730_s29  ;;  %3498 = vrot.lane.b32.xlu0 %v4506_v44, %s3728_s27 }
 0x130   : > { %2657 = vmatpush1.bf16.msra.mxu1 %v2656_v47  ;;  %1135 = vmatmul.mubr.f32.gmra.mrb[12].mxu0 %v4248_v42 }
 0x131   : > { %v1008_v16 = vsel %vm519_vm5, %v3205_v13, %v3206_v29  ;;  %v1007_v55 = vsel %vm519_vm5, %v3200_v18, %v3201_v21  ;;  %2658 = vmatprep.subr.bf16.mxu1 %v3731_v33  ;;  %1139 = vmatprep.mubr.f32.mxu0 %v4253_v26 }
 0x132   : > { %v2659_v8 = vpack.c.bf16 %v1008_v16, %v1007_v55  ;;  %v3214_v4 = vpop.permute.xlu1 %3213  ;;  %v3209_v38 = vpop.permute.xlu0 %3208 }
 0x133   : > { %v3216_v12 = vunpack.i.h.bf16 %v3214_v4  ;;  %v3215_v51 = vunpack.i.l.bf16 %v3214_v4  ;;  %v3211_v37 = vunpack.i.h.bf16 %v3209_v38  ;;  %v3210_v50 = vunpack.i.l.bf16 %v3209_v38  ;;  %3513 = vrot.lane.b32.xlu1 %v4522_v53, %s3728_s27  ;;  %3508 = vrot.lane.b32.xlu0 %v4430_v54, %s3730_s29 }
 0x134   : > { %2660 = vmatpush1.bf16.msra.mxu1 %v2659_v8  ;;  %1140 = vmatmul.mubr.f32.gmra.mrb[14].mxu0 %v4267_v35 }
 0x135   : > { %v1010_v42 = vsel %vm519_vm5, %v3215_v51, %v3216_v12  ;;  %v1009_v26 = vsel %vm519_vm5, %v3210_v50, %v3211_v37  ;;  %2661 = vmatprep.subr.bf16.mxu1 %v3731_v33  ;;  %1595 = vmatprep.mubr.f32.mxu0 %v4553_v40  ;;  %v4956_v51 = vmov 0.0  }
 0x136   : > { %v2662_v25 = vpack.c.bf16 %v1010_v42, %v1009_v26  ;;  %v3224_v10 = vpop.permute.xlu1 %3223  ;;  %v3219_v45 = vpop.permute.xlu0 %3218 }
 0x137   : > { %v3226_v30 = vunpack.i.h.bf16 %v3224_v10  ;;  %v3225_v36 = vunpack.i.l.bf16 %v3224_v10  ;;  %v3221_v39 = vunpack.i.h.bf16 %v3219_v45  ;;  %v3220_v35 = vunpack.i.l.bf16 %v3219_v45  ;;  %3523 = vrot.lane.b32.xlu1 %v4506_v44, %s3726_s25  ;;  %3518 = vrot.lane.b32.xlu0 %v4430_v54, %s3728_s27 }
 0x138   : > { %2663 = vmatpush1.bf16.msra.mxu1 %v2662_v25 }
 0x139   : > { %v1047_v2 = vsel %vm562_vm6, %v3225_v36, %v3226_v30  ;;  %v1046_v17 = vsel %vm562_vm6, %v3220_v35, %v3221_v39  ;;  %2664 = vmatprep.subr.bf16.mxu1 %v3731_v33  ;;  %v3659_v39 = vld [vmem:[%s3816_s13 + $0xe0] sm:$0xff] }
 0x13a   : > { %v2665_v7 = vpack.c.bf16 %v1047_v2, %v1046_v17  ;;  %v3234_v43 = vpop.permute.xlu1 %3233  ;;  %v3229_v15 = vpop.permute.xlu0 %3228  ;;  %v2675_v35 = vpack.c.bf16 %v4215_v20, %v3659_v39  ;;  %v3663_v39 = vld [vmem:[%s3816_s13 + $0x130] sm:$0xff] }
 0x13b   : > { %v3236_v34 = vunpack.i.h.bf16 %v3234_v43  ;;  %v3235_v31 = vunpack.i.l.bf16 %v3234_v43  ;;  %v3231_v19 = vunpack.i.h.bf16 %v3229_v15  ;;  %v3230_v41 = vunpack.i.l.bf16 %v3229_v15  ;;  %3533 = vrot.lane.b32.xlu1 %v4458_v49, %s3730_s29  ;;  %3528 = vrot.lane.b32.xlu0 %v4451_v23, %s3730_s29 }
 0x13c   : > { %2666 = vmatpush1.bf16.msra.mxu1 %v2665_v7 }
 0x13d   : > { %v1049_v46 = vsel %vm562_vm6, %v3235_v31, %v3236_v34  ;;  %v1048_v3 = vsel %vm562_vm6, %v3230_v41, %v3231_v19  ;;  %2667 = vmatprep.subr.bf16.mxu1 %v3731_v33 }
 0x13e   : > { %v2668_v28 = vpack.c.bf16 %v1049_v46, %v1048_v3  ;;  %v3244_v47 = vpop.permute.xlu1 %3243  ;;  %v3239_v29 = vpop.permute.xlu0 %3238 }
 0x13f   : > { %v3246_v13 = vunpack.i.h.bf16 %v3244_v47  ;;  %v3245_v21 = vunpack.i.l.bf16 %v3244_v47  ;;  %v3241_v18 = vunpack.i.h.bf16 %v3239_v29  ;;  %v3240_v16 = vunpack.i.l.bf16 %v3239_v29  ;;  %3543 = vrot.lane.b32.xlu1 %v4458_v49, %s3728_s27  ;;  %3538 = vrot.lane.b32.xlu0 %v4451_v23, %s3728_s27 }
 0x140   : > { %2669 = vmatpush1.bf16.msra.mxu1 %v2668_v28 }
 0x141   : > { %v1051_v55 = vsel %vm562_vm6, %v3245_v21, %v3246_v13  ;;  %v1050_v8 = vsel %vm562_vm6, %v3240_v16, %v3241_v18  ;;  %2670 = vmatprep.subr.bf16.mxu1 %v3731_v33  ;;  %v3661_v13 = vld [vmem:[%s3816_s13 + $0x100] sm:$0xff] }
 0x142   : > { %v2671_v4 = vpack.c.bf16 %v1051_v55, %v1050_v8  ;;  %v1045_v38 = vpop.permute.xlu1 %1044  ;;  %v1043_v12 = vpop.permute.xlu0 %1042 }
 0x143   : > { %3553 = vrot.lane.b32.xlu1 %v4430_v54, %s3726_s25  ;;  %3548 = vrot.lane.b32.xlu0 %v4522_v53, %s3726_s25  ;;  %v1052_v37 = vsel %vm562_vm6, %v1043_v12, %v1045_v38 }
 0x144   : > { %2672 = vmatpush1.bf16.msra.mxu1 %v2671_v4 }
 0x145   : > { %1177 = vmatprep.subr.mxu1 %v4956_v51 }
 0x146   : > { %v3254_v50 = vpop.permute.xlu1 %3253  ;;  %v3249_v42 = vpop.permute.xlu0 %3248 }
 0x147   : > { %v3256_v26 = vunpack.i.h.bf16 %v3254_v50  ;;  %v3255_v25 = vunpack.i.l.bf16 %v3254_v50  ;;  %v3251_v10 = vunpack.i.h.bf16 %v3249_v42  ;;  %v3250_v45 = vunpack.i.l.bf16 %v3249_v42  ;;  %3563 = vrot.lane.b32.xlu1 %v4493_v52, %s3730_s29  ;;  %3558 = vrot.lane.b32.xlu0 %v4475_v14, %s3730_s29 }
 0x148   : > { %1178 = vmatpush1.msra.mxu1 %v1052_v37 }
 0x149   : > { %1210 = vmatmul.mubr.f32.vlgmr.msra.gmra.mrb[8].mxu1 %v4313_v1  ;;  %v1351_v30 = vsel %vm390_vm1, %v3250_v45, %v3251_v10  ;;  %v1352_v36 = vsel %vm390_vm1, %v3255_v25, %v3256_v26  ;;  %2705 = vmatprep.subr.bf16.mxu1 %v3731_v33  ;;  %v4626_v26 = vld [vmem:[%s4950_s1 + $0x18] sm:$0xff] }
 0x14a   : > { %v3264_v2 = vpop.permute.xlu1 %3263  ;;  %v3259_v17 = vpop.permute.xlu0 %3258  ;;  %2327 = vmatprep.mubr.msk.f32.mxu1 %vm577_vm0, %v4319_v27  ;;  %v2673_v7 = vpack.c.bf16 %v1352_v36, %v1351_v30 }
 0x14b   : > { %v3266_v43 = vunpack.i.h.bf16 %v3264_v2  ;;  %v3265_v15 = vunpack.i.l.bf16 %v3264_v2  ;;  %v3261_v34 = vunpack.i.h.bf16 %v3259_v17  ;;  %v3260_v31 = vunpack.i.l.bf16 %v3259_v17  ;;  %3573 = vrot.lane.b32.xlu1 %v4493_v52, %s3728_s27  ;;  %3568 = vrot.lane.b32.xlu0 %v4475_v14, %s3728_s27 }
 0x14c   : > { %2674 = vmatprep.subr.bf16.mxu0 %v2673_v7 }
 0x14d   : > { %v1438_v1 = vsel %vm476_vm4, %v3265_v15, %v3266_v43  ;;  %v1437_v20 = vsel %vm476_vm4, %v3260_v31, %v3261_v34  ;;  %1215 = vmatmul.mubr.f32.gmra.mrb[10].mxu1 %v4336_v56  ;;  %2676 = vmatpush3.bf16.msra.mxu0 %v2675_v35  ;;  %v3664_v35 = vld [vmem:[%s3816_s13 + $0x120] sm:$0xff] }
 0x14e   : > { %v2706_v27 = vpack.c.bf16 %v1438_v1, %v1437_v20  ;;  %v3274_v19 = vpop.permute.xlu1 %3273  ;;  %v3269_v41 = vpop.permute.xlu0 %3268  ;;  %2328 = vmatprep.mubr.msk.f32.mxu1 %vm577_vm0, %v4341_v48  ;;  %v3660_v48 = vld [vmem:[%s3816_s13 + $0x110] sm:$0xff]  ;;  %v2683_v2 = vpack.c.bf16 %v3663_v39, %v3664_v35 }
 0x14f   : > { %v3276_v46 = vunpack.i.h.bf16 %v3274_v19  ;;  %v3275_v3 = vunpack.i.l.bf16 %v3274_v19  ;;  %v3271_v28 = vunpack.i.h.bf16 %v3269_v41  ;;  %v3270_v47 = vunpack.i.l.bf16 %v3269_v41  ;;  %3583 = vrot.lane.b32.xlu1 %v4458_v49, %s3726_s25  ;;  %3578 = vrot.lane.b32.xlu0 %v4451_v23, %s3726_s25 }
 0x150   : > { %2707 = vmatpush1.bf16.msra.mxu1 %v2706_v27  ;;  %v2679_v21 = vpack.c.bf16 %v3660_v48, %v3661_v13 }
 0x151   : > { %1220 = vmatmul.mubr.f32.gmra.mrb[12].mxu1 %v4357_v6  ;;  %v1353_v56 = vsel %vm390_vm1, %v3270_v47, %v3271_v28  ;;  %v1354_v29 = vsel %vm390_vm1, %v3275_v3, %v3276_v46  ;;  %2708 = vmatprep.subr.bf16.mxu1 %v3731_v33 }
 0x152   : > { %v3284_v18 = vpop.permute.xlu1 %3283  ;;  %v3279_v16 = vpop.permute.xlu0 %3278  ;;  %2329 = vmatprep.mubr.msk.f32.mxu1 %vm577_vm0, %v4362_v11  ;;  %v2677_v55 = vpack.c.bf16 %v1354_v29, %v1353_v56 }
 0x153   : > { %v3286_v8 = vunpack.i.h.bf16 %v3284_v18  ;;  %v3285_v4 = vunpack.i.l.bf16 %v3284_v18  ;;  %v3281_v38 = vunpack.i.h.bf16 %v3279_v16  ;;  %v3280_v12 = vunpack.i.l.bf16 %v3279_v16  ;;  %3593 = vrot.lane.b32.xlu1 %v4522_v53, %s3732_s30  ;;  %3588 = vrot.lane.b32.xlu0 %v4506_v44, %s3732_s30 }
 0x154   : > { %2678 = vmatprep.subr.bf16.mxu0 %v2677_v55 }
 0x155   : > { %v1475_v6 = vsel %vm519_vm5, %v3285_v4, %v3286_v8  ;;  %v1439_v37 = vsel %vm476_vm4, %v3280_v12, %v3281_v38  ;;  %1225 = vmatmul.mubr.f32.gmra.mrb[14].mxu1 %v4378_v24  ;;  %2680 = vmatpush3.bf16.msra.mxu0 %v2679_v21 }
 0x156   : > { %v2709_v11 = vpack.c.bf16 %v1475_v6, %v1439_v37  ;;  %v3294_v50 = vpop.permute.xlu1 %3293  ;;  %v3289_v42 = vpop.permute.xlu0 %3288  ;;  %2350 = vmatprep.mubr.msk.f32.mxu1 %vm577_vm0, %v4626_v26 }
 0x157   : > { %v3296_v25 = vunpack.i.h.bf16 %v3294_v50  ;;  %v3295_v10 = vunpack.i.l.bf16 %v3294_v50  ;;  %v3291_v45 = vunpack.i.h.bf16 %v3289_v42  ;;  %v3290_v30 = vunpack.i.l.bf16 %v3289_v42  ;;  %3603 = vrot.lane.b32.xlu1 %v4522_v53, %s3729_s28  ;;  %3598 = vrot.lane.b32.xlu0 %v4506_v44, %s3729_s28 }
 0x158   : > { %2710 = vmatpush1.bf16.msra.mxu1 %v2709_v11 }
 0x159   : > { %v1355_v24 = vsel %vm390_vm1, %v3290_v30, %v3291_v45  ;;  %v1391_v36 = vsel %vm433_vm2, %v3295_v10, %v3296_v25  ;;  %2711 = vmatprep.subr.bf16.mxu1 %v3731_v33  ;;  %v3665_v25 = vld [vmem:[%s3816_s13 + $0x140] sm:$0xff] }
 0x15a   : > { %v3304_v17 = vpop.permute.xlu1 %3303  ;;  %v3299_v7 = vpop.permute.xlu0 %3298  ;;  %v2681_v43 = vpack.c.bf16 %v1391_v36, %v1355_v24 }
 0x15b   : > { %v3306_v15 = vunpack.i.h.bf16 %v3304_v17  ;;  %v3305_v34 = vunpack.i.l.bf16 %v3304_v17  ;;  %v3301_v31 = vunpack.i.h.bf16 %v3299_v7  ;;  %v3300_v1 = vunpack.i.l.bf16 %v3299_v7  ;;  %3613 = vrot.lane.b32.xlu1 %v4493_v52, %s3726_s25  ;;  %3608 = vrot.lane.b32.xlu0 %v4475_v14, %s3726_s25 }
 0x15c   : > { %2682 = vmatprep.subr.bf16.mxu0 %v2681_v43 }
 0x15d   : > { %v1477_v20 = vsel %vm519_vm5, %v3305_v34, %v3306_v15  ;;  %v1476_v27 = vsel %vm519_vm5, %v3300_v1, %v3301_v31  ;;  %2684 = vmatpush3.bf16.msra.mxu0 %v2683_v2 }
 0x15e   : > { %v2712_v19 = vpack.c.bf16 %v1477_v20, %v1476_v27  ;;  %v3314_v41 = vpop.permute.xlu1 %3313  ;;  %v3309_v46 = vpop.permute.xlu0 %3308 }
 0x15f   : > { %v3316_v3 = vunpack.i.h.bf16 %v3314_v41  ;;  %v3315_v28 = vunpack.i.l.bf16 %v3314_v41  ;;  %v3311_v47 = vunpack.i.h.bf16 %v3309_v46  ;;  %v3310_v56 = vunpack.i.l.bf16 %v3309_v46  ;;  %3623 = vrot.lane.b32.xlu1 %v4451_v23, %s3732_s30  ;;  %3618 = vrot.lane.b32.xlu0 %v4430_v54, %s3732_s30 }
 0x160   : > { %2713 = vmatpush1.bf16.msra.mxu1 %v2712_v19 }
 0x161   : > { %v1392_v52 = vsel %vm433_vm2, %v3310_v56, %v3311_v47  ;;  %v1393_v29 = vsel %vm433_vm2, %v3315_v28, %v3316_v3  ;;  %2714 = vmatprep.subr.bf16.mxu1 %v3731_v33 }
 0x162   : > { %v3324_v48 = vpop.permute.xlu1 %3323  ;;  %v3319_v13 = vpop.permute.xlu0 %3318  ;;  %v2685_v21 = vpack.c.bf16 %v1393_v29, %v1392_v52 }
 0x163   : > { %v3326_v18 = vunpack.i.h.bf16 %v3324_v48  ;;  %v3325_v16 = vunpack.i.l.bf16 %v3324_v48  ;;  %v3321_v55 = vunpack.i.h.bf16 %v3319_v13  ;;  %v3320_v8 = vunpack.i.l.bf16 %v3319_v13  ;;  %3633 = vrot.lane.b32.xlu1 %v4451_v23, %s3729_s28  ;;  %3628 = vrot.lane.b32.xlu0 %v4430_v54, %s3729_s28 }
 0x164   : > { %2686 = vmatprep.subr.bf16.mxu0 %v2685_v21 }
 0x165   : > { %v1479_v4 = vsel %vm519_vm5, %v3325_v16, %v3326_v18  ;;  %v1478_v38 = vsel %vm519_vm5, %v3320_v8, %v3321_v55 }
 0x166   : > { %v2715_v12 = vpack.c.bf16 %v1479_v4, %v1478_v38  ;;  %v3334_v6 = vpop.permute.xlu1 %3333  ;;  %v3329_v37 = vpop.permute.xlu0 %3328 }
 0x167   : > { %v3331_v11 = vunpack.i.h.bf16 %v3329_v37  ;;  %v3330_v50 = vunpack.i.l.bf16 %v3329_v37  ;;  %3643 = vrot.lane.b32.xlu1 %v4522_v53, %s3727_s26  ;;  %3638 = vrot.lane.b32.xlu0 %v4506_v44, %s3727_s26  ;;  %v3336_v23 = vunpack.i.h.bf16 %v3334_v6  ;;  %v3335_v54 = vunpack.i.l.bf16 %v3334_v6 }
 0x168   : > { %2716 = vmatpush1.bf16.msra.mxu1 %v2715_v12 }
 0x169   : > { %v1307_v42 = vsel %vm347_vm3, %v3330_v50, %v3331_v11  ;;  %2717 = vmatprep.subr.bf16.mxu1 %v3731_v33  ;;  %v1394_v39 = vsel %vm433_vm2, %v3335_v54, %v3336_v23 }
 0x16a   : > { %v2687_v10 = vpack.c.bf16 %v1307_v42, %v3665_v25  ;;  %v3344_v45 = vpop.permute.xlu1 %3343  ;;  %v3339_v30 = vpop.permute.xlu0 %3338 }
 0x16b   : > { %v3341_v24 = vunpack.i.h.bf16 %v3339_v30  ;;  %v3340_v36 = vunpack.i.l.bf16 %v3339_v30  ;;  %3653 = vrot.lane.b32.xlu1 %v4475_v14, %s3732_s30  ;;  %3648 = vrot.lane.b32.xlu0 %v4458_v49, %s3732_s30  ;;  %v3346_v44 = vunpack.i.h.bf16 %v3344_v45  ;;  %v3345_v53 = vunpack.i.l.bf16 %v3344_v45 }
 0x16c   : > { %2688 = vmatpush3.bf16.msra.mxu0 %v2687_v10 }
 0x16d   : > { %v1395_v35 = vsel %vm433_vm2, %v3340_v36, %v3341_v24  ;;  %v1480_v49 = vsel %vm519_vm5, %v3345_v53, %v3346_v44 }
 0x16e   : > { %v3354_v2 = vpop.permute.xlu1 %3353  ;;  %v3349_v17 = vpop.permute.xlu0 %3348  ;;  %v2689_v7 = vpack.c.bf16 %v1395_v35, %v1394_v39 }
 0x16f   : > { %v3351_v43 = vunpack.i.h.bf16 %v3349_v17  ;;  %v3350_v15 = vunpack.i.l.bf16 %v3349_v17  ;;  %1986 = vrot.lane.b32.xlu1 %v4487_v32, %s3732_s30  ;;  %1984 = vrot.lane.b32.xlu0 %v4484_v5, %s3732_s30  ;;  %v3356_v14 = vunpack.i.h.bf16 %v3354_v2  ;;  %v3355_v34 = vunpack.i.l.bf16 %v3354_v2 }
 0x170   : > { %2690 = vmatprep.subr.bf16.mxu0 %v2689_v7 }
 0x171   : > { %v1481_v31 = vsel %vm519_vm5, %v3350_v15, %v3351_v43  ;;  %v1308_v46 = vsel %vm347_vm3, %v3355_v34, %v3356_v14 }
 0x172   : > { %v2718_v1 = vpack.c.bf16 %v1481_v31, %v1480_v49  ;;  %v3364_v20 = vpop.permute.xlu1 %3363  ;;  %v3359_v27 = vpop.permute.xlu0 %3358 }
 0x173   : > { %v3361_v19 = vunpack.i.h.bf16 %v3359_v27  ;;  %v3360_v41 = vunpack.i.l.bf16 %v3359_v27  ;;  %v3366_v3 = vunpack.i.h.bf16 %v3364_v20  ;;  %v3365_v32 = vunpack.i.l.bf16 %v3364_v20 }
 0x174   : > { %2719 = vmatpush1.bf16.msra.mxu1 %v2718_v1 }
 0x175   : > { %v1309_v28 = vsel %vm347_vm3, %v3360_v41, %v3361_v19  ;;  %2720 = vmatprep.subr.bf16.mxu1 %v3731_v33  ;;  %v1396_v21 = vsel %vm433_vm2, %v3365_v32, %v3366_v3 }
 0x176   : > { %v2691_v5 = vpack.c.bf16 %v1309_v28, %v1308_v46  ;;  %v3374_v47 = vpop.permute.xlu1 %3373  ;;  %v3369_v56 = vpop.permute.xlu0 %3368 }
 0x177   : > { %v3371_v52 = vunpack.i.h.bf16 %v3369_v56  ;;  %v3370_v29 = vunpack.i.l.bf16 %v3369_v56  ;;  %v3376_v48 = vunpack.i.h.bf16 %v3374_v47  ;;  %v3375_v13 = vunpack.i.l.bf16 %v3374_v47 }
 0x178   : > { %2692 = vmatpush3.bf16.msra.mxu0 %v2691_v5 }
 0x179   : > { %v1397_v18 = vsel %vm433_vm2, %v3370_v29, %v3371_v52  ;;  %v1517_v12 = vsel %vm562_vm6, %v3375_v13, %v3376_v48 }
 0x17a   : > { %v3384_v16 = vpop.permute.xlu1 %3383  ;;  %v3379_v55 = vpop.permute.xlu0 %3378  ;;  %v2693_v8 = vpack.c.bf16 %v1397_v18, %v1396_v21 }
 0x17b   : > { %v3381_v4 = vunpack.i.h.bf16 %v3379_v55  ;;  %v3380_v38 = vunpack.i.l.bf16 %v3379_v55  ;;  %v3386_v6 = vunpack.i.h.bf16 %v3384_v16  ;;  %v3385_v37 = vunpack.i.l.bf16 %v3384_v16 }
 0x17c   : > { %2694 = vmatprep.subr.bf16.mxu0 %v2693_v8 }
 0x17d   : > { %v1518_v11 = vsel %vm562_vm6, %v3380_v38, %v3381_v4  ;;  %v1310_v10 = vsel %vm347_vm3, %v3385_v37, %v3386_v6 }
 0x17e   : > { %v2721_v50 = vpack.c.bf16 %v1518_v11, %v1517_v12  ;;  %v3394_v23 = vpop.permute.xlu1 %3393  ;;  %v3389_v54 = vpop.permute.xlu0 %3388 }
 0x17f   : > { %v3391_v42 = vunpack.i.h.bf16 %v3389_v54  ;;  %v3390_v25 = vunpack.i.l.bf16 %v3389_v54  ;;  %v3396_v45 = vunpack.i.h.bf16 %v3394_v23  ;;  %v3395_v30 = vunpack.i.l.bf16 %v3394_v23 }
 0x180   : > { %2722 = vmatpush1.bf16.msra.mxu1 %v2721_v50 }
 0x181   : > { %v1311_v24 = vsel %vm347_vm3, %v3390_v25, %v3391_v42  ;;  %2723 = vmatprep.subr.bf16.mxu1 %v3731_v33  ;;  %v1433_v7 = vsel %vm476_vm4, %v3395_v30, %v3396_v45 }
 0x182   : > { %v2695_v36 = vpack.c.bf16 %v1311_v24, %v1310_v10  ;;  %v3404_v44 = vpop.permute.xlu1 %3403  ;;  %v3399_v53 = vpop.permute.xlu0 %3398 }
 0x183   : > { %v3401_v39 = vunpack.i.h.bf16 %v3399_v53  ;;  %v3400_v35 = vunpack.i.l.bf16 %v3399_v53  ;;  %v3406_v2 = vunpack.i.h.bf16 %v3404_v44  ;;  %v3405_v17 = vunpack.i.l.bf16 %v3404_v44 }
 0x184   : > { %2696 = vmatpush3.bf16.msra.mxu0 %v2695_v36 }
 0x185   : > { %v1434_v43 = vsel %vm476_vm4, %v3400_v35, %v3401_v39  ;;  %v1519_v1 = vsel %vm562_vm6, %v3405_v17, %v3406_v2 }
 0x186   : > { %v3414_v15 = vpop.permute.xlu1 %3413  ;;  %v3409_v49 = vpop.permute.xlu0 %3408  ;;  %v2697_v14 = vpack.c.bf16 %v1434_v43, %v1433_v7 }
 0x187   : > { %v3411_v34 = vunpack.i.h.bf16 %v3409_v49  ;;  %v3410_v31 = vunpack.i.l.bf16 %v3409_v49  ;;  %v3416_v20 = vunpack.i.h.bf16 %v3414_v15  ;;  %v3415_v27 = vunpack.i.l.bf16 %v3414_v15 }
 0x188   : > { %2698 = vmatprep.subr.bf16.mxu0 %v2697_v14 }
 0x189   : > { %v1520_v19 = vsel %vm562_vm6, %v3410_v31, %v3411_v34  ;;  %v1312_v5 = vsel %vm347_vm3, %v3415_v27, %v3416_v20  ;;  %v4707_v20 = vld [vmem:[%s4950_s1] sm:$0xff]  ;;  %v2731_v27 = vpack.c.bf16 %v4513_v22, %v4500_v9  ;;  %v4727_v9 = vld [vmem:[%s4950_s1 + $0x38] sm:$0xff] }
 0x18a   : > { %v2724_v41 = vpack.c.bf16 %v1520_v19, %v1519_v1  ;;  %v3424_v46 = vpop.permute.xlu1 %3423  ;;  %v3419_v3 = vpop.permute.xlu0 %3418 }
 0x18b   : > { %v3421_v32 = vunpack.i.h.bf16 %v3419_v3  ;;  %v3420_v28 = vunpack.i.l.bf16 %v3419_v3  ;;  %v3426_v47 = vunpack.i.h.bf16 %v3424_v46  ;;  %v3425_v56 = vunpack.i.l.bf16 %v3424_v46  ;;  %v4715_v46 = vld [vmem:[%s4950_s1 + $0x28] sm:$0xff]  ;;  %v4721_v3 = vld [vmem:[%s4950_s1 + $0x10] sm:$0xff] }
 0x18c   : > { %2725 = vmatpush1.bf16.msra.mxu1 %v2724_v41 }
 0x18d   : > { %v1313_v52 = vsel %vm347_vm3, %v3420_v28, %v3421_v32  ;;  %2726 = vmatprep.subr.bf16.mxu1 %v3731_v33  ;;  %v1435_v8 = vsel %vm476_vm4, %v3425_v56, %v3426_v47  ;;  %v4735_v47 = vld [vmem:[%s4950_s1 + $0x20] sm:$0xff]  ;;  %v4741_v56 = vld [vmem:[%s4950_s1 + $0x48] sm:$0xff] }
 0x18e   : > { %v2699_v29 = vpack.c.bf16 %v1313_v52, %v1312_v5  ;;  %v3434_v48 = vpop.permute.xlu1 %3433  ;;  %v3429_v13 = vpop.permute.xlu0 %3428 }
 0x18f   : > { %v3431_v21 = vunpack.i.h.bf16 %v3429_v13  ;;  %v3430_v18 = vunpack.i.l.bf16 %v3429_v13  ;;  %v3436_v16 = vunpack.i.h.bf16 %v3434_v48  ;;  %v3435_v55 = vunpack.i.l.bf16 %v3434_v48 }
 0x190   : > { %2700 = vmatpush3.bf16.msra.mxu0 %v2699_v29 }
 0x191   : > { %v1436_v4 = vsel %vm476_vm4, %v3430_v18, %v3431_v21  ;;  %v1521_v50 = vsel %vm562_vm6, %v3435_v55, %v3436_v16  ;;  %v4749_v21 = vld [vmem:[%s4950_s1 + $0x30] sm:$0xff] }
 0x192   : > { %v3444_v38 = vpop.permute.xlu1 %3443  ;;  %v3439_v12 = vpop.permute.xlu0 %3438  ;;  %v2701_v6 = vpack.c.bf16 %v1436_v4, %v1435_v8  ;;  %v4755_v8 = vld [vmem:[%s4950_s1 + $0x58] sm:$0xff] }
 0x193   : > { %v3441_v37 = vunpack.i.h.bf16 %v3439_v12  ;;  %v3440_v11 = vunpack.i.l.bf16 %v3439_v12  ;;  %v3446_v23 = vunpack.i.h.bf16 %v3444_v38  ;;  %v3445_v54 = vunpack.i.l.bf16 %v3444_v38  ;;  %v4762_v12 = vld [vmem:[%s4950_s1 + $0x40] sm:$0xff] }
 0x194   : > { %2702 = vmatprep.subr.bf16.mxu0 %v2701_v6 }
 0x195   : > { %v1522_v42 = vsel %vm562_vm6, %v3440_v11, %v3441_v37  ;;  %v1349_v36 = vsel %vm390_vm1, %v3445_v54, %v3446_v23  ;;  %v3676_v23 = vld [vmem:[%s3816_s13 + $0x170] sm:$0xff]  ;;  %v3677_v54 = vld [vmem:[%s3816_s13 + $0x180] sm:$0xff] }
 0x196   : > { %v2727_v25 = vpack.c.bf16 %v1522_v42, %v1521_v50  ;;  %v3454_v10 = vpop.permute.xlu1 %3453  ;;  %v3449_v45 = vpop.permute.xlu0 %3448  ;;  %v4768_v50 = vld [vmem:[%s4950_s1 + $0x68] sm:$0x1]  ;;  %v2735_v42 = vpack.c.bf16 %v3677_v54, %v3676_v23 }
 0x197   : > { %v3451_v30 = vunpack.i.h.bf16 %v3449_v45  ;;  %v3450_v24 = vunpack.i.l.bf16 %v3449_v45  ;;  %v3456_v44 = vunpack.i.h.bf16 %v3454_v10  ;;  %v3455_v53 = vunpack.i.l.bf16 %v3454_v10  ;;  %v4776_v10 = vld [vmem:[%s4950_s1 + $0x50] sm:$0xff] }
 0x198   : > { %2728 = vmatpush1.bf16.msra.mxu1 %v2727_v25 }
 0x199   : > { %v1350_v39 = vsel %vm390_vm1, %v3450_v24, %v3451_v30  ;;  %1648 = vmatprep.subr.mxu1 %v4956_v51  ;;  %v1822_v15 = vsel %vm390_vm1, %v3455_v53, %v3456_v44 }
 0x19a   : > { %v2703_v35 = vpack.c.bf16 %v1350_v39, %v1349_v36  ;;  %v1514_v2 = vpop.permute.xlu1 %1513  ;;  %v3459_v17 = vpop.permute.xlu0 %3458  ;;  %v4787_v39 = vld [vmem:[%s4950_s1 + $0x78] sm:$0x1] }
 0x19b   : > { %v3461_v7 = vunpack.i.h.bf16 %v3459_v17  ;;  %v3460_v43 = vunpack.i.l.bf16 %v3459_v17  ;;  %v4794_v17 = vld [vmem:[%s4950_s1 + $0x60] sm:$0x1] }
 0x19c   : > { %2704 = vmatpush3.bf16.msra.mxu0 %v2703_v35 }
 0x19d   : > { %v1823_v49 = vsel %vm390_vm1, %v3460_v43, %v3461_v7 }
 0x19e   : > { %v3464_v14 = vpop.permute.xlu1 %3463  ;;  %v1516_v34 = vpop.permute.xlu0 %1515  ;;  %v2729_v31 = vpack.c.bf16 %v1823_v49, %v1822_v15 }
 0x19f   : > { %v1523_v1 = vsel %vm562_vm6, %v1514_v2, %v1516_v34  ;;  %1596 = vmatmul.mubr.f32.vlgmr.msra.gmra.mrb[16].mxu0 %v4707_v20  ;;  %v3466_v19 = vunpack.i.h.bf16 %v3464_v14  ;;  %v3465_v41 = vunpack.i.l.bf16 %v3464_v14 }
 0x1a0   : > { %1649 = vmatpush1.msra.mxu1 %v1523_v1  ;;  %2730 = vmatprep.subr.bf16.mxu0 %v2729_v31  ;;  %v4803_v31 = vld [vmem:[%s4950_s1 + $0x70] sm:$0x1] }
 0x1a1   : > { %1600 = vmatprep.mubr.f32.mxu0 %v4715_v46  ;;  %1681 = vmatmul.mubr.f32.vlgmr.msra.gmra.mrb[16].mxu1 %v4721_v3  ;;  %v1908_v52 = vsel %vm476_vm4, %v3465_v41, %v3466_v19 }
 0x1a2   : > { %v3474_v32 = vpop.permute.xlu1 %3473  ;;  %v3469_v28 = vpop.permute.xlu0 %3468  ;;  %2351 = vmatprep.mubr.msk.f32.mxu1 %vm577_vm0, %v4727_v9  ;;  %2761 = vmatprep.subr.bf16.mxu1 %v3731_v33 }
 0x1a3   : > { %v3471_v22 = vunpack.i.h.bf16 %v3469_v28  ;;  %v3470_v5 = vunpack.i.l.bf16 %v3469_v28  ;;  %1601 = vmatmul.mubr.f32.gmra.mrb[18].mxu0 %v4735_v47  ;;  %v3476_v29 = vunpack.i.h.bf16 %v3474_v32  ;;  %v3475_v48 = vunpack.i.l.bf16 %v3474_v32 }
 0x1a4   : > { %1605 = vmatprep.mubr.f32.mxu0 %v4741_v56  ;;  %2732 = vmatpush3.bf16.msra.mxu0 %v2731_v27 }
 0x1a5   : > { %v1909_v13 = vsel %vm476_vm4, %v3470_v5, %v3471_v22  ;;  %1686 = vmatmul.mubr.f32.gmra.mrb[18].mxu1 %v4749_v21  ;;  %v1824_v45 = vsel %vm390_vm1, %v3475_v48, %v3476_v29 }
 0x1a6   : > { %v2762_v18 = vpack.c.bf16 %v1909_v13, %v1908_v52  ;;  %v3484_v16 = vpop.permute.xlu1 %3483  ;;  %v3479_v55 = vpop.permute.xlu0 %3478  ;;  %2352 = vmatprep.mubr.msk.f32.mxu1 %vm577_vm0, %v4755_v8  ;;  %v3682_v13 = vld [vmem:[%s3816_s13 + $0x190] sm:$0xff] }
 0x1a7   : > { %v3481_v4 = vunpack.i.h.bf16 %v3479_v55  ;;  %v3480_v38 = vunpack.i.l.bf16 %v3479_v55  ;;  %1606 = vmatmul.mubr.f32.gmra.mrb[20].mxu0 %v4762_v12  ;;  %v2417_v6 = vpop.f32.mrb[0].mxu0  ;;  %v3486_v37 = vunpack.i.h.bf16 %v3484_v16  ;;  %v3485_v11 = vunpack.i.l.bf16 %v3484_v16 }
 0x1a8   : > { %2763 = vmatpush1.bf16.msra.mxu1 %v2762_v18  ;;  %1610 = vmatprep.mubr.f32.mxu0 %v4768_v50  ;;  %v2418_v25 = vpop.f32.mrb[1].mxu0  ;;  %v3683_v18 = vld [vmem:[%s3816_s13 + $0x1a0] sm:$0xff] }
 0x1a9   : > { %1691 = vmatmul.mubr.f32.gmra.mrb[20].mxu1 %v4776_v10  ;;  %v1825_v30 = vsel %vm390_vm1, %v3480_v38, %v3481_v4  ;;  %2764 = vmatprep.subr.bf16.mxu1 %v3731_v33  ;;  %v4782_v24 = vadd.f32 %v2418_v25, %v2417_v6  ;;  %v1910_v43 = vsel %vm476_vm4, %v3485_v11, %v3486_v37 }
 0x1aa   : > { %v3494_v36 = vpop.permute.xlu1 %3493  ;;  %v3489_v44 = vpop.permute.xlu0 %3488  ;;  %v2733_v53 = vpack.c.bf16 %v1825_v30, %v1824_v45  ;;  %2353 = vmatprep.mubr.msk.f32.mxu1 %vm577_vm0, %v4787_v39  ;;  %v2739_v16 = vpack.c.bf16 %v3683_v18, %v3682_v13 }
 0x1ab   : > { %v3491_v35 = vunpack.i.h.bf16 %v3489_v44  ;;  %v3490_v2 = vunpack.i.l.bf16 %v3489_v44  ;;  %1611 = vmatmul.mubr.f32.gmra.mrb[22].mxu0 %v4794_v17  ;;  %v2420_v7 = vpop.f32.mrb[2].mxu0  ;;  %v3496_v49 = vunpack.i.h.bf16 %v3494_v36  ;;  %v3495_v14 = vunpack.i.l.bf16 %v3494_v36 }
 0x1ac   : > { %2734 = vmatprep.subr.bf16.mxu0 %v2733_v53  ;;  %v2421_v15 = vpop.f32.mrb[3].mxu0  ;;  %2066 = vmatprep.mubr.f32.mxu0 %v4553_v40 }
 0x1ad   : > { %v1946_v34 = vsel %vm519_vm5, %v3490_v2, %v3491_v35  ;;  %1696 = vmatmul.mubr.f32.gmra.mrb[22].mxu1 %v4803_v31  ;;  %2736 = vmatpush3.bf16.msra.mxu0 %v2735_v42  ;;  %v4806_v1 = vadd.f32 %v2421_v15, %v2420_v7  ;;  %v1826_v29 = vsel %vm390_vm1, %v3495_v14, %v3496_v49 }
 0x1ae   : > { %v2765_v27 = vpack.c.bf16 %v1946_v34, %v1910_v43  ;;  %v3504_v19 = vpop.permute.xlu1 %3503  ;;  %v3499_v41 = vpop.permute.xlu0 %3498  ;;  %2374 = vmatprep.mubr.msk.f32.mxu1 %vm577_vm0, %v4626_v26  ;;  %v3684_v34 = vld [vmem:[%s3816_s13 + $0x1b0] sm:$0xff]  ;;  %s2301_s13 = sshll.u32 %s4968_s16, 5 }
 0x1af   : > { %v3501_v40 = vunpack.i.h.bf16 %v3499_v41  ;;  %v3500_v32 = vunpack.i.l.bf16 %v3499_v41  ;;  %v2423_v28 = vpop.f32.mrb[4].mxu0  ;;  %v3506_v22 = vunpack.i.h.bf16 %v3504_v19  ;;  %v3505_v5 = vunpack.i.l.bf16 %v3504_v19  ;;  %s219_s10 = sadd.s32 %s2301_s13, %s2300_s15 }
 0x1b0   : > { %2766 = vmatpush1.bf16.msra.mxu1 %v2765_v27  ;;  %v2424_v52 = vpop.f32.mrb[5].mxu0  ;;  %s2302_s16 = sshll.u32 %s219_s10, 3 }
 0x1b1   : > { %v1862_v48 = vsel %vm433_vm2, %v3500_v32, %v3501_v40  ;;  %2767 = vmatprep.subr.bf16.mxu1 %v3731_v33  ;;  %v4815_v55 = vadd.f32 %v2424_v52, %v2423_v28  ;;  %v1947_v23 = vsel %vm519_vm5, %v3505_v5, %v3506_v22  ;;  %s4846_s14 = scalar_lea.vmem %s4953_s4, %s2302_s16 }
 0x1b2   : > { %v3514_v4 = vpop.permute.xlu1 %3513  ;;  %v3509_v26 = vpop.permute.xlu0 %3508  ;;  %v2737_v38 = vpack.c.bf16 %v1862_v48, %v1826_v29 }
 0x1b3   : > { %v3511_v6 = vunpack.i.h.bf16 %v3509_v26  ;;  %v3510_v37 = vunpack.i.l.bf16 %v3509_v26  ;;  %v2426_v11 = vpop.f32.mrb[6].mxu0  ;;  %v3516_v42 = vunpack.i.h.bf16 %v3514_v4  ;;  %v3515_v25 = vunpack.i.l.bf16 %v3514_v4 }
 0x1b4   : > { %2738 = vmatprep.subr.bf16.mxu0 %v2737_v38  ;;  %v2427_v54 = vpop.f32.mrb[7].mxu0 }
 0x1b5   : > { %v1948_v45 = vsel %vm519_vm5, %v3510_v37, %v3511_v6  ;;  %2740 = vmatpush3.bf16.msra.mxu0 %v2739_v16  ;;  %v4819_v30 = vadd.f32 %v2427_v54, %v2426_v11  ;;  %v1863_v49 = vsel %vm433_vm2, %v3515_v25, %v3516_v42 }
 0x1b6   : > { %v2768_v36 = vpack.c.bf16 %v1948_v45, %v1947_v23  ;;  %v3524_v44 = vpop.permute.xlu1 %3523  ;;  %v3519_v53 = vpop.permute.xlu0 %3518 }
 0x1b7   : > { %v3526_v35 = vunpack.i.h.bf16 %v3524_v44  ;;  %v3525_v2 = vunpack.i.l.bf16 %v3524_v44  ;;  %v3521_v7 = vunpack.i.h.bf16 %v3519_v53  ;;  %v3520_v43 = vunpack.i.l.bf16 %v3519_v53 }
 0x1b8   : > { %2769 = vmatpush1.bf16.msra.mxu1 %v2768_v36 }
 0x1b9   : > { %v1778_v15 = vsel %vm347_vm3, %v3525_v2, %v3526_v35  ;;  %v1864_v14 = vsel %vm433_vm2, %v3520_v43, %v3521_v7  ;;  %2770 = vmatprep.subr.bf16.mxu1 %v3731_v33 }
 0x1ba   : > { %v2743_v27 = vpack.c.bf16 %v1778_v15, %v3684_v34  ;;  %v3534_v19 = vpop.permute.xlu1 %3533  ;;  %v3529_v41 = vpop.permute.xlu0 %3528  ;;  %v2741_v40 = vpack.c.bf16 %v1864_v14, %v1863_v49 }
 0x1bb   : > { %v3536_v32 = vunpack.i.h.bf16 %v3534_v19  ;;  %v3535_v28 = vunpack.i.l.bf16 %v3534_v19  ;;  %v3531_v22 = vunpack.i.h.bf16 %v3529_v41  ;;  %v3530_v5 = vunpack.i.l.bf16 %v3529_v41 }
 0x1bc   : > { %2742 = vmatprep.subr.bf16.mxu0 %v2741_v40 }
 0x1bd   : > { %v1950_v52 = vsel %vm519_vm5, %v3535_v28, %v3536_v32  ;;  %v1949_v29 = vsel %vm519_vm5, %v3530_v5, %v3531_v22  ;;  %2744 = vmatpush3.bf16.msra.mxu0 %v2743_v27 }
 0x1be   : > { %v2771_v48 = vpack.c.bf16 %v1950_v52, %v1949_v29  ;;  %v3544_v13 = vpop.permute.xlu1 %3543  ;;  %v3539_v18 = vpop.permute.xlu0 %3538 }
 0x1bf   : > { %v3546_v16 = vunpack.i.h.bf16 %v3544_v13  ;;  %v3545_v4 = vunpack.i.l.bf16 %v3544_v13  ;;  %v3541_v26 = vunpack.i.h.bf16 %v3539_v18  ;;  %v3540_v38 = vunpack.i.l.bf16 %v3539_v18 }
 0x1c0   : > { %2772 = vmatpush1.bf16.msra.mxu1 %v2771_v48 }
 0x1c1   : > { %v1865_v6 = vsel %vm433_vm2, %v3540_v38, %v3541_v26  ;;  %v1866_v37 = vsel %vm433_vm2, %v3545_v4, %v3546_v16  ;;  %2773 = vmatprep.subr.bf16.mxu1 %v3731_v33 }
 0x1c2   : > { %v3554_v11 = vpop.permute.xlu1 %3553  ;;  %v3549_v23 = vpop.permute.xlu0 %3548  ;;  %v2745_v54 = vpack.c.bf16 %v1866_v37, %v1865_v6 }
 0x1c3   : > { %v3556_v42 = vunpack.i.h.bf16 %v3554_v11  ;;  %v3555_v25 = vunpack.i.l.bf16 %v3554_v11  ;;  %v3551_v45 = vunpack.i.h.bf16 %v3549_v23  ;;  %v3550_v36 = vunpack.i.l.bf16 %v3549_v23 }
 0x1c4   : > { %2746 = vmatprep.subr.bf16.mxu0 %v2745_v54 }
 0x1c5   : > { %v1780_v44 = vsel %vm347_vm3, %v3555_v25, %v3556_v42  ;;  %v1779_v53 = vsel %vm347_vm3, %v3550_v36, %v3551_v45 }
 0x1c6   : > { %v2747_v35 = vpack.c.bf16 %v1780_v44, %v1779_v53  ;;  %v3564_v2 = vpop.permute.xlu1 %3563  ;;  %v3559_v7 = vpop.permute.xlu0 %3558 }
 0x1c7   : > { %v3566_v43 = vunpack.i.h.bf16 %v3564_v2  ;;  %v3565_v15 = vunpack.i.l.bf16 %v3564_v2  ;;  %v3561_v49 = vunpack.i.h.bf16 %v3559_v7  ;;  %v3560_v14 = vunpack.i.l.bf16 %v3559_v7 }
 0x1c8   : > { %v741_v34 = vpop.f32.mrb[0].mxu1  ;;  %2748 = vmatpush3.bf16.msra.mxu0 %v2747_v35 }
 0x1c9   : > { %v1952_v27 = vsel %vm519_vm5, %v3565_v15, %v3566_v43  ;;  %v1951_v19 = vsel %vm519_vm5, %v3560_v14, %v3561_v49  ;;  %v742_v41 = vadd.f32 %v4782_v24, %v741_v34  ;;  %v743_v40 = vpop.f32.mrb[1].mxu1 }
 0x1ca   : > { %v2774_v32 = vpack.c.bf16 %v1952_v27, %v1951_v19  ;;  %v3574_v28 = vpop.permute.xlu1 %3573  ;;  %v3569_v22 = vpop.permute.xlu0 %3568 }
 0x1cb   : > { %v760_v5 = vmul.f32 %v742_v41, %v4011_v58  ;;  %v3576_v52 = vunpack.i.h.bf16 %v3574_v28  ;;  %v3575_v29 = vunpack.i.l.bf16 %v3574_v28  ;;  %v3571_v48 = vunpack.i.h.bf16 %v3569_v22 }
 0x1cc   : > { %v3570_v13 = vunpack.i.l.bf16 %v3569_v22  ;;  %v746_v18 = vpop.f32.mrb[2].mxu1  ;;  %2775 = vmatpush1.bf16.msra.mxu1 %v2774_v32 }
 0x1cd   : > { %v764_v16 = vadd.f32 %v760_v5, %v4027_v62  ;;  %v747_v4 = vadd.f32 %v4806_v1, %v746_v18  ;;  %v748_v26 = vpop.f32.mrb[3].mxu1  ;;  %v1868_v24 = vsel %vm433_vm2, %v3575_v29, %v3576_v52  ;;  %2776 = vmatprep.subr.bf16.mxu1 %v3731_v33 }
 0x1ce   : > { %v3584_v38 = vpop.permute.xlu1 %3583  ;;  %v3579_v6 = vpop.permute.xlu0 %3578  ;;  %v1867_v37 = vsel %vm433_vm2, %v3570_v13, %v3571_v48 }
 0x1cf   : > { %v768_v11 = vmax.f32 %v764_v16, 0.0  ;;  %v761_v23 = vmul.f32 %v747_v4, %v4019_v60  ;;  %v3586_v54 = vunpack.i.h.bf16 %v3584_v38  ;;  %v3585_v1 = vunpack.i.l.bf16 %v3584_v38 }
 0x1d0   : > { %v3581_v42 = vunpack.i.h.bf16 %v3579_v6  ;;  %v3580_v25 = vunpack.i.l.bf16 %v3579_v6  ;;  %v751_v45 = vpop.f32.mrb[4].mxu1  ;;  %v2749_v36 = vpack.c.bf16 %v1868_v24, %v1867_v37 }
 0x1d1   : > { %772 = vst [vmem:[%s4846_s14] sm:$0xff] %v768_v11  ;;  %v765_v44 = vadd.f32 %v761_v23, %v4025_v61  ;;  %v1782_v53 = vsel %vm347_vm3, %v3585_v1, %v3586_v54  ;;  %v752_v35 = vadd.f32 %v4815_v55, %v751_v45  ;;  %v753_v2 = vpop.f32.mrb[5].mxu1 }
 0x1d2   : > { %v1781_v7 = vsel %vm347_vm3, %v3580_v25, %v3581_v42  ;;  %2750 = vmatprep.subr.bf16.mxu0 %v2749_v36  ;;  %v3594_v43 = vpop.permute.xlu1 %3593  ;;  %v3589_v15 = vpop.permute.xlu0 %3588 }
 0x1d3   : > { %v769_v49 = vmax.f32 %v765_v44, 0.0  ;;  %v2751_v14 = vpack.c.bf16 %v1782_v53, %v1781_v7  ;;  %v762_v34 = vmul.f32 %v752_v35, %v4009_v57  ;;  %v3596_v27 = vunpack.i.h.bf16 %v3594_v43 }
 0x1d4   : > { %v3595_v19 = vunpack.i.l.bf16 %v3594_v43  ;;  %v3591_v41 = vunpack.i.h.bf16 %v3589_v15  ;;  %v3590_v40 = vunpack.i.l.bf16 %v3589_v15  ;;  %v756_v32 = vpop.f32.mrb[6].mxu1 }
 0x1d5   : > { %773 = vst [vmem:[%s4846_s14 + $0x8] sm:$0xff] %v769_v49  ;;  %v766_v28 = vadd.f32 %v762_v34, %v4035_v0  ;;  %v757_v55 = vadd.f32 %v4819_v30, %v756_v32  ;;  %2752 = vmatpush3.bf16.msra.mxu0 %v2751_v14  ;;  %v758_v22 = vpop.f32.mrb[7].mxu1 }
 0x1d6   : > { %v1989_v5 = vsel %vm562_vm6, %v3595_v19, %v3596_v27  ;;  %v1988_v52 = vsel %vm562_vm6, %v3590_v40, %v3591_v41  ;;  %v3604_v29 = vpop.permute.xlu1 %3603  ;;  %v3599_v48 = vpop.permute.xlu0 %3598 }
 0x1d7   : > { %v770_v13 = vmax.f32 %v766_v28, 0.0  ;;  %v2777_v18 = vpack.c.bf16 %v1989_v5, %v1988_v52  ;;  %v763_v16 = vmul.f32 %v757_v55, %v4017_v59  ;;  %v3606_v4 = vunpack.i.h.bf16 %v3604_v29 }
 0x1d8   : > { %v3605_v26 = vunpack.i.l.bf16 %v3604_v29  ;;  %v3601_v24 = vunpack.i.h.bf16 %v3599_v48  ;;  %v3600_v38 = vunpack.i.l.bf16 %v3599_v48 }
 0x1d9   : > { %774 = vst [vmem:[%s4846_s14 + $0x10] sm:$0xff] %v770_v13  ;;  %v767_v30 = vadd.f32 %v763_v16, %v4033_v63  ;;  %2778 = vmatpush1.bf16.msra.mxu1 %v2777_v18 }
 0x1da   : > { %v3614_v6 = vpop.permute.xlu1 %3613  ;;  %v3609_v37 = vpop.permute.xlu0 %3608  ;;  %v1904_v11 = vsel %vm476_vm4, %v3600_v38, %v3601_v24  ;;  %v1905_v23 = vsel %vm476_vm4, %v3605_v26, %v3606_v4  ;;  %2779 = vmatprep.subr.bf16.mxu1 %v3731_v33 }
 0x1db   : > { %v771_v54 = vmax.f32 %v767_v30, 0.0  ;;  %v3616_v1 = vunpack.i.h.bf16 %v3614_v6  ;;  %v3615_v42 = vunpack.i.l.bf16 %v3614_v6  ;;  %v3611_v25 = vunpack.i.h.bf16 %v3609_v37 }
 0x1dc   : > { %v3610_v45 = vunpack.i.l.bf16 %v3609_v37  ;;  %v2753_v36 = vpack.c.bf16 %v1905_v23, %v1904_v11 }
 0x1dd   : > { %775 = vst [vmem:[%s4846_s14 + $0x18] sm:$0x1] %v771_v54  ;;  %v1784_v44 = vsel %vm347_vm3, %v3615_v42, %v3616_v1 }
 0x1de   : > { %v1783_v53 = vsel %vm347_vm3, %v3610_v45, %v3611_v25  ;;  %2754 = vmatprep.subr.bf16.mxu0 %v2753_v36  ;;  %v3624_v35 = vpop.permute.xlu1 %3623  ;;  %v3619_v2 = vpop.permute.xlu0 %3618 }
 0x1df   : > { %v2755_v7 = vpack.c.bf16 %v1784_v44, %v1783_v53  ;;  %v3626_v43 = vunpack.i.h.bf16 %v3624_v35  ;;  %v3625_v15 = vunpack.i.l.bf16 %v3624_v35  ;;  %v3621_v49 = vunpack.i.h.bf16 %v3619_v2 }
 0x1e0   : > { %v3620_v14 = vunpack.i.l.bf16 %v3619_v2 }
 0x1e1   : > { %v1991_v34 = vsel %vm562_vm6, %v3625_v15, %v3626_v43  ;;  %2756 = vmatpush3.bf16.msra.mxu0 %v2755_v7 }
 0x1e2   : > { %v1990_v27 = vsel %vm562_vm6, %v3620_v14, %v3621_v49  ;;  %v3634_v19 = vpop.permute.xlu1 %3633  ;;  %v3629_v41 = vpop.permute.xlu0 %3628 }
 0x1e3   : > { %v2780_v40 = vpack.c.bf16 %v1991_v34, %v1990_v27  ;;  %v3636_v32 = vunpack.i.h.bf16 %v3634_v19  ;;  %v3635_v28 = vunpack.i.l.bf16 %v3634_v19  ;;  %v3631_v55 = vunpack.i.h.bf16 %v3629_v41 }
 0x1e4   : > { %v3630_v22 = vunpack.i.l.bf16 %v3629_v41 }
 0x1e5   : > { %2781 = vmatpush1.bf16.msra.mxu1 %v2780_v40  ;;  %v1907_v5 = vsel %vm476_vm4, %v3635_v28, %v3636_v32 }
 0x1e6   : > { %v3644_v52 = vpop.permute.xlu1 %3643  ;;  %v3639_v29 = vpop.permute.xlu0 %3638  ;;  %v1906_v48 = vsel %vm476_vm4, %v3630_v22, %v3631_v55  ;;  %2782 = vmatprep.subr.bf16.mxu1 %v3731_v33 }
 0x1e7   : > { %v3646_v13 = vunpack.i.h.bf16 %v3644_v52  ;;  %v3645_v18 = vunpack.i.l.bf16 %v3644_v52  ;;  %v3641_v16 = vunpack.i.h.bf16 %v3639_v29  ;;  %v3640_v4 = vunpack.i.l.bf16 %v3639_v29 }
 0x1e8   : > { %v2757_v26 = vpack.c.bf16 %v1907_v5, %v1906_v48 }
 0x1e9   : > { %v1821_v24 = vsel %vm390_vm1, %v3645_v18, %v3646_v13  ;;  %v1820_v38 = vsel %vm390_vm1, %v3640_v4, %v3641_v16 }
 0x1ea   : > { %v2759_v30 = vpack.c.bf16 %v1821_v24, %v1820_v38  ;;  %2758 = vmatprep.subr.bf16.mxu0 %v2757_v26  ;;  %v3654_v6 = vpop.permute.xlu1 %3653  ;;  %v3649_v37 = vpop.permute.xlu0 %3648 }
 0x1eb   : > { %v3656_v11 = vunpack.i.h.bf16 %v3654_v6  ;;  %v3655_v23 = vunpack.i.l.bf16 %v3654_v6  ;;  %v3651_v54 = vunpack.i.h.bf16 %v3649_v37  ;;  %v3650_v1 = vunpack.i.l.bf16 %v3649_v37 }
 0x1ec   : > { %2760 = vmatpush3.bf16.msra.mxu0 %v2759_v30 }
 0x1ed   : > { %v1993_v33 = vsel %vm562_vm6, %v3655_v23, %v3656_v11  ;;  %v1992_v42 = vsel %vm562_vm6, %v3650_v1, %v3651_v54 }
 0x1ee   : > { %v2783_v25 = vpack.c.bf16 %v1993_v33, %v1992_v42  ;;  %v1987_v45 = vpop.permute.xlu1 %1986  ;;  %v1985_v36 = vpop.permute.xlu0 %1984 }
 0x1ef   : > { %2067 = vmatmul.mubr.f32.vlgmr.msra.gmra.mrb[24].mxu0 %v4707_v20  ;;  %v1994_v44 = vsel %vm562_vm6, %v1985_v36, %v1987_v45 }
 0x1f0   : > { %2784 = vmatpush1.bf16.msra.mxu1 %v2783_v25  ;;  %2071 = vmatprep.mubr.f32.mxu0 %v4715_v46 }
 0x1f1   : > { %2119 = vmatprep.subr.mxu1 %v4956_v51 }
 0x1f3   : > { %2072 = vmatmul.mubr.f32.gmra.mrb[26].mxu0 %v4735_v47 }
 0x1f4   : > { %2120 = vmatpush1.msra.mxu1 %v1994_v44  ;;  %2076 = vmatprep.mubr.f32.mxu0 %v4741_v56 }
 0x1f5   : > { %2152 = vmatmul.mubr.f32.vlgmr.msra.gmra.mrb[24].mxu1 %v4721_v3 }
 0x1f6   : > { %2375 = vmatprep.mubr.msk.f32.mxu1 %vm577_vm0, %v4727_v9 }
 0x1f7   : > { %2077 = vmatmul.mubr.f32.gmra.mrb[28].mxu0 %v4762_v12 }
 0x1f8   : > { %2081 = vmatprep.mubr.f32.mxu0 %v4768_v50 }
 0x1f9   : > { %2157 = vmatmul.mubr.f32.gmra.mrb[26].mxu1 %v4749_v21 }
 0x1fa   : > { %2376 = vmatprep.mubr.msk.f32.mxu1 %vm577_vm0, %v4755_v8 }
 0x1fb   : > { %2082 = vmatmul.mubr.f32.gmra.mrb[30].mxu0 %v4794_v17  ;;  %v2461_v51 = vpop.f32.mrb[8].mxu0 }
 0x1fc   : > { %v2462_v20 = vpop.f32.mrb[9].mxu0 }
 0x1fd   : > { %2162 = vmatmul.mubr.f32.gmra.mrb[28].mxu1 %v4776_v10  ;;  %v2463_v46 = vadd.f32 %v2462_v20, %v2461_v51 }
 0x1fe   : > { %2377 = vmatprep.mubr.msk.f32.mxu1 %vm577_vm0, %v4787_v39 }
 0x1ff   : > { %v2464_v3 = vpop.f32.mrb[10].mxu0 }
 0x200   : > { %v2465_v9 = vpop.f32.mrb[11].mxu0 }
 0x201   : > { %2167 = vmatmul.mubr.f32.gmra.mrb[30].mxu1 %v4803_v31  ;;  %v2466_v47 = vadd.f32 %v2465_v9, %v2464_v3 }
 0x203   : > { %v2467_v56 = vpop.f32.mrb[12].mxu0 }
 0x204   : > { %v2468_v21 = vpop.f32.mrb[13].mxu0 }
 0x205   : > { %v2469_v12 = vadd.f32 %v2468_v21, %v2467_v56 }
 0x207   : > { %v2470_v8 = vpop.f32.mrb[14].mxu0 }
 0x208   : > { %v2471_v50 = vpop.f32.mrb[15].mxu0 }
 0x209   : > { %v2472_v17 = vadd.f32 %v2471_v50, %v2470_v8 }
 0x21c   : > { %v1211_v53 = vpop.f32.mrb[8].mxu1 }
 0x21d   : > { %v1212_v35 = vadd.f32 %v2463_v46, %v1211_v53  ;;  %v1213_v2 = vpop.f32.mrb[9].mxu1 }
 0x21f   : > { %v1230_v10 = vmul.f32 %v1212_v35, %v4011_v58 }
 0x220   : > { %v1216_v7 = vpop.f32.mrb[10].mxu1 }
 0x221   : > { %v1234_v39 = vadd.f32 %v1230_v10, %v4027_v62  ;;  %v1217_v43 = vadd.f32 %v2466_v47, %v1216_v7  ;;  %v1218_v15 = vpop.f32.mrb[11].mxu1 }
 0x223   : > { %v1238_v31 = vmax.f32 %v1234_v39, 0.0  ;;  %v1231_v49 = vmul.f32 %v1217_v43, %v4019_v60 }
 0x224   : > { %v1221_v14 = vpop.f32.mrb[12].mxu1 }
 0x225   : > { %2330 = vst [vmem:[%s4846_s14 + $0x20] sm:$0xff] %v1238_v31  ;;  %v1235_v34 = vadd.f32 %v1231_v49, %v4025_v61  ;;  %v1222_v27 = vadd.f32 %v2469_v12, %v1221_v14  ;;  %v1223_v19 = vpop.f32.mrb[13].mxu1 }
 0x227   : > { %v1239_v41 = vmax.f32 %v1235_v34, 0.0  ;;  %v1232_v40 = vmul.f32 %v1222_v27, %v4009_v57 }
 0x228   : > { %v1226_v32 = vpop.f32.mrb[14].mxu1 }
 0x229   : > { %2331 = vst [vmem:[%s4846_s14 + $0x28] sm:$0xff] %v1239_v41  ;;  %v1236_v28 = vadd.f32 %v1232_v40, %v4035_v0  ;;  %v1227_v55 = vadd.f32 %v2472_v17, %v1226_v32  ;;  %v1228_v22 = vpop.f32.mrb[15].mxu1 }
 0x22b   : > { %v1240_v5 = vmax.f32 %v1236_v28, 0.0  ;;  %v1233_v52 = vmul.f32 %v1227_v55, %v4017_v59 }
 0x22d   : > { %2332 = vst [vmem:[%s4846_s14 + $0x30] sm:$0xff] %v1240_v5  ;;  %v1237_v29 = vadd.f32 %v1233_v52, %v4033_v63 }
 0x22f   : > { %v1241_v48 = vmax.f32 %v1237_v29, 0.0 }
 0x231   : > { %2333 = vst [vmem:[%s4846_s14 + $0x38] sm:$0x1] %v1241_v48 }
 0x272   : > { %v2505_v13 = vpop.f32.mrb[16].mxu0 }
 0x273   : > { %v2506_v18 = vpop.f32.mrb[17].mxu0 }
 0x274   : > { %v2507_v16 = vadd.f32 %v2506_v18, %v2505_v13  ;;  %v1682_v4 = vpop.f32.mrb[16].mxu1 }
 0x275   : > { %v1684_v26 = vpop.f32.mrb[17].mxu1 }
 0x276   : > { %v1683_v24 = vadd.f32 %v2507_v16, %v1682_v4  ;;  %v2508_v38 = vpop.f32.mrb[18].mxu0 }
 0x277   : > { %v2509_v30 = vpop.f32.mrb[19].mxu0 }
 0x278   : > { %v1701_v6 = vmul.f32 %v1683_v24, %v4011_v58  ;;  %v2510_v37 = vadd.f32 %v2509_v30, %v2508_v38  ;;  %v1687_v11 = vpop.f32.mrb[18].mxu1 }
 0x279   : > { %v1689_v23 = vpop.f32.mrb[19].mxu1 }
 0x27a   : > { %v1705_v54 = vadd.f32 %v1701_v6, %v4027_v62  ;;  %v1688_v1 = vadd.f32 %v2510_v37, %v1687_v11  ;;  %v2511_v33 = vpop.f32.mrb[20].mxu0 }
 0x27b   : > { %v2512_v42 = vpop.f32.mrb[21].mxu0 }
 0x27c   : > { %v1709_v25 = vmax.f32 %v1705_v54, 0.0  ;;  %v1702_v45 = vmul.f32 %v1688_v1, %v4019_v60  ;;  %v2513_v36 = vadd.f32 %v2512_v42, %v2511_v33  ;;  %v1692_v44 = vpop.f32.mrb[20].mxu1 }
 0x27d   : > { %v1694_v51 = vpop.f32.mrb[21].mxu1 }
 0x27e   : > { %2354 = vst [vmem:[%s4846_s14 + $0x40] sm:$0xff] %v1709_v25  ;;  %v1706_v20 = vadd.f32 %v1702_v45, %v4025_v61  ;;  %v1693_v46 = vadd.f32 %v2513_v36, %v1692_v44  ;;  %v2514_v3 = vpop.f32.mrb[22].mxu0 }
 0x27f   : > { %v2515_v9 = vpop.f32.mrb[23].mxu0 }
 0x280   : > { %v1710_v47 = vmax.f32 %v1706_v20, 0.0  ;;  %v1703_v56 = vmul.f32 %v1693_v46, %v4009_v57  ;;  %v2516_v21 = vadd.f32 %v2515_v9, %v2514_v3  ;;  %v1697_v12 = vpop.f32.mrb[22].mxu1 }
 0x281   : > { %v1699_v8 = vpop.f32.mrb[23].mxu1 }
 0x282   : > { %2355 = vst [vmem:[%s4846_s14 + $0x48] sm:$0xff] %v1710_v47  ;;  %v1707_v50 = vadd.f32 %v1703_v56, %v4035_v0  ;;  %v1698_v17 = vadd.f32 %v2516_v21, %v1697_v12 }
 0x284   : > { %v1711_v53 = vmax.f32 %v1707_v50, 0.0  ;;  %v1704_v35 = vmul.f32 %v1698_v17, %v4017_v59 }
 0x286   : > { %2356 = vst [vmem:[%s4846_s14 + $0x50] sm:$0xff] %v1711_v53  ;;  %v1708_v2 = vadd.f32 %v1704_v35, %v4033_v63 }
 0x288   : > { %v1712_v10 = vmax.f32 %v1708_v2, 0.0 }
 0x28a   : > { %2357 = vst [vmem:[%s4846_s14 + $0x58] sm:$0x1] %v1712_v10 }
 0x2c2   : > { %v2549_v7 = vpop.f32.mrb[24].mxu0 }
 0x2c3   : > { %v2550_v39 = vpop.f32.mrb[25].mxu0 }
 0x2c4   : > { %v2551_v43 = vadd.f32 %v2550_v39, %v2549_v7 }
 0x2c6   : > { %v2552_v15 = vpop.f32.mrb[26].mxu0 }
 0x2c7   : > { %v2553_v31 = vpop.f32.mrb[27].mxu0 }
 0x2c8   : > { %v2153_v49 = vpop.f32.mrb[24].mxu1  ;;  %v2554_v14 = vadd.f32 %v2553_v31, %v2552_v15 }
 0x2c9   : > { %v2154_v34 = vadd.f32 %v2551_v43, %v2153_v49  ;;  %v2155_v27 = vpop.f32.mrb[25].mxu1 }
 0x2ca   : > { %v2555_v19 = vpop.f32.mrb[28].mxu0 }
 0x2cb   : > { %v2172_v41 = vmul.f32 %v2154_v34, %v4011_v58  ;;  %v2556_v40 = vpop.f32.mrb[29].mxu0 }
 0x2cc   : > { %v2158_v32 = vpop.f32.mrb[26].mxu1  ;;  %v2557_v28 = vadd.f32 %v2556_v40, %v2555_v19 }
 0x2cd   : > { %v2176_v55 = vadd.f32 %v2172_v41, %v4027_v62  ;;  %v2159_v22 = vadd.f32 %v2554_v14, %v2158_v32  ;;  %v2160_v5 = vpop.f32.mrb[27].mxu1 }
 0x2ce   : > { %v2558_v52 = vpop.f32.mrb[30].mxu0 }
 0x2cf   : > { %v2180_v29 = vmax.f32 %v2176_v55, 0.0  ;;  %v2173_v48 = vmul.f32 %v2159_v22, %v4019_v60  ;;  %v2559_v13 = vpop.f32.mrb[31].mxu0 }
 0x2d0   : > { %v2163_v18 = vpop.f32.mrb[28].mxu1  ;;  %v2560_v16 = vadd.f32 %v2559_v13, %v2558_v52 }
 0x2d1   : > { %2378 = vst [vmem:[%s4846_s14 + $0x60] sm:$0xff] %v2180_v29  ;;  %v2177_v58 = vadd.f32 %v2173_v48, %v4025_v61  ;;  %v2164_v4 = vadd.f32 %v2557_v28, %v2163_v18  ;;  %v2165_v26 = vpop.f32.mrb[29].mxu1 }
 0x2d3   : > { %v2181_v24 = vmax.f32 %v2177_v58, 0.0  ;;  %v2174_v62 = vmul.f32 %v2164_v4, %v4009_v57 }
 0x2d4   : > { %v2168_v38 = vpop.f32.mrb[30].mxu1 }
 0x2d5   : > { %2379 = vst [vmem:[%s4846_s14 + $0x68] sm:$0xff] %v2181_v24  ;;  %v2178_v30 = vadd.f32 %v2174_v62, %v4035_v0  ;;  %v2169_v6 = vadd.f32 %v2560_v16, %v2168_v38  ;;  %v2170_v37 = vpop.f32.mrb[31].mxu1 }
 0x2d7   : > { %v2182_v60 = vmax.f32 %v2178_v30, 0.0  ;;  %v2175_v11 = vmul.f32 %v2169_v6, %v4017_v59 }
 0x2d9   : > { %2380 = vst [vmem:[%s4846_s14 + $0x70] sm:$0xff] %v2182_v60  ;;  %v2179_v23 = vadd.f32 %v2175_v11, %v4033_v63 }
 0x2db   : > { %v2183_v54 = vmax.f32 %v2179_v23, 0.0 }
 0x2dd   : > { %2381 = vst [vmem:[%s4846_s14 + $0x78] sm:$0x1] %v2183_v54 }
 0x2de PF: > { %s14_s19 = sadd.s32 1, %s3723_s19   ;;  %s4957_s15 = smov %s3715_s17 }
 0x2df   : > { %p11_p7 = scmp.ge.s32.totalorder %s14_s19, 6   ;;  %s4958_s16 = smov %s3719_s18 }
 0x2e0   : > { %s4959_s17 = smov %s4962_s20  ;;  %s4960_s18 = smov %s4966_s21 }
 0x2e1   :  { %13 = sbr.rel (!%p11_p7) target bundleno = 3 (0x3), region = 73 }

// kernel: _lambda_.9
= control target key start
LH: loop header
LB: loop body
LE: loop exit
PB: predicated region body
PF: predicated region fallthrough
CT: control target
= control target key end

     0   :  { %s1095_s18 = smov 0   ;;  %s1097_s19 = smov 0   ;;  %s1212_s0 = inlined_call_operand.vmem [shape: f32[2,8,8,130], index: 0, kind: input, shape index: {}]   ;;  %s1213_s1 = inlined_call_operand.vmem [shape: f32[2,24], index: 1, kind: input, shape index: {}]   ;;  %s1214_s2 = inlined_call_operand.vmem [shape: f32[2,1], index: 2, kind: input, shape index: {}]   ;;  %s1215_s3 = inlined_call_operand.vmem [shape: f32[2,1], index: 3, kind: input, shape index: {}]   ;;  %s1216_s4 = inlined_call_operand.vmem [shape: f32[2,8,2,128], index: 4, kind: input, shape index: {}]   ;;  %s1217_s5 = inlined_call_operand.vmem [shape: f32[2,8,2,128], index: 5, kind: output, shape index: {}]  }
   0x1   :  { %s1099_s20 = smov 0   ;;  %s1101_s21 = smov 0  }
   0x2   :  { %s1103_s22 = smov 0  }
   0x3 LB: > { %s24_s23 = sadd.s32 1, %s1049_s20  ;;  %s27_s24 = sadd.s32 1, %s1053_s21  ;;  %s1057_s22 = sphi %s1103_s22, %s15_s22   ;;  %s1053_s21 = sphi %s1101_s21, %s1221_s21   ;;  %s1049_s20 = sphi %s1099_s20, %s1220_s20   ;;  %s1045_s19 = sphi %s1097_s19, %s1219_s19   ;;  %s1041_s18 = sphi %s1095_s18, %s1218_s18  }
   0x4   : > { %p25_p0 = scmp.ge.s32.totalorder %s24_s23, 2  ;;  %p829_p1 = scmp.ge.s32.totalorder %s1057_s22, 1 }
   0x5   : > { %p218_p2 = scmp.lt.s32.totalorder %s1057_s22, 5 }
   0x6   : > { %s1223_s23 = smov (%p25_p0, %s24_s23), 0  ;;  %s1225_s24 = smov (!%p25_p0, %s27_s24), %s1053_s21 }
   0x7   : > { %p219_p3 = pnand %p829_p1, %p218_p2  ;;  %p29_p4 = scmp.ge.s32.totalorder %s1225_s24, 2 }
   0x8   : > { %p259_p5 = scmp.lt.s32.totalorder (!%p219_p3), %s1045_s19, 1  ;;  %v1059_v0 = vmov (!%p219_p3), 0.0|0.0   ;;  %s867_s25 = sshll.u32 (!%p219_p3), %s1041_s18, 6  ;;  %vm1062_vm0 = vmmov (!%p219_p3), 0   ;;  %v1063_v7 = vmov (!%p219_p3), 0.0   ;;  %v1064_v14 = vmov (!%p219_p3), 0  }
   0x9   : > { %s1227_s24 = smov (%p29_p4, %s1225_s24), 0  ;;  %222 = sbr.rel (%p219_p3) target bundleno = 409 (0x199), region = 40 }
   0xa   : > { %923 = vmatprep.subr.bf16.mxu0 (!%p219_p3), %v1059_v0  ;;  %926 = vmatprep.subr.bf16.mxu1 (!%p219_p3), %v1059_v0  ;;  %s1060_s6 = smov (!%p219_p3), 126   ;;  %s1061_s7 = smov (!%p219_p3), 127   ;;  %v291_v15 = vld [vmem:[%s1215_s3] sm:$0x3] (!%p219_p3)  ;;  %vm309_vm1 = vcmask (!%p219_p3), 1039360   ;;  %vm316_vm2 = vcmask (!%p219_p3), 1031168  }
   0xb   : > { %893 = vmatprep.mubr.msk.f32.mxu0 (!%p219_p3), %vm1062_vm0, %v1063_v7  ;;  %902 = vmatprep.mubr.msk.f32.mxu1 (!%p219_p3), %vm1062_vm0, %v1063_v7  ;;  %v285_v16 = vld [vmem:[%s1214_s2] sm:$0x3] (!%p219_p3)  ;;  %vm319_vm3 = vcmask (!%p219_p3), 195584   ;;  %s832_s14 = sshll.u32 (!%p219_p3), %s1041_s18, 2 }
   0xc   : > { %1001 = vset.pattern.permute.xlu0 (!%p219_p3), %v1064_v14  ;;  %1002 = vset.pattern.permute.xlu1 (!%p219_p3), %v1064_v14  ;;  %v284_v31 = vld [vmem:[%s1213_s1] sm:$0x3] (!%p219_p3)  ;;  %p267_p6 = scmp.lt.s32.totalorder (!%p219_p3), %s832_s14, 7 }
  0x10   : > { %s1229_s19 = smov (!%p259_p5, %s1045_s19), 1  ;;  %s1231_s14 = smov (!%p267_p6, %s832_s14), 7 }
  0x11   : > { %s865_s26 = sshll.u32 %s1229_s19, 7  ;;  %s833_s15 = sshll.u32 %s1229_s19, 3 }
  0x12   : > { %s263_s29 = scalar_lea.vmem %s1212_s0, %s865_s26  ;;  %s270_s16 = sadd.s32 %s833_s15, %s1231_s14 }
  0x13   : > { %s300_s30 = scalar_lea.vmem %s263_s29, %s867_s25  ;;  %s834_s17 = sshll.u32 %s270_s16, 1 }
  0x14   : > { %v301_v1 = vld [vmem:[%s300_s30] sm:$0xff]  ;;  %v302_v2 = vld [vmem:[%s300_s30 + $0x8] sm:$0xff]  ;;  %v844_v3 = vld [vmem:[%s300_s30 + $0x10] sm:$0xff]  ;;  %s272_s26 = scalar_lea.vmem %s1216_s4, %s834_s17  ;;  %s282_s28 = scalar_lea.vmem %s1217_s5, %s834_s17 }
  0x15   : > { %312 = vrot.lane.b32.xlu1 %v301_v1, %s1060_s6  ;;  %v981_v4 = vpack.i.bf16 %v302_v2, %v301_v1  ;;  %v845_v5 = vld [vmem:[%s300_s30 + $0x18] sm:$0xff]  ;;  %v1140_v8 = vld [vmem:[%s300_s30 + $0x30] sm:$0xff]  ;;  %v1144_v10 = vld [vmem:[%s300_s30 + $0x20] sm:$0xff] }
  0x16   : > { %v986_v6 = vpack.i.bf16 %v845_v5, %v844_v3  ;;  %v859_v9 = vld [vmem:[%s300_s30 + $0x38] sm:$0xff]  ;;  %v852_v11 = vld [vmem:[%s300_s30 + $0x28] sm:$0xff] }
  0x17   : > { %982 = vrot.lane.b32.xlu0 %v981_v4, %s1061_s7  ;;  %v996_v12 = vpack.i.bf16 %v859_v9, %v1140_v8  ;;  %v991_v13 = vpack.i.bf16 %v852_v11, %v1144_v10 }
  0x19   : > { %314 = vrot.lane.b32.xlu1 %v302_v2, %s1060_s6 }
  0x1b   : > { %987 = vrot.lane.b32.xlu0 %v986_v6, %s1061_s7 }
  0x1d   : > { %419 = vrot.lane.b32.xlu1 %v845_v5, %s1060_s6 }
  0x1f   : > { %417 = vrot.lane.b32.xlu0 %v844_v3, %s1060_s6 }
  0x21   : > { %997 = vrot.lane.b32.xlu1 %v996_v12, %s1061_s7 }
  0x23   : > { %992 = vrot.lane.b32.xlu0 %v991_v13, %s1061_s7 }
  0x25   : > { %521 = vrot.lane.b32.xlu1 %v852_v11, %s1060_s6 }
  0x27   : > { %519 = vrot.lane.b32.xlu0 %v1144_v10, %s1060_s6 }
  0x29   : > { %623 = vrot.lane.b32.xlu1 %v859_v9, %s1060_s6 }
  0x2b   : > { %621 = vrot.lane.b32.xlu0 %v1140_v8, %s1060_s6 }
  0x2d   : > { %294 = vperm.xlu1 %1002, %v291_v15  }
  0x2f   : > { %288 = vperm.xlu0 %1001, %v285_v16   ;;  %v400_v16 = vld [vmem:[%s272_s26] sm:$0x3] }
  0x87   : > { %v313_v17 = vpop.permute.xlu1 %312 }
  0x89   : > { %v983_v18 = vpop.permute.xlu0 %982 }
  0x8a   : > { %v985_v19 = vunpack.i.h.bf16 %v983_v18  ;;  %v984_v20 = vunpack.i.l.bf16 %v983_v18 }
  0x8b   : > { %v315_v21 = vpop.permute.xlu1 %314 }
  0x8c   : > { %v310_v22 = vsel %vm309_vm1, %v984_v20, %v985_v19  ;;  %v317_v32 = vsel %vm316_vm2, %v313_v17, %v315_v21 }
  0x8d   : > { %v988_v23 = vpop.permute.xlu0 %987  ;;  %v924_v24 = vpack.c.bf16 %v310_v22, %v301_v1  ;;  %v847_v22 = vld [vmem:[%s272_s26 + $0x2] sm:$0x3] }
  0x8e   : > { %v990_v25 = vunpack.i.h.bf16 %v988_v23  ;;  %v989_v26 = vunpack.i.l.bf16 %v988_v23 }
  0x8f   : > { %925 = vmatpush3.bf16.msra.mxu0 %v924_v24  ;;  %v420_v27 = vpop.permute.xlu1 %419 }
  0x90   : > { %891 = vmatprep.subr.mxu0 %v1063_v7  ;;  %v415_v28 = vsel %vm309_vm1, %v989_v26, %v990_v25  ;;  %v854_v26 = vld [vmem:[%s272_s26 + $0x4] sm:$0x3] }
  0x91   : > { %v418_v29 = vpop.permute.xlu0 %417  ;;  %v927_v30 = vpack.c.bf16 %v415_v28, %v844_v3  ;;  %v861_v28 = vld [vmem:[%s272_s26 + $0x6] sm:$0x3] }
  0x92   : > { %v421_v40 = vsel %vm316_vm2, %v418_v29, %v420_v27 }
  0x93   : > { %892 = vmatpush3.msra.mxu0 %v317_v32  ;;  %928 = vmatpush3.bf16.msra.mxu1 %v927_v30  ;;  %v998_v33 = vpop.permute.xlu1 %997 }
  0x94   : > { %v1000_v34 = vunpack.i.h.bf16 %v998_v33  ;;  %v999_v35 = vunpack.i.l.bf16 %v998_v33  ;;  %900 = vmatprep.subr.mxu1 %v1063_v7  ;;  %894 = vmatmul.mubr.msk.f32.vlgmr.msra.gmra.mrb[0].mxu0 %vm319_vm3, %v284_v31 }
  0x95   : > { %v993_v36 = vpop.permute.xlu0 %992  ;;  %929 = vmatprep.subr.bf16.mxu0 %v1059_v0  ;;  %911 = vmatprep.mubr.msk.f32.mxu0 %vm1062_vm0, %v1063_v7 }
  0x96   : > { %v619_v37 = vsel %vm309_vm1, %v999_v35, %v1000_v34  ;;  %v995_v38 = vunpack.i.h.bf16 %v993_v36  ;;  %v994_v39 = vunpack.i.l.bf16 %v993_v36 }
  0x97   : > { %v933_v41 = vpack.c.bf16 %v619_v37, %v1140_v8  ;;  %901 = vmatpush3.msra.mxu1 %v421_v40  ;;  %v522_v42 = vpop.permute.xlu1 %521 }
  0x98   : > { %v517_v43 = vsel %vm309_vm1, %v994_v39, %v995_v38  ;;  %903 = vmatmul.mubr.msk.f32.vlgmr.msra.gmra.mrb[0].mxu1 %vm319_vm3, %v284_v31  ;;  %932 = vmatprep.subr.bf16.mxu1 %v1059_v0 }
  0x99   : > { %v930_v44 = vpack.c.bf16 %v517_v43, %v1144_v10  ;;  %v520_v45 = vpop.permute.xlu0 %519  ;;  %934 = vmatpush3.bf16.msra.mxu1 %v933_v41  ;;  %920 = vmatprep.mubr.msk.f32.mxu1 %vm1062_vm0, %v1063_v7 }
  0x9a   : > { %918 = vmatprep.subr.mxu1 %v1063_v7  ;;  %v523_v48 = vsel %vm316_vm2, %v520_v45, %v522_v42 }
  0x9b   : > { %931 = vmatpush3.bf16.msra.mxu0 %v930_v44  ;;  %v624_v46 = vpop.permute.xlu1 %623 }
  0x9c   : > { %909 = vmatprep.subr.mxu0 %v1063_v7 }
  0x9d   : > { %v622_v47 = vpop.permute.xlu0 %621 }
  0x9e   : > { %v625_v49 = vsel %vm316_vm2, %v622_v47, %v624_v46 }
  0x9f   : > { %910 = vmatpush3.msra.mxu0 %v523_v48  ;;  %919 = vmatpush3.msra.mxu1 %v625_v49 }
  0xa0   : > { %912 = vmatmul.mubr.msk.f32.vlgmr.msra.gmra.mrb[2].mxu0 %vm319_vm3, %v284_v31  ;;  %921 = vmatmul.mubr.msk.f32.vlgmr.msra.gmra.mrb[2].mxu1 %vm319_vm3, %v284_v31 }
  0xac   : > { %v295_v52 = vpop.permute.xlu1 %294 }
  0xae   : > { %v289_v50 = vpop.permute.xlu0 %288 }
 0x167   : > { %v389_v51 = vpop.f32.mrb[0].mxu0 }
 0x168   : > { %v393_v53 = vmul.f32 %v389_v51, %v289_v50  ;;  %v895_v54 = vpop.f32.mrb[1].mxu0 }
 0x16a   : > { %v394_v55 = vadd.f32 %v393_v53, %v295_v52 }
 0x16b   : > { %v489_v56 = vpop.f32.mrb[0].mxu1 }
 0x16c   : > { %v493_v57 = vmul.f32 %v489_v56, %v289_v50  ;;  %v904_v58 = vpop.f32.mrb[1].mxu1  ;;  %v395_v59 = vsub.f32 0.0, %v394_v55 }
 0x16e   : > { %v396_v60 = vmul.f32 1.442695, %v395_v59  ;;  %v494_v61 = vadd.f32 %v493_v57, %v295_v52 }
 0x170   : > { %1003 = vpow2.f32 %v396_v60  ;;  %v495_v62 = vsub.f32 0.0, %v494_v61 }
 0x172   : > { %v496_v63 = vmul.f32 1.442695, %v495_v62 }
 0x173   : > { %v591_v0 = vpop.f32.mrb[2].mxu0  ;;  %v693_v1 = vpop.f32.mrb[2].mxu1 }
 0x174   : > { %1005 = vpow2.f32 %v496_v63  ;;  %v595_v2 = vmul.f32 %v591_v0, %v289_v50  ;;  %v697_v3 = vmul.f32 %v693_v1, %v289_v50  ;;  %v913_v4 = vpop.f32.mrb[3].mxu0  ;;  %v922_v5 = vpop.f32.mrb[3].mxu1 }
 0x176   : > { %v596_v6 = vadd.f32 %v595_v2, %v295_v52  ;;  %v698_v7 = vadd.f32 %v697_v3, %v295_v52 }
 0x178   : > { %v597_v8 = vsub.f32 0.0, %v596_v6  ;;  %v699_v9 = vsub.f32 0.0, %v698_v7 }
 0x17a   : > { %v1004_v10 = vpop.eup %1003  ;;  %v598_v11 = vmul.f32 1.442695, %v597_v8  ;;  %v700_v12 = vmul.f32 1.442695, %v699_v9 }
 0x17b   : > { %v398_v13 = vadd.f32 1.0, %v1004_v10 }
 0x17c   : > { %1007 = vpow2.f32 %v598_v11 }
 0x17d   : > { %1009 = vrcp.f32 %v398_v13 }
 0x17e   : > { %v1006_v14 = vpop.eup %1005  ;;  %1011 = vpow2.f32 %v700_v12 }
 0x17f   : > { %v498_v15 = vadd.f32 1.0, %v1006_v14 }
 0x181   : > { %1013 = vrcp.f32 %v498_v15 }
 0x186   : > { %v1008_v17 = vpop.eup %1007 }
 0x187   : > { %v1010_v18 = vpop.eup %1009  ;;  %v600_v19 = vadd.f32 1.0, %v1008_v17 }
 0x188   : > { %v1012_v20 = vpop.eup %1011  ;;  %v401_v21 = vmul.f32 %v1010_v18, %v400_v16 }
 0x189   : > { %1015 = vrcp.f32 %v600_v19  ;;  %v702_v23 = vadd.f32 1.0, %v1012_v20 }
 0x18a   : > { %402 = vst [vmem:[%s282_s28] sm:$0x3] %v401_v21 }
 0x18b   : > { %v1014_v24 = vpop.eup %1013  ;;  %1017 = vrcp.f32 %v702_v23 }
 0x18c   : > { %v502_v25 = vmul.f32 %v1014_v24, %v847_v22 }
 0x18e   : > { %848 = vst [vmem:[%s282_s28 + $0x2] sm:$0x3] %v502_v25 }
 0x193   : > { %v1016_v27 = vpop.eup %1015 }
 0x194   : > { %v604_v29 = vmul.f32 %v1016_v27, %v854_v26 }
 0x195   : > { %v1018_v30 = vpop.eup %1017 }
 0x196   : > { %855 = vst [vmem:[%s282_s28 + $0x4] sm:$0x3] %v604_v29  ;;  %v706_v31 = vmul.f32 %v1018_v30, %v861_v28 }
 0x198   : > { %862 = vst [vmem:[%s282_s28 + $0x6] sm:$0x3] %v706_v31 }
 0x199 PF: > { %s15_s22 = sadd.s32 1, %s1057_s22   ;;  %s1218_s18 = smov %s1049_s20 }
 0x19a   : > { %p12_p7 = scmp.ge.s32.totalorder %s15_s22, 6   ;;  %s1219_s19 = smov %s1053_s21 }
 0x19b   : > { %s1220_s20 = smov %s1223_s23  ;;  %s1221_s21 = smov %s1227_s24 }
 0x19c   :  { %14 = sbr.rel (!%p12_p7) target bundleno = 3 (0x3), region = 83 }

</bundles_post_ra>
